<compile_context>
chip_gen: v7x
topology: tpu7x:2x2x1
jax: 0.10.0
libtpu: 0.0.40
codegen_flags: <defaults>
</compile_context>

<pallas_src>
import functools
import math

import jax
import jax.numpy as jnp
from jax.experimental import pallas as pl
from jax.experimental.pallas import tpu as pltpu

# ----------------------------- model constants ------------------------------
C_FEAT = 32          # backbone / RPN channel width
NUM_ANCHORS = 3      # anchors per feature-map location
NUM_CLASSES = 5      # including background (index 0)
POOL = 7             # RoI pool output size
NUM_PROPOSALS = 8    # proposals kept per image
RPN_N = NUM_ANCHORS + 4 * NUM_ANCHORS   # 15 real RPN head outputs per location
RPN_N_PAD = 16                          # padded to 16 for layout-clean stores
BBOX_XFORM_CLIP = math.log(1000.0 / 16.0)

_VMEM_LIMIT = 32 * 1024 * 1024


def _pick_tile_m(M, target=256):
    """Largest M-tile <= target that divides M, stepped by 16 (bf16 sublane packing).
    target<=256 keeps the stem matmul grid at >=2 steps so v7x can shard it
    across both TensorCores (neutral on single-TC v5e/v6e)."""
    if M <= target:
        return M
    for tm in range(target - (target % 16), 15, -16):
        if M % tm == 0:
            return tm
    return M


# ----------------------------- fused matmul kernel ---------------------------
def _matmul_bias_kernel(x_ref, w_ref, b_ref, o_ref, *, relu):
    acc = jnp.dot(x_ref[...], w_ref[...], preferred_element_type=jnp.float32)
    acc = acc + b_ref[...]
    if relu:
        acc = jnp.maximum(acc, 0.0)
    o_ref[...] = acc.astype(o_ref.dtype)


def matmul_bias(x, w, b, *, relu=False, out_dtype=jnp.float32, tile_m=256):
    """(M,K) @ (K,N) + bias (+ReLU). bf16 operands, f32 accumulate, tiled/parallel M."""
    M, K = x.shape
    N = w.shape[1]
    tm = _pick_tile_m(M, tile_m)
    return pl.pallas_call(
        functools.partial(_matmul_bias_kernel, relu=relu),
        out_shape=jax.ShapeDtypeStruct((M, N), out_dtype),
        grid=(M // tm,),
        in_specs=[
            pl.BlockSpec((tm, K), lambda i: (i, 0)),
            pl.BlockSpec((K, N), lambda i: (0, 0)),
            pl.BlockSpec((1, N), lambda i: (0, 0)),
        ],
        out_specs=pl.BlockSpec((tm, N), lambda i: (i, 0)),
        compiler_params=pltpu.CompilerParams(
            dimension_semantics=("parallel",),
            vmem_limit_bytes=_VMEM_LIMIT),
    )(x, w, b)


# ---------------- fused residual block + RPN conv/head kernel -----------------
def _backbone_rpn_kernel(x_ref, mask_ref, w1_ref, b1_ref, w2_ref, b2_ref,
                         w3_ref, b3_ref, hw_ref, hb_ref,
                         feat_ref, head_ref, pad1_ref, pad2_ref,
                         *, Wp, Mw, S):
    """Per image: r1 = relu(conv(f)); feat = relu(conv(r1) + f);
    hidden = relu(conv(feat)); head = hidden @ Wh + bh.

    Each 3x3 conv is ONE K=9*Cin MXU matmul: the 9 taps are row-offset slices
    of a flattened padded slab, concatenated along channels.  The padded
    intermediates (r1, feat) live in VMEM scratch slabs; the wide (Ho, Wp)
    result is written at sublane-aligned offset S, its 2 wrap-around junk
    columns are zeroed via `mask` so they act as the conv's left/right padding.
    """
    C = w1_ref.shape[1]
    rows_s = pad1_ref.shape[0]
    tail = rows_s - S - Mw

    def taps(src_ref, base):
        parts = [src_ref[pl.ds(base + i * Wp + j, Mw), :]
                 for i in range(3) for j in range(3)]
        return jnp.concatenate(parts, axis=-1)            # (Mw, 9*C) bf16

    def place_padded(dst_ref, val_bf16):
        # top border rows, wide payload, bottom border rows (junk cols already 0)
        dst_ref[pl.ds(0, S), :] = jnp.zeros((S, C), jnp.bfloat16)
        dst_ref[pl.ds(S, Mw), :] = val_bf16
        dst_ref[pl.ds(S + Mw, tail), :] = jnp.zeros((tail, C), jnp.bfloat16)

    mask = mask_ref[...]                                  # (Mw, 1) f32, 0 on junk cols
    base = S - Wp - 1                                     # tap base inside the scratch slabs

    # --- residual block conv 1: r1 = relu(conv3x3(f)) ---
    a1 = jnp.dot(taps(x_ref, 0), w1_ref[...], preferred_element_type=jnp.float32)
    r1 = jnp.maximum(a1 + b1_ref[...], 0.0) * mask
    place_padded(pad1_ref, r1.astype(jnp.bfloat16))

    # --- residual block conv 2 + skip + ReLU (residual read straight from padded f) ---
    a2 = jnp.dot(taps(pad1_ref, base), w2_ref[...], preferred_element_type=jnp.float32)
    res = x_ref[pl.ds(Wp + 1, Mw), :].astype(jnp.float32)
    feat = jnp.maximum(a2 + b2_ref[...] + res, 0.0) * mask
    feat_bf = feat.astype(jnp.bfloat16)
    feat_ref[...] = feat_bf
    place_padded(pad2_ref, feat_bf)

    # --- RPN shared 3x3 conv (ReLU) + fused 1x1 head ---
    a3 = jnp.dot(taps(pad2_ref, base), w3_ref[...], preferred_element_type=jnp.float32)
    hidden = jnp.maximum(a3 + b3_ref[...], 0.0).astype(jnp.bfloat16)
    head = jnp.dot(hidden, hw_ref[...], preferred_element_type=jnp.float32) + hb_ref[...]
    head_ref[...] = head


def backbone_rpn(f, params):
    """One fused pallas_call: residual block + RPN conv + RPN head, grid over batch."""
    B, Hf, Wf, C = f.shape
    Wp = Wf + 2
    Mw = Hf * Wp                                  # wide output rows per image
    rows_in = (Hf + 3) * Wp                       # host pad H by (1,2): slack folded in
    S = ((Wp + 1 + 15) // 16) * 16                # aligned placement offset (>= Wp+1)
    rows_s = ((S + Mw + Wp + 1 + 7) // 8) * 8     # scratch rows (covers deepest tap read)

    xw = jnp.pad(f.astype(jnp.bfloat16),
                 ((0, 0), (1, 2), (1, 1), (0, 0))).reshape(B, rows_in, C)

    # mask that zeroes the 2 wrap-around junk columns of the wide output grid
    col = (jnp.arange(Mw, dtype=jnp.int32) + 1) % Wp
    mask = ((col != 0) & (col != Wp - 1)).astype(jnp.float32)[:, None]    # (Mw, 1)

    feat, head = pl.pallas_call(
        functools.partial(_backbone_rpn_kernel, Wp=Wp, Mw=Mw, S=S),
        out_shape=(jax.ShapeDtypeStruct((B, Mw, C), jnp.bfloat16),
                   jax.ShapeDtypeStruct((B, Mw, RPN_N_PAD), jnp.float32)),
        grid=(B,),
        in_specs=[
            pl.BlockSpec((None, rows_in, C), lambda b: (b, 0, 0)),   # padded stem output f
            pl.BlockSpec((Mw, 1), lambda b: (0, 0)),                  # junk-column mask
            pl.BlockSpec((9 * C, C), lambda b: (0, 0)),               # res conv1 weight
            pl.BlockSpec((1, C), lambda b: (0, 0)),
            pl.BlockSpec((9 * C, C), lambda b: (0, 0)),               # res conv2 weight
            pl.BlockSpec((1, C), lambda b: (0, 0)),
            pl.BlockSpec((9 * C, C), lambda b: (0, 0)),               # rpn conv weight
            pl.BlockSpec((1, C), lambda b: (0, 0)),
            pl.BlockSpec((C, RPN_N_PAD), lambda b: (0, 0)),           # rpn 1x1 head weight
            pl.BlockSpec((1, RPN_N_PAD), lambda b: (0, 0)),
        ],
        out_specs=(pl.BlockSpec((None, Mw, C), lambda b: (b, 0, 0)),
                   pl.BlockSpec((None, Mw, RPN_N_PAD), lambda b: (b, 0, 0))),
        scratch_shapes=[pltpu.VMEM((rows_s, C), jnp.bfloat16),
                        pltpu.VMEM((rows_s, C), jnp.bfloat16)],
        compiler_params=pltpu.CompilerParams(
            dimension_semantics=("parallel",),
            vmem_limit_bytes=_VMEM_LIMIT),
    )(xw, mask, params["res_w1"], params["res_b1"],
      params["res_w2"], params["res_b2"],
      params["rpn_conv_w"], params["rpn_conv_b"],
      params["rpn_head_w"], params["rpn_head_b"])

    feat = feat.reshape(B, Hf, Wp, C)[:, :, :Wf, :]
    head = head.reshape(B, Hf, Wp, RPN_N_PAD)[:, :, :Wf, :RPN_N]
    return feat, head


# ---------------------- fused RoI head (fc1 + cls/box) ------------------------
def _roi_mlp_kernel(x_ref, w1_ref, b1_ref, w2_ref, b2_ref, o_ref):
    h = jnp.dot(x_ref[...], w1_ref[...], preferred_element_type=jnp.float32) + b1_ref[...]
    h = jnp.maximum(h, 0.0).astype(jnp.bfloat16)
    o_ref[...] = jnp.dot(h, w2_ref[...], preferred_element_type=jnp.float32) + b2_ref[...]


def roi_mlp(pooled, w1, b1, w2, b2):
    # M = B*R is tiny: this call is launch-overhead dominated by design (per review).
    M, K = pooled.shape
    Nh = w1.shape[1]
    N2 = w2.shape[1]
    return pl.pallas_call(
        _roi_mlp_kernel,
        out_shape=jax.ShapeDtypeStruct((M, N2), jnp.float32),
        grid=(1,),
        in_specs=[pl.BlockSpec((M, K), lambda i: (0, 0)),
                  pl.BlockSpec((K, Nh), lambda i: (0, 0)),
                  pl.BlockSpec((1, Nh), lambda i: (0, 0)),
                  pl.BlockSpec((Nh, N2), lambda i: (0, 0)),
                  pl.BlockSpec((1, N2), lambda i: (0, 0))],
        out_specs=pl.BlockSpec((M, N2), lambda i: (0, 0)),
        compiler_params=pltpu.CompilerParams(
            dimension_semantics=("arbitrary",),
            vmem_limit_bytes=_VMEM_LIMIT),
    )(pooled, w1, b1, w2, b2)


# --------------------------------- glue ops -----------------------------------
def _im2col_s2(images_f32):
    """3x3 / stride-2 / pad-1 patches of the 3-channel input; K padded 27 -> 32."""
    B, H, W, Cin = images_f32.shape
    xp = jnp.pad(images_f32, ((0, 0), (1, 1), (1, 1), (0, 0)))
    Ho = (H + 2 - 3) // 2 + 1
    Wo = (W + 2 - 3) // 2 + 1
    cols = [xp[:, i:i + 2 * Ho:2, j:j + 2 * Wo:2, :]
            for i in range(3) for j in range(3)]
    patches = jnp.concatenate(cols, axis=-1).reshape(B * Ho * Wo, 9 * Cin)
    patches = jnp.pad(patches, ((0, 0), (0, 32 - 9 * Cin)))     # K: 27 -> 32
    return patches.astype(jnp.bfloat16), Ho, Wo


def make_anchors(hf, wf, stride, sizes=(4.0, 8.0, 16.0)):
    ys = (jnp.arange(hf, dtype=jnp.float32) + 0.5) * stride
    xs = (jnp.arange(wf, dtype=jnp.float32) + 0.5) * stride
    cy, cx = jnp.meshgrid(ys, xs, indexing="ij")
    centers = jnp.stack([cx, cy], axis=-1).reshape(-1, 1, 2)          # (L, 1, 2)
    half = jnp.asarray(sizes, jnp.float32)[None, :, None] / 2.0       # (1, A, 1)
    x1y1 = centers - half
    x2y2 = centers + half
    return jnp.concatenate([x1y1, x2y2], axis=-1).reshape(-1, 4)      # (L*A, 4)


def decode_boxes(anchors, deltas):
    wa = anchors[..., 2] - anchors[..., 0]
    ha = anchors[..., 3] - anchors[..., 1]
    cxa = anchors[..., 0] + 0.5 * wa
    cya = anchors[..., 1] + 0.5 * ha
    dx, dy = deltas[..., 0], deltas[..., 1]
    dw = jnp.minimum(deltas[..., 2], BBOX_XFORM_CLIP)   # torchvision-style clamp
    dh = jnp.minimum(deltas[..., 3], BBOX_XFORM_CLIP)
    cx = cxa + dx * wa
    cy = cya + dy * ha
    w = wa * jnp.exp(dw)
    h = ha * jnp.exp(dh)
    return jnp.stack([cx - 0.5 * w, cy - 0.5 * h, cx + 0.5 * w, cy + 0.5 * h], axis=-1)


def _proposals_one(logits_b, deltas_b, anchors, size_b):
    # sigmoid dropped before top_k: monotonic, selection-only.
    _, top_i = jax.lax.top_k(logits_b, NUM_PROPOSALS)
    props = decode_boxes(anchors[top_i], deltas_b[top_i])
    h, w = size_b[0], size_b[1]
    return jnp.stack([jnp.clip(props[:, 0], 0.0, w),
                      jnp.clip(props[:, 1], 0.0, h),
                      jnp.clip(props[:, 2], 0.0, w),
                      jnp.clip(props[:, 3], 0.0, h)], axis=-1)


def roi_pool_nearest(feat, rois, img_h, img_w, out_size=POOL):
    """Nearest-neighbor RoI pooling for one image. feat: (H, W, C), rois: (R, 4)."""
    H, W, _ = feat.shape
    sy = H / img_h
    sx = W / img_w

    def one(roi):
        x1, y1, x2, y2 = roi[0], roi[1], roi[2], roi[3]
        xs = x1 + (jnp.arange(out_size, dtype=jnp.float32) + 0.5) / out_size * (x2 - x1)
        ys = y1 + (jnp.arange(out_size, dtype=jnp.float32) + 0.5) / out_size * (y2 - y1)
        xi = jnp.clip(jnp.floor(xs * sx).astype(jnp.int32), 0, W - 1)
        yi = jnp.clip(jnp.floor(ys * sy).astype(jnp.int32), 0, H - 1)
        return feat[yi[:, None], xi[None, :], :]                       # (P, P, C)

    return jax.vmap(one)(rois)


# --------------------------------- parameters ---------------------------------
def init_params(key):
    """Weights pre-reshaped / pre-cast (bf16) once; 3x3 convs stored (9*Cin, Cout)
    so every conv is a single K=288 MXU matmul; RPN head padded N 15->16;
    cls/box heads concatenated along N."""
    ks = jax.random.split(key, 8)

    def w(k, shape, scale=0.05):
        return scale * jax.random.normal(k, shape, jnp.float32)

    A, C, NC = NUM_ANCHORS, C_FEAT, NUM_CLASSES
    bf = jnp.bfloat16
    return {
        "conv1_w": jnp.pad(w(ks[0], (27, C)), ((0, 5), (0, 0))).astype(bf),   # K padded 27->32
        "conv1_b": jnp.zeros((1, C), jnp.float32),
        "res_w1": w(ks[1], (9 * C, C)).astype(bf),
        "res_b1": jnp.zeros((1, C), jnp.float32),
        "res_w2": w(ks[2], (9 * C, C)).astype(bf),
        "res_b2": jnp.zeros((1, C), jnp.float32),
        "rpn_conv_w": w(ks[3], (9 * C, C)).astype(bf),
        "rpn_conv_b": jnp.zeros((1, C), jnp.float32),
        "rpn_head_w": jnp.pad(w(ks[4], (C, RPN_N)),
                              ((0, 0), (0, RPN_N_PAD - RPN_N))).astype(bf),
        "rpn_head_b": jnp.zeros((1, RPN_N_PAD), jnp.float32),
        "roi_fc1_w": w(ks[5], (POOL * POOL * C, 64)).astype(bf),
        "roi_fc1_b": jnp.zeros((1, 64), jnp.float32),
        "roi_head_w": jnp.concatenate(
            [w(ks[6], (64, NC)), w(ks[7], (64, 4 * NC))], axis=1).astype(bf),
        "roi_head_b": jnp.zeros((1, NC + 4 * NC), jnp.float32),
    }


# --------------------------------- forward ------------------------------------
def faster_rcnn_forward(params, images_nchw, sizes):
    """Inference path: returns (boxes, probs, labels) like Model.forward (eval)."""
    images = jnp.transpose(images_nchw, (0, 2, 3, 1)).astype(jnp.float32)  # NCHW -> NHWC
    B, H = images.shape[0], images.shape[1]
    A, NC, R, C = NUM_ANCHORS, NUM_CLASSES, NUM_PROPOSALS, C_FEAT

    # ---- backbone stem: stride-2 conv as im2col matmul (launch 1) ----
    patches, Hf, Wf = _im2col_s2(images)
    f = matmul_bias(patches, params["conv1_w"], params["conv1_b"],
                    relu=True, out_dtype=jnp.bfloat16).reshape(B, Hf, Wf, C)

    # ---- residual block + RPN conv + RPN head, all fused (launch 2) ----
    feat, head = backbone_rpn(f, params)                  # (B,Hf,Wf,C), (B,Hf,Wf,15)

    head = head.reshape(B, Hf * Wf, A + 4 * A)
    obj = head[..., :A].reshape(B, Hf * Wf * A)           # raw objectness logits
    deltas = head[..., A:].reshape(B, Hf * Wf * A, 4)
    anchors = make_anchors(Hf, Wf, stride=H // Hf)

    proposals = jax.vmap(_proposals_one, in_axes=(0, 0, None, 0))(
        obj, deltas, anchors, sizes)                      # (B, R, 4)

    # ---- RoI head (launch 3) ----
    pooled = jax.vmap(roi_pool_nearest)(feat, proposals, sizes[:, 0], sizes[:, 1])
    pooled = pooled.reshape(B * R, POOL * POOL * C).astype(jnp.bfloat16)

    out = roi_mlp(pooled, params["roi_fc1_w"], params["roi_fc1_b"],
                  params["roi_head_w"], params["roi_head_b"])   # (B*R, NC + 4*NC) f32
    cls_logits = out[:, :NC]
    box_deltas = out[:, NC:]

    probs_all = jax.nn.softmax(cls_logits, axis=-1)
    labels = jnp.argmax(probs_all[:, 1:], axis=-1) + 1          # skip background
    sel_probs = jnp.take_along_axis(probs_all, labels[:, None], axis=1)[:, 0]
    d = box_deltas.reshape(-1, NC, 4)
    sel_d = jnp.take_along_axis(d, labels[:, None, None], axis=1)[:, 0, :]
    boxes = decode_boxes(proposals.reshape(-1, 4), sel_d)

    return (boxes.reshape(B, R, 4),
            sel_probs.reshape(B, R),
            labels.reshape(B, R).astype(jnp.int32))


# ----------------------------------- main --------------------------------------
if __name__ == "__main__":
    key = jax.random.PRNGKey(0)
    pkey, xkey = jax.random.split(key)
    params = init_params(pkey)

    # small synthetic batch: 2 images, 3x32x32, NCHW like the PyTorch module
    images = jax.random.normal(xkey, (2, 3, 32, 32), jnp.float32)
    sizes = jnp.array([[32.0, 32.0], [32.0, 32.0]], jnp.float32)   # (H, W) per image

    fwd = jax.jit(faster_rcnn_forward)
    boxes, probs, labels = fwd(params, images, sizes)
    jax.block_until_ready((boxes, probs, labels))
    assert boxes.shape == (2, NUM_PROPOSALS, 4)
    assert probs.shape == (2, NUM_PROPOSALS)
    assert labels.shape == (2, NUM_PROPOSALS)
    assert bool(jnp.all(jnp.isfinite(boxes))) and bool(jnp.all(jnp.isfinite(probs)))
    print("KERNEL_OK")
</pallas_src>

<mosaic_0001>
module attributes {stable_mosaic.version = 11 : i64} {
  func.func @_matmul_bias_kernel(%arg0: i32, %arg1: memref<256x32xbf16, #tpu.memory_space<vmem>>, %arg2: memref<32x32xbf16, #tpu.memory_space<vmem>>, %arg3: memref<1x32xf32, #tpu.memory_space<vmem>>, %arg4: memref<256x32xbf16, #tpu.memory_space<vmem>>) attributes {dimension_semantics = [#tpu.dimension_semantics<parallel>], iteration_bounds = array<i64: 2>, scalar_prefetch = 0 : i64, scratch_operands = 0 : i64, tpu.core_type = #tpu.core_type<tc>, window_params = [{transform_indices = @transform_0, window_bounds = array<i64: 256, 32>}, {pipeline_mode = #tpu.pipeline_mode<synchronous>, transform_indices = @transform_1, window_bounds = array<i64: 32, 32>}, {pipeline_mode = #tpu.pipeline_mode<synchronous>, transform_indices = @transform_2, window_bounds = array<i64: 1, 32>}, {transform_indices = @transform_3, window_bounds = array<i64: 256, 32>}]} {
    %c0 = arith.constant 0 : index
    %c0_0 = arith.constant 0 : index
    %0 = vector.load %arg1[%c0, %c0_0] : memref<256x32xbf16, #tpu.memory_space<vmem>>, vector<256x32xbf16>
    %c0_1 = arith.constant 0 : index
    %c0_2 = arith.constant 0 : index
    %1 = vector.load %arg2[%c0_1, %c0_2] : memref<32x32xbf16, #tpu.memory_space<vmem>>, vector<32x32xbf16>
    %cst = arith.constant dense<0.000000e+00> : vector<256x32xf32>
    %2 = tpu.matmul %0, %1, %cst {dimension_numbers = #tpu.dot_dimension_numbers<[1], [0], [0], [1], [0, 0, 1, 1], [], []>} : vector<256x32xbf16>, vector<32x32xbf16>, vector<256x32xf32> -> vector<256x32xf32>
    %c0_3 = arith.constant 0 : index
    %c0_4 = arith.constant 0 : index
    %3 = vector.load %arg3[%c0_3, %c0_4] : memref<1x32xf32, #tpu.memory_space<vmem>>, vector<1x32xf32>
    %4 = vector.broadcast %3 : vector<1x32xf32> to vector<256x32xf32>
    %5 = arith.addf %2, %4 : vector<256x32xf32>
    %cst_5 = arith.constant 0.000000e+00 : f32
    %6 = vector.broadcast %cst_5 : f32 to vector<256x32xf32>
    %7 = arith.maximumf %5, %6 : vector<256x32xf32>
    %8 = arith.truncf %7 : vector<256x32xf32> to vector<256x32xbf16>
    %c0_6 = arith.constant 0 : index
    %c0_7 = arith.constant 0 : index
    %9 = vector.load %arg4[%c0_6, %c0_7] : memref<256x32xbf16, #tpu.memory_space<vmem>>, vector<256x32xbf16>
    tpu.vector_store %arg4[%c0_6, %c0_7], %8 {strides = array<i32>} : memref<256x32xbf16, #tpu.memory_space<vmem>>, vector<256x32xbf16>,
    return
  }
  func.func @transform_0(%arg0: i32) -> (i32, i32) {
    %c0_i32 = arith.constant 0 : i32
    %c0_i32_0 = arith.constant 0 : i32
    return %arg0, %c0_i32 : i32, i32
  }
  func.func @transform_1(%arg0: i32) -> (i32, i32) {
    %c0_i32 = arith.constant 0 : i32
    %c0_i32_0 = arith.constant 0 : i32
    %c0_i32_1 = arith.constant 0 : i32
    return %c0_i32, %c0_i32_0 : i32, i32
  }
  func.func @transform_2(%arg0: i32) -> (i32, i32) {
    %c0_i32 = arith.constant 0 : i32
    %c0_i32_0 = arith.constant 0 : i32
    %c0_i32_1 = arith.constant 0 : i32
    return %c0_i32, %c0_i32_0 : i32, i32
  }
  func.func @transform_3(%arg0: i32) -> (i32, i32) {
    %c0_i32 = arith.constant 0 : i32
    %c0_i32_0 = arith.constant 0 : i32
    return %arg0, %c0_i32 : i32, i32
  }
}

module attributes {stable_mosaic.version = 11 : i64} {
  func.func @_backbone_rpn_kernel(%arg0: i32, %arg1: memref<1x342x32xbf16, #tpu.memory_space<vmem>>, %arg2: memref<288x1xf32, #tpu.memory_space<vmem>>, %arg3: memref<288x32xbf16, #tpu.memory_space<vmem>>, %arg4: memref<1x32xf32, #tpu.memory_space<vmem>>, %arg5: memref<288x32xbf16, #tpu.memory_space<vmem>>, %arg6: memref<1x32xf32, #tpu.memory_space<vmem>>, %arg7: memref<288x32xbf16, #tpu.memory_space<vmem>>, %arg8: memref<1x32xf32, #tpu.memory_space<vmem>>, %arg9: memref<32x16xbf16, #tpu.memory_space<vmem>>, %arg10: memref<1x16xf32, #tpu.memory_space<vmem>>, %arg11: memref<1x288x32xbf16, #tpu.memory_space<vmem>>, %arg12: memref<1x288x16xf32, #tpu.memory_space<vmem>>, %arg13: memref<344x32xbf16, #tpu.memory_space<vmem>>, %arg14: memref<344x32xbf16, #tpu.memory_space<vmem>>) attributes {dimension_semantics = [#tpu.dimension_semantics<parallel>], iteration_bounds = array<i64: 2>, scalar_prefetch = 0 : i64, scratch_operands = 2 : i64, tpu.core_type = #tpu.core_type<tc>, window_params = [{transform_indices = @transform_0, window_bounds = array<i64: 1, 342, 32>}, {pipeline_mode = #tpu.pipeline_mode<synchronous>, transform_indices = @transform_1, window_bounds = array<i64: 288, 1>}, {pipeline_mode = #tpu.pipeline_mode<synchronous>, transform_indices = @transform_2, window_bounds = array<i64: 288, 32>}, {pipeline_mode = #tpu.pipeline_mode<synchronous>, transform_indices = @transform_3, window_bounds = array<i64: 1, 32>}, {pipeline_mode = #tpu.pipeline_mode<synchronous>, transform_indices = @transform_4, window_bounds = array<i64: 288, 32>}, {pipeline_mode = #tpu.pipeline_mode<synchronous>, transform_indices = @transform_5, window_bounds = array<i64: 1, 32>}, {pipeline_mode = #tpu.pipeline_mode<synchronous>, transform_indices = @transform_6, window_bounds = array<i64: 288, 32>}, {pipeline_mode = #tpu.pipeline_mode<synchronous>, transform_indices = @transform_7, window_bounds = array<i64: 1, 32>}, {pipeline_mode = #tpu.pipeline_mode<synchronous>, transform_indices = @transform_8, window_bounds = array<i64: 32, 16>}, {pipeline_mode = #tpu.pipeline_mode<synchronous>, transform_indices = @transform_9, window_bounds = array<i64: 1, 16>}, {transform_indices = @transform_10, window_bounds = array<i64: 1, 288, 32>}, {transform_indices = @transform_11, window_bounds = array<i64: 1, 288, 16>}]} {
    %c0 = arith.constant 0 : index
    %c0_0 = arith.constant 0 : index
    %0 = vector.load %arg2[%c0, %c0_0] : memref<288x1xf32, #tpu.memory_space<vmem>>, vector<288x1xf32>
    %c0_1 = arith.constant 0 : index
    %c0_2 = arith.constant 0 : index
    %c0_3 = arith.constant 0 : index
    %1 = vector.load %arg1[%c0_1, %c0_2, %c0_3] : memref<1x342x32xbf16, #tpu.memory_space<vmem>>, vector<1x288x32xbf16>
    %2 = vector.shape_cast %1 : vector<1x288x32xbf16> to vector<288x32xbf16>
    %c0_4 = arith.constant 0 : index
    %c1 = arith.constant 1 : index
    %c0_5 = arith.constant 0 : index
    %3 = vector.load %arg1[%c0_4, %c1, %c0_5] : memref<1x342x32xbf16, #tpu.memory_space<vmem>>, vector<1x288x32xbf16>
    %4 = vector.shape_cast %3 : vector<1x288x32xbf16> to vector<288x32xbf16>
    %c0_6 = arith.constant 0 : index
    %c2 = arith.constant 2 : index
    %c0_7 = arith.constant 0 : index
    %5 = vector.load %arg1[%c0_6, %c2, %c0_7] : memref<1x342x32xbf16, #tpu.memory_space<vmem>>, vector<1x288x32xbf16>
    %6 = vector.shape_cast %5 : vector<1x288x32xbf16> to vector<288x32xbf16>
    %c0_8 = arith.constant 0 : index
    %c18 = arith.constant 18 : index
    %c0_9 = arith.constant 0 : index
    %7 = vector.load %arg1[%c0_8, %c18, %c0_9] : memref<1x342x32xbf16, #tpu.memory_space<vmem>>, vector<1x288x32xbf16>
    %8 = vector.shape_cast %7 : vector<1x288x32xbf16> to vector<288x32xbf16>
    %c0_10 = arith.constant 0 : index
    %c19 = arith.constant 19 : index
    %c0_11 = arith.constant 0 : index
    %9 = vector.load %arg1[%c0_10, %c19, %c0_11] : memref<1x342x32xbf16, #tpu.memory_space<vmem>>, vector<1x288x32xbf16>
    %10 = vector.shape_cast %9 : vector<1x288x32xbf16> to vector<288x32xbf16>
    %c0_12 = arith.constant 0 : index
    %c20 = arith.constant 20 : index
    %c0_13 = arith.constant 0 : index
    %11 = vector.load %arg1[%c0_12, %c20, %c0_13] : memref<1x342x32xbf16, #tpu.memory_space<vmem>>, vector<1x288x32xbf16>
    %12 = vector.shape_cast %11 : vector<1x288x32xbf16> to vector<288x32xbf16>
    %c0_14 = arith.constant 0 : index
    %c36 = arith.constant 36 : index
    %c0_15 = arith.constant 0 : index
    %13 = vector.load %arg1[%c0_14, %c36, %c0_15] : memref<1x342x32xbf16, #tpu.memory_space<vmem>>, vector<1x288x32xbf16>
    %14 = vector.shape_cast %13 : vector<1x288x32xbf16> to vector<288x32xbf16>
    %c0_16 = arith.constant 0 : index
    %c37 = arith.constant 37 : index
    %c0_17 = arith.constant 0 : index
    %15 = vector.load %arg1[%c0_16, %c37, %c0_17] : memref<1x342x32xbf16, #tpu.memory_space<vmem>>, vector<1x288x32xbf16>
    %16 = vector.shape_cast %15 : vector<1x288x32xbf16> to vector<288x32xbf16>
    %c0_18 = arith.constant 0 : index
    %c38 = arith.constant 38 : index
    %c0_19 = arith.constant 0 : index
    %17 = vector.load %arg1[%c0_18, %c38, %c0_19] : memref<1x342x32xbf16, #tpu.memory_space<vmem>>, vector<1x288x32xbf16>
    %18 = vector.shape_cast %17 : vector<1x288x32xbf16> to vector<288x32xbf16>
    %19 = tpu.concatenate %2, %4, %6, %8, %10, %12, %14, %16, %18 in 1 : vector<288x32xbf16>, vector<288x32xbf16>, vector<288x32xbf16>, vector<288x32xbf16>, vector<288x32xbf16>, vector<288x32xbf16>, vector<288x32xbf16>, vector<288x32xbf16>, vector<288x32xbf16> -> vector<288x288xbf16>
    %c0_20 = arith.constant 0 : index
    %c0_21 = arith.constant 0 : index
    %20 = vector.load %arg3[%c0_20, %c0_21] : memref<288x32xbf16, #tpu.memory_space<vmem>>, vector<288x32xbf16>
    %cst = arith.constant dense<0.000000e+00> : vector<288x32xf32>
    %21 = tpu.matmul %19, %20, %cst {dimension_numbers = #tpu.dot_dimension_numbers<[1], [0], [0], [1], [0, 0, 1, 1], [], []>} : vector<288x288xbf16>, vector<288x32xbf16>, vector<288x32xf32> -> vector<288x32xf32>
    %c0_22 = arith.constant 0 : index
    %c0_23 = arith.constant 0 : index
    %22 = vector.load %arg4[%c0_22, %c0_23] : memref<1x32xf32, #tpu.memory_space<vmem>>, vector<1x32xf32>
    %23 = vector.broadcast %22 : vector<1x32xf32> to vector<288x32xf32>
    %24 = arith.addf %21, %23 : vector<288x32xf32>
    %cst_24 = arith.constant 0.000000e+00 : f32
    %25 = vector.broadcast %cst_24 : f32 to vector<288x32xf32>
    %26 = arith.maximumf %24, %25 : vector<288x32xf32>
    %27 = vector.broadcast %0 : vector<288x1xf32> to vector<288x32xf32>
    %28 = arith.mulf %26, %27 : vector<288x32xf32>
    %29 = arith.truncf %28 : vector<288x32xf32> to vector<288x32xbf16>
    %cst_25 = arith.constant 0.000000e+00 : bf16
    %30 = vector.broadcast %cst_25 : bf16 to vector<32x32xbf16>
    %c0_26 = arith.constant 0 : index
    %c0_27 = arith.constant 0 : index
    %31 = vector.load %arg13[%c0_26, %c0_27] : memref<344x32xbf16, #tpu.memory_space<vmem>>, vector<32x32xbf16>
    tpu.vector_store %arg13[%c0_26, %c0_27], %30 {strides = array<i32>} : memref<344x32xbf16, #tpu.memory_space<vmem>>, vector<32x32xbf16>,
    %c32 = arith.constant 32 : index
    %c0_28 = arith.constant 0 : index
    %32 = vector.load %arg13[%c32, %c0_28] : memref<344x32xbf16, #tpu.memory_space<vmem>>, vector<288x32xbf16>
    tpu.vector_store %arg13[%c32, %c0_28], %29 {strides = array<i32>} : memref<344x32xbf16, #tpu.memory_space<vmem>>, vector<288x32xbf16>,
    %cst_29 = arith.constant 0.000000e+00 : bf16
    %33 = vector.broadcast %cst_29 : bf16 to vector<24x32xbf16>
    %c320 = arith.constant 320 : index
    %c0_30 = arith.constant 0 : index
    %34 = vector.load %arg13[%c320, %c0_30] : memref<344x32xbf16, #tpu.memory_space<vmem>>, vector<24x32xbf16>
    tpu.vector_store %arg13[%c320, %c0_30], %33 {strides = array<i32>} : memref<344x32xbf16, #tpu.memory_space<vmem>>, vector<24x32xbf16>,
    %c13 = arith.constant 13 : index
    %c0_31 = arith.constant 0 : index
    %35 = vector.load %arg13[%c13, %c0_31] : memref<344x32xbf16, #tpu.memory_space<vmem>>, vector<288x32xbf16>
    %c14 = arith.constant 14 : index
    %c0_32 = arith.constant 0 : index
    %36 = vector.load %arg13[%c14, %c0_32] : memref<344x32xbf16, #tpu.memory_space<vmem>>, vector<288x32xbf16>
    %c15 = arith.constant 15 : index
    %c0_33 = arith.constant 0 : index
    %37 = vector.load %arg13[%c15, %c0_33] : memref<344x32xbf16, #tpu.memory_space<vmem>>, vector<288x32xbf16>
    %c31 = arith.constant 31 : index
    %c0_34 = arith.constant 0 : index
    %38 = vector.load %arg13[%c31, %c0_34] : memref<344x32xbf16, #tpu.memory_space<vmem>>, vector<288x32xbf16>
    %c32_35 = arith.constant 32 : index
    %c0_36 = arith.constant 0 : index
    %39 = vector.load %arg13[%c32_35, %c0_36] : memref<344x32xbf16, #tpu.memory_space<vmem>>, vector<288x32xbf16>
    %c33 = arith.constant 33 : index
    %c0_37 = arith.constant 0 : index
    %40 = vector.load %arg13[%c33, %c0_37] : memref<344x32xbf16, #tpu.memory_space<vmem>>, vector<288x32xbf16>
    %c49 = arith.constant 49 : index
    %c0_38 = arith.constant 0 : index
    %41 = vector.load %arg13[%c49, %c0_38] : memref<344x32xbf16, #tpu.memory_space<vmem>>, vector<288x32xbf16>
    %c50 = arith.constant 50 : index
    %c0_39 = arith.constant 0 : index
    %42 = vector.load %arg13[%c50, %c0_39] : memref<344x32xbf16, #tpu.memory_space<vmem>>, vector<288x32xbf16>
    %c51 = arith.constant 51 : index
    %c0_40 = arith.constant 0 : index
    %43 = vector.load %arg13[%c51, %c0_40] : memref<344x32xbf16, #tpu.memory_space<vmem>>, vector<288x32xbf16>
    %44 = tpu.concatenate %35, %36, %37, %38, %39, %40, %41, %42, %43 in 1 : vector<288x32xbf16>, vector<288x32xbf16>, vector<288x32xbf16>, vector<288x32xbf16>, vector<288x32xbf16>, vector<288x32xbf16>, vector<288x32xbf16>, vector<288x32xbf16>, vector<288x32xbf16> -> vector<288x288xbf16>
    %c0_41 = arith.constant 0 : index
    %c0_42 = arith.constant 0 : index
    %45 = vector.load %arg5[%c0_41, %c0_42] : memref<288x32xbf16, #tpu.memory_space<vmem>>, vector<288x32xbf16>
    %cst_43 = arith.constant dense<0.000000e+00> : vector<288x32xf32>
    %46 = tpu.matmul %44, %45, %cst_43 {dimension_numbers = #tpu.dot_dimension_numbers<[1], [0], [0], [1], [0, 0, 1, 1], [], []>} : vector<288x288xbf16>, vector<288x32xbf16>, vector<288x32xf32> -> vector<288x32xf32>
    %c0_44 = arith.constant 0 : index
    %c19_45 = arith.constant 19 : index
    %c0_46 = arith.constant 0 : index
    %47 = vector.load %arg1[%c0_44, %c19_45, %c0_46] : memref<1x342x32xbf16, #tpu.memory_space<vmem>>, vector<1x288x32xbf16>
    %48 = vector.shape_cast %47 : vector<1x288x32xbf16> to vector<288x32xbf16>
    %49 = arith.extf %48 : vector<288x32xbf16> to vector<288x32xf32>
    %c0_47 = arith.constant 0 : index
    %c0_48 = arith.constant 0 : index
    %50 = vector.load %arg6[%c0_47, %c0_48] : memref<1x32xf32, #tpu.memory_space<vmem>>, vector<1x32xf32>
    %51 = vector.broadcast %50 : vector<1x32xf32> to vector<288x32xf32>
    %52 = arith.addf %46, %51 : vector<288x32xf32>
    %53 = arith.addf %52, %49 : vector<288x32xf32>
    %cst_49 = arith.constant 0.000000e+00 : f32
    %54 = vector.broadcast %cst_49 : f32 to vector<288x32xf32>
    %55 = arith.maximumf %53, %54 : vector<288x32xf32>
    %56 = vector.broadcast %0 : vector<288x1xf32> to vector<288x32xf32>
    %57 = arith.mulf %55, %56 : vector<288x32xf32>
    %58 = arith.truncf %57 : vector<288x32xf32> to vector<288x32xbf16>
    %c0_50 = arith.constant 0 : index
    %c0_51 = arith.constant 0 : index
    %c0_52 = arith.constant 0 : index
    %59 = vector.load %arg11[%c0_50, %c0_51, %c0_52] : memref<1x288x32xbf16, #tpu.memory_space<vmem>>, vector<1x288x32xbf16>
    %60 = vector.shape_cast %59 : vector<1x288x32xbf16> to vector<288x32xbf16>
    %61 = vector.shape_cast %58 : vector<288x32xbf16> to vector<1x288x32xbf16>
    tpu.vector_store %arg11[%c0_50, %c0_51, %c0_52], %61 {strides = array<i32>} : memref<1x288x32xbf16, #tpu.memory_space<vmem>>, vector<1x288x32xbf16>,
    %cst_53 = arith.constant 0.000000e+00 : bf16
    %62 = vector.broadcast %cst_53 : bf16 to vector<32x32xbf16>
    %c0_54 = arith.constant 0 : index
    %c0_55 = arith.constant 0 : index
    %63 = vector.load %arg14[%c0_54, %c0_55] : memref<344x32xbf16, #tpu.memory_space<vmem>>, vector<32x32xbf16>
    tpu.vector_store %arg14[%c0_54, %c0_55], %62 {strides = array<i32>} : memref<344x32xbf16, #tpu.memory_space<vmem>>, vector<32x32xbf16>,
    %c32_56 = arith.constant 32 : index
    %c0_57 = arith.constant 0 : index
    %64 = vector.load %arg14[%c32_56, %c0_57] : memref<344x32xbf16, #tpu.memory_space<vmem>>, vector<288x32xbf16>
    tpu.vector_store %arg14[%c32_56, %c0_57], %58 {strides = array<i32>} : memref<344x32xbf16, #tpu.memory_space<vmem>>, vector<288x32xbf16>,
    %cst_58 = arith.constant 0.000000e+00 : bf16
    %65 = vector.broadcast %cst_58 : bf16 to vector<24x32xbf16>
    %c320_59 = arith.constant 320 : index
    %c0_60 = arith.constant 0 : index
    %66 = vector.load %arg14[%c320_59, %c0_60] : memref<344x32xbf16, #tpu.memory_space<vmem>>, vector<24x32xbf16>
    tpu.vector_store %arg14[%c320_59, %c0_60], %65 {strides = array<i32>} : memref<344x32xbf16, #tpu.memory_space<vmem>>, vector<24x32xbf16>,
    %c13_61 = arith.constant 13 : index
    %c0_62 = arith.constant 0 : index
    %67 = vector.load %arg14[%c13_61, %c0_62] : memref<344x32xbf16, #tpu.memory_space<vmem>>, vector<288x32xbf16>
    %c14_63 = arith.constant 14 : index
    %c0_64 = arith.constant 0 : index
    %68 = vector.load %arg14[%c14_63, %c0_64] : memref<344x32xbf16, #tpu.memory_space<vmem>>, vector<288x32xbf16>
    %c15_65 = arith.constant 15 : index
    %c0_66 = arith.constant 0 : index
    %69 = vector.load %arg14[%c15_65, %c0_66] : memref<344x32xbf16, #tpu.memory_space<vmem>>, vector<288x32xbf16>
    %c31_67 = arith.constant 31 : index
    %c0_68 = arith.constant 0 : index
    %70 = vector.load %arg14[%c31_67, %c0_68] : memref<344x32xbf16, #tpu.memory_space<vmem>>, vector<288x32xbf16>
    %c32_69 = arith.constant 32 : index
    %c0_70 = arith.constant 0 : index
    %71 = vector.load %arg14[%c32_69, %c0_70] : memref<344x32xbf16, #tpu.memory_space<vmem>>, vector<288x32xbf16>
    %c33_71 = arith.constant 33 : index
    %c0_72 = arith.constant 0 : index
    %72 = vector.load %arg14[%c33_71, %c0_72] : memref<344x32xbf16, #tpu.memory_space<vmem>>, vector<288x32xbf16>
    %c49_73 = arith.constant 49 : index
    %c0_74 = arith.constant 0 : index
    %73 = vector.load %arg14[%c49_73, %c0_74] : memref<344x32xbf16, #tpu.memory_space<vmem>>, vector<288x32xbf16>
    %c50_75 = arith.constant 50 : index
    %c0_76 = arith.constant 0 : index
    %74 = vector.load %arg14[%c50_75, %c0_76] : memref<344x32xbf16, #tpu.memory_space<vmem>>, vector<288x32xbf16>
    %c51_77 = arith.constant 51 : index
    %c0_78 = arith.constant 0 : index
    %75 = vector.load %arg14[%c51_77, %c0_78] : memref<344x32xbf16, #tpu.memory_space<vmem>>, vector<288x32xbf16>
    %76 = tpu.concatenate %67, %68, %69, %70, %71, %72, %73, %74, %75 in 1 : vector<288x32xbf16>, vector<288x32xbf16>, vector<288x32xbf16>, vector<288x32xbf16>, vector<288x32xbf16>, vector<288x32xbf16>, vector<288x32xbf16>, vector<288x32xbf16>, vector<288x32xbf16> -> vector<288x288xbf16>
    %c0_79 = arith.constant 0 : index
    %c0_80 = arith.constant 0 : index
    %77 = vector.load %arg7[%c0_79, %c0_80] : memref<288x32xbf16, #tpu.memory_space<vmem>>, vector<288x32xbf16>
    %cst_81 = arith.constant dense<0.000000e+00> : vector<288x32xf32>
    %78 = tpu.matmul %76, %77, %cst_81 {dimension_numbers = #tpu.dot_dimension_numbers<[1], [0], [0], [1], [0, 0, 1, 1], [], []>} : vector<288x288xbf16>, vector<288x32xbf16>, vector<288x32xf32> -> vector<288x32xf32>
    %c0_82 = arith.constant 0 : index
    %c0_83 = arith.constant 0 : index
    %79 = vector.load %arg8[%c0_82, %c0_83] : memref<1x32xf32, #tpu.memory_space<vmem>>, vector<1x32xf32>
    %80 = vector.broadcast %79 : vector<1x32xf32> to vector<288x32xf32>
    %81 = arith.addf %78, %80 : vector<288x32xf32>
    %cst_84 = arith.constant 0.000000e+00 : f32
    %82 = vector.broadcast %cst_84 : f32 to vector<288x32xf32>
    %83 = arith.maximumf %81, %82 : vector<288x32xf32>
    %84 = arith.truncf %83 : vector<288x32xf32> to vector<288x32xbf16>
    %c0_85 = arith.constant 0 : index
    %c0_86 = arith.constant 0 : index
    %85 = vector.load %arg9[%c0_85, %c0_86] : memref<32x16xbf16, #tpu.memory_space<vmem>>, vector<32x16xbf16>
    %cst_87 = arith.constant dense<0.000000e+00> : vector<288x16xf32>
    %86 = tpu.matmul %84, %85, %cst_87 {dimension_numbers = #tpu.dot_dimension_numbers<[1], [0], [0], [1], [0, 0, 1, 1], [], []>} : vector<288x32xbf16>, vector<32x16xbf16>, vector<288x16xf32> -> vector<288x16xf32>
    %c0_88 = arith.constant 0 : index
    %c0_89 = arith.constant 0 : index
    %87 = vector.load %arg10[%c0_88, %c0_89] : memref<1x16xf32, #tpu.memory_space<vmem>>, vector<1x16xf32>
    %88 = vector.broadcast %87 : vector<1x16xf32> to vector<288x16xf32>
    %89 = arith.addf %86, %88 : vector<288x16xf32>
    %c0_90 = arith.constant 0 : index
    %c0_91 = arith.constant 0 : index
    %c0_92 = arith.constant 0 : index
    %90 = vector.load %arg12[%c0_90, %c0_91, %c0_92] : memref<1x288x16xf32, #tpu.memory_space<vmem>>, vector<1x288x16xf32>
    %91 = vector.shape_cast %90 : vector<1x288x16xf32> to vector<288x16xf32>
    %92 = vector.shape_cast %89 : vector<288x16xf32> to vector<1x288x16xf32>
    tpu.vector_store %arg12[%c0_90, %c0_91, %c0_92], %92 {strides = array<i32>} : memref<1x288x16xf32, #tpu.memory_space<vmem>>, vector<1x288x16xf32>,
    return
  }
  func.func @transform_0(%arg0: i32) -> (i32, i32, i32) {
    %c0_i32 = arith.constant 0 : i32
    %c0_i32_0 = arith.constant 0 : i32
    %c0_i32_1 = arith.constant 0 : i32
    return %arg0, %c0_i32, %c0_i32_0 : i32, i32, i32
  }
  func.func @transform_1(%arg0: i32) -> (i32, i32) {
    %c0_i32 = arith.constant 0 : i32
    %c0_i32_0 = arith.constant 0 : i32
    %c0_i32_1 = arith.constant 0 : i32
    return %c0_i32, %c0_i32_0 : i32, i32
  }
  func.func @transform_2(%arg0: i32) -> (i32, i32) {
    %c0_i32 = arith.constant 0 : i32
    %c0_i32_0 = arith.constant 0 : i32
    %c0_i32_1 = arith.constant 0 : i32
    return %c0_i32, %c0_i32_0 : i32, i32
  }
  func.func @transform_3(%arg0: i32) -> (i32, i32) {
    %c0_i32 = arith.constant 0 : i32
    %c0_i32_0 = arith.constant 0 : i32
    %c0_i32_1 = arith.constant 0 : i32
    return %c0_i32, %c0_i32_0 : i32, i32
  }
  func.func @transform_4(%arg0: i32) -> (i32, i32) {
    %c0_i32 = arith.constant 0 : i32
    %c0_i32_0 = arith.constant 0 : i32
    %c0_i32_1 = arith.constant 0 : i32
    return %c0_i32, %c0_i32_0 : i32, i32
  }
  func.func @transform_5(%arg0: i32) -> (i32, i32) {
    %c0_i32 = arith.constant 0 : i32
    %c0_i32_0 = arith.constant 0 : i32
    %c0_i32_1 = arith.constant 0 : i32
    return %c0_i32, %c0_i32_0 : i32, i32
  }
  func.func @transform_6(%arg0: i32) -> (i32, i32) {
    %c0_i32 = arith.constant 0 : i32
    %c0_i32_0 = arith.constant 0 : i32
    %c0_i32_1 = arith.constant 0 : i32
    return %c0_i32, %c0_i32_0 : i32, i32
  }
  func.func @transform_7(%arg0: i32) -> (i32, i32) {
    %c0_i32 = arith.constant 0 : i32
    %c0_i32_0 = arith.constant 0 : i32
    %c0_i32_1 = arith.constant 0 : i32
    return %c0_i32, %c0_i32_0 : i32, i32
  }
  func.func @transform_8(%arg0: i32) -> (i32, i32) {
    %c0_i32 = arith.constant 0 : i32
    %c0_i32_0 = arith.constant 0 : i32
    %c0_i32_1 = arith.constant 0 : i32
    return %c0_i32, %c0_i32_0 : i32, i32
  }
  func.func @transform_9(%arg0: i32) -> (i32, i32) {
    %c0_i32 = arith.constant 0 : i32
    %c0_i32_0 = arith.constant 0 : i32
    %c0_i32_1 = arith.constant 0 : i32
    return %c0_i32, %c0_i32_0 : i32, i32
  }
  func.func @transform_10(%arg0: i32) -> (i32, i32, i32) {
    %c0_i32 = arith.constant 0 : i32
    %c0_i32_0 = arith.constant 0 : i32
    %c0_i32_1 = arith.constant 0 : i32
    return %arg0, %c0_i32, %c0_i32_0 : i32, i32, i32
  }
  func.func @transform_11(%arg0: i32) -> (i32, i32, i32) {
    %c0_i32 = arith.constant 0 : i32
    %c0_i32_0 = arith.constant 0 : i32
    %c0_i32_1 = arith.constant 0 : i32
    return %arg0, %c0_i32, %c0_i32_0 : i32, i32, i32
  }
}

module attributes {stable_mosaic.version = 11 : i64} {
  func.func @_roi_mlp_kernel(%arg0: i32, %arg1: memref<16x1568xbf16, #tpu.memory_space<vmem>>, %arg2: memref<1568x64xbf16, #tpu.memory_space<vmem>>, %arg3: memref<1x64xf32, #tpu.memory_space<vmem>>, %arg4: memref<64x25xbf16, #tpu.memory_space<vmem>>, %arg5: memref<1x25xf32, #tpu.memory_space<vmem>>, %arg6: memref<16x25xf32, #tpu.memory_space<vmem>>) attributes {dimension_semantics = [#tpu.dimension_semantics<arbitrary>], iteration_bounds = array<i64: 1>, scalar_prefetch = 0 : i64, scratch_operands = 0 : i64, tpu.core_type = #tpu.core_type<tc>, window_params = [{pipeline_mode = #tpu.pipeline_mode<synchronous>, transform_indices = @transform_0, window_bounds = array<i64: 16, 1568>}, {pipeline_mode = #tpu.pipeline_mode<synchronous>, transform_indices = @transform_1, window_bounds = array<i64: 1568, 64>}, {pipeline_mode = #tpu.pipeline_mode<synchronous>, transform_indices = @transform_2, window_bounds = array<i64: 1, 64>}, {pipeline_mode = #tpu.pipeline_mode<synchronous>, transform_indices = @transform_3, window_bounds = array<i64: 64, 25>}, {pipeline_mode = #tpu.pipeline_mode<synchronous>, transform_indices = @transform_4, window_bounds = array<i64: 1, 25>}, {pipeline_mode = #tpu.pipeline_mode<synchronous>, transform_indices = @transform_5, window_bounds = array<i64: 16, 25>}]} {
    %c0 = arith.constant 0 : index
    %c0_0 = arith.constant 0 : index
    %0 = vector.load %arg1[%c0, %c0_0] : memref<16x1568xbf16, #tpu.memory_space<vmem>>, vector<16x1568xbf16>
    %c0_1 = arith.constant 0 : index
    %c0_2 = arith.constant 0 : index
    %1 = vector.load %arg2[%c0_1, %c0_2] : memref<1568x64xbf16, #tpu.memory_space<vmem>>, vector<1568x64xbf16>
    %cst = arith.constant dense<0.000000e+00> : vector<16x64xf32>
    %2 = tpu.matmul %0, %1, %cst {dimension_numbers = #tpu.dot_dimension_numbers<[1], [0], [0], [1], [0, 0, 1, 1], [], []>} : vector<16x1568xbf16>, vector<1568x64xbf16>, vector<16x64xf32> -> vector<16x64xf32>
    %c0_3 = arith.constant 0 : index
    %c0_4 = arith.constant 0 : index
    %3 = vector.load %arg3[%c0_3, %c0_4] : memref<1x64xf32, #tpu.memory_space<vmem>>, vector<1x64xf32>
    %4 = vector.broadcast %3 : vector<1x64xf32> to vector<16x64xf32>
    %5 = arith.addf %2, %4 : vector<16x64xf32>
    %cst_5 = arith.constant 0.000000e+00 : f32
    %6 = vector.broadcast %cst_5 : f32 to vector<16x64xf32>
    %7 = arith.maximumf %5, %6 : vector<16x64xf32>
    %8 = arith.truncf %7 : vector<16x64xf32> to vector<16x64xbf16>
    %c0_6 = arith.constant 0 : index
    %c0_7 = arith.constant 0 : index
    %9 = vector.load %arg4[%c0_6, %c0_7] : memref<64x25xbf16, #tpu.memory_space<vmem>>, vector<64x25xbf16>
    %cst_8 = arith.constant dense<0.000000e+00> : vector<16x25xf32>
    %10 = tpu.matmul %8, %9, %cst_8 {dimension_numbers = #tpu.dot_dimension_numbers<[1], [0], [0], [1], [0, 0, 1, 1], [], []>} : vector<16x64xbf16>, vector<64x25xbf16>, vector<16x25xf32> -> vector<16x25xf32>
    %c0_9 = arith.constant 0 : index
    %c0_10 = arith.constant 0 : index
    %11 = vector.load %arg5[%c0_9, %c0_10] : memref<1x25xf32, #tpu.memory_space<vmem>>, vector<1x25xf32>
    %12 = vector.broadcast %11 : vector<1x25xf32> to vector<16x25xf32>
    %13 = arith.addf %10, %12 : vector<16x25xf32>
    %c0_11 = arith.constant 0 : index
    %c0_12 = arith.constant 0 : index
    %14 = vector.load %arg6[%c0_11, %c0_12] : memref<16x25xf32, #tpu.memory_space<vmem>>, vector<16x25xf32>
    tpu.vector_store %arg6[%c0_11, %c0_12], %13 {strides = array<i32>} : memref<16x25xf32, #tpu.memory_space<vmem>>, vector<16x25xf32>,
    return
  }
  func.func @transform_0(%arg0: i32) -> (i32, i32) {
    %c0_i32 = arith.constant 0 : i32
    %c0_i32_0 = arith.constant 0 : i32
    %c0_i32_1 = arith.constant 0 : i32
    return %c0_i32, %c0_i32_0 : i32, i32
  }
  func.func @transform_1(%arg0: i32) -> (i32, i32) {
    %c0_i32 = arith.constant 0 : i32
    %c0_i32_0 = arith.constant 0 : i32
    %c0_i32_1 = arith.constant 0 : i32
    return %c0_i32, %c0_i32_0 : i32, i32
  }
  func.func @transform_2(%arg0: i32) -> (i32, i32) {
    %c0_i32 = arith.constant 0 : i32
    %c0_i32_0 = arith.constant 0 : i32
    %c0_i32_1 = arith.constant 0 : i32
    return %c0_i32, %c0_i32_0 : i32, i32
  }
  func.func @transform_3(%arg0: i32) -> (i32, i32) {
    %c0_i32 = arith.constant 0 : i32
    %c0_i32_0 = arith.constant 0 : i32
    %c0_i32_1 = arith.constant 0 : i32
    return %c0_i32, %c0_i32_0 : i32, i32
  }
  func.func @transform_4(%arg0: i32) -> (i32, i32) {
    %c0_i32 = arith.constant 0 : i32
    %c0_i32_0 = arith.constant 0 : i32
    %c0_i32_1 = arith.constant 0 : i32
    return %c0_i32, %c0_i32_0 : i32, i32
  }
  func.func @transform_5(%arg0: i32) -> (i32, i32) {
    %c0_i32 = arith.constant 0 : i32
    %c0_i32_0 = arith.constant 0 : i32
    %c0_i32_1 = arith.constant 0 : i32
    return %c0_i32, %c0_i32_0 : i32, i32
  }
}

</mosaic_0001>

<bundles_post_ra>
// kernel: faster_rcnn_forward.3
= control target key start
LH: loop header
LB: loop body
LE: loop exit
PB: predicated region body
PF: predicated region fallthrough
CT: control target
= control target key end

     0   :  { %s991_s12 = smov 0   ;;  %s1158_s0 = inlined_call_operand.vmem [shape: bf16[512,32], index: 0, kind: input, shape index: {}]   ;;  %s1159_s1 = inlined_call_operand.vmem [shape: bf16[32,32], index: 1, kind: input, shape index: {}]   ;;  %s1160_s2 = inlined_call_operand.vmem [shape: f32[1,32], index: 2, kind: input, shape index: {}]   ;;  %s1161_s3 = inlined_call_operand.vmem [shape: bf16[512,32], index: 3, kind: output, shape index: {}]  }
   0x1 LB: > { %s769_s13 = sadd.s32 4294967295, %s969_s12   ;;  %p773_p0 = scmp.ge.s32.totalorder %s969_s12, 1  ;;  %s969_s12 = sphi %s991_s12, %s13_s12  }
   0x2   : > { %p138_p1 = scmp.lt.s32.totalorder %s969_s12, 3 }
   0x4   : > { %p139_p2 = pnand %p773_p0, %p138_p1 }
   0x5   : > { %v945_v0 = vld [vmem:[%s1159_s1] sm:$0xff] (!%p139_p2)   ;;  %s774_s16 = sshll.u32 (!%p139_p2), %s769_s13, 5  ;;  %v946_v1 = vld [vmem:[%s1159_s1 + $0x8] sm:$0xff] (!%p139_p2)   ;;  %vm310_vm0 = vcmask (!%p139_p2), 261120   ;;  %vm680_vm1 = vcmask (!%p139_p2), 257024  }
   0x6   : > { %142 = sbr.rel (%p139_p2) target bundleno = 265 (0x109), region = 32  ;;  %p163_p3 = scmp.lt.s32.totalorder (!%p139_p2), %s774_s16, 63  ;;  %897 = vmatprep.subr.bf16.mxu0 (!%p139_p2), %v945_v0  ;;  %933 = vmatprep.subr.bf16.mxu1 (!%p139_p2), %v945_v0  ;;  %v1050_v18 = vld [vmem:[%s1160_s2] ss:$0 sm:$0xff] (!%p139_p2) }
   0x7   : > { %898 = vmatpush3.bf16.msra.mxu0 (!%p139_p2), %v945_v0  ;;  %935 = vmatpush3.bf16.msra.mxu1 (!%p139_p2), %v945_v0 }
   0x8   : > { %899 = vmatprep.subr.bf16.mxu0 (!%p139_p2), %v946_v1  ;;  %934 = vmatprep.subr.bf16.mxu1 (!%p139_p2), %v946_v1 }
   0xb   : > { %900 = vmatpush3.bf16.msra.mxu0 (!%p139_p2), %v946_v1  ;;  %936 = vmatpush3.bf16.msra.mxu1 (!%p139_p2), %v946_v1 }
   0xd   : > { %s1163_s16 = smov (!%p163_p3, %s774_s16), 63 }
   0xe   : > { %s775_s19 = sshll.u32 %s1163_s16, 2 }
   0xf   : > { %s1013_s22 = scalar_lea.vmem %s1158_s0, %s775_s19  ;;  %s1062_s27 = scalar_lea.vmem %s1161_s3, %s775_s19 }
  0x10   : > { %v947_v2 = vld [vmem:[%s1013_s22] sm:$0xff]   ;;  %v949_v4 = vld [vmem:[%s1013_s22 + $0x8] sm:$0xff]   ;;  %v951_v6 = vld [vmem:[%s1013_s22 + $0x10] sm:$0xff]  }
  0x11   : > { %v948_v3 = vld [vmem:[%s1013_s22 + $0x40] sm:$0xff]   ;;  %901 = vmatprep.mubr.msk.bf16.mxu0 %vm310_vm0, %v947_v2  ;;  %v950_v5 = vld [vmem:[%s1013_s22 + $0x48] sm:$0xff]   ;;  %v952_v7 = vld [vmem:[%s1013_s22 + $0x50] sm:$0xff]  }
  0x12   : > { %917 = vmatprep.mubr.msk.bf16.mxu1 %vm310_vm0, %v948_v3  ;;  %902 = vmatmul.mubr.msk.bf16.vlgmr.msra.gmra.mrb[0].mxu0 %vm310_vm0, %v949_v4  ;;  %v953_v8 = vld [vmem:[%s1013_s22 + $0x18] sm:$0xff]   ;;  %v955_v10 = vld [vmem:[%s1013_s22 + $0x20] sm:$0xff]   ;;  %v957_v12 = vld [vmem:[%s1013_s22 + $0x28] sm:$0xff]  }
  0x13   : > { %918 = vmatmul.mubr.msk.bf16.vlgmr.msra.gmra.mrb[0].mxu1 %vm310_vm0, %v950_v5  ;;  %905 = vmatprep.mubr.msk.bf16.mxu0 %vm310_vm0, %v951_v6  ;;  %v954_v9 = vld [vmem:[%s1013_s22 + $0x58] sm:$0xff]   ;;  %v956_v11 = vld [vmem:[%s1013_s22 + $0x60] sm:$0xff]   ;;  %v958_v13 = vld [vmem:[%s1013_s22 + $0x68] sm:$0xff]  }
  0x14   : > { %921 = vmatprep.mubr.msk.bf16.mxu1 %vm310_vm0, %v952_v7  ;;  %v959_v14 = vld [vmem:[%s1013_s22 + $0x30] sm:$0xff]   ;;  %v961_v16 = vld [vmem:[%s1013_s22 + $0x38] sm:$0xff]  }
  0x15   : > { %v960_v15 = vld [vmem:[%s1013_s22 + $0x70] sm:$0xff]   ;;  %v962_v17 = vld [vmem:[%s1013_s22 + $0x78] sm:$0xff]  }
  0x1a   : > { %906 = vmatmul.mubr.msk.bf16.gmra.mrb[4].mxu0 %vm310_vm0, %v953_v8 }
  0x1b   : > { %922 = vmatmul.mubr.msk.bf16.gmra.mrb[4].mxu1 %vm310_vm0, %v954_v9  ;;  %909 = vmatprep.mubr.msk.bf16.mxu0 %vm310_vm0, %v955_v10 }
  0x1c   : > { %925 = vmatprep.mubr.msk.bf16.mxu1 %vm310_vm0, %v956_v11 }
  0x22   : > { %910 = vmatmul.mubr.msk.bf16.gmra.mrb[8].mxu0 %vm310_vm0, %v957_v12 }
  0x23   : > { %926 = vmatmul.mubr.msk.bf16.gmra.mrb[8].mxu1 %vm310_vm0, %v958_v13  ;;  %913 = vmatprep.mubr.msk.bf16.mxu0 %vm310_vm0, %v959_v14 }
  0x24   : > { %929 = vmatprep.mubr.msk.bf16.mxu1 %vm310_vm0, %v960_v15 }
  0x2a   : > { %914 = vmatmul.mubr.msk.bf16.gmra.mrb[12].mxu0 %vm310_vm0, %v961_v16 }
  0x2b   : > { %930 = vmatmul.mubr.msk.bf16.gmra.mrb[12].mxu1 %vm310_vm0, %v962_v17 }
  0xe5   : > { %v903_v19 = vpop.f32.mrb[0].mxu0 }
  0xe6   : > { %v402_v20 = vadd.f32 %v903_v19, %v1050_v18  ;;  %v919_v21 = vpop.f32.mrb[0].mxu1  ;;  %v393_v22 = vpop.f32.mrb[1].mxu0 }
  0xe7   : > { %v466_v23 = vadd.f32 %v919_v21, %v1050_v18  ;;  %v394_v24 = vadd.f32 %v1050_v18, %v393_v22  ;;  %v457_v25 = vpop.f32.mrb[1].mxu1  ;;  %v904_v26 = vpop.f32.mrb[2].mxu0 }
  0xe8   : > { %v522_v27 = vmax.f32 %v402_v20, 0.0  ;;  %v458_v28 = vadd.f32 %v1050_v18, %v457_v25  ;;  %v405_v29 = vadd.f32 %v904_v26, %v1050_v18  ;;  %v920_v30 = vpop.f32.mrb[2].mxu1  ;;  %v396_v31 = vpop.f32.mrb[3].mxu0 }
  0xe9   : > { %v538_v32 = vmax.f32 %v466_v23, 0.0  ;;  %v520_v33 = vmax.f32 %v394_v24, 0.0  ;;  %v469_v34 = vadd.f32 %v920_v30, %v1050_v18  ;;  %v397_v35 = vadd.f32 %v1050_v18, %v396_v31  ;;  %v460_v36 = vpop.f32.mrb[3].mxu1 }
  0xea   : > { %v849_v37 = vpack.c.bf16 %v522_v27, %v522_v27  ;;  %v536_v38 = vmax.f32 %v458_v28, 0.0  ;;  %v523_v39 = vmax.f32 %v405_v29, 0.0  ;;  %v461_v40 = vadd.f32 %v1050_v18, %v460_v36 }
  0xeb   : > { %v865_v41 = vpack.c.bf16 %v538_v32, %v538_v32  ;;  %v847_v42 = vpack.c.bf16 %v520_v33, %v520_v33  ;;  %v539_v43 = vmax.f32 %v469_v34, 0.0  ;;  %v521_v44 = vmax.f32 %v397_v35, 0.0 }
  0xec   : > { %683 = vst.msk [vmem:[%s1062_s27 + $0x8] sm:$0xf] %vm680_vm1, %v849_v37  ;;  %v863_v45 = vpack.c.bf16 %v536_v38, %v536_v38  ;;  %v850_v46 = vpack.c.bf16 %v523_v39, %v523_v39  ;;  %v537_v47 = vmax.f32 %v461_v40, 0.0 }
  0xed   : > { %699 = vst.msk [vmem:[%s1062_s27 + $0x48] sm:$0xf] %vm680_vm1, %v865_v41  ;;  %681 = vst.msk [vmem:[%s1062_s27] sm:$0xf] %vm680_vm1, %v847_v42  ;;  %v866_v48 = vpack.c.bf16 %v539_v43, %v539_v43  ;;  %v848_v49 = vpack.c.bf16 %v521_v44, %v521_v44  ;;  %v907_v50 = vpop.f32.mrb[4].mxu0 }
  0xee   : > { %697 = vst.msk [vmem:[%s1062_s27 + $0x40] sm:$0xf] %vm680_vm1, %v863_v45  ;;  %684 = vst.msk [vmem:[%s1062_s27 + $0xc] sm:$0xf] %vm680_vm1, %v850_v46  ;;  %v864_v51 = vpack.c.bf16 %v537_v47, %v537_v47  ;;  %v418_v52 = vadd.f32 %v907_v50, %v1050_v18  ;;  %v923_v53 = vpop.f32.mrb[4].mxu1  ;;  %v409_v54 = vpop.f32.mrb[5].mxu0 }
  0xef   : > { %700 = vst.msk [vmem:[%s1062_s27 + $0x4c] sm:$0xf] %vm680_vm1, %v866_v48  ;;  %682 = vst.msk [vmem:[%s1062_s27 + $0x4] sm:$0xf] %vm680_vm1, %v848_v49  ;;  %v482_v55 = vadd.f32 %v923_v53, %v1050_v18  ;;  %v410_v56 = vadd.f32 %v1050_v18, %v409_v54  ;;  %v473_v57 = vpop.f32.mrb[5].mxu1  ;;  %v908_v58 = vpop.f32.mrb[6].mxu0 }
  0xf0   : > { %698 = vst.msk [vmem:[%s1062_s27 + $0x44] sm:$0xf] %vm680_vm1, %v864_v51  ;;  %v526_v59 = vmax.f32 %v418_v52, 0.0  ;;  %v474_v60 = vadd.f32 %v1050_v18, %v473_v57  ;;  %v421_v61 = vadd.f32 %v908_v58, %v1050_v18  ;;  %v924_v62 = vpop.f32.mrb[6].mxu1  ;;  %v412_v63 = vpop.f32.mrb[7].mxu0 }
  0xf1   : > { %v542_v0 = vmax.f32 %v482_v55, 0.0  ;;  %v524_v1 = vmax.f32 %v410_v56, 0.0  ;;  %v485_v2 = vadd.f32 %v924_v62, %v1050_v18  ;;  %v413_v3 = vadd.f32 %v1050_v18, %v412_v63  ;;  %v476_v4 = vpop.f32.mrb[7].mxu1 }
  0xf2   : > { %v853_v5 = vpack.c.bf16 %v526_v59, %v526_v59  ;;  %v540_v6 = vmax.f32 %v474_v60, 0.0  ;;  %v527_v7 = vmax.f32 %v421_v61, 0.0  ;;  %v477_v8 = vadd.f32 %v1050_v18, %v476_v4 }
  0xf3   : > { %v869_v9 = vpack.c.bf16 %v542_v0, %v542_v0  ;;  %v851_v10 = vpack.c.bf16 %v524_v1, %v524_v1  ;;  %v543_v11 = vmax.f32 %v485_v2, 0.0  ;;  %v525_v12 = vmax.f32 %v413_v3, 0.0 }
  0xf4   : > { %687 = vst.msk [vmem:[%s1062_s27 + $0x18] sm:$0xf] %vm680_vm1, %v853_v5  ;;  %v867_v13 = vpack.c.bf16 %v540_v6, %v540_v6  ;;  %v854_v14 = vpack.c.bf16 %v527_v7, %v527_v7  ;;  %v541_v15 = vmax.f32 %v477_v8, 0.0 }
  0xf5   : > { %703 = vst.msk [vmem:[%s1062_s27 + $0x58] sm:$0xf] %vm680_vm1, %v869_v9  ;;  %685 = vst.msk [vmem:[%s1062_s27 + $0x10] sm:$0xf] %vm680_vm1, %v851_v10  ;;  %v870_v16 = vpack.c.bf16 %v543_v11, %v543_v11  ;;  %v852_v17 = vpack.c.bf16 %v525_v12, %v525_v12  ;;  %v911_v19 = vpop.f32.mrb[8].mxu0 }
  0xf6   : > { %701 = vst.msk [vmem:[%s1062_s27 + $0x50] sm:$0xf] %vm680_vm1, %v867_v13  ;;  %688 = vst.msk [vmem:[%s1062_s27 + $0x1c] sm:$0xf] %vm680_vm1, %v854_v14  ;;  %v868_v20 = vpack.c.bf16 %v541_v15, %v541_v15  ;;  %v434_v21 = vadd.f32 %v911_v19, %v1050_v18  ;;  %v927_v22 = vpop.f32.mrb[8].mxu1  ;;  %v425_v23 = vpop.f32.mrb[9].mxu0 }
  0xf7   : > { %704 = vst.msk [vmem:[%s1062_s27 + $0x5c] sm:$0xf] %vm680_vm1, %v870_v16  ;;  %686 = vst.msk [vmem:[%s1062_s27 + $0x14] sm:$0xf] %vm680_vm1, %v852_v17  ;;  %v498_v24 = vadd.f32 %v927_v22, %v1050_v18  ;;  %v426_v25 = vadd.f32 %v1050_v18, %v425_v23  ;;  %v489_v26 = vpop.f32.mrb[9].mxu1  ;;  %v912_v27 = vpop.f32.mrb[10].mxu0 }
  0xf8   : > { %702 = vst.msk [vmem:[%s1062_s27 + $0x54] sm:$0xf] %vm680_vm1, %v868_v20  ;;  %v530_v28 = vmax.f32 %v434_v21, 0.0  ;;  %v490_v29 = vadd.f32 %v1050_v18, %v489_v26  ;;  %v437_v30 = vadd.f32 %v912_v27, %v1050_v18  ;;  %v928_v31 = vpop.f32.mrb[10].mxu1  ;;  %v428_v32 = vpop.f32.mrb[11].mxu0 }
  0xf9   : > { %v546_v33 = vmax.f32 %v498_v24, 0.0  ;;  %v528_v34 = vmax.f32 %v426_v25, 0.0  ;;  %v501_v35 = vadd.f32 %v928_v31, %v1050_v18  ;;  %v429_v36 = vadd.f32 %v1050_v18, %v428_v32  ;;  %v492_v37 = vpop.f32.mrb[11].mxu1 }
  0xfa   : > { %v857_v38 = vpack.c.bf16 %v530_v28, %v530_v28  ;;  %v544_v39 = vmax.f32 %v490_v29, 0.0  ;;  %v531_v40 = vmax.f32 %v437_v30, 0.0  ;;  %v493_v41 = vadd.f32 %v1050_v18, %v492_v37 }
  0xfb   : > { %v873_v42 = vpack.c.bf16 %v546_v33, %v546_v33  ;;  %v855_v43 = vpack.c.bf16 %v528_v34, %v528_v34  ;;  %v547_v44 = vmax.f32 %v501_v35, 0.0  ;;  %v529_v45 = vmax.f32 %v429_v36, 0.0 }
  0xfc   : > { %691 = vst.msk [vmem:[%s1062_s27 + $0x28] sm:$0xf] %vm680_vm1, %v857_v38  ;;  %v871_v46 = vpack.c.bf16 %v544_v39, %v544_v39  ;;  %v858_v47 = vpack.c.bf16 %v531_v40, %v531_v40  ;;  %v545_v48 = vmax.f32 %v493_v41, 0.0 }
  0xfd   : > { %707 = vst.msk [vmem:[%s1062_s27 + $0x68] sm:$0xf] %vm680_vm1, %v873_v42  ;;  %689 = vst.msk [vmem:[%s1062_s27 + $0x20] sm:$0xf] %vm680_vm1, %v855_v43  ;;  %v874_v49 = vpack.c.bf16 %v547_v44, %v547_v44  ;;  %v856_v50 = vpack.c.bf16 %v529_v45, %v529_v45  ;;  %v915_v51 = vpop.f32.mrb[12].mxu0 }
  0xfe   : > { %705 = vst.msk [vmem:[%s1062_s27 + $0x60] sm:$0xf] %vm680_vm1, %v871_v46  ;;  %692 = vst.msk [vmem:[%s1062_s27 + $0x2c] sm:$0xf] %vm680_vm1, %v858_v47  ;;  %v872_v52 = vpack.c.bf16 %v545_v48, %v545_v48  ;;  %v450_v53 = vadd.f32 %v915_v51, %v1050_v18  ;;  %v931_v54 = vpop.f32.mrb[12].mxu1  ;;  %v441_v55 = vpop.f32.mrb[13].mxu0 }
  0xff   : > { %708 = vst.msk [vmem:[%s1062_s27 + $0x6c] sm:$0xf] %vm680_vm1, %v874_v49  ;;  %690 = vst.msk [vmem:[%s1062_s27 + $0x24] sm:$0xf] %vm680_vm1, %v856_v50  ;;  %v514_v56 = vadd.f32 %v931_v54, %v1050_v18  ;;  %v442_v57 = vadd.f32 %v1050_v18, %v441_v55  ;;  %v505_v58 = vpop.f32.mrb[13].mxu1  ;;  %v916_v59 = vpop.f32.mrb[14].mxu0 }
 0x100   : > { %706 = vst.msk [vmem:[%s1062_s27 + $0x64] sm:$0xf] %vm680_vm1, %v872_v52  ;;  %v534_v60 = vmax.f32 %v450_v53, 0.0  ;;  %v506_v61 = vadd.f32 %v1050_v18, %v505_v58  ;;  %v453_v62 = vadd.f32 %v916_v59, %v1050_v18  ;;  %v932_v63 = vpop.f32.mrb[14].mxu1  ;;  %v444_v0 = vpop.f32.mrb[15].mxu0 }
 0x101   : > { %v550_v1 = vmax.f32 %v514_v56, 0.0  ;;  %v532_v2 = vmax.f32 %v442_v57, 0.0  ;;  %v517_v3 = vadd.f32 %v932_v63, %v1050_v18  ;;  %v445_v4 = vadd.f32 %v1050_v18, %v444_v0  ;;  %v508_v5 = vpop.f32.mrb[15].mxu1 }
 0x102   : > { %v861_v6 = vpack.c.bf16 %v534_v60, %v534_v60  ;;  %v548_v7 = vmax.f32 %v506_v61, 0.0  ;;  %v535_v8 = vmax.f32 %v453_v62, 0.0  ;;  %v509_v9 = vadd.f32 %v1050_v18, %v508_v5 }
 0x103   : > { %v877_v10 = vpack.c.bf16 %v550_v1, %v550_v1  ;;  %v859_v11 = vpack.c.bf16 %v532_v2, %v532_v2  ;;  %v551_v12 = vmax.f32 %v517_v3, 0.0  ;;  %v533_v13 = vmax.f32 %v445_v4, 0.0 }
 0x104   : > { %695 = vst.msk [vmem:[%s1062_s27 + $0x38] sm:$0xf] %vm680_vm1, %v861_v6  ;;  %v875_v14 = vpack.c.bf16 %v548_v7, %v548_v7  ;;  %v862_v15 = vpack.c.bf16 %v535_v8, %v535_v8  ;;  %v549_v16 = vmax.f32 %v509_v9, 0.0 }
 0x105   : > { %711 = vst.msk [vmem:[%s1062_s27 + $0x78] sm:$0xf] %vm680_vm1, %v877_v10  ;;  %693 = vst.msk [vmem:[%s1062_s27 + $0x30] sm:$0xf] %vm680_vm1, %v859_v11  ;;  %v878_v17 = vpack.c.bf16 %v551_v12, %v551_v12  ;;  %v860_v19 = vpack.c.bf16 %v533_v13, %v533_v13 }
 0x106   : > { %709 = vst.msk [vmem:[%s1062_s27 + $0x70] sm:$0xf] %vm680_vm1, %v875_v14  ;;  %696 = vst.msk [vmem:[%s1062_s27 + $0x3c] sm:$0xf] %vm680_vm1, %v862_v15  ;;  %v876_v18 = vpack.c.bf16 %v549_v16, %v549_v16 }
 0x107   : > { %712 = vst.msk [vmem:[%s1062_s27 + $0x7c] sm:$0xf] %vm680_vm1, %v878_v17  ;;  %694 = vst.msk [vmem:[%s1062_s27 + $0x34] sm:$0xf] %vm680_vm1, %v860_v19 }
 0x108   : > { %710 = vst.msk [vmem:[%s1062_s27 + $0x74] sm:$0xf] %vm680_vm1, %v876_v18 }
 0x109 PF: > { %s13_s12 = sadd.s32 1, %s969_s12  }
 0x10a   : > { %p10_p4 = scmp.ge.s32.totalorder %s13_s12, 4  }
 0x10c   :  { %12 = sbr.rel (!%p10_p4) target bundleno = 1 (0x1), region = 62 }

// kernel: custom-call
= control target key start
LH: loop header
LB: loop body
LE: loop exit
PB: predicated region body
PF: predicated region fallthrough
CT: control target
= control target key end

     0   :  { %5 = vsyncpa [#allocation9], 0  ;;  %v1086_v0 = vmov 2147483648   ;;  %v1087_v1 = vmov 2147483647   ;;  %s1221_s0 = inlined_call_operand.vmem [shape: f32[2,768], index: 0, kind: input, shape index: {}]   ;;  %s1222_s1 = inlined_call_operand.hbm [shape: f32[2,8], index: 1, kind: output, shape index: {0}]   ;;  %s1223_s2 = inlined_call_operand.vmem [shape: s32[2,8], index: 2, kind: output, shape index: {1}]  }
   0x1   :  { %7 = vst [vmem:[#allocation12] sm:$0xff] %v1086_v0  ;;  %8 = vst [vmem:[#allocation14] sm:$0xff] %v1087_v1 }
   0x2   :  { %v1022_v2 = vld [vmem:[%s1221_s0 + $0x8] sm:$0xf]  ;;  %v43_v3 = vlaneseq  ;;  %v27_v4 = vld [vmem:[%s1221_s0] sm:$0xff]  ;;  %v1088_v5 = vmov 2147483648   ;;  %v1089_v6 = vmov 2147483647  }
   0x3   :  { %39 = vst [vmem:[#allocation16 + $0x8] sm:$0xf] %v1022_v2  ;;  %84 = vst [vmem:[#allocation13] sm:$0xff] %v1088_v5  ;;  %v54_v10 = vsub.s32 2147483647, %v27_v4  ;;  %vm53_vm0 = vcmp.lt.s32.totalorder %v27_v4, 0 }
   0x4   :  { %85 = vst [vmem:[#allocation15] sm:$0xff] %v1089_v6  ;;  %v1118_v7 = vshrl.u32 %v43_v3, 7  ;;  %v44_v8 = vand.u32 127, %v43_v3  ;;  %s1122_s0 = smov 0  }
   0x5   :  { %v55_v13 = vsel %vm53_vm0, %v54_v10, %v27_v4 }
   0x6   :  { %v47_v9 = vshrl.u32 %v1118_v7, 1 }
   0x8   :  { %v49_v11 = vmul.u32 128, %v47_v9 }
   0xa   :  { %v50_v12 = vadd.s32 %v49_v11, %v44_v8  ;;  %v61_v14 = vld [vmem:[#allocation16 + $0x8] sm:$0xff] }
   0xb   :  { %vm62_vm1 = vcmp.lt.s32.totalorder %v61_v14, 0  ;;  %v63_v15 = vsub.s32 2147483647, %v61_v14 }
   0xc   :  { %vm57_vm2 = vcmp.lt.s32.totalorder %v50_v12, 768  ;;  %v65_v16 = vadd.s32 512, %v50_v12  ;;  %79 = vst [vmem:[#allocation17] sm:$0xff] %v50_v12 }
   0xd   :  { %v58_v17 = vsel %vm57_vm2, %v55_v13, 2147483648  ;;  %v64_v18 = vsel %vm62_vm1, %v63_v15, %v61_v14 }
   0xe   :  { %59 = vst [vmem:[#allocation16] sm:$0xff] %v58_v17  ;;  %vm66_vm3 = vcmp.lt.s32.totalorder %v65_v16, 768  ;;  %82 = vst [vmem:[#allocation17 + $0x8] sm:$0xff] %v65_v16 }
   0xf   :  { %v67_v19 = vsel %vm66_vm3, %v64_v18, 2147483648 }
  0x10   :  { %68 = vst [vmem:[#allocation16 + $0x8] sm:$0xff] %v67_v19 }
  0x11 LB: > { %s419_s13 = scalar_lea.vmem [#allocation13], %s1084_s0  ;;  %s421_s14 = scalar_lea.vmem [#allocation15], %s1084_s0  ;;  %s1084_s0 = sphi %s1122_s0, %s92_s0  }
  0x12   : > { %s92_s0 = sadd.s32 1, %s1084_s0  }
  0x13   : > { %v94_v21 = vld [vmem:[#allocation17] sm:$0xff]  ;;  %p89_p2 = scmp.ge.s32.totalorder %s92_s0, 8  }
  0x14   :  { %s1095_s0 = smov (%p89_p2), [#allocation8]  }
  0x15   : > { %v93_v20 = vld [vmem:[#allocation16] sm:$0xff]  ;;  %v99_v23 = vld [vmem:[#allocation17 + $0x8] sm:$0xff] }
  0x16   : > { %vm103_vm6 = vcmp.lt.s32.totalorder %v99_v23, %v94_v21 }
  0x17   : > { %v97_v22 = vld [vmem:[#allocation16 + $0x8] sm:$0xff] }
  0x18   : > { %vm101_vm4 = vcmp.gt.s32.totalorder %v97_v22, %v93_v20  ;;  %vm102_vm5 = vcmp.eq.s32.totalorder %v97_v22, %v93_v20 }
  0x19   : > { %vm104_vm7 = vmand %vm102_vm5, %vm103_vm6 }
  0x1a   : > { %vm105_vm8 = vmor %vm101_vm4, %vm104_vm7 }
  0x1b   : > { %v106_v24 = vsel %vm105_vm8, %v97_v22, %v93_v20  ;;  %v107_v25 = vsel %vm105_vm8, %v99_v23, %v94_v21 }
  0x1c   : > { %v109_v26 = vrot.slane %v106_v24, 2  ;;  %v110_v27 = vrot.slane %v107_v25, 2 }
  0x1e   : > { %vm112_vm9 = vcmp.gt.s32.totalorder %v109_v26, %v106_v24  ;;  %vm113_vm10 = vcmp.eq.s32.totalorder %v109_v26, %v106_v24  ;;  %vm114_vm11 = vcmp.lt.s32.totalorder %v110_v27, %v107_v25 }
  0x1f   : > { %vm115_vm12 = vmand %vm113_vm10, %vm114_vm11 }
  0x20   : > { %vm116_vm13 = vmor %vm112_vm9, %vm115_vm12 }
  0x21   : > { %v117_v28 = vsel %vm116_vm13, %v109_v26, %v106_v24  ;;  %v118_v29 = vsel %vm116_vm13, %v110_v27, %v107_v25 }
  0x22   : > { %v120_v30 = vrot.slane %v117_v28, 2  ;;  %v121_v31 = vrot.slane %v118_v29, 2 }
  0x24   : > { %vm123_vm14 = vcmp.gt.s32.totalorder %v120_v30, %v117_v28  ;;  %vm124_vm15 = vcmp.eq.s32.totalorder %v120_v30, %v117_v28  ;;  %vm125_vm0 = vcmp.lt.s32.totalorder %v121_v31, %v118_v29 }
  0x25   : > { %vm126_vm1 = vmand %vm124_vm15, %vm125_vm0 }
  0x26   : > { %vm127_vm2 = vmor %vm123_vm14, %vm126_vm1 }
  0x27   : > { %v128_v32 = vsel %vm127_vm2, %v120_v30, %v117_v28  ;;  %v129_v33 = vsel %vm127_vm2, %v121_v31, %v118_v29 }
  0x28   : > { %v131_v34 = vrot.slane %v128_v32, 2  ;;  %v132_v35 = vrot.slane %v129_v33, 2 }
  0x2a   : > { %vm134_vm3 = vcmp.gt.s32.totalorder %v131_v34, %v128_v32  ;;  %vm135_vm4 = vcmp.eq.s32.totalorder %v131_v34, %v128_v32  ;;  %vm136_vm5 = vcmp.lt.s32.totalorder %v132_v35, %v129_v33 }
  0x2b   : > { %vm137_vm6 = vmand %vm135_vm4, %vm136_vm5 }
  0x2c   : > { %vm138_vm7 = vmor %vm134_vm3, %vm137_vm6 }
  0x2d   : > { %v140_v36 = vsel %vm138_vm7, %v132_v35, %v129_v33  ;;  %v139_v37 = vsel %vm138_vm7, %v131_v34, %v128_v32 }
  0x2e   : > { %174 = vxpose.xlu1.b32.start [1/16] %v140_v36, 128  ;;  %142 = vxpose.xlu0.b32.start [1/16] %v139_v37, 128 }
  0x32   : > { %175 = vxpose.xlu1.b32.cont [2/16] %v140_v36, 128  ;;  %143 = vxpose.xlu0.b32.cont [2/16] %v139_v37, 128 }
  0x36   : > { %176 = vxpose.xlu1.b32.cont [3/16] %v140_v36, 128  ;;  %144 = vxpose.xlu0.b32.cont [3/16] %v139_v37, 128 }
  0x3a   : > { %177 = vxpose.xlu1.b32.cont [4/16] %v140_v36, 128  ;;  %145 = vxpose.xlu0.b32.cont [4/16] %v139_v37, 128 }
  0x3e   : > { %178 = vxpose.xlu1.b32.cont [5/16] %v140_v36, 128  ;;  %146 = vxpose.xlu0.b32.cont [5/16] %v139_v37, 128 }
  0x42   : > { %179 = vxpose.xlu1.b32.cont [6/16] %v140_v36, 128  ;;  %147 = vxpose.xlu0.b32.cont [6/16] %v139_v37, 128 }
  0x46   : > { %180 = vxpose.xlu1.b32.cont [7/16] %v140_v36, 128  ;;  %148 = vxpose.xlu0.b32.cont [7/16] %v139_v37, 128 }
  0x4a   : > { %181 = vxpose.xlu1.b32.cont [8/16] %v140_v36, 128  ;;  %149 = vxpose.xlu0.b32.cont [8/16] %v139_v37, 128 }
  0x4e   : > { %182 = vxpose.xlu1.b32.cont [9/16] %v140_v36, 128  ;;  %150 = vxpose.xlu0.b32.cont [9/16] %v139_v37, 128 }
  0x52   : > { %183 = vxpose.xlu1.b32.cont [10/16] %v140_v36, 128  ;;  %151 = vxpose.xlu0.b32.cont [10/16] %v139_v37, 128 }
  0x56   : > { %184 = vxpose.xlu1.b32.cont [11/16] %v140_v36, 128  ;;  %152 = vxpose.xlu0.b32.cont [11/16] %v139_v37, 128 }
  0x5a   : > { %185 = vxpose.xlu1.b32.cont [12/16] %v140_v36, 128  ;;  %153 = vxpose.xlu0.b32.cont [12/16] %v139_v37, 128 }
  0x5e   : > { %186 = vxpose.xlu1.b32.cont [13/16] %v140_v36, 128  ;;  %154 = vxpose.xlu0.b32.cont [13/16] %v139_v37, 128 }
  0x62   : > { %187 = vxpose.xlu1.b32.cont [14/16] %v140_v36, 128  ;;  %155 = vxpose.xlu0.b32.cont [14/16] %v139_v37, 128 }
  0x66   : > { %188 = vxpose.xlu1.b32.cont [15/16] %v140_v36, 128  ;;  %156 = vxpose.xlu0.b32.cont [15/16] %v139_v37, 128 }
  0x6a   : > { %189 = vxpose.xlu1.b32.end [16/16] %v140_v36, 128  ;;  %157 = vxpose.xlu0.b32.end [16/16] %v139_v37, 128 }
  0xae   : > { %v190_v38 = vpop.trf.xlu1  ;;  %v158_v39 = vpop.trf.xlu0 }
  0xb2   : > { %v191_v40 = vpop.trf.xlu1  ;;  %v159_v41 = vpop.trf.xlu0 }
  0xb3   : > { %vm210_vm8 = vcmp.lt.s32.totalorder %v191_v40, %v190_v38  ;;  %vm208_vm9 = vcmp.gt.s32.totalorder %v159_v41, %v158_v39  ;;  %vm209_vm10 = vcmp.eq.s32.totalorder %v159_v41, %v158_v39 }
  0xb4   : > { %vm211_vm11 = vmand %vm209_vm10, %vm210_vm8 }
  0xb5   : > { %vm212_vm12 = vmor %vm208_vm9, %vm211_vm11 }
  0xb6   : > { %v213_v42 = vsel %vm212_vm12, %v159_v41, %v158_v39  ;;  %v192_v43 = vpop.trf.xlu1  ;;  %v214_v44 = vsel %vm212_vm12, %v191_v40, %v190_v38  ;;  %v160_v45 = vpop.trf.xlu0 }
  0xb7   : > { %vm219_vm13 = vcmp.lt.s32.totalorder %v192_v43, %v214_v44  ;;  %vm217_vm14 = vcmp.gt.s32.totalorder %v160_v45, %v213_v42  ;;  %vm218_vm15 = vcmp.eq.s32.totalorder %v160_v45, %v213_v42 }
  0xb8   : > { %vm220_vm0 = vmand %vm218_vm15, %vm219_vm13 }
  0xb9   : > { %vm221_vm1 = vmor %vm217_vm14, %vm220_vm0 }
  0xba   : > { %v222_v46 = vsel %vm221_vm1, %v160_v45, %v213_v42  ;;  %v193_v47 = vpop.trf.xlu1  ;;  %v223_v48 = vsel %vm221_vm1, %v192_v43, %v214_v44  ;;  %v161_v49 = vpop.trf.xlu0 }
  0xbb   : > { %vm228_vm2 = vcmp.lt.s32.totalorder %v193_v47, %v223_v48  ;;  %vm226_vm3 = vcmp.gt.s32.totalorder %v161_v49, %v222_v46  ;;  %vm227_vm4 = vcmp.eq.s32.totalorder %v161_v49, %v222_v46 }
  0xbc   : > { %vm229_vm5 = vmand %vm227_vm4, %vm228_vm2 }
  0xbd   : > { %vm230_vm6 = vmor %vm226_vm3, %vm229_vm5 }
  0xbe   : > { %v231_v50 = vsel %vm230_vm6, %v161_v49, %v222_v46  ;;  %v194_v51 = vpop.trf.xlu1  ;;  %v232_v52 = vsel %vm230_vm6, %v193_v47, %v223_v48  ;;  %v162_v53 = vpop.trf.xlu0 }
  0xbf   : > { %vm237_vm7 = vcmp.lt.s32.totalorder %v194_v51, %v232_v52  ;;  %vm235_vm8 = vcmp.gt.s32.totalorder %v162_v53, %v231_v50  ;;  %vm236_vm9 = vcmp.eq.s32.totalorder %v162_v53, %v231_v50 }
  0xc0   : > { %vm238_vm10 = vmand %vm236_vm9, %vm237_vm7 }
  0xc1   : > { %vm239_vm11 = vmor %vm235_vm8, %vm238_vm10 }
  0xc2   : > { %v240_v54 = vsel %vm239_vm11, %v162_v53, %v231_v50  ;;  %v195_v55 = vpop.trf.xlu1  ;;  %v241_v56 = vsel %vm239_vm11, %v194_v51, %v232_v52  ;;  %v163_v57 = vpop.trf.xlu0 }
  0xc3   : > { %vm246_vm12 = vcmp.lt.s32.totalorder %v195_v55, %v241_v56  ;;  %vm244_vm13 = vcmp.gt.s32.totalorder %v163_v57, %v240_v54  ;;  %vm245_vm14 = vcmp.eq.s32.totalorder %v163_v57, %v240_v54 }
  0xc4   : > { %vm247_vm15 = vmand %vm245_vm14, %vm246_vm12 }
  0xc5   : > { %vm248_vm0 = vmor %vm244_vm13, %vm247_vm15 }
  0xc6   : > { %v249_v58 = vsel %vm248_vm0, %v163_v57, %v240_v54  ;;  %v196_v59 = vpop.trf.xlu1  ;;  %v250_v60 = vsel %vm248_vm0, %v195_v55, %v241_v56  ;;  %v164_v61 = vpop.trf.xlu0 }
  0xc7   : > { %vm255_vm1 = vcmp.lt.s32.totalorder %v196_v59, %v250_v60  ;;  %vm253_vm2 = vcmp.gt.s32.totalorder %v164_v61, %v249_v58  ;;  %vm254_vm3 = vcmp.eq.s32.totalorder %v164_v61, %v249_v58 }
  0xc8   : > { %vm256_vm4 = vmand %vm254_vm3, %vm255_vm1 }
  0xc9   : > { %vm257_vm5 = vmor %vm253_vm2, %vm256_vm4 }
  0xca   : > { %v258_v62 = vsel %vm257_vm5, %v164_v61, %v249_v58  ;;  %v197_v63 = vpop.trf.xlu1  ;;  %v259_v0 = vsel %vm257_vm5, %v196_v59, %v250_v60  ;;  %v165_v1 = vpop.trf.xlu0 }
  0xcb   : > { %vm264_vm6 = vcmp.lt.s32.totalorder %v197_v63, %v259_v0  ;;  %vm262_vm7 = vcmp.gt.s32.totalorder %v165_v1, %v258_v62  ;;  %vm263_vm8 = vcmp.eq.s32.totalorder %v165_v1, %v258_v62 }
  0xcc   : > { %vm265_vm9 = vmand %vm263_vm8, %vm264_vm6 }
  0xcd   : > { %vm266_vm10 = vmor %vm262_vm7, %vm265_vm9 }
  0xce   : > { %v267_v2 = vsel %vm266_vm10, %v165_v1, %v258_v62  ;;  %v198_v4 = vpop.trf.xlu1  ;;  %v268_v5 = vsel %vm266_vm10, %v197_v63, %v259_v0  ;;  %v166_v6 = vpop.trf.xlu0 }
  0xcf   : > { %vm273_vm11 = vcmp.lt.s32.totalorder %v198_v4, %v268_v5  ;;  %vm271_vm12 = vcmp.gt.s32.totalorder %v166_v6, %v267_v2  ;;  %vm272_vm13 = vcmp.eq.s32.totalorder %v166_v6, %v267_v2 }
  0xd0   : > { %vm274_vm14 = vmand %vm272_vm13, %vm273_vm11 }
  0xd1   : > { %vm275_vm15 = vmor %vm271_vm12, %vm274_vm14 }
  0xd2   : > { %v276_v8 = vsel %vm275_vm15, %v166_v6, %v267_v2  ;;  %v199_v9 = vpop.trf.xlu1  ;;  %v277_v10 = vsel %vm275_vm15, %v198_v4, %v268_v5  ;;  %v167_v11 = vpop.trf.xlu0  ;;  %v1090_v6 = vmov 2147483648  }
  0xd3   : > { %vm282_vm0 = vcmp.lt.s32.totalorder %v199_v9, %v277_v10  ;;  %vm280_vm1 = vcmp.gt.s32.totalorder %v167_v11, %v276_v8  ;;  %vm281_vm2 = vcmp.eq.s32.totalorder %v167_v11, %v276_v8 }
  0xd4   : > { %vm283_vm3 = vmand %vm281_vm2, %vm282_vm0 }
  0xd5   : > { %vm284_vm4 = vmor %vm280_vm1, %vm283_vm3 }
  0xd6   : > { %v285_v12 = vsel %vm284_vm4, %v167_v11, %v276_v8  ;;  %v200_v13 = vpop.trf.xlu1  ;;  %v286_v14 = vsel %vm284_vm4, %v199_v9, %v277_v10  ;;  %v168_v15 = vpop.trf.xlu0  ;;  %v1091_v8 = vmov 2147483647  }
  0xd7   : > { %vm291_vm5 = vcmp.lt.s32.totalorder %v200_v13, %v286_v14  ;;  %vm289_vm6 = vcmp.gt.s32.totalorder %v168_v15, %v285_v12  ;;  %vm290_vm7 = vcmp.eq.s32.totalorder %v168_v15, %v285_v12 }
  0xd8   : > { %vm292_vm8 = vmand %vm290_vm7, %vm291_vm5 }
  0xd9   : > { %vm293_vm9 = vmor %vm289_vm6, %vm292_vm8 }
  0xda   : > { %v294_v16 = vsel %vm293_vm9, %v168_v15, %v285_v12  ;;  %v201_v17 = vpop.trf.xlu1  ;;  %v295_v18 = vsel %vm293_vm9, %v200_v13, %v286_v14  ;;  %v169_v19 = vpop.trf.xlu0  ;;  %v517_v13 = vld [vmem:[#allocation12] sm:$0xff] (%p89_p2)  ;;  %v518_v14 = vld [vmem:[#allocation14] sm:$0xff] (%p89_p2)  ;;  %v1092_v15 = vmov (%p89_p2), 839939668  }
  0xdb   : > { %vm300_vm10 = vcmp.lt.s32.totalorder %v201_v17, %v295_v18  ;;  %vm298_vm11 = vcmp.gt.s32.totalorder %v169_v19, %v294_v16  ;;  %vm299_vm12 = vcmp.eq.s32.totalorder %v169_v19, %v294_v16 }
  0xdc   : > { %vm301_vm13 = vmand %vm299_vm12, %vm300_vm10 }
  0xdd   : > { %vm302_vm14 = vmor %vm298_vm11, %vm301_vm13 }
  0xde   : > { %v303_v20 = vsel %vm302_vm14, %v169_v19, %v294_v16  ;;  %v202_v21 = vpop.trf.xlu1  ;;  %v304_v22 = vsel %vm302_vm14, %v201_v17, %v295_v18  ;;  %v170_v23 = vpop.trf.xlu0  ;;  %v542_v16 = vunpack.c.l.s4 (%p89_p2), %v1092_v15  ;;  %v1093_v17 = vmov (%p89_p2), 1417023538  }
  0xdf   : > { %vm309_vm15 = vcmp.lt.s32.totalorder %v202_v21, %v304_v22  ;;  %vm307_vm0 = vcmp.gt.s32.totalorder %v170_v23, %v303_v20  ;;  %vm308_vm1 = vcmp.eq.s32.totalorder %v170_v23, %v303_v20  ;;  %v570_v18 = vunpack.c.l.s4 (%p89_p2), %v1093_v17 }
  0xe0   : > { %vm310_vm2 = vmand %vm308_vm1, %vm309_vm15  ;;  %v543_v19 = vunpack.c.0.s8 (%p89_p2), %v542_v16 }
  0xe1   : > { %vm311_vm3 = vmor %vm307_vm0, %vm310_vm2 }
  0xe2   : > { %v312_v24 = vsel %vm311_vm3, %v170_v23, %v303_v20  ;;  %v203_v25 = vpop.trf.xlu1  ;;  %v313_v26 = vsel %vm311_vm3, %v202_v21, %v304_v22  ;;  %v171_v27 = vpop.trf.xlu0  ;;  %v563_v23 = vand.u32 (%p89_p2), 4, %v1118_v7 }
  0xe3   : > { %vm318_vm4 = vcmp.lt.s32.totalorder %v203_v25, %v313_v26  ;;  %vm316_vm5 = vcmp.gt.s32.totalorder %v171_v27, %v312_v24  ;;  %vm317_vm6 = vcmp.eq.s32.totalorder %v171_v27, %v312_v24 }
  0xe4   : > { %vm319_vm7 = vmand %vm317_vm6, %vm318_vm4 }
  0xe5   : > { %vm320_vm8 = vmor %vm316_vm5, %vm319_vm7 }
  0xe6   : > { %v321_v28 = vsel %vm320_vm8, %v171_v27, %v312_v24  ;;  %v204_v29 = vpop.trf.xlu1  ;;  %v322_v30 = vsel %vm320_vm8, %v203_v25, %v313_v26  ;;  %v172_v31 = vpop.trf.xlu0  ;;  %v571_v25 = vunpack.c.0.s8 (%p89_p2), %v570_v18 }
  0xe7   : > { %vm327_vm9 = vcmp.lt.s32.totalorder %v204_v29, %v322_v30  ;;  %vm325_vm10 = vcmp.gt.s32.totalorder %v172_v31, %v321_v28  ;;  %vm326_vm11 = vcmp.eq.s32.totalorder %v172_v31, %v321_v28 }
  0xe8   : > { %vm328_vm12 = vmand %vm326_vm11, %vm327_vm9 }
  0xe9   : > { %vm329_vm13 = vmor %vm325_vm10, %vm328_vm12 }
  0xea   : > { %v330_v32 = vsel %vm329_vm13, %v172_v31, %v321_v28  ;;  %v205_v33 = vpop.trf.xlu1  ;;  %v331_v34 = vsel %vm329_vm13, %v204_v29, %v322_v30  ;;  %v173_v35 = vpop.trf.xlu0  ;;  %v1094_v31 = vmov (%p89_p2), 1732584193  }
  0xeb   : > { %vm336_vm14 = vcmp.lt.s32.totalorder %v205_v33, %v331_v34  ;;  %vm334_vm15 = vcmp.gt.s32.totalorder %v173_v35, %v330_v32  ;;  %vm335_vm0 = vcmp.eq.s32.totalorder %v173_v35, %v330_v32 }
  0xec   : > { %vm337_vm1 = vmand %vm335_vm0, %vm336_vm14 }
  0xed   : > { %vm338_vm2 = vmor %vm334_vm15, %vm337_vm1 }
  0xee   : > { %v339_v36 = vsel %vm338_vm2, %v173_v35, %v330_v32  ;;  %v340_v37 = vsel %vm338_vm2, %v205_v33, %v331_v34  ;;  %v598_v32 = vunpack.c.l.s4 (%p89_p2), %v1094_v31  ;;  %v1147_v33 = vsub.s32 (%p89_p2), %v571_v25, %v1118_v7 }
  0xef   : > { %v342_v38 = vrot.slane %v339_v36, 1  ;;  %v343_v39 = vrot.slane %v340_v37, 1  ;;  %v591_v34 = vand.u32 (%p89_p2), 2, %v1118_v7 }
  0xf1   : > { %vm345_vm3 = vcmp.gt.s32.totalorder %v342_v38, %v339_v36  ;;  %vm346_vm4 = vcmp.eq.s32.totalorder %v342_v38, %v339_v36  ;;  %vm347_vm5 = vcmp.lt.s32.totalorder %v343_v39, %v340_v37 }
  0xf2   : > { %vm348_vm6 = vmand %vm346_vm4, %vm347_vm5 }
  0xf3   : > { %vm349_vm7 = vmor %vm345_vm3, %vm348_vm6 }
  0xf4   : > { %v350_v40 = vsel %vm349_vm7, %v342_v38, %v339_v36  ;;  %v351_v41 = vsel %vm349_vm7, %v343_v39, %v340_v37  ;;  %v599_v37 = vunpack.c.0.s8 (%p89_p2), %v598_v32 }
  0xf5   : > { %v353_v42 = vrot.slane %v350_v40, 1  ;;  %v354_v43 = vrot.slane %v351_v41, 1 }
  0xf7   : > { %vm356_vm8 = vcmp.gt.s32.totalorder %v353_v42, %v350_v40  ;;  %vm357_vm9 = vcmp.eq.s32.totalorder %v353_v42, %v350_v40  ;;  %vm358_vm10 = vcmp.lt.s32.totalorder %v354_v43, %v351_v41 }
  0xf8   : > { %vm359_vm11 = vmand %vm357_vm9, %vm358_vm10 }
  0xf9   : > { %vm360_vm12 = vmor %vm356_vm8, %vm359_vm11 }
  0xfa   : > { %v361_v44 = vsel %vm360_vm12, %v353_v42, %v350_v40  ;;  %v362_v45 = vsel %vm360_vm12, %v354_v43, %v351_v41  ;;  %v1161_v42 = vsub.s32 (%p89_p2), %v599_v37, %v1118_v7 }
  0xfb   : > { %v364_v46 = vrot.slane %v361_v44, 1  ;;  %v365_v47 = vrot.slane %v362_v45, 1 }
  0xfd   : > { %vm369_vm13 = vcmp.lt.s32.totalorder %v365_v47, %v362_v45  ;;  %vm367_vm14 = vcmp.gt.s32.totalorder %v364_v46, %v361_v44  ;;  %vm368_vm15 = vcmp.eq.s32.totalorder %v364_v46, %v361_v44 }
  0xfe   : > { %vm370_vm0 = vmand %vm368_vm15, %vm369_vm13 }
  0xff   : > { %vm371_vm1 = vmor %vm367_vm14, %vm370_vm0 }
 0x100   : > { %v372_v48 = vsel %vm371_vm1, %v364_v46, %v361_v44  ;;  %v373_v49 = vsel %vm371_vm1, %v365_v47, %v362_v45  ;;  %v619_v46 = vand.u32 (%p89_p2), 1, %v1118_v7 }
 0x101   : > { %v375_v50 = vrot.slane %v372_v48, 1  ;;  %v376_v51 = vrot.slane %v373_v49, 1 }
 0x103   : > { %vm378_vm2 = vcmp.gt.s32.totalorder %v375_v50, %v372_v48  ;;  %vm379_vm3 = vcmp.eq.s32.totalorder %v375_v50, %v372_v48  ;;  %vm380_vm4 = vcmp.lt.s32.totalorder %v376_v51, %v373_v49 }
 0x104   : > { %vm381_vm5 = vmand %vm379_vm3, %vm380_vm4 }
 0x105   : > { %vm382_vm6 = vmor %vm378_vm2, %vm381_vm5 }
 0x106   : > { %v383_v52 = vsel %vm382_vm6, %v375_v50, %v372_v48  ;;  %v384_v53 = vsel %vm382_vm6, %v376_v51, %v373_v49 }
 0x107   : > { %v386_v54 = vrot.slane %v383_v52, 1  ;;  %v387_v55 = vrot.slane %v384_v53, 1 }
 0x109   : > { %vm389_vm7 = vcmp.gt.s32.totalorder %v386_v54, %v383_v52  ;;  %vm390_vm8 = vcmp.eq.s32.totalorder %v386_v54, %v383_v52  ;;  %vm391_vm9 = vcmp.lt.s32.totalorder %v387_v55, %v384_v53 }
 0x10a   : > { %vm392_vm10 = vmand %vm390_vm8, %vm391_vm9 }
 0x10b   : > { %vm393_vm11 = vmor %vm389_vm7, %vm392_vm10 }
 0x10c   : > { %v394_v56 = vsel %vm393_vm11, %v386_v54, %v383_v52  ;;  %v395_v57 = vsel %vm393_vm11, %v387_v55, %v384_v53 }
 0x10d   : > { %v397_v58 = vrot.slane %v394_v56, 1  ;;  %v398_v59 = vrot.slane %v395_v57, 1 }
 0x10f   : > { %vm400_vm12 = vcmp.gt.s32.totalorder %v397_v58, %v394_v56  ;;  %vm401_vm13 = vcmp.eq.s32.totalorder %v397_v58, %v394_v56  ;;  %vm402_vm14 = vcmp.lt.s32.totalorder %v398_v59, %v395_v57 }
 0x110   : > { %vm403_vm15 = vmand %vm401_vm13, %vm402_vm14  ;;  %vm1141_vm13 = vcmp.ne.s32.totalorder (%p89_p2), %v563_v23, 0 }
 0x111   : > { %vm404_vm0 = vmor %vm400_vm12, %vm403_vm15 }
 0x112   : > { %v405_v60 = vsel %vm404_vm0, %v397_v58, %v394_v56  ;;  %v406_v61 = vsel %vm404_vm0, %v398_v59, %v395_v57 }
 0x113   : > { %v408_v62 = vrot.slane %v405_v60, 1  ;;  %v409_v63 = vrot.slane %v406_v61, 1 }
 0x115   : > { %vm411_vm1 = vcmp.gt.s32.totalorder %v408_v62, %v405_v60  ;;  %vm412_vm2 = vcmp.eq.s32.totalorder %v408_v62, %v405_v60  ;;  %vm413_vm3 = vcmp.lt.s32.totalorder %v409_v63, %v406_v61 }
 0x116   : > { %vm414_vm4 = vmand %vm412_vm2, %vm413_vm3 }
 0x117   : > { %vm415_vm5 = vmor %vm411_vm1, %vm414_vm4 }
 0x118   : > { %v417_v0 = vsel %vm415_vm5, %v409_v63, %v406_v61  ;;  %v416_v1 = vsel %vm415_vm5, %v408_v62, %v405_v60 }
 0x119   : > { %424 = vxpose.xlu0.b32.start.end [1/1] (short) (narrow) %v417_v0, 8  ;;  %420 = vst [vmem:[%s419_s13] sm:$0x1] %v416_v1  ;;  %422 = vst [vmem:[%s421_s14] sm:$0x1] %v417_v0  ;;  %s958_s13 = sshll.u32 (%p89_p2), %s1095_s0, 4  ;;  %s959_s13 = int_to_ptr.vmem [resolvable:$true] %s958_s13 }
 0x11a   :  { %s1054_s14 = scalar_lea.vmem (%p89_p2), %s959_s13, 32  ;;  %p1059_p4 = scmp.lt.s32.totalorder (%p89_p2), %s959_s13, %s959_s13 }
 0x11b   :  { %p1055_p3 = scmp.ne.s32.totalorder (%p89_p2), %s959_s13, %s1054_s14  ;;  %p1060_p5 = scmp.lt.s32.totalorder (%p89_p2), %s1054_s14, %s1054_s14 }
 0x11d   :  { %p1061_p6 = por (%p89_p2), %p1060_p5, %p1059_p4 }
 0x11f   :  { %p1062_p7 = pnand (%p89_p2), %p1061_p6, %p1055_p3 }
 0x120   :  { %v505_v11 = vld [vmem:[#allocation13 + $0x7] ss:$-1 sm:$0xff] (%p89_p2)  ;;  %v511_v12 = vld [vmem:[#allocation15 + $0x7] ss:$-1 sm:$0xff] (%p89_p2) }
 0x121   :  { %vm523_vm8 = vcmp.gt.s32.totalorder (%p89_p2), %v517_v13, %v505_v11  ;;  %vm524_vm9 = vcmp.eq.s32.totalorder (%p89_p2), %v517_v13, %v505_v11  ;;  %vm525_vm10 = vcmp.lt.s32.totalorder (%p89_p2), %v518_v14, %v511_v12 }
 0x122   :  { %vm526_vm11 = vmand (%p89_p2), %vm524_vm9, %vm525_vm10  ;;  %vm1154_vm9 = vcmp.ne.s32.totalorder (%p89_p2), %v591_v34, 0 }
 0x123   :  { %vm527_vm12 = vmor (%p89_p2), %vm523_vm8, %vm526_vm11 }
 0x124   :  { %v528_v20 = vsel (%p89_p2), %vm527_vm12, %v517_v13, %v505_v11  ;;  %v530_v21 = vsel (%p89_p2), %vm527_vm12, %v505_v11, %v517_v13  ;;  %v532_v22 = vsel (%p89_p2), %vm527_vm12, %v518_v14, %v511_v12  ;;  %v534_v24 = vsel (%p89_p2), %vm527_vm12, %v511_v12, %v518_v14 }
 0x199   : > { %v440_v2 = vpop.trf.xlu0 }
 0x19a   : > { %v479_v4 = vrot.slane %v440_v2, 1  ;;  %1031 = vpush %v440_v2 }
 0x19c   : > { %1033 = vpush %v479_v4 }
 0x1cb   : > { %s1032_s15 = spop %1031 }
 0x1cc   : > { %s457_s16 = sshrl.u32 %s1032_s15, 9  ;;  %s459_s17 = ssub.s32 0, %s1032_s15 }
 0x1cd   : > { %p458_p0 = scmp.lt.s32.totalorder %s1032_s15, 0  ;;  %s1023_s18 = smin.u32 %s1032_s15, %s459_s17 }
 0x1ce   : > { %s461_s19 = sand.u32 511, %s1023_s18   ;;  %s1025_s20 = sshll.u32 %s457_s16, 3 }
 0x1cf   : > { %s462_s21 = ssub.s32 0, %s461_s19  ;;  %s1034_s22 = spop %1033 }
 0x1d0   : > { %s1231_s21 = smov (!%p458_p0, %s462_s21), %s461_s19  ;;  %s483_s26 = ssub.s32 0, %s1034_s22 }
 0x1d1   : > { %s464_s23 = sshrl.u32 %s1231_s21, 7  ;;  %s466_s24 = sand.u32 127, %s1231_s21  }
 0x1d2   : > { %s1024_s25 = sshll.u32 %s464_s23, 8  ;;  %s1027_s28 = smin.u32 %s1034_s22, %s483_s26 }
 0x1d3   : > { %s467_s27 = sadd.s32 %s1024_s25, %s466_s24  ;;  %p482_p1 = scmp.lt.s32.totalorder %s1034_s22, 0 }
 0x1d4   : > { %v469_v5 = vstv %s467_s27  ;;  %s485_s29 = sand.u32 511, %s1027_s28   ;;  %s473_s3 = scalar_lea.vmem [#allocation16], %s1025_s20 }
 0x1d5   : > { %vm471_vm6 = vcmp.eq.s32.totalorder %v43_v3, %v469_v5  ;;  %s486_s30 = ssub.s32 0, %s485_s29  ;;  %s476_s4 = scalar_lea.vmem [#allocation17], %s1025_s20 }
 0x1d6   : > { %474 = vst.msk [vmem:[%s473_s3] sm:$0xff] %vm471_vm6, %v1090_v6  ;;  %477 = vst.msk [vmem:[%s476_s4] sm:$0xff] %vm471_vm6, %v1091_v8  ;;  %s1233_s30 = smov (!%p482_p1, %s486_s30), %s485_s29  ;;  %s481_s5 = sshrl.u32 %s1034_s22, 9 }
 0x1d7   : > { %s488_s6 = sshrl.u32 %s1233_s30, 7  ;;  %s490_s7 = sand.u32 127, %s1233_s30  }
 0x1d8   : > { %s1028_s8 = sshll.u32 %s488_s6, 8  ;;  %s1029_s10 = sshll.u32 %s481_s5, 3 }
 0x1d9   : > { %s491_s9 = sadd.s32 %s1028_s8, %s490_s7  ;;  %s497_s11 = scalar_lea.vmem [#allocation16], %s1029_s10 }
 0x1da   : > { %v493_v9 = vstv %s491_s9  ;;  %s500_s12 = scalar_lea.vmem [#allocation17], %s1029_s10  ;;  %91 = sbr.rel (!%p89_p2) target bundleno = 17 (0x11), region = 107 }
 0x1db   : > { %v494_v10 = vadd.s32 128, %v493_v9 }
 0x1dd   : > { %vm495_vm7 = vcmp.eq.s32.totalorder %v43_v3, %v494_v10  ;;  %v1136_v3 = vsub.s32 (%p89_p2), %v543_v19, %v1118_v7 }
 0x1de   : > { %498 = vst.msk [vmem:[%s497_s11] sm:$0xff] %vm495_vm7, %v1090_v6  ;;  %501 = vst.msk [vmem:[%s500_s12] sm:$0xff] %vm495_vm7, %v1091_v8 }
 0x1df   :  { %v547_v26 = vrot.slane (%p89_p2), %v528_v20, %v1136_v3  ;;  %v554_v27 = vrot.slane (%p89_p2), %v532_v22, %v1136_v3  ;;  %v728_v28 = vrot.slane (%p89_p2), %v530_v21, %v1136_v3  ;;  %v735_v30 = vrot.slane (%p89_p2), %v534_v24, %v1136_v3 }
 0x1e1   :  { %vm556_vm14 = vcmp.gt.s32.totalorder %v528_v20, %v547_v26  ;;  %vm557_vm15 = vcmp.eq.s32.totalorder %v528_v20, %v547_v26  ;;  %vm558_vm0 = vcmp.lt.s32.totalorder %v532_v22, %v554_v27  ;;  %vm738_vm2 = vcmp.eq.s32.totalorder %v530_v21, %v728_v28 }
 0x1e2   :  { %vm559_vm1 = vmand %vm557_vm15, %vm558_vm0  ;;  %vm739_vm3 = vcmp.lt.s32.totalorder %v534_v24, %v735_v30  ;;  %vm737_vm5 = vcmp.gt.s32.totalorder %v530_v21, %v728_v28 }
 0x1e3   :  { %vm560_vm4 = vmor %vm556_vm14, %vm559_vm1 }
 0x1e4   :  { %vm565_vm6 = vmxor %vm560_vm4, %vm1141_vm13 }
 0x1e5   :  { %v566_v35 = vsel %vm565_vm6, %v528_v20, %v547_v26  ;;  %v567_v36 = vsel %vm565_vm6, %v532_v22, %v554_v27  ;;  %vm740_vm7 = vmand %vm738_vm2, %vm739_vm3 }
 0x1e6   :  { %v575_v38 = vrot.slane %v566_v35, %v1147_v33  ;;  %v582_v39 = vrot.slane %v567_v36, %v1147_v33  ;;  %vm741_vm8 = vmor %vm737_vm5, %vm740_vm7 }
 0x1e7   :  { %vm746_vm10 = vmxor %vm741_vm8, %vm1141_vm13 }
 0x1e8   :  { %vm584_vm11 = vcmp.gt.s32.totalorder %v566_v35, %v575_v38  ;;  %vm585_vm12 = vcmp.eq.s32.totalorder %v566_v35, %v575_v38  ;;  %vm586_vm14 = vcmp.lt.s32.totalorder %v567_v36, %v582_v39  ;;  %v747_v41 = vsel %vm746_vm10, %v530_v21, %v728_v28 }
 0x1e9   :  { %vm587_vm15 = vmand %vm585_vm12, %vm586_vm14  ;;  %v748_v43 = vsel %vm746_vm10, %v534_v24, %v735_v30  ;;  %v756_v44 = vrot.slane %v747_v41, %v1147_v33 }
 0x1ea   :  { %vm588_vm0 = vmor %vm584_vm11, %vm587_vm15  ;;  %v763_v45 = vrot.slane %v748_v43, %v1147_v33  ;;  %vm1170_vm11 = vcmp.ne.s32.totalorder %v619_v46, 0 }
 0x1eb   :  { %vm593_vm1 = vmxor %vm588_vm0, %vm1154_vm9  ;;  %vm765_vm2 = vcmp.gt.s32.totalorder %v747_v41, %v756_v44  ;;  %vm766_vm3 = vcmp.eq.s32.totalorder %v747_v41, %v756_v44 }
 0x1ec   :  { %v594_v47 = vsel %vm593_vm1, %v566_v35, %v575_v38  ;;  %v595_v48 = vsel %vm593_vm1, %v567_v36, %v582_v39  ;;  %vm767_vm4 = vcmp.lt.s32.totalorder %v748_v43, %v763_v45 }
 0x1ed   :  { %v603_v49 = vrot.slane %v594_v47, %v1161_v42  ;;  %v610_v50 = vrot.slane %v595_v48, %v1161_v42  ;;  %vm768_vm5 = vmand %vm766_vm3, %vm767_vm4 }
 0x1ee   :  { %vm769_vm6 = vmor %vm765_vm2, %vm768_vm5 }
 0x1ef   :  { %vm612_vm7 = vcmp.gt.s32.totalorder %v594_v47, %v603_v49  ;;  %vm613_vm8 = vcmp.eq.s32.totalorder %v594_v47, %v603_v49  ;;  %vm614_vm10 = vcmp.lt.s32.totalorder %v595_v48, %v610_v50  ;;  %vm774_vm12 = vmxor %vm769_vm6, %vm1154_vm9 }
 0x1f0   :  { %vm615_vm14 = vmand %vm613_vm8, %vm614_vm10  ;;  %v775_v7 = vsel %vm774_vm12, %v747_v41, %v756_v44  ;;  %v776_v52 = vsel %vm774_vm12, %v748_v43, %v763_v45 }
 0x1f1   :  { %vm616_vm15 = vmor %vm612_vm7, %vm615_vm14  ;;  %v784_v53 = vrot.slane %v775_v7, %v1161_v42  ;;  %v791_v54 = vrot.slane %v776_v52, %v1161_v42 }
 0x1f2   :  { %vm621_vm0 = vmxor %vm616_vm15, %vm1170_vm11 }
 0x1f3   :  { %v622_v55 = vsel %vm621_vm0, %v594_v47, %v603_v49  ;;  %v623_v56 = vsel %vm621_vm0, %v595_v48, %v610_v50  ;;  %vm793_vm1 = vcmp.gt.s32.totalorder %v775_v7, %v784_v53  ;;  %vm794_vm2 = vcmp.eq.s32.totalorder %v775_v7, %v784_v53 }
 0x1f4   :  { %v637_v57 = vrot.slane %v622_v55, %v1136_v3  ;;  %v644_v58 = vrot.slane %v623_v56, %v1136_v3  ;;  %vm795_vm3 = vcmp.lt.s32.totalorder %v776_v52, %v791_v54 }
 0x1f5   :  { %vm796_vm4 = vmand %vm794_vm2, %vm795_vm3 }
 0x1f6   :  { %vm646_vm5 = vcmp.gt.s32.totalorder %v622_v55, %v637_v57  ;;  %vm647_vm6 = vcmp.eq.s32.totalorder %v622_v55, %v637_v57  ;;  %vm648_vm7 = vcmp.lt.s32.totalorder %v623_v56, %v644_v58  ;;  %vm797_vm8 = vmor %vm793_vm1, %vm796_vm4 }
 0x1f7   :  { %vm649_vm10 = vmand %vm647_vm6, %vm648_vm7 }
 0x1f8   :  { %vm650_vm12 = vmor %vm646_vm5, %vm649_vm10 }
 0x1f9   :  { %vm655_vm14 = vmxor %vm650_vm12, %vm1141_vm13 }
 0x1fa   :  { %v656_v59 = vsel %vm655_vm14, %v622_v55, %v637_v57  ;;  %v657_v60 = vsel %vm655_vm14, %v623_v56, %v644_v58  ;;  %vm802_vm15 = vmxor %vm797_vm8, %vm1170_vm11 }
 0x1fb   :  { %v665_v61 = vrot.slane %v656_v59, %v1147_v33  ;;  %v672_v62 = vrot.slane %v657_v60, %v1147_v33  ;;  %v803_v63 = vsel %vm802_vm15, %v775_v7, %v784_v53  ;;  %v804_v0 = vsel %vm802_vm15, %v776_v52, %v791_v54 }
 0x1fc   :  { %v818_v1 = vrot.slane %v803_v63, %v1136_v3  ;;  %v825_v2 = vrot.slane %v804_v0, %v1136_v3 }
 0x1fd   :  { %vm674_vm0 = vcmp.gt.s32.totalorder %v656_v59, %v665_v61  ;;  %vm675_vm1 = vcmp.eq.s32.totalorder %v656_v59, %v665_v61  ;;  %vm676_vm2 = vcmp.lt.s32.totalorder %v657_v60, %v672_v62 }
 0x1fe   :  { %vm677_vm3 = vmand %vm675_vm1, %vm676_vm2  ;;  %vm828_vm4 = vcmp.eq.s32.totalorder %v803_v63, %v818_v1  ;;  %vm829_vm5 = vcmp.lt.s32.totalorder %v804_v0, %v825_v2  ;;  %vm827_vm7 = vcmp.gt.s32.totalorder %v803_v63, %v818_v1 }
 0x1ff   :  { %vm678_vm6 = vmor %vm674_vm0, %vm677_vm3 }
 0x200   :  { %vm683_vm8 = vmxor %vm678_vm6, %vm1154_vm9 }
 0x201   :  { %v684_v4 = vsel %vm683_vm8, %v656_v59, %v665_v61  ;;  %v685_v5 = vsel %vm683_vm8, %v657_v60, %v672_v62  ;;  %vm830_vm10 = vmand %vm828_vm4, %vm829_vm5 }
 0x202   :  { %v693_v6 = vrot.slane %v684_v4, %v1161_v42  ;;  %v700_v8 = vrot.slane %v685_v5, %v1161_v42  ;;  %vm831_vm12 = vmor %vm827_vm7, %vm830_vm10 }
 0x203   :  { %vm836_vm14 = vmxor %vm831_vm12, %vm1141_vm13 }
 0x204   :  { %vm702_vm15 = vcmp.gt.s32.totalorder %v684_v4, %v693_v6  ;;  %vm703_vm1 = vcmp.eq.s32.totalorder %v684_v4, %v693_v6  ;;  %vm704_vm2 = vcmp.lt.s32.totalorder %v685_v5, %v700_v8  ;;  %v837_v9 = vsel %vm836_vm14, %v803_v63, %v818_v1 }
 0x205   :  { %vm705_vm0 = vmand %vm703_vm1, %vm704_vm2  ;;  %v838_v10 = vsel %vm836_vm14, %v804_v0, %v825_v2  ;;  %v846_v11 = vrot.slane %v837_v9, %v1147_v33 }
 0x206   :  { %vm706_vm3 = vmor %vm702_vm15, %vm705_vm0  ;;  %v853_v12 = vrot.slane %v838_v10, %v1147_v33 }
 0x207   :  { %vm711_vm4 = vmxor %vm706_vm3, %vm1170_vm11  ;;  %vm855_vm5 = vcmp.gt.s32.totalorder %v837_v9, %v846_v11  ;;  %vm856_vm6 = vcmp.eq.s32.totalorder %v837_v9, %v846_v11 }
 0x208   :  { %v712_v13 = vsel %vm711_vm4, %v684_v4, %v693_v6  ;;  %v713_v14 = vsel %vm711_vm4, %v685_v5, %v700_v8  ;;  %vm857_vm7 = vcmp.lt.s32.totalorder %v838_v10, %v853_v12 }
 0x209   :  { %715 = vst [vmem:[#allocation12] sm:$0xff] %v712_v13  ;;  %716 = vst [vmem:[#allocation14] sm:$0xff] %v713_v14 }
 0x20a   :  { %vm858_vm13 = vmand %vm856_vm6, %vm857_vm7 }
 0x20b   :  { %vm859_vm8 = vmor %vm855_vm5, %vm858_vm13 }
 0x20c   :  { %vm864_vm10 = vmxor %vm859_vm8, %vm1154_vm9 }
 0x20d   :  { %v865_v15 = vsel %vm864_vm10, %v837_v9, %v846_v11  ;;  %v866_v16 = vsel %vm864_vm10, %v838_v10, %v853_v12 }
 0x20e   :  { %v874_v17 = vrot.slane %v865_v15, %v1161_v42  ;;  %v881_v18 = vrot.slane %v866_v16, %v1161_v42 }
 0x210   :  { %vm883_vm12 = vcmp.gt.s32.totalorder %v865_v15, %v874_v17  ;;  %vm884_vm14 = vcmp.eq.s32.totalorder %v865_v15, %v874_v17  ;;  %vm885_vm15 = vcmp.lt.s32.totalorder %v866_v16, %v881_v18  ;;  %v923_v21 = vld [vmem:[#allocation14] sm:$0xff]  ;;  %v899_v22 = vld [vmem:[#allocation12] sm:$0xff] }
 0x211   :  { %vm886_vm1 = vmand %vm884_vm14, %vm885_vm15  ;;  %924 = vxpose.xlu0.b32.start.end [1/1] (short) (narrow) %v923_v21, 8  ;;  %vm900_vm9 = vcmp.lt.s32.totalorder %v899_v22, 0  ;;  %v901_v23 = vsub.s32 2147483647, %v899_v22 }
 0x212   :  { %vm887_vm2 = vmor %vm883_vm12, %vm886_vm1 }
 0x213   :  { %vm892_vm0 = vmxor %vm887_vm2, %vm1170_vm11  ;;  %v902_v24 = vsel %vm900_vm9, %v901_v23, %v899_v22 }
 0x214   :  { %v893_v19 = vsel %vm892_vm0, %v865_v15, %v874_v17  ;;  %v894_v20 = vsel %vm892_vm0, %v866_v16, %v881_v18  ;;  %903 = vst [vmem:[#allocation12] sm:$0xff] %v902_v24 }
 0x215   :  { %896 = vst [vmem:[#allocation13] sm:$0xff] %v893_v19  ;;  %897 = vst [vmem:[#allocation15] sm:$0xff] %v894_v20  ;;  %905 = vxpose.xlu0.b32.start.end [1/1] (short) (narrow) %v902_v24, 8 }
 0x291   :  { %v925_v3 = vpop.trf.xlu0 }
 0x292   :  { %941 = vst [vmem:[#allocation10] sm:$0xff] %v925_v3 }
 0x295   :  { %v906_v25 = vpop.trf.xlu0 }
 0x296   :  { %922 = vst [vmem:[#allocation7] sm:$0xff] %v906_v25 }
 0x299   :  { %v951_v26 = vld [vmem:[#allocation10] sm:$0x3] }
 0x29a   :  { %953 = vst [vmem:[#allocation11] sm:$0x3] %v951_v26 }
 0x29d   :  { %v945_v27 = vld [vmem:[#allocation7] sm:$0x3] }
 0x29e   :  { %947 = vst [vmem:[#allocation8] sm:$0x3] %v945_v27 }
 0x29f   :  { %1065 = shalt.err (!%p1062_p7)
}
 0x2a0   :  { %s1066_s17 = scalar_lea.hbm %s1222_s1, 32 }
 0x2a1   :  { %p1067_p8 = scmp.ne.s32.totalorder %s1222_s1, %s1066_s17  ;;  %p1070_p9 = scmp.lt.u32.totalorder %s1066_s17, %s1222_s1 }
 0x2a3   :  { %p1072_p10 = pnand %p1070_p9, %p1067_p8 }
 0x2a5   :  { %1075 = shalt.err (!%p1072_p10)
}
 0x2a6   :  { %961 = dma.vmem_to_hbm [thread:$0]  %s959_s13, 32, %s1222_s1, [#allocation9]   ;;  %v977_v28 = vld [vmem:[#allocation11] sm:$0x3] }
 0x2a7   :  { %978 = vst [vmem:[%s1223_s2] sm:$0x3] %v977_v28 }
 0x2a8   :  { %1080 = dma.done.wait [#allocation9], 32  }
 0x2a9   :  { %1081 = vsyncadd [#allocation9], 4294967264 }
 0x2aa   :  { %994 = vsyncpa [#allocation9], 1 }

// kernel: sub.22
= control target key start
LH: loop header
LB: loop body
LE: loop exit
PB: predicated region body
PF: predicated region fallthrough
CT: control target
= control target key end

     0   :  { %s8_s6 = smov 3  ;;  %s11_s7 = smov 12  ;;  %vm13_vm0 = vcmask 1043458   ;;  %vm3_vm1 = vcmask 130048   ;;  %vm17_vm2 = vcmask 1048448   ;;  %vm31_vm3 = vcmask 917248   ;;  %s213_s0 = inlined_call_operand.vmem [shape: f32[16,16,2], index: 0, kind: input, shape index: {}]   ;;  %s214_s1 = inlined_call_operand.vmem [shape: f32[256,2], index: 1, kind: output, shape index: {}]  }
   0x1   :  { %v116_v0 = vld [vmem:[%s213_s0 + $0x7] ss:$16 sm:%s8_s6]   ;;  %v117_v1 = vld [vmem:[%s213_s0 - $0x11] ss:$16 sm:%s11_s7]   ;;  %s36_s12 = smov 3  ;;  %s39_s15 = smov 12 }
   0x2   :  { %v14_v2 = vsel %vm13_vm0, %v117_v1, %v116_v0  ;;  %v120_v3 = vld [vmem:[%s213_s0 + $0x5] ss:$16 sm:%s36_s12]   ;;  %s138_s16 = smov 112   ;;  %v121_v4 = vld [vmem:[%s213_s0 - $0x13] ss:$16 sm:%s39_s15]   ;;  %s22_s19 = smov 3 }
   0x3   :  { %15 = vrot.lane.b32.xlu0 %v14_v2, %s138_s16  ;;  %s25_s20 = smov 12  ;;  %v42_v5 = vsel %vm13_vm0, %v121_v4, %v120_v3  ;;  %v118_v6 = vld [vmem:[%s213_s0 + $0x6] ss:$16 sm:%s22_s19]   ;;  %s50_s25 = smov 3  ;;  %vm45_vm4 = vcmask 786048   ;;  %vm59_vm5 = vcmask 654848  }
   0x4   :  { %v119_v7 = vld [vmem:[%s213_s0 - $0x12] ss:$16 sm:%s25_s20]   ;;  %s139_s26 = smov 80   ;;  %v122_v9 = vld [vmem:[%s213_s0 + $0x4] ss:$16 sm:%s50_s25]   ;;  %s53_s29 = smov 12 }
   0x5   :  { %43 = vrot.lane.b32.xlu1 %v42_v5, %s139_s26  ;;  %v28_v8 = vsel %vm13_vm0, %v119_v7, %v118_v6  ;;  %v123_v10 = vld [vmem:[%s213_s0 - $0x14] ss:$16 sm:%s53_s29]   ;;  %s64_s3 = smov 3  ;;  %s67_s4 = smov 12  ;;  %vm73_vm6 = vcmask 523648   ;;  %vm87_vm7 = vcmask 392448  }
   0x6   :  { %s140_s5 = smov 96   ;;  %v56_v11 = vsel %vm13_vm0, %v123_v10, %v122_v9  ;;  %v124_v12 = vld [vmem:[%s213_s0 + $0x3] ss:$16 sm:%s64_s3]   ;;  %s78_s8 = smov 3  ;;  %v125_v13 = vld [vmem:[%s213_s0 - $0x15] ss:$16 sm:%s67_s4]  }
   0x7   :  { %29 = vrot.lane.b32.xlu0 %v28_v8, %s140_s5  ;;  %v126_v14 = vld [vmem:[%s213_s0 + $0x2] ss:$16 sm:%s78_s8]   ;;  %s81_s13 = smov 12  ;;  %s141_s14 = smov 64   ;;  %v70_v15 = vsel %vm13_vm0, %v125_v13, %v124_v12  ;;  %vm101_vm8 = vcmask 261248  }
   0x8   :  { %v127_v16 = vld [vmem:[%s213_s0 - $0x16] ss:$16 sm:%s81_s13]   ;;  %s92_s17 = smov 3  ;;  %s95_s18 = smov 12 }
   0x9   :  { %57 = vrot.lane.b32.xlu1 %v56_v11, %s141_s14  ;;  %v84_v17 = vsel %vm13_vm0, %v127_v16, %v126_v14  ;;  %v128_v18 = vld [vmem:[%s213_s0 + $0x1] ss:$16 sm:%s92_s17]   ;;  %s142_s23 = smov 48   ;;  %v2_v20 = vld [vmem:[%s213_s0] ss:$8 sm:$0xf]  }
   0xa   :  { %v129_v19 = vld [vmem:[%s213_s0 - $0x17] ss:$16 sm:%s95_s18]   ;;  %4 = vst.msk [vmem:[#allocation0] ss:$8 sm:$0x3] %vm3_vm1, %v2_v20   ;;  %s143_s0 = smov 32  }
   0xb   :  { %71 = vrot.lane.b32.xlu0 %v70_v15, %s142_s23  ;;  %v98_v21 = vsel %vm13_vm0, %v129_v19, %v128_v18  ;;  %6 = vst.msk [vmem:[#allocation0 - $0xf] ss:$8 sm:$0xc] %vm3_vm1, %v2_v20   ;;  %s144_s26 = smov 16  }
   0xd   :  { %85 = vrot.lane.b32.xlu1 %v84_v17, %s143_s0 }
   0xf   :  { %99 = vrot.lane.b32.xlu0 %v98_v21, %s144_s26 }
  0x75   :  { %v16_v22 = vpop.permute.xlu0 %15  }
  0x76   :  { %18 = vst.msk [vmem:[#allocation0] sm:$0x3] %vm17_vm2, %v16_v22   ;;  %20 = vst.msk [vmem:[#allocation0 + $0x6] sm:$0xc] %vm17_vm2, %v16_v22  }
  0x77   :  { %v44_v23 = vpop.permute.xlu1 %43  }
  0x79   :  { %v30_v24 = vpop.permute.xlu0 %29  }
  0x7a   :  { %32 = vst.msk [vmem:[#allocation0] sm:$0x3] %vm31_vm3, %v30_v24   ;;  %34 = vst.msk [vmem:[#allocation0 + $0x6] sm:$0xc] %vm31_vm3, %v30_v24  }
  0x7b   :  { %46 = vst.msk [vmem:[#allocation0] sm:$0x3] %vm45_vm4, %v44_v23   ;;  %48 = vst.msk [vmem:[#allocation0 + $0x6] sm:$0xc] %vm45_vm4, %v44_v23   ;;  %v58_v25 = vpop.permute.xlu1 %57  }
  0x7c   :  { %60 = vst.msk [vmem:[#allocation0] sm:$0x3] %vm59_vm5, %v58_v25   ;;  %62 = vst.msk [vmem:[#allocation0 + $0x6] sm:$0xc] %vm59_vm5, %v58_v25  }
  0x7d   :  { %v72_v26 = vpop.permute.xlu0 %71  }
  0x7e   :  { %74 = vst.msk [vmem:[#allocation0] sm:$0x3] %vm73_vm6, %v72_v26   ;;  %76 = vst.msk [vmem:[#allocation0 + $0x6] sm:$0xc] %vm73_vm6, %v72_v26  }
  0x7f   :  { %v86_v27 = vpop.permute.xlu1 %85  }
  0x80   :  { %88 = vst.msk [vmem:[#allocation0] sm:$0x3] %vm87_vm7, %v86_v27   ;;  %90 = vst.msk [vmem:[#allocation0 + $0x6] sm:$0xc] %vm87_vm7, %v86_v27  }
  0x81   :  { %v100_v28 = vpop.permute.xlu0 %99  }
  0x82   :  { %102 = vst.msk [vmem:[#allocation0] sm:$0x3] %vm101_vm8, %v100_v28   ;;  %104 = vst.msk [vmem:[#allocation0 + $0x6] sm:$0xc] %vm101_vm8, %v100_v28  }
  0x89   :  { %v108_v29 = vld [vmem:[#allocation0] sm:$0x3]  ;;  %v112_v30 = vld [vmem:[#allocation0 + $0x8] sm:$0x3] }
  0x8a   :  { %110 = vst [vmem:[%s214_s1] sm:$0x3] %v108_v29  ;;  %130 = vst [vmem:[%s214_s1 + $0x2] sm:$0x3] %v112_v30 }

// kernel: faster_rcnn_forward.5
= control target key start
LH: loop header
LB: loop body
LE: loop exit
PB: predicated region body
PF: predicated region fallthrough
CT: control target
= control target key end

     0   :  { %vm1679_vm0 = vmmov 0   ;;  %vm891_vm1 = vcmask 261120   ;;  %vm1224_vm2 = vcmask 523264   ;;  %vm1269_vm3 = vcmask 203776   ;;  %s2067_s1 = inlined_call_operand.vmem [shape: bf16[1568,64], index: 1, kind: input, shape index: {}]   ;;  %s2068_s0 = inlined_call_operand.vmem [shape: bf16[16,1568], index: 0, kind: input, shape index: {}]   ;;  %s2069_s3 = inlined_call_operand.vmem [shape: bf16[64,25], index: 3, kind: input, shape index: {}]   ;;  %s2070_s2 = inlined_call_operand.vmem [shape: f32[1,64], index: 2, kind: input, shape index: {}]   ;;  %s2071_s4 = inlined_call_operand.vmem [shape: f32[1,25], index: 4, kind: input, shape index: {}]   ;;  %s2072_s5 = inlined_call_operand.vmem [shape: f32[16,25], index: 5, kind: output, shape index: {}]  }
   0x1   :  { %v1557_v0 = vld [vmem:[%s2067_s1 + $0x40] sm:$0xff]   ;;  %v1561_v4 = vld [vmem:[%s2067_s1 + $0x48] sm:$0xff]   ;;  %v1565_v8 = vld [vmem:[%s2067_s1 + $0x50] sm:$0xff]  }
   0x2   :  { %v1558_v1 = vld [vmem:[%s2067_s1] sm:$0xff]   ;;  %1395 = vmatprep.subr.bf16.mxu0 %v1557_v0  ;;  %v1562_v5 = vld [vmem:[%s2067_s1 + $0x8] sm:$0xff]   ;;  %v1566_v9 = vld [vmem:[%s2067_s1 + $0x10] sm:$0xff]  }
   0x3   :  { %v1559_v2 = vld [vmem:[%s2067_s1 + $0xc0] sm:$0xff]   ;;  %1396 = vmatpush3.bf16.msra.mxu0 %v1558_v1  ;;  %v1563_v6 = vld [vmem:[%s2067_s1 + $0xc8] sm:$0xff]   ;;  %v1567_v10 = vld [vmem:[%s2067_s1 + $0xd0] sm:$0xff]  }
   0x4   :  { %v1560_v3 = vld [vmem:[%s2067_s1 + $0x80] sm:$0xff]   ;;  %1417 = vmatprep.subr.bf16.mxu1 %v1559_v2  ;;  %1397 = vmatprep.subr.bf16.mxu0 %v1561_v4  ;;  %v1564_v7 = vld [vmem:[%s2067_s1 + $0x88] sm:$0xff]   ;;  %v1568_v11 = vld [vmem:[%s2067_s1 + $0x90] sm:$0xff]  }
   0x5   :  { %1418 = vmatpush3.bf16.msra.mxu1 %v1560_v3  ;;  %v1569_v12 = vld [vmem:[%s2067_s1 + $0x58] sm:$0xff]   ;;  %v1573_v16 = vld [vmem:[%s2067_s1 + $0x60] sm:$0xff]   ;;  %v1577_v20 = vld [vmem:[%s2067_s1 + $0x68] sm:$0xff]  }
   0x6   :  { %1419 = vmatprep.subr.bf16.mxu1 %v1563_v6  ;;  %v1570_v13 = vld [vmem:[%s2067_s1 + $0x18] sm:$0xff]   ;;  %v1574_v17 = vld [vmem:[%s2067_s1 + $0x20] sm:$0xff]   ;;  %v1578_v21 = vld [vmem:[%s2067_s1 + $0x28] sm:$0xff]  }
   0x7   :  { %1398 = vmatpush3.bf16.msra.mxu0 %v1562_v5  ;;  %v1571_v14 = vld [vmem:[%s2067_s1 + $0xd8] sm:$0xff]   ;;  %v1575_v18 = vld [vmem:[%s2067_s1 + $0xe0] sm:$0xff]   ;;  %v1579_v22 = vld [vmem:[%s2067_s1 + $0xe8] sm:$0xff]  }
   0x8   :  { %1399 = vmatprep.subr.bf16.mxu0 %v1565_v8  ;;  %v1572_v15 = vld [vmem:[%s2067_s1 + $0x98] sm:$0xff]   ;;  %v1576_v19 = vld [vmem:[%s2067_s1 + $0xa0] sm:$0xff]   ;;  %v1580_v23 = vld [vmem:[%s2067_s1 + $0xa8] sm:$0xff]  }
   0x9   :  { %1420 = vmatpush3.bf16.msra.mxu1 %v1564_v7  ;;  %v1581_v24 = vld [vmem:[%s2067_s1 + $0x70] sm:$0xff]   ;;  %v1585_v28 = vld [vmem:[%s2067_s1 + $0x78] sm:$0xff]   ;;  %v1592_v34 = vld [vmem:[%s2067_s1 + $0x140] sm:$0xff]  }
   0xa   :  { %1421 = vmatprep.subr.bf16.mxu1 %v1567_v10  ;;  %v1582_v25 = vld [vmem:[%s2067_s1 + $0x30] sm:$0xff]   ;;  %v1586_v29 = vld [vmem:[%s2067_s1 + $0x38] sm:$0xff]   ;;  %v1595_v36 = vld [vmem:[%s2068_s0 + $0xc] ss:$52 sps:$4 sm:$0xff]  }
   0xb   :  { %1400 = vmatpush3.bf16.msra.mxu0 %v1566_v9  ;;  %v1583_v26 = vld [vmem:[%s2067_s1 + $0xf0] sm:$0xff]   ;;  %v1587_v30 = vld [vmem:[%s2067_s1 + $0xf8] sm:$0xff]   ;;  %v1596_v37 = vld [vmem:[%s2067_s1 + $0x100] sm:$0xff]   ;;  %968 = vmatprep.mubr.bf16.mxu1 %v1595_v36 }
   0xc   :  { %1401 = vmatprep.subr.bf16.mxu0 %v1569_v12  ;;  %v1584_v27 = vld [vmem:[%s2067_s1 + $0xb0] sm:$0xff]   ;;  %v1588_v31 = vld [vmem:[%s2067_s1 + $0xb8] sm:$0xff]   ;;  %v1597_v38 = vld [vmem:[%s2067_s1 + $0x1c0] sm:$0xff]  }
   0xd   :  { %1422 = vmatpush3.bf16.msra.mxu1 %v1568_v11  ;;  %v1589_v32 = vld [vmem:[%s2068_s0] ss:$52 sps:$4 sm:$0xff]   ;;  %v1591_v33 = vld [vmem:[%s2068_s0 + $0x4] ss:$52 sps:$4 sm:$0xff]   ;;  %v1593_v35 = vld [vmem:[%s2068_s0 + $0x8] ss:$52 sps:$4 sm:$0xff]  }
   0xe   :  { %1423 = vmatprep.subr.bf16.mxu1 %v1571_v14  ;;  %927 = vmatprep.mubr.bf16.mxu0 %v1591_v33  ;;  %v1598_v39 = vld [vmem:[%s2067_s1 + $0x180] sm:$0xff]   ;;  %v1599_v40 = vld [vmem:[%s2067_s1 + $0x148] sm:$0xff]   ;;  %v1603_v44 = vld [vmem:[%s2067_s1 + $0x150] sm:$0xff]  }
   0xf   :  { %1402 = vmatpush3.bf16.msra.mxu0 %v1570_v13  ;;  %v1600_v41 = vld [vmem:[%s2067_s1 + $0x108] sm:$0xff]   ;;  %v1604_v45 = vld [vmem:[%s2067_s1 + $0x110] sm:$0xff]   ;;  %v1607_v48 = vld [vmem:[%s2067_s1 + $0x158] sm:$0xff]  }
  0x10   :  { %1403 = vmatprep.subr.bf16.mxu0 %v1573_v16  ;;  %v1601_v42 = vld [vmem:[%s2067_s1 + $0x1c8] sm:$0xff]   ;;  %v1605_v46 = vld [vmem:[%s2067_s1 + $0x1d0] sm:$0xff]   ;;  %v1608_v49 = vld [vmem:[%s2067_s1 + $0x118] sm:$0xff]  }
  0x11   :  { %1424 = vmatpush3.bf16.msra.mxu1 %v1572_v15  ;;  %v1602_v43 = vld [vmem:[%s2067_s1 + $0x188] sm:$0xff]   ;;  %v1606_v47 = vld [vmem:[%s2067_s1 + $0x190] sm:$0xff]   ;;  %v1609_v50 = vld [vmem:[%s2067_s1 + $0x1d8] sm:$0xff]  }
  0x12   :  { %1425 = vmatprep.subr.bf16.mxu1 %v1575_v18  ;;  %v1610_v51 = vld [vmem:[%s2067_s1 + $0x198] sm:$0xff]   ;;  %v1611_v52 = vld [vmem:[%s2067_s1 + $0x160] sm:$0xff]   ;;  %v1615_v56 = vld [vmem:[%s2067_s1 + $0x168] sm:$0xff]  }
  0x13   :  { %1404 = vmatpush3.bf16.msra.mxu0 %v1574_v17  ;;  %v1612_v53 = vld [vmem:[%s2067_s1 + $0x120] sm:$0xff]   ;;  %v1616_v57 = vld [vmem:[%s2067_s1 + $0x128] sm:$0xff]   ;;  %v1619_v60 = vld [vmem:[%s2067_s1 + $0x170] sm:$0xff]  }
  0x14   :  { %1405 = vmatprep.subr.bf16.mxu0 %v1577_v20  ;;  %v1613_v54 = vld [vmem:[%s2067_s1 + $0x1e0] sm:$0xff]   ;;  %v1617_v58 = vld [vmem:[%s2067_s1 + $0x1e8] sm:$0xff]   ;;  %v1620_v61 = vld [vmem:[%s2067_s1 + $0x130] sm:$0xff]  }
  0x15   :  { %1426 = vmatpush3.bf16.msra.mxu1 %v1576_v19  ;;  %v1614_v55 = vld [vmem:[%s2067_s1 + $0x1a0] sm:$0xff]   ;;  %v1618_v59 = vld [vmem:[%s2067_s1 + $0x1a8] sm:$0xff]   ;;  %v1621_v62 = vld [vmem:[%s2067_s1 + $0x1f0] sm:$0xff]  }
  0x16   :  { %1427 = vmatprep.subr.bf16.mxu1 %v1579_v22  ;;  %v1622_v63 = vld [vmem:[%s2067_s1 + $0x1b0] sm:$0xff]   ;;  %v1623_v0 = vld [vmem:[%s2067_s1 + $0x178] sm:$0xff]   ;;  %v1630_v6 = vld [vmem:[%s2067_s1 + $0x240] sm:$0xff]  }
  0x17   :  { %1406 = vmatpush3.bf16.msra.mxu0 %v1578_v21  ;;  %v1624_v1 = vld [vmem:[%s2067_s1 + $0x138] sm:$0xff]   ;;  %v1627_v4 = vld [vmem:[%s2068_s0 + $0x10] ss:$52 sps:$4 sm:$0xff]   ;;  %v1629_v5 = vld [vmem:[%s2068_s0 + $0x14] ss:$52 sps:$4 sm:$0xff]  }
  0x18   :  { %1407 = vmatprep.subr.bf16.mxu0 %v1581_v24  ;;  %v1625_v2 = vld [vmem:[%s2067_s1 + $0x1f8] sm:$0xff]   ;;  %v1634_v9 = vld [vmem:[%s2067_s1 + $0x200] sm:$0xff]   ;;  %v1637_v12 = vld [vmem:[%s2067_s1 + $0x248] sm:$0xff]  }
  0x19   :  { %1428 = vmatpush3.bf16.msra.mxu1 %v1580_v23  ;;  %v1626_v3 = vld [vmem:[%s2067_s1 + $0x1b8] sm:$0xff]   ;;  %v1635_v10 = vld [vmem:[%s2067_s1 + $0x2c0] sm:$0xff]   ;;  %v1638_v13 = vld [vmem:[%s2067_s1 + $0x208] sm:$0xff]  }
  0x1a   :  { %1429 = vmatprep.subr.bf16.mxu1 %v1583_v26  ;;  %v1631_v7 = vld [vmem:[%s2068_s0 + $0x18] ss:$52 sps:$4 sm:$0xff]   ;;  %v1633_v8 = vld [vmem:[%s2068_s0 + $0x1c] ss:$52 sps:$4 sm:$0xff]   ;;  %v1636_v11 = vld [vmem:[%s2067_s1 + $0x280] sm:$0xff]  }
  0x1b   :  { %1408 = vmatpush3.bf16.msra.mxu0 %v1582_v25  ;;  %v1639_v14 = vld [vmem:[%s2067_s1 + $0x2c8] sm:$0xff]   ;;  %v1641_v16 = vld [vmem:[%s2067_s1 + $0x250] sm:$0xff]   ;;  %v1645_v20 = vld [vmem:[%s2067_s1 + $0x258] sm:$0xff]  }
  0x1c   :  { %1409 = vmatprep.subr.bf16.mxu0 %v1585_v28  ;;  %v1640_v15 = vld [vmem:[%s2067_s1 + $0x288] sm:$0xff]   ;;  %v1642_v17 = vld [vmem:[%s2067_s1 + $0x210] sm:$0xff]   ;;  %v1646_v21 = vld [vmem:[%s2067_s1 + $0x218] sm:$0xff]  }
  0x1d   :  { %1430 = vmatpush3.bf16.msra.mxu1 %v1584_v27  ;;  %v1643_v18 = vld [vmem:[%s2067_s1 + $0x2d0] sm:$0xff]   ;;  %v1647_v22 = vld [vmem:[%s2067_s1 + $0x2d8] sm:$0xff]   ;;  %v1649_v24 = vld [vmem:[%s2067_s1 + $0x260] sm:$0xff]  }
  0x1e   :  { %1431 = vmatprep.subr.bf16.mxu1 %v1587_v30  ;;  %v1644_v19 = vld [vmem:[%s2067_s1 + $0x290] sm:$0xff]   ;;  %v1648_v23 = vld [vmem:[%s2067_s1 + $0x298] sm:$0xff]   ;;  %v1650_v25 = vld [vmem:[%s2067_s1 + $0x220] sm:$0xff]  }
  0x1f   :  { %1410 = vmatpush3.bf16.msra.mxu0 %v1586_v29  ;;  %v1651_v26 = vld [vmem:[%s2067_s1 + $0x2e0] sm:$0xff]   ;;  %v1653_v28 = vld [vmem:[%s2067_s1 + $0x268] sm:$0xff]   ;;  %v1658_v33 = vld [vmem:[%s2067_s1 + $0x230] sm:$0xff]  }
  0x20   :  { %1439 = vmatprep.subr.bf16.mxu0 %v1592_v34  ;;  %v1652_v27 = vld [vmem:[%s2067_s1 + $0x2a0] sm:$0xff]   ;;  %v1654_v29 = vld [vmem:[%s2067_s1 + $0x228] sm:$0xff]   ;;  %v1659_v34 = vld [vmem:[%s2067_s1 + $0x2f0] sm:$0xff]  }
  0x21   :  { %1432 = vmatpush3.bf16.msra.mxu1 %v1588_v31  ;;  %v1655_v30 = vld [vmem:[%s2067_s1 + $0x2e8] sm:$0xff]   ;;  %v1661_v36 = vld [vmem:[%s2067_s1 + $0x278] sm:$0xff]  }
  0x22   :  { %928 = vmatmul.mubr.bf16.vlgmr.msra.gmra.mrb[0].mxu0 %v1589_v32  ;;  %1461 = vmatprep.subr.bf16.mxu1 %v1597_v38  ;;  %v1656_v31 = vld [vmem:[%s2067_s1 + $0x2a8] sm:$0xff]   ;;  %v1657_v32 = vld [vmem:[%s2067_s1 + $0x270] sm:$0xff]   ;;  %v1663_v38 = vld [vmem:[%s2067_s1 + $0x2f8] sm:$0xff]  }
  0x23   :  { %1440 = vmatpush3.bf16.msra.mxu0 %v1596_v37  ;;  %1009 = vmatprep.mubr.bf16.mxu0 %v1629_v5  ;;  %v1662_v37 = vld [vmem:[%s2067_s1 + $0x238] sm:$0xff]  }
  0x24   :  { %969 = vmatmul.mubr.bf16.vlgmr.msra.gmra.mrb[0].mxu1 %v1593_v35  ;;  %1441 = vmatprep.subr.bf16.mxu0 %v1599_v40  ;;  %v1660_v35 = vld [vmem:[%s2067_s1 + $0x2b0] sm:$0xff]  }
  0x25   :  { %1462 = vmatpush3.bf16.msra.mxu1 %v1598_v39  ;;  %1050 = vmatprep.mubr.bf16.mxu1 %v1633_v8  ;;  %v1664_v39 = vld [vmem:[%s2067_s1 + $0x2b8] sm:$0xff]   ;;  %v1665_v40 = vld [vmem:[%s2068_s0 + $0x20] ss:$52 sps:$4 sm:$0xff]  }
  0x26   :  { %1463 = vmatprep.subr.bf16.mxu1 %v1601_v42  ;;  %v1678_v42 = vmov 0.0  }
  0x27   :  { %1442 = vmatpush3.bf16.msra.mxu0 %v1600_v41  ;;  %v1667_v41 = vld [vmem:[%s2068_s0 + $0x24] ss:$52 sps:$4 sm:$0xff]  }
  0x28   :  { %1443 = vmatprep.subr.bf16.mxu0 %v1603_v44  ;;  %v1670_v44 = vld [vmem:[%s2068_s0 + $0x2c] ss:$52 sps:$4 sm:$0xff]  }
  0x29   :  { %1464 = vmatpush3.bf16.msra.mxu1 %v1602_v43  ;;  %v1668_v43 = vld [vmem:[%s2068_s0 + $0x28] ss:$52 sps:$4 sm:$0xff]  }
  0x2a   :  { %1465 = vmatprep.subr.bf16.mxu1 %v1605_v46  ;;  %v1672_v46 = vld [vmem:[%s2067_s1 + $0x308] sm:$0xff]  }
  0x2b   :  { %1444 = vmatpush3.bf16.msra.mxu0 %v1604_v45  ;;  %v1671_v45 = vld [vmem:[%s2067_s1 + $0x300] sm:$0xff]  }
  0x2c   :  { %1445 = vmatprep.subr.bf16.mxu0 %v1607_v48  ;;  %v1674_v48 = vld [vmem:[%s2069_s3] sm:$0xff]  }
  0x2d   :  { %1466 = vmatpush3.bf16.msra.mxu1 %v1606_v47  ;;  %v1673_v47 = vld [vmem:[%s2068_s0 + $0x30] ss:$52 sps:$4 sm:$0xff]  }
  0x2e   :  { %1467 = vmatprep.subr.bf16.mxu1 %v1609_v50  ;;  %v1676_v50 = vld [vmem:[%s2069_s3 + $0x10] sm:$0xff]  }
  0x2f   :  { %1446 = vmatpush3.bf16.msra.mxu0 %v1608_v49  ;;  %v1675_v49 = vld [vmem:[%s2069_s3 + $0x8] sm:$0xff]  }
  0x30   :  { %1447 = vmatprep.subr.bf16.mxu0 %v1611_v52 }
  0x31   :  { %1468 = vmatpush3.bf16.msra.mxu1 %v1610_v51  ;;  %v1677_v51 = vld [vmem:[%s2069_s3 + $0x18] sm:$0xff]  }
  0x32   :  { %1469 = vmatprep.subr.bf16.mxu1 %v1613_v54 }
  0x33   :  { %1448 = vmatpush3.bf16.msra.mxu0 %v1612_v53  ;;  %v1276_v53 = vld [vmem:[%s2070_s2] ss:$0 sm:$0xff] }
  0x34   :  { %1449 = vmatprep.subr.bf16.mxu0 %v1615_v56 }
  0x35   :  { %1470 = vmatpush3.bf16.msra.mxu1 %v1614_v55 }
  0x36   :  { %1471 = vmatprep.subr.bf16.mxu1 %v1617_v58 }
  0x37   :  { %1450 = vmatpush3.bf16.msra.mxu0 %v1616_v57 }
  0x38   :  { %1451 = vmatprep.subr.bf16.mxu0 %v1619_v60 }
  0x39   :  { %1472 = vmatpush3.bf16.msra.mxu1 %v1618_v59 }
  0x3a   :  { %1473 = vmatprep.subr.bf16.mxu1 %v1621_v62 }
  0x3b   :  { %1452 = vmatpush3.bf16.msra.mxu0 %v1620_v61 }
  0x3c   :  { %1453 = vmatprep.subr.bf16.mxu0 %v1623_v0 }
  0x3d   :  { %1474 = vmatpush3.bf16.msra.mxu1 %v1622_v63 }
  0x3e   :  { %1475 = vmatprep.subr.bf16.mxu1 %v1625_v2 }
  0x3f   :  { %1454 = vmatpush3.bf16.msra.mxu0 %v1624_v1 }
  0x40   :  { %1483 = vmatprep.subr.bf16.mxu0 %v1630_v6 }
  0x41   :  { %1476 = vmatpush3.bf16.msra.mxu1 %v1626_v3 }
  0x42   :  { %1010 = vmatmul.mubr.bf16.vlgmr.msra.gmra.mrb[4].mxu0 %v1627_v4  ;;  %1505 = vmatprep.subr.bf16.mxu1 %v1635_v10 }
  0x43   :  { %1484 = vmatpush3.bf16.msra.mxu0 %v1634_v9  ;;  %1091 = vmatprep.mubr.bf16.mxu0 %v1667_v41 }
  0x44   :  { %1051 = vmatmul.mubr.bf16.vlgmr.msra.gmra.mrb[4].mxu1 %v1631_v7  ;;  %1485 = vmatprep.subr.bf16.mxu0 %v1637_v12 }
  0x45   :  { %1506 = vmatpush3.bf16.msra.mxu1 %v1636_v11  ;;  %1132 = vmatprep.mubr.bf16.mxu1 %v1670_v44 }
  0x46   :  { %1507 = vmatprep.subr.bf16.mxu1 %v1639_v14 }
  0x47   :  { %1486 = vmatpush3.bf16.msra.mxu0 %v1638_v13 }
  0x48   :  { %1487 = vmatprep.subr.bf16.mxu0 %v1641_v16 }
  0x49   :  { %1508 = vmatpush3.bf16.msra.mxu1 %v1640_v15 }
  0x4a   :  { %1509 = vmatprep.subr.bf16.mxu1 %v1643_v18 }
  0x4b   :  { %1488 = vmatpush3.bf16.msra.mxu0 %v1642_v17 }
  0x4c   :  { %1489 = vmatprep.subr.bf16.mxu0 %v1645_v20 }
  0x4d   :  { %1510 = vmatpush3.bf16.msra.mxu1 %v1644_v19 }
  0x4e   :  { %1511 = vmatprep.subr.bf16.mxu1 %v1647_v22 }
  0x4f   :  { %1490 = vmatpush3.bf16.msra.mxu0 %v1646_v21 }
  0x50   :  { %1491 = vmatprep.subr.bf16.mxu0 %v1649_v24 }
  0x51   :  { %1512 = vmatpush3.bf16.msra.mxu1 %v1648_v23 }
  0x52   :  { %1513 = vmatprep.subr.bf16.mxu1 %v1651_v26 }
  0x53   :  { %1492 = vmatpush3.bf16.msra.mxu0 %v1650_v25 }
  0x54   :  { %1493 = vmatprep.subr.bf16.mxu0 %v1653_v28 }
  0x55   :  { %1514 = vmatpush3.bf16.msra.mxu1 %v1652_v27 }
  0x56   :  { %1515 = vmatprep.subr.bf16.mxu1 %v1655_v30 }
  0x57   :  { %1494 = vmatpush3.bf16.msra.mxu0 %v1654_v29 }
  0x58   :  { %1495 = vmatprep.subr.bf16.mxu0 %v1657_v32 }
  0x59   :  { %1516 = vmatpush3.bf16.msra.mxu1 %v1656_v31 }
  0x5a   :  { %1517 = vmatprep.subr.bf16.mxu1 %v1659_v34 }
  0x5b   :  { %1496 = vmatpush3.bf16.msra.mxu0 %v1658_v33 }
  0x5c   :  { %1497 = vmatprep.subr.bf16.mxu0 %v1661_v36 }
  0x5d   :  { %1518 = vmatpush3.bf16.msra.mxu1 %v1660_v35 }
  0x5e   :  { %1519 = vmatprep.subr.bf16.mxu1 %v1663_v38 }
  0x5f   :  { %1498 = vmatpush3.bf16.msra.mxu0 %v1662_v37 }
  0x60   :  { %1535 = vmatprep.subr.bf16.mxu0 %v1678_v42 }
  0x61   :  { %1520 = vmatpush3.bf16.msra.mxu1 %v1664_v39 }
  0x62   :  { %1543 = vmatprep.subr.bf16.mxu1 %v1678_v42  ;;  %1092 = vmatmul.mubr.bf16.vlgmr.msra.gmra.mrb[8].mxu0 %v1665_v40 }
  0x63   :  { %1536 = vmatpush3.bf16.msra.mxu0 %v1671_v45  ;;  %1539 = vmatprep.mubr.msk.bf16.mxu0 %vm1679_vm0, %v1678_v42 }
  0x64   :  { %1133 = vmatmul.mubr.bf16.vlgmr.msra.gmra.mrb[8].mxu1 %v1668_v43  ;;  %1537 = vmatprep.subr.bf16.mxu0 %v1678_v42 }
  0x65   :  { %1551 = vmatprep.mubr.msk.bf16.mxu1 %vm1679_vm0, %v1678_v42  ;;  %1544 = vmatpush3.bf16.msra.mxu1 %v1674_v48 }
  0x66   :  { %1545 = vmatprep.subr.bf16.mxu1 %v1678_v42 }
  0x67   :  { %1538 = vmatpush3.bf16.msra.mxu0 %v1672_v46  ;;  %v1389_v46 = vld [vmem:[%s2071_s4] ss:$0 sm:$0xff] }
  0x69   :  { %1546 = vmatpush3.bf16.msra.mxu1 %v1675_v49 }
  0x6a   :  { %1540 = vmatmul.mubr.msk.bf16.vlgmr.msra.gmra.mrb[12].mxu0 %vm891_vm1, %v1673_v47  ;;  %1547 = vmatprep.subr.bf16.mxu1 %v1678_v42 }
  0x6d   :  { %1548 = vmatpush3.bf16.msra.mxu1 %v1676_v50 }
  0x6e   :  { %1549 = vmatprep.subr.bf16.mxu1 %v1678_v42 }
  0x71   :  { %1550 = vmatpush3.bf16.msra.mxu1 %v1677_v51 }
  0xf5   :  { %v1411_v52 = vpop.f32.mrb[0].mxu0 }
  0xf6   :  { %v1412_v54 = vpop.f32.mrb[1].mxu0 }
  0xf7   :  { %v1413_v55 = vadd.f32 %v1412_v54, %v1411_v52  ;;  %v1414_v56 = vpop.f32.mrb[2].mxu0  ;;  %v1433_v57 = vpop.f32.mrb[0].mxu1 }
  0xf8   :  { %v1415_v58 = vpop.f32.mrb[3].mxu0  ;;  %v1434_v59 = vpop.f32.mrb[1].mxu1 }
  0xf9   :  { %v930_v60 = vadd.f32 %v1413_v55, %v1276_v53  ;;  %v1416_v61 = vadd.f32 %v1415_v58, %v1414_v56  ;;  %v1435_v62 = vadd.f32 %v1434_v59, %v1433_v57  ;;  %v1436_v63 = vpop.f32.mrb[2].mxu1 }
  0xfa   :  { %v1437_v0 = vpop.f32.mrb[3].mxu1 }
  0xfb   :  { %v933_v1 = vadd.f32 %v1416_v61, %v1276_v53  ;;  %v971_v2 = vadd.f32 %v1435_v62, %v930_v60  ;;  %v1438_v3 = vadd.f32 %v1437_v0, %v1436_v63 }
  0xfd   :  { %v974_v4 = vadd.f32 %v1438_v3, %v933_v1 }
 0x115   :  { %v1455_v5 = vpop.f32.mrb[4].mxu0 }
 0x116   :  { %v1456_v6 = vpop.f32.mrb[5].mxu0 }
 0x117   :  { %v1457_v7 = vadd.f32 %v1456_v6, %v1455_v5  ;;  %v1458_v8 = vpop.f32.mrb[6].mxu0  ;;  %v1477_v9 = vpop.f32.mrb[4].mxu1 }
 0x118   :  { %v1459_v10 = vpop.f32.mrb[7].mxu0  ;;  %v1478_v13 = vpop.f32.mrb[5].mxu1 }
 0x119   :  { %v1012_v11 = vadd.f32 %v1457_v7, %v971_v2  ;;  %v1460_v12 = vadd.f32 %v1459_v10, %v1458_v8  ;;  %v1479_v14 = vadd.f32 %v1478_v13, %v1477_v9  ;;  %v1480_v15 = vpop.f32.mrb[6].mxu1 }
 0x11a   :  { %v1481_v17 = vpop.f32.mrb[7].mxu1 }
 0x11b   :  { %v1015_v16 = vadd.f32 %v1460_v12, %v974_v4  ;;  %v1053_v18 = vadd.f32 %v1479_v14, %v1012_v11  ;;  %v1482_v19 = vadd.f32 %v1481_v17, %v1480_v15 }
 0x11d   :  { %v1056_v20 = vadd.f32 %v1482_v19, %v1015_v16 }
 0x135   :  { %v1499_v21 = vpop.f32.mrb[8].mxu0 }
 0x136   :  { %v1500_v22 = vpop.f32.mrb[9].mxu0 }
 0x137   :  { %v1521_v23 = vpop.f32.mrb[8].mxu1  ;;  %v1501_v24 = vadd.f32 %v1500_v22, %v1499_v21  ;;  %v1502_v25 = vpop.f32.mrb[10].mxu0 }
 0x138   :  { %v1522_v26 = vpop.f32.mrb[9].mxu1  ;;  %v1503_v28 = vpop.f32.mrb[11].mxu0 }
 0x139   :  { %v1523_v27 = vadd.f32 %v1522_v26, %v1521_v23  ;;  %v1524_v29 = vpop.f32.mrb[10].mxu1  ;;  %v1094_v30 = vadd.f32 %v1501_v24, %v1053_v18  ;;  %v1504_v31 = vadd.f32 %v1503_v28, %v1502_v25 }
 0x13a   :  { %v1525_v32 = vpop.f32.mrb[11].mxu1 }
 0x13b   :  { %v1526_v33 = vadd.f32 %v1525_v32, %v1524_v29  ;;  %v1097_v34 = vadd.f32 %v1504_v31, %v1056_v20  ;;  %v1135_v35 = vadd.f32 %v1523_v27, %v1094_v30 }
 0x13d   :  { %v1175_v36 = vpop.f32.mrb[12].mxu0  ;;  %v1138_v37 = vadd.f32 %v1526_v33, %v1097_v34 }
 0x13e   :  { %v1176_v38 = vadd.f32 %v1175_v36, %v1135_v35  ;;  %v1541_v39 = vpop.f32.mrb[13].mxu0 }
 0x13f   :  { %v1178_v40 = vpop.f32.mrb[14].mxu0 }
 0x140   :  { %v1179_v41 = vadd.f32 %v1178_v40, %v1138_v37  ;;  %v1542_v42 = vpop.f32.mrb[15].mxu0  ;;  %v1182_v43 = vmax.f32 %v1176_v38, 0.0 }
 0x142   :  { %v1183_v44 = vmax.f32 %v1179_v41, 0.0 }
 0x144   :  { %v1184_v45 = vpack.c.bf16 %v1183_v44, %v1182_v43 }
 0x146   :  { %1552 = vmatmul.mubr.msk.bf16.vlgmr.msra.gmra.mrb[12].mxu1 %vm1224_vm2, %v1184_v45 }
 0x219   :  { %v1262_v47 = vpop.f32.mrb[12].mxu1 }
 0x21a   :  { %v1263_v48 = vadd.f32 %v1389_v46, %v1262_v47  ;;  %v1553_v49 = vpop.f32.mrb[13].mxu1 }
 0x21b   :  { %v1265_v50 = vpop.f32.mrb[14].mxu1 }
 0x21c   :  { %1270 = vst.msk [vmem:[%s2072_s5] sm:$0xff] %vm1269_vm3, %v1263_v48  ;;  %v1266_v51 = vadd.f32 %v1389_v46, %v1265_v50  ;;  %v1554_v52 = vpop.f32.mrb[15].mxu1 }
 0x21e   :  { %1271 = vst.msk [vmem:[%s2072_s5 + $0x8] sm:$0xff] %vm1269_vm3, %v1266_v51 }

// kernel: faster_rcnn_forward.4
= control target key start
LH: loop header
LB: loop body
LE: loop exit
PB: predicated region body
PF: predicated region fallthrough
CT: control target
= control target key end

     0   :  { %s9053_s17 = smov 0   ;;  %s14101_s0 = inlined_call_operand.vmem [shape: bf16[2,342,32], index: 0, kind: input, shape index: {}]   ;;  %s14102_s1 = inlined_call_operand.vmem [shape: f32[288,1], index: 1, kind: input, shape index: {}]   ;;  %s14103_s2 = inlined_call_operand.vmem [shape: bf16[288,32], index: 2, kind: input, shape index: {}]   ;;  %s14104_s3 = inlined_call_operand.vmem [shape: f32[1,32], index: 3, kind: input, shape index: {}]   ;;  %s14105_s4 = inlined_call_operand.vmem [shape: bf16[288,32], index: 4, kind: input, shape index: {}]   ;;  %s14106_s5 = inlined_call_operand.vmem [shape: f32[1,32], index: 5, kind: input, shape index: {}]   ;;  %s14107_s6 = inlined_call_operand.vmem [shape: bf16[288,32], index: 6, kind: input, shape index: {}]   ;;  %s14108_s7 = inlined_call_operand.vmem [shape: f32[1,32], index: 7, kind: input, shape index: {}]   ;;  %s14109_s8 = inlined_call_operand.vmem [shape: bf16[32,16], index: 8, kind: input, shape index: {}]   ;;  %s14110_s9 = inlined_call_operand.vmem [shape: f32[1,16], index: 9, kind: input, shape index: {}]   ;;  %s14111_s10 = inlined_call_operand.vmem [shape: bf16[2,288,32], index: 10, kind: output, shape index: {0}]   ;;  %s14112_s11 = inlined_call_operand.vmem [shape: f32[2,288,16], index: 11, kind: output, shape index: {1}]  }
   0x1 LB: > { %s8065_s18 = sadd.s32 4294967295, %s8987_s17   ;;  %p8069_p0 = scmp.ge.s32.totalorder %s8987_s17, 1  ;;  %s8987_s17 = sphi %s9053_s17, %s22_s17  }
   0x2   : > { %p340_p1 = scmp.lt.s32.totalorder %s8987_s17, 3 }
   0x4   : > { %p341_p2 = pnand %p8069_p0, %p340_p1 }
   0x6   : > { %344 = sbr.rel (%p341_p2) target bundleno = 1636 (0x664), region = 60 }
   0xd   : > { %p385_p3 = scmp.lt.s32.totalorder %s8065_s18, 1  ;;  %v8834_v0 = vld [vmem:[%s14103_s2] sm:$0xff]   ;;  %v14114_v1 = vmov 0   ;;  %v8835_v2 = vld [vmem:[%s14103_s2 + $0x8] sm:$0xff]   ;;  %vm992_vm0 = vcmask 1045504   ;;  %v8837_v3 = vld [vmem:[%s14103_s2 + $0x10] sm:$0xff]  }
   0xe   : > { %1768 = vmatprep.subr.bf16.mxu0 %v14114_v1  ;;  %8820 = vset.pattern.permute.xlu1 %v14114_v1  ;;  %vm768_vm1 = vcmask 1046528   ;;  %v8838_v13 = vld [vmem:[%s14103_s2 + $0x18] sm:$0xff]   ;;  %s8990_s12 = smov 64   ;;  %s8991_s13 = smov 32   ;;  %v8839_v38 = vld [vmem:[%s14103_s2 + $0x20] sm:$0xff]   ;;  %v8841_v58 = vld [vmem:[%s14103_s2 + $0x28] sm:$0xff]  }
   0xf   : > { %s14527_s18 = smov (!%p385_p3, %s8065_s18), 1  ;;  %1769 = vmatpush1.bf16.msra.mxu0 %v8834_v0  ;;  %8819 = vset.pattern.permute.xlu0 %v14114_v1  ;;  %vm580_vm2 = vsmask.f32 7424  ;;  %s8992_s16 = smov 96   ;;  %vm1122_vm3 = vsmask.f32 5376 }
  0x10   : > { %s8804_s23 = smul.u32 172, %s14527_s18  ;;  %1770 = vmatprep.subr.bf16.mxu0 %v14114_v1  ;;  %vm898_vm4 = vsmask.f32 6400  ;;  %vm1252_vm5 = vcmask 1044480   ;;  %vm1290_vm6 = vcmask 261120   ;;  %vm1327_vm7 = vcmask 523264  }
  0x11   : > { %vm1364_vm8 = vcmask 785408   ;;  %vm2392_vm9 = vcmask 257024   ;;  %vm3209_vm10 = vcmask 1041408   ;;  %vm3470_vm11 = vcmask 1040384   ;;  %s8805_s27 = smul.u32 144, %s14527_s18 }
  0x12   : > { %s9077_s26 = scalar_lea.vmem %s14101_s0, %s8804_s23  ;;  %2394 = vst.msk [vmem:[#allocation2 + $0x4] sm:$0xf] %vm2392_vm9, %v14114_v1  ;;  %2395 = vst.msk [vmem:[#allocation2 + $0x8] sm:$0xf] %vm2392_vm9, %v14114_v1  ;;  %vm3044_vm12 = vsmask.f32 2304 }
  0x13   : > { %v9083_v4 = vld [vmem:[%s9077_s26 + $0x14] sm:$0xf]  ;;  %1771 = vmatpush1.bf16.msra.mxu0 %v8835_v2  ;;  %v481_v5 = vld [vmem:[%s9077_s26 + $0x10] sm:$0xc]  ;;  %v9087_v6 = vld [vmem:[%s9077_s26 + $0x18] sm:$0xff]   ;;  %s11921_s30 = scalar_lea.vmem %s14111_s10, %s8805_s27  ;;  %s8806_s15 = smul.u32 288, %s14527_s18 }
  0x14   : > { %v441_v7 = vld [vmem:[%s9077_s26 + $0x10] sm:$0xf]  ;;  %1772 = vmatprep.subr.bf16.mxu0 %v14114_v1  ;;  %v8098_v8 = vcombine.low %v481_v5, %v9083_v4  ;;  %v440_v10 = vld [vmem:[%s9077_s26 + $0xc] sm:$0xf]  ;;  %v475_v11 = vld [vmem:[%s9077_s26 + $0x8] sm:$0xe] }
  0x15   : > { %v9093_v9 = vcombine.low %v441_v7, %v9083_v4  ;;  %v480_v12 = vld [vmem:[%s9077_s26 + $0x8] sm:$0xc]  ;;  %v996_v14 = vrot.slane %v9087_v6, 2  ;;  %v9103_v17 = vcombine.low %v475_v11, %v440_v10  ;;  %v438_v18 = vld [vmem:[%s9077_s26 + $0x4] sm:$0xf]  ;;  %v9142_v43 = vshll.u32 %v9087_v6, 16 }
  0x16   : > { %v8097_v15 = vcombine.low %v480_v12, %v440_v10  ;;  %v439_v16 = vld [vmem:[%s9077_s26 + $0x8] sm:$0xf]  ;;  %v9107_v19 = vld [vmem:[%s9077_s26 + $0x20] sm:$0xff]   ;;  %v1077_v20 = vrot.slane %v8098_v8, 2  ;;  %v9145_v44 = vshrl.u32 %v9087_v6, 16  ;;  %v1124_v47 = vshrl.u32 %v8098_v8, 16 }
  0x17   : > { %v994_v21 = vrot.slane %v9093_v9, 2  ;;  %v9110_v22 = vcombine.low %v439_v16, %v440_v10  ;;  %v474_v23 = vld [vmem:[%s9077_s26] sm:$0xe]  ;;  %1773 = vmatpush1.bf16.msra.mxu0 %v8837_v3  ;;  %v998_v30 = vrot.slane %v9107_v19, 2  ;;  %v9123_v33 = vrot.slane %v9093_v9, 1  ;;  %v8842_v5 = vld [vmem:[%s14103_s2 + $0x30] sm:$0xff]  }
  0x18   : > { %v437_v24 = vld [vmem:[%s9077_s26] sm:$0xf]  ;;  %v993_v25 = vrot.slane %v8097_v15, 2  ;;  %v8092_v26 = vcombine.low %v474_v23, %v438_v18  ;;  %1774 = vmatprep.subr.bf16.mxu0 %v14114_v1  ;;  %v1078_v28 = vsel %vm992_vm0, %v1077_v20, %v996_v14  ;;  %v853_v34 = vrot.slane %v9103_v17, 1  ;;  %v9185_v11 = vld [vmem:[%s9077_s26 + $0x28] sm:$0xff]  }
  0x19   : > { %v9114_v27 = vcombine.low %v437_v24, %v438_v18  ;;  %v770_v29 = vrot.slane %v9110_v22, 1  ;;  %1083 = vrot.lane.b32.xlu1 %v1078_v28, %s8990_s12  ;;  %v589_v37 = vshll.u32 %v9110_v22, 16  ;;  %v997_v39 = vsel %vm992_vm0, %v994_v21, %v996_v14  ;;  %v8845_v24 = vld [vmem:[%s14103_s2 + $0x40] sm:$0xff]   ;;  %2396 = vst.msk [vmem:[#allocation2 + $0xc] sm:$0xf] %vm2392_vm9, %v14114_v1 }
  0x1a   : > { %v995_v31 = vsel %vm992_vm0, %v993_v25, %v994_v21  ;;  %v769_v32 = vrot.slane %v8092_v26, 1  ;;  %v9139_v41 = vsel %vm992_vm0, %v996_v14, %v998_v30  ;;  %v854_v45 = vsel %vm768_vm1, %v853_v34, %v9123_v33  ;;  %v8843_v14 = vld [vmem:[%s14103_s2 + $0x38] sm:$0xff]   ;;  %v9226_v34 = vld [vmem:[%s9077_s26 + $0x30] sm:$0xff]   ;;  %2559 = vst.msk [vmem:[#allocation2 + $0xa0] sm:$0xf] %vm2392_vm9, %v14114_v1 }
  0x1b   : > { %1030 = vrot.lane.b32.xlu0 %v995_v31, %s8991_s13  ;;  %v582_v35 = vshrl.u32 %v9114_v27, 16  ;;  %v584_v36 = vshll.u32 %v9114_v27, 16  ;;  %1775 = vmatpush1.bf16.msra.mxu0 %v8838_v13  ;;  %v593_v46 = vshrl.u32 %v9110_v22, 16  ;;  %v1127_v48 = vshll.u32 %v8098_v8, 16  ;;  %v8846_v31 = vld [vmem:[%s14103_s2 + $0x48] sm:$0xff]  }
  0x1c   : > { %v771_v40 = vsel %vm768_vm1, %v769_v32, %v770_v29  ;;  %1776 = vmatprep.subr.bf16.mxu0 %v14114_v1  ;;  %v591_v50 = vrot.slane %v589_v37, 1  ;;  %v597_v51 = vshll.u32 %v9093_v9, 16  ;;  %v1131_v52 = vrot.slane %v9145_v44, 2  ;;  %v8854_v32 = vld [vmem:[%s14103_s2 + $0x80] sm:$0xff]   ;;  %v8847_v37 = vld [vmem:[%s14103_s2 + $0x50] sm:$0xff]  }
  0x1d   : > { %v586_v42 = vrot.slane %v584_v36, 1  ;;  %806 = vrot.lane.b32.xlu1 %v771_v40, %s8990_s12  ;;  %v1126_v53 = vrot.slane %v1124_v47, 2  ;;  %v1129_v54 = vrot.slane %v1127_v48, 3  ;;  %v1132_v55 = vrot.slane %v9142_v43, 3  ;;  %8640 = vmatprep.subr.bf16.mxu1 %v8854_v32  ;;  %v8849_v48 = vld [vmem:[%s14103_s2 + $0x58] sm:$0xff]  }
  0x1e   : > { %v9156_v56 = vshll.u32 %v9107_v19, 16  ;;  %v9160_v57 = vshrl.u32 %v9107_v19, 16  ;;  %v773_v59 = vsel %vm768_vm1, %v770_v29, %v9123_v33  ;;  %v595_v60 = vor.u32 %v593_v46, %v591_v50  ;;  %8641 = vmatpush3.bf16.msra.mxu1 %v8854_v32  ;;  %2560 = vst.msk [vmem:[#allocation2 + $0xa4] sm:$0xf] %vm2392_vm9, %v14114_v1  ;;  %2561 = vst.msk [vmem:[#allocation2 + $0xa8] sm:$0xf] %vm2392_vm9, %v14114_v1 }
  0x1f   : > { %1032 = vrot.lane.b32.xlu0 %v997_v39, %s8991_s13  ;;  %v587_v49 = vor.u32 %v586_v42, %v582_v35  ;;  %1777 = vmatpush1.bf16.msra.mxu0 %v8839_v38  ;;  %v599_v61 = vrot.slane %v597_v51, 1  ;;  %v1130_v0 = vor.u32 %v1129_v54, %v1126_v53  ;;  %v1133_v2 = vor.u32 %v1132_v55, %v1131_v52 }
  0x20   : > { %1778 = vmatprep.subr.bf16.mxu0 %v14114_v1  ;;  %v1136_v62 = vrot.slane %v9156_v56, 3  ;;  %v1135_v3 = vrot.slane %v9160_v57, 2  ;;  %v774_v8 = vrot.slane %v9087_v6, 1  ;;  %v601_v10 = vshrl.u32 %v9093_v9, 16  ;;  %5333 = vst.msk [vmem:[#allocation3 + $0x4] sm:$0xf] %vm2392_vm9, %v14114_v1 }
  0x21   : > { %859 = vrot.lane.b32.xlu1 %v854_v45, %s8992_s16  ;;  %v592_v63 = vsel %vm580_vm2, %v587_v49, %v591_v50  ;;  %v600_v7 = vsel %vm580_vm2, %v595_v60, %v599_v61  ;;  %v1134_v12 = vsel %vm1122_vm3, %v1130_v0, %v1133_v2  ;;  %v607_v18 = vrot.slane %v9142_v43, 1  ;;  %5334 = vst.msk [vmem:[#allocation3 + $0x8] sm:$0xf] %vm2392_vm9, %v14114_v1 }
  0x22   : > { %v1137_v13 = vor.u32 %v1136_v62, %v1135_v3  ;;  %v775_v15 = vsel %vm768_vm1, %v9123_v33, %v774_v8  ;;  %v603_v16 = vor.u32 %v601_v10, %v599_v61  ;;  %v9198_v20 = vshll.u32 %v9185_v11, 16  ;;  %5335 = vst.msk [vmem:[#allocation3 + $0xc] sm:$0xf] %vm2392_vm9, %v14114_v1  ;;  %5372 = vst.msk [vmem:[#allocation3 + $0xa0] sm:$0xf] %vm2392_vm9, %v14114_v1 }
  0x23   : > { %1085 = vrot.lane.b32.xlu0 %v9139_v41, %s8990_s12  ;;  %1779 = vmatpush1.bf16.msra.mxu0 %v8841_v58  ;;  %v9202_v23 = vshrl.u32 %v9185_v11, 16  ;;  %v1000_v26 = vrot.slane %v9185_v11, 2  ;;  %v776_v33 = vrot.slane %v9107_v19, 1  ;;  %v908_v38 = vrot.slane %v597_v51, 2  ;;  %v8850_v58 = vld [vmem:[%s14103_s2 + $0x60] sm:$0xff]  }
  0x24   : > { %1780 = vmatprep.subr.bf16.mxu0 %v14114_v1  ;;  %v1138_v21 = vsel %vm1122_vm3, %v1133_v2, %v1137_v13  ;;  %v608_v25 = vsel %vm580_vm2, %v603_v16, %v607_v18  ;;  %v1140_v29 = vrot.slane %v9198_v20, 3  ;;  %v611_v39 = vor.u32 %v9145_v44, %v607_v18  ;;  %v8853_v18 = vld [vmem:[%s14103_s2 + $0x70] sm:$0xff]   ;;  %5373 = vst.msk [vmem:[#allocation3 + $0xa4] sm:$0xf] %vm2392_vm9, %v14114_v1 }
  0x25   : > { %808 = vrot.lane.b32.xlu1 %v773_v59, %s8990_s12  ;;  %v1139_v28 = vrot.slane %v9202_v23, 2  ;;  %v1001_v35 = vsel %vm992_vm0, %v998_v30, %v1000_v26  ;;  %v615_v40 = vrot.slane %v9156_v56, 1  ;;  %v8856_v30 = vld [vmem:[%s14103_s2 + $0x88] sm:$0xff]   ;;  %v777_v42 = vsel %vm768_vm1, %v774_v8, %v776_v33  ;;  %v9269_v59 = vld [vmem:[%s9077_s26 + $0x38] sm:$0xff]   ;;  %5374 = vst.msk [vmem:[#allocation3 + $0xa8] sm:$0xf] %vm2392_vm9, %v14114_v1 }
  0x26   : > { %v9246_v45 = vshll.u32 %v9226_v34, 16  ;;  %v9249_v46 = vshrl.u32 %v9226_v34, 16  ;;  %8642 = vmatprep.subr.bf16.mxu1 %v8856_v30  ;;  %v1002_v50 = vrot.slane %v9226_v34, 2  ;;  %v900_v54 = vshrl.u32 %v9103_v17, 16 }
  0x27   : > { %729 = vrot.lane.b32.xlu0 %v592_v63, %s8991_s13  ;;  %1781 = vmatpush1.bf16.msra.mxu0 %v8842_v5  ;;  %v1141_v36 = vor.u32 %v1140_v29, %v1139_v28  ;;  %v616_v49 = vsel %vm580_vm2, %v611_v39, %v615_v40  ;;  %v903_v55 = vshll.u32 %v9103_v17, 16  ;;  %v778_v61 = vrot.slane %v9185_v11, 1 }
  0x28   : > { %1782 = vmatprep.subr.bf16.mxu0 %v14114_v1  ;;  %8643 = vmatpush3.bf16.msra.mxu1 %v8856_v30  ;;  %v1143_v51 = vrot.slane %v9249_v46, 2  ;;  %v1144_v52 = vrot.slane %v9246_v45, 3  ;;  %v902_v60 = vrot.slane %v900_v54, 1  ;;  %v911_v63 = vrot.slane %v9145_v44, 1  ;;  %v486_v44 = vld [vmem:[%s9077_s26 + $0x10] sm:$0x8] }
  0x29   : > { %731 = vrot.lane.b32.xlu1 %v600_v7, %s8991_s13  ;;  %v1142_v47 = vsel %vm1122_vm3, %v1137_v13, %v1141_v36  ;;  %4543 = vmatprep.subr.bf16.mxu1 %v14114_v1  ;;  %v905_v62 = vrot.slane %v903_v55, 2  ;;  %v912_v0 = vrot.slane %v9142_v43, 2  ;;  %v1003_v17 = vsel %vm992_vm0, %v1000_v26, %v1002_v50  ;;  %v8851_v7 = vld [vmem:[%s14103_s2 + $0x68] sm:$0xff]  }
  0x2a   : > { %v9280_v2 = vor.u32 %v1144_v52, %v1143_v51  ;;  %v623_v13 = vrot.slane %v9198_v20, 1  ;;  %v9306_v16 = vshll.u32 %v9269_v59, 16  ;;  %v1004_v26 = vrot.slane %v9269_v59, 2 }
  0x2b   : > { %1213 = vrot.lane.b32.xlu0 %v1134_v12, %s8992_s16  ;;  %1783 = vmatpush1.bf16.msra.mxu0 %v8843_v14  ;;  %v906_v3 = vor.u32 %v905_v62, %v902_v60  ;;  %v913_v5 = vor.u32 %v912_v0, %v911_v63  ;;  %v619_v12 = vor.u32 %v9160_v57, %v615_v40  ;;  %v9301_v14 = vshrl.u32 %v9269_v59, 16 }
  0x2c   : > { %1784 = vmatprep.subr.bf16.mxu0 %v14114_v1  ;;  %v915_v29 = vrot.slane %v9160_v57, 1  ;;  %v1260_v39 = vrot.slane %v9226_v34, 3  ;;  %v919_v40 = vrot.slane %v9202_v23, 1  ;;  %v1005_v30 = vsel %vm992_vm0, %v1002_v50, %v1004_v26 }
  0x2d   : > { %861 = vrot.lane.b32.xlu1 %v775_v15, %s8992_s16  ;;  %v924_v54 = vrot.slane %v9246_v45, 2  ;;  %vm3338_vm13 = vsmask.f32 1280  ;;  %vm7940_vm14 = vcmask 130048  }
  0x2f   : > { %1215 = vrot.lane.b32.xlu0 %v1138_v21, %s8992_s16  ;;  %1785 = vmatpush1.bf16.msra.mxu0 %v8845_v24  ;;  %v8102_v21 = vcombine.low %v486_v44, %v9083_v4  ;;  %v1254_v24 = vrot.slane %v9087_v6, 3  ;;  %v624_v4 = vsel %vm580_vm2, %v619_v12, %v623_v13  ;;  %v916_v6 = vrot.slane %v9156_v56, 2 }
  0x30   : > { %1786 = vmatprep.subr.bf16.mxu0 %v14114_v1  ;;  %v1258_v56 = vrot.slane %v9185_v11, 3 }
  0x31   : > { %733 = vrot.lane.b32.xlu1 %v608_v25, %s8991_s13  ;;  %v1256_v25 = vrot.slane %v9107_v19, 3  ;;  %v1253_v28 = vrot.slane %v8102_v21, 3  ;;  %v1148_v19 = vrot.slane %v9306_v16, 3  ;;  %v917_v57 = vor.u32 %v916_v6, %v915_v29 }
  0x32   : > { %v1261_v52 = vsel %vm1252_vm5, %v1258_v56, %v1260_v39 }
  0x33   : > { %1034 = vrot.lane.b32.xlu0 %v9139_v41, %s8991_s13  ;;  %1787 = vmatpush1.bf16.msra.mxu0 %v8846_v31  ;;  %v907_v41 = vrot.slane %v601_v10, 1  ;;  %v779_v10 = vsel %vm768_vm1, %v776_v33, %v778_v61  ;;  %v1147_v31 = vrot.slane %v9301_v14, 2  ;;  %v1257_v32 = vsel %vm1252_vm5, %v1254_v24, %v1256_v25  ;;  %v8855_v33 = vld [vmem:[%s14103_s2 + $0x78] sm:$0xff]  }
  0x34   : > { %1788 = vmatprep.subr.bf16.mxu0 %v14114_v1 }
  0x35   : > { %810 = vrot.lane.b32.xlu1 %v775_v15, %s8990_s12  ;;  %v909_v53 = vor.u32 %v908_v38, %v907_v41  ;;  %v1146_v15 = vsel %vm1122_vm3, %v1141_v36, %v9280_v2  ;;  %v780_v36 = vrot.slane %v9226_v34, 1  ;;  %v9339_v38 = vsel %vm898_vm4, %v913_v5, %v917_v57 }
  0x36   : > { %v1149_v41 = vor.u32 %v1148_v19, %v1147_v31  ;;  %v631_v34 = vrot.slane %v9246_v45, 1  ;;  %v1262_v45 = vrot.slane %v9269_v59, 3 }
  0x37   : > { %1087 = vrot.lane.b32.xlu0 %v1001_v35, %s8990_s12  ;;  %1789 = vmatpush1.bf16.msra.mxu0 %v8847_v37  ;;  %v9289_v43 = vsel %vm898_vm4, %v906_v3, %v909_v53  ;;  %v9292_v8 = vsel %vm898_vm4, %v909_v53, %v913_v5  ;;  %v9333_v37 = vld [vmem:[%s9077_s26 + $0x40] sm:$0xff]   ;;  %v782_v5 = vrot.slane %v9269_v59, 1 }
  0x38   : > { %1790 = vmatprep.subr.bf16.mxu0 %v14114_v1  ;;  %v9359_v50 = vshll.u32 %v9333_v37, 16  ;;  %v1150_v11 = vsel %vm1122_vm3, %v9280_v2, %v1149_v41  ;;  %v1006_v60 = vrot.slane %v9333_v37, 2  ;;  %v1264_v0 = vrot.slane %v9333_v37, 3 }
  0x39   : > { %863 = vrot.lane.b32.xlu1 %v777_v42, %s8992_s16  ;;  %v928_v2 = vrot.slane %v9306_v16, 2  ;;  %v1263_v3 = vsel %vm1252_vm5, %v1260_v39, %v1262_v45  ;;  %v783_v59 = vsel %vm768_vm1, %v780_v36, %v782_v5 }
  0x3a   : > { %v1152_v62 = vrot.slane %v9359_v50, 3  ;;  %v932_v21 = vrot.slane %v9359_v50, 2 }
  0x3b   : > { %1217 = vrot.lane.b32.xlu0 %v1142_v47, %s8992_s16  ;;  %1791 = vmatpush1.bf16.msra.mxu0 %v8849_v48  ;;  %v920_v47 = vrot.slane %v9198_v20, 2  ;;  %v781_v48 = vsel %vm768_vm1, %v778_v61, %v780_v36  ;;  %v9362_v20 = vshrl.u32 %v9333_v37, 16 }
  0x3c   : > { %1792 = vmatprep.subr.bf16.mxu0 %v14114_v1 }
  0x3d   : > { %735 = vrot.lane.b32.xlu1 %v616_v49, %s8991_s13  ;;  %v627_v49 = vor.u32 %v9202_v23, %v623_v13  ;;  %v921_v51 = vor.u32 %v920_v47, %v919_v40  ;;  %v923_v23 = vrot.slane %v9249_v46, 1  ;;  %v1151_v61 = vrot.slane %v9362_v20, 2  ;;  %v9396_v13 = vld [vmem:[%s9077_s26 + $0x48] sm:$0xff]  }
  0x3e   : > { %v9414_v29 = vshll.u32 %v9396_v13, 16  ;;  %v784_v40 = vrot.slane %v9333_v37, 1 }
  0x3f   : > { %1036 = vrot.lane.b32.xlu0 %v1001_v35, %s8991_s13  ;;  %1793 = vmatpush1.bf16.msra.mxu0 %v8850_v58  ;;  %v1255_v35 = vsel %vm1252_vm5, %v1253_v28, %v1254_v24  ;;  %v9368_v53 = vsel %vm898_vm4, %v917_v57, %v921_v51  ;;  %v925_v55 = vor.u32 %v924_v54, %v923_v23 }
  0x40   : > { %1794 = vmatprep.subr.bf16.mxu0 %v14114_v1  ;;  %8644 = vmatprep.mubr.msk.bf16.mxu1 %vm1290_vm6, %v1255_v35  ;;  %v632_v58 = vsel %vm580_vm2, %v627_v49, %v631_v34  ;;  %v1153_v12 = vor.u32 %v1152_v62, %v1151_v61  ;;  %v635_v24 = vor.u32 %v9249_v46, %v631_v34  ;;  %v1156_v57 = vrot.slane %v9414_v29, 3 }
  0x41   : > { %812 = vrot.lane.b32.xlu1 %v777_v42, %s8990_s12  ;;  %8645 = vmatmul.mubr.msk.bf16.vlgmr.msra.gmra.mrb[0].mxu1 %vm1290_vm6, %v1257_v32  ;;  %v1259_v42 = vsel %vm1252_vm5, %v1256_v25, %v1258_v56  ;;  %v9380_v63 = vsel %vm898_vm4, %v921_v51, %v925_v55  ;;  %v639_v25 = vrot.slane %v9306_v16, 1  ;;  %v1266_v32 = vrot.slane %v9396_v13, 3 }
  0x42   : > { %8648 = vmatprep.mubr.msk.bf16.mxu1 %vm1290_vm6, %v1259_v42  ;;  %v1154_v28 = vsel %vm1122_vm3, %v1149_v41, %v1153_v12  ;;  %v936_v39 = vrot.slane %v9414_v29, 2  ;;  %v785_v49 = vsel %vm768_vm1, %v782_v5, %v784_v40 }
  0x43   : > { %1089 = vrot.lane.b32.xlu0 %v1003_v17, %s8990_s12  ;;  %1795 = vmatpush1.bf16.msra.mxu0 %v8851_v7  ;;  %v1265_v7 = vsel %vm1252_vm5, %v1262_v45, %v1264_v0  ;;  %v640_v16 = vsel %vm580_vm2, %v635_v24, %v639_v25  ;;  %v1267_v19 = vsel %vm1252_vm5, %v1264_v0, %v1266_v32  ;;  %v9468_v45 = vld [vmem:[%s9077_s26 + $0x58] sm:$0xff]  }
  0x44   : > { %1796 = vmatprep.subr.bf16.mxu0 %v14114_v1  ;;  %v643_v37 = vor.u32 %v9301_v14, %v639_v25 }
  0x45   : > { %865 = vrot.lane.b32.xlu1 %v779_v10, %s8992_s16 }
  0x47   : > { %1219 = vrot.lane.b32.xlu0 %v1146_v15, %s8992_s16  ;;  %1797 = vmatpush1.bf16.msra.mxu0 %v8853_v18  ;;  %v931_v18 = vrot.slane %v9362_v20, 1 }
  0x48   : > { %1798 = vmatprep.subr.bf16.mxu0 %v14114_v1 }
  0x49   : > { %737 = vrot.lane.b32.xlu1 %v624_v4, %s8991_s13  ;;  %8649 = vmatmul.mubr.msk.bf16.gmra.mrb[4].mxu1 %vm1290_vm6, %v1261_v52  ;;  %v9417_v4 = vshrl.u32 %v9396_v13, 16  ;;  %v933_v31 = vor.u32 %v932_v21, %v931_v18 }
  0x4a   : > { %8652 = vmatprep.mubr.msk.bf16.mxu1 %vm1290_vm6, %v1263_v3  ;;  %v655_v3 = vrot.slane %v9414_v29, 1 }
  0x4b   : > { %1038 = vrot.lane.b32.xlu0 %v1003_v17, %s8991_s13  ;;  %1799 = vmatpush1.bf16.msra.mxu0 %v8855_v33  ;;  %v927_v17 = vrot.slane %v9301_v14, 1  ;;  %v1008_v33 = vrot.slane %v9396_v13, 2  ;;  %v1155_v35 = vrot.slane %v9417_v4, 2  ;;  %v935_v56 = vrot.slane %v9417_v4, 1 }
  0x4d   : > { %814 = vrot.lane.b32.xlu1 %v779_v10, %s8990_s12  ;;  %v929_v44 = vor.u32 %v928_v2, %v927_v17  ;;  %v1007_v10 = vsel %vm992_vm0, %v1004_v26, %v1006_v60  ;;  %v9410_v26 = vld [vmem:[%s9077_s26 + $0x50] sm:$0xff]   ;;  %v1009_v41 = vsel %vm992_vm0, %v1006_v60, %v1008_v33  ;;  %v1157_v42 = vor.u32 %v1156_v57, %v1155_v35 }
  0x4e   : > { %v1268_v46 = vrot.slane %v9410_v26, 3  ;;  %v9450_v34 = vshll.u32 %v9410_v26, 16  ;;  %v9453_v52 = vshrl.u32 %v9410_v26, 16  ;;  %v659_v57 = vor.u32 %v9417_v4, %v655_v3 }
  0x4f   : > { %1091 = vrot.lane.b32.xlu0 %v1005_v30, %s8990_s12  ;;  %v9399_v15 = vsel %vm898_vm4, %v925_v55, %v929_v44  ;;  %v9422_v6 = vsel %vm898_vm4, %v929_v44, %v933_v31  ;;  %v1158_v51 = vsel %vm1122_vm3, %v1153_v12, %v1157_v42  ;;  %v9483_v44 = vshrl.u32 %v9468_v45, 16 }
  0x50   : > { %v1269_v36 = vsel %vm1252_vm5, %v1266_v32, %v1268_v46  ;;  %v1159_v23 = vrot.slane %v9453_v52, 2  ;;  %v1160_v14 = vrot.slane %v9450_v34, 3  ;;  %v939_v54 = vrot.slane %v9453_v52, 1 }
  0x51   : > { %867 = vrot.lane.b32.xlu1 %v781_v48, %s8992_s16  ;;  %8653 = vmatmul.mubr.msk.bf16.gmra.mrb[8].mxu1 %vm1290_vm6, %v1265_v7  ;;  %v940_v55 = vrot.slane %v9450_v34, 2  ;;  %v9480_v7 = vshll.u32 %v9468_v45, 16  ;;  %v1270_v12 = vrot.slane %v9468_v45, 3  ;;  %v1163_v24 = vrot.slane %v9483_v44, 2 }
  0x52   : > { %8656 = vmatprep.mubr.msk.bf16.mxu1 %vm1290_vm6, %v1267_v19  ;;  %v1161_v62 = vor.u32 %v1160_v14, %v1159_v23  ;;  %v943_v29 = vrot.slane %v9483_v44, 1  ;;  %v788_v32 = vrot.slane %v9410_v26, 1 }
  0x53   : > { %1221 = vrot.lane.b32.xlu0 %v1150_v11, %s8992_s16  ;;  %v1010_v11 = vrot.slane %v9410_v26, 2  ;;  %v941_v60 = vor.u32 %v940_v55, %v939_v54  ;;  %v1271_v21 = vsel %vm1252_vm5, %v1268_v46, %v1270_v12  ;;  %v1164_v25 = vrot.slane %v9480_v7, 3  ;;  %v9550_v55 = vld [vmem:[%s9077_s26 + $0x70] sm:$0xff]  }
  0x54   : > { %v1162_v5 = vsel %vm1122_vm3, %v1157_v42, %v1161_v62  ;;  %v663_v26 = vrot.slane %v9450_v34, 1  ;;  %v790_v42 = vrot.slane %v9468_v45, 1 }
  0x55   : > { %739 = vrot.lane.b32.xlu1 %v632_v58, %s8991_s13  ;;  %v786_v58 = vrot.slane %v9396_v13, 1  ;;  %v1011_v61 = vsel %vm992_vm0, %v1008_v33, %v1010_v11  ;;  %v1165_v19 = vor.u32 %v1164_v25, %v1163_v24 }
  0x56   : > { %v667_v34 = vor.u32 %v9453_v52, %v663_v26  ;;  %v1276_v52 = vrot.slane %v9550_v55, 3 }
  0x57   : > { %1040 = vrot.lane.b32.xlu0 %v1005_v30, %s8991_s13  ;;  %v937_v30 = vor.u32 %v936_v39, %v935_v56  ;;  %v787_v17 = vsel %vm768_vm1, %v784_v40, %v786_v58  ;;  %v789_v35 = vsel %vm768_vm1, %v786_v58, %v788_v32  ;;  %v664_v40 = vsel %vm580_vm2, %v659_v57, %v663_v26 }
  0x59   : > { %816 = vrot.lane.b32.xlu1 %v781_v48, %s8990_s12  ;;  %8657 = vmatmul.mubr.msk.bf16.gmra.mrb[12].mxu1 %vm1290_vm6, %v1269_v36  ;;  %v9441_v47 = vsel %vm898_vm4, %v933_v31, %v937_v30  ;;  %v647_v48 = vrot.slane %v9359_v50, 1  ;;  %v9471_v0 = vsel %vm898_vm4, %v937_v30, %v941_v60  ;;  %v944_v31 = vrot.slane %v9480_v7, 2 }
  0x5a   : > { %8660 = vmatprep.mubr.msk.bf16.mxu1 %vm1290_vm6, %v1271_v21  ;;  %v1166_v36 = vsel %vm1122_vm3, %v1161_v62, %v1165_v19 }
  0x5b   : > { %1093 = vrot.lane.b32.xlu0 %v1007_v10, %s8990_s12  ;;  %v648_v50 = vsel %vm580_vm2, %v643_v37, %v647_v48  ;;  %v651_v2 = vor.u32 %v9362_v20, %v647_v48  ;;  %v9505_v46 = vor.u32 %v944_v31, %v943_v29  ;;  %v9535_v37 = vld [vmem:[%s9077_s26 + $0x68] sm:$0xff]  }
  0x5c   : > { %v9544_v14 = vshll.u32 %v9535_v37, 16  ;;  %v9547_v54 = vshrl.u32 %v9535_v37, 16 }
  0x5d   : > { %869 = vrot.lane.b32.xlu1 %v783_v59, %s8992_s16  ;;  %v656_v20 = vsel %vm580_vm2, %v651_v2, %v655_v3  ;;  %v9510_v33 = vsel %vm898_vm4, %v941_v60, %v9505_v46  ;;  %v1274_v60 = vrot.slane %v9535_v37, 3  ;;  %v1016_v2 = vrot.slane %v9535_v37, 2 }
  0x5e   : > { %v1171_v3 = vrot.slane %v9547_v54, 2 }
  0x5f   : > { %1223 = vrot.lane.b32.xlu0 %v1154_v28, %s8992_s16 }
  0x61   : > { %741 = vrot.lane.b32.xlu1 %v640_v16, %s8991_s13 }
  0x63   : > { %1042 = vrot.lane.b32.xlu0 %v1007_v10, %s8991_s13  ;;  %v9486_v10 = vld [vmem:[%s9077_s26 + $0x60] sm:$0xff]  }
  0x64   : > { %v1272_v18 = vrot.slane %v9486_v10, 3  ;;  %v9519_v56 = vshll.u32 %v9486_v10, 16  ;;  %v9522_v39 = vshrl.u32 %v9486_v10, 16  ;;  %v1014_v30 = vrot.slane %v9486_v10, 2 }
  0x65   : > { %818 = vrot.lane.b32.xlu1 %v783_v59, %s8990_s12  ;;  %v1012_v59 = vrot.slane %v9468_v45, 2 }
  0x66   : > { %v1273_v28 = vsel %vm1252_vm5, %v1270_v12, %v1272_v18  ;;  %v1167_v4 = vrot.slane %v9522_v39, 2  ;;  %v1275_v62 = vsel %vm1252_vm5, %v1272_v18, %v1274_v60  ;;  %v792_v18 = vrot.slane %v9486_v10, 1 }
  0x67   : > { %1095 = vrot.lane.b32.xlu0 %v1009_v41, %s8990_s12  ;;  %8661 = vmatmul.mubr.msk.bf16.gmra.mrb[16].mxu1 %vm1290_vm6, %v1273_v28  ;;  %v1013_v16 = vsel %vm992_vm0, %v1010_v11, %v1012_v59  ;;  %v1015_v48 = vsel %vm992_vm0, %v1012_v59, %v1014_v30  ;;  %v671_v11 = vrot.slane %v9480_v7, 1  ;;  %v1277_v7 = vsel %vm1252_vm5, %v1274_v60, %v1276_v52 }
  0x68   : > { %8664 = vmatprep.mubr.msk.bf16.mxu1 %vm1290_vm6, %v1275_v62  ;;  %v1017_v21 = vsel %vm992_vm0, %v1014_v30, %v1016_v2  ;;  %v793_v25 = vsel %vm768_vm1, %v790_v42, %v792_v18  ;;  %v679_v29 = vrot.slane %v9519_v56, 1  ;;  %v1018_v30 = vrot.slane %v9550_v55, 2 }
  0x69   : > { %871 = vrot.lane.b32.xlu1 %v785_v49, %s8992_s16  ;;  %v675_v28 = vor.u32 %v9483_v44, %v671_v11 }
  0x6b   : > { %1225 = vrot.lane.b32.xlu0 %v1158_v51, %s8992_s16  ;;  %v791_v51 = vsel %vm768_vm1, %v788_v32, %v790_v42  ;;  %v680_v44 = vsel %vm580_vm2, %v675_v28, %v679_v29 }
  0x6d   : > { %743 = vrot.lane.b32.xlu1 %v648_v50, %s8991_s13 }
  0x6f   : > { %1044 = vrot.lane.b32.xlu0 %v1009_v41, %s8991_s13  ;;  %v1168_v41 = vrot.slane %v9519_v56, 3  ;;  %8665 = vmatmul.mubr.msk.bf16.gmra.mrb[20].mxu1 %vm1290_vm6, %v1277_v7 }
  0x71   : > { %820 = vrot.lane.b32.xlu1 %v785_v49, %s8990_s12  ;;  %v1169_v49 = vor.u32 %v1168_v41, %v1167_v4 }
  0x73   : > { %1097 = vrot.lane.b32.xlu0 %v1011_v61, %s8990_s12  ;;  %v1170_v23 = vsel %vm1122_vm3, %v1165_v19, %v1169_v49  ;;  %v9580_v19 = vshrl.u32 %v9550_v55, 16 }
  0x75   : > { %873 = vrot.lane.b32.xlu1 %v787_v17, %s8992_s16  ;;  %v1175_v4 = vrot.slane %v9580_v19, 2 }
  0x77   : > { %1227 = vrot.lane.b32.xlu0 %v1162_v5, %s8992_s16  ;;  %v1172_v5 = vrot.slane %v9544_v14, 3 }
  0x79   : > { %745 = vrot.lane.b32.xlu1 %v656_v20, %s8991_s13  ;;  %v1173_v59 = vor.u32 %v1172_v5, %v1171_v3 }
  0x7b   : > { %1046 = vrot.lane.b32.xlu0 %v1011_v61, %s8991_s13  ;;  %v672_v61 = vsel %vm580_vm2, %v667_v34, %v671_v11  ;;  %v1174_v32 = vsel %vm1122_vm3, %v1169_v49, %v1173_v59  ;;  %v794_v49 = vrot.slane %v9535_v37, 1  ;;  %v1019_v11 = vsel %vm992_vm0, %v1016_v2, %v1018_v30 }
  0x7c   : > { %v687_v2 = vrot.slane %v9544_v14, 1 }
  0x7d   : > { %822 = vrot.lane.b32.xlu1 %v787_v17, %s8990_s12 }
  0x7f   : > { %1099 = vrot.lane.b32.xlu0 %v1013_v16, %s8990_s12 }
  0x81   : > { %875 = vrot.lane.b32.xlu1 %v789_v35, %s8992_s16 }
  0x83   : > { %1229 = vrot.lane.b32.xlu0 %v1166_v36, %s8992_s16 }
  0x85   : > { %747 = vrot.lane.b32.xlu1 %v664_v40, %s8991_s13 }
  0x87   : > { %1048 = vrot.lane.b32.xlu0 %v1013_v16, %s8991_s13  ;;  %v9577_v16 = vshll.u32 %v9550_v55, 16 }
  0x89   : > { %824 = vrot.lane.b32.xlu1 %v789_v35, %s8990_s12 }
  0x8b   : > { %1101 = vrot.lane.b32.xlu0 %v1015_v48, %s8990_s12  ;;  %v1084_v50 = vpop.permute.xlu1 %1083 }
  0x8d   : > { %v1031_v58 = vpop.permute.xlu0 %1030  ;;  %877 = vrot.lane.b32.xlu1 %v791_v51, %s8992_s16 }
  0x8e   : > { %v1421_v57 = vsel %vm1290_vm6, %v9289_v43, %v1031_v58  ;;  %v1176_v43 = vrot.slane %v9577_v16, 3 }
  0x8f   : > { %1231 = vrot.lane.b32.xlu0 %v1170_v23, %s8992_s16  ;;  %v807_v17 = vpop.permute.xlu1 %806 }
  0x90   : > { %v1177_v23 = vor.u32 %v1176_v43, %v1175_v4 }
  0x91   : > { %v1033_v12 = vpop.permute.xlu0 %1032  ;;  %749 = vrot.lane.b32.xlu1 %v672_v61, %s8991_s13 }
  0x92   : > { %v1178_v5 = vsel %vm1122_vm3, %v1173_v59, %v1177_v23 }
  0x93   : > { %1050 = vrot.lane.b32.xlu0 %v1015_v48, %s8991_s13  ;;  %v860_v20 = vpop.permute.xlu1 %859 }
  0x95   : > { %v1086_v24 = vpop.permute.xlu0 %1085  ;;  %826 = vrot.lane.b32.xlu1 %v791_v51, %s8990_s12  ;;  %v1424_v51 = vsel %vm1290_vm6, %v9292_v8, %v1033_v12  ;;  %v795_v8 = vsel %vm768_vm1, %v792_v18, %v794_v49 }
  0x96   : > { %v1476_v58 = vsel %vm1327_vm7, %v1424_v51, %v1086_v24 }
  0x97   : > { %1103 = vrot.lane.b32.xlu0 %v1017_v21, %s8990_s12  ;;  %v809_v31 = vpop.permute.xlu1 %808 }
  0x99   : > { %v730_v35 = vpop.permute.xlu0 %729  ;;  %879 = vrot.lane.b32.xlu1 %v793_v25, %s8992_s16 }
  0x9a   : > { %v1292_v26 = vsel %vm1290_vm6, %v9114_v27, %v730_v35  ;;  %v1474_v27 = vsel %vm1327_vm7, %v1421_v57, %v1084_v50  ;;  %v9603_v50 = vld [vmem:[%s9077_s26 + $0x78] sm:$0xff]  }
  0x9b   : > { %1233 = vrot.lane.b32.xlu0 %v1174_v32, %s8992_s16  ;;  %v732_v36 = vpop.permute.xlu1 %731  ;;  %v1329_v40 = vsel %vm1327_vm7, %v1292_v26, %v807_v17  ;;  %v683_v17 = vor.u32 %v9522_v39, %v679_v29  ;;  %v9616_v7 = vshll.u32 %v9603_v50, 16  ;;  %v9619_v12 = vshrl.u32 %v9603_v50, 16 }
  0x9c   : > { %v1366_v48 = vsel %vm1364_vm8, %v1329_v40, %v860_v20  ;;  %v1294_v62 = vsel %vm1290_vm6, %v9110_v22, %v732_v36  ;;  %v9622_v20 = vld [vmem:[%s9077_s26 + $0x80] sm:$0xff]   ;;  %v1020_v35 = vrot.slane %v9603_v50, 2  ;;  %v796_v36 = vrot.slane %v9550_v55, 1 }
  0x9d   : > { %v1214_v41 = vpop.permute.xlu0 %1213  ;;  %751 = vrot.lane.b32.xlu1 %v680_v44, %s8991_s13  ;;  %v1331_v18 = vsel %vm1327_vm7, %v1294_v62, %v809_v31  ;;  %v1280_v24 = vrot.slane %v9622_v20, 3  ;;  %v688_v28 = vsel %vm580_vm2, %v683_v17, %v687_v2  ;;  %v1179_v31 = vrot.slane %v9619_v12, 2 }
  0x9e   : > { %v1510_v42 = vsel %vm1364_vm8, %v1474_v27, %v1214_v41  ;;  %v1180_v57 = vrot.slane %v9616_v7, 3  ;;  %v1021_v4 = vsel %vm992_vm0, %v1018_v30, %v1020_v35  ;;  %v691_v55 = vor.u32 %v9547_v54, %v687_v2 }
  0x9f   : > { %1052 = vrot.lane.b32.xlu0 %v1017_v21, %s8991_s13  ;;  %1800 = vmatprep.mubr.bf16.mxu0 %v1510_v42  ;;  %v862_v34 = vpop.permute.xlu1 %861  ;;  %v1278_v21 = vrot.slane %v9603_v50, 3  ;;  %v695_v30 = vrot.slane %v9577_v16, 1  ;;  %v1022_v17 = vrot.slane %v9622_v20, 2 }
  0xa0   : > { %1801 = vmatmul.mubr.bf16.vlgmr.msra.gmra.mrb[0].mxu0 %v1366_v48  ;;  %v1181_v43 = vor.u32 %v1180_v57, %v1179_v31  ;;  %v797_v48 = vsel %vm768_vm1, %v794_v49, %v796_v36 }
  0xa1   : > { %v1216_v60 = vpop.permute.xlu0 %1215  ;;  %828 = vrot.lane.b32.xlu1 %v793_v25, %s8990_s12  ;;  %v1369_v25 = vsel %vm1364_vm8, %v1331_v18, %v862_v34  ;;  %v1279_v29 = vsel %vm1252_vm5, %v1276_v52, %v1278_v21  ;;  %v696_v62 = vsel %vm580_vm2, %v691_v55, %v695_v30  ;;  %v798_v18 = vrot.slane %v9603_v50, 1 }
  0xa2   : > { %v1513_v61 = vsel %vm1364_vm8, %v1476_v58, %v1216_v60  ;;  %8668 = vmatprep.mubr.msk.bf16.mxu1 %vm1290_vm6, %v1279_v29  ;;  %v1182_v34 = vsel %vm1122_vm3, %v1177_v23, %v1181_v43  ;;  %v9664_v58 = vshrl.u32 %v9622_v20, 16 }
  0xa3   : > { %1105 = vrot.lane.b32.xlu0 %v1019_v11, %s8990_s12  ;;  %1808 = vmatprep.mubr.bf16.mxu0 %v1513_v61  ;;  %v734_v3 = vpop.permute.xlu1 %733  ;;  %v8964_v61 = vld [vmem:[%s9077_s26 + $0x18] sm:$0xff]   ;;  %v799_v57 = vsel %vm768_vm1, %v796_v36, %v798_v18 }
  0xa4   : > { %v1296_v59 = vsel %vm1290_vm6, %v9093_v9, %v734_v3  ;;  %v1281_v9 = vsel %vm1252_vm5, %v1278_v21, %v1280_v24  ;;  %v1183_v2 = vrot.slane %v9664_v58, 2 }
  0xa5   : > { %v1035_v22 = vpop.permute.xlu0 %1034  ;;  %881 = vrot.lane.b32.xlu1 %v795_v8, %s8992_s16  ;;  %8669 = vmatmul.mubr.msk.bf16.gmra.mrb[24].mxu1 %vm1290_vm6, %v1281_v9  ;;  %v699_v9 = vor.u32 %v9580_v19, %v695_v30 }
  0xa6   : > { %v1427_v52 = vsel %vm1290_vm6, %v9339_v38, %v1035_v22 }
  0xa7   : > { %1235 = vrot.lane.b32.xlu0 %v1178_v5, %s8992_s16  ;;  %v811_v32 = vpop.permute.xlu1 %810 }
  0xa8   : > { %1809 = vmatmul.mubr.bf16.gmra.mrb[4].mxu0 %v1369_v25  ;;  %v1333_v44 = vsel %vm1327_vm7, %v1296_v59, %v811_v32 }
  0xa9   : > { %v1088_v26 = vpop.permute.xlu0 %1087  ;;  %753 = vrot.lane.b32.xlu1 %v688_v28, %s8991_s13  ;;  %v9683_v28 = vld [vmem:[%s9077_s26 + $0x88] sm:$0xff]  }
  0xaa   : > { %v1478_v41 = vsel %vm1327_vm7, %v1427_v52, %v1088_v26 }
  0xab   : > { %1054 = vrot.lane.b32.xlu0 %v1019_v11, %s8991_s13  ;;  %v864_v40 = vpop.permute.xlu1 %863  ;;  %v9661_v11 = vshll.u32 %v9622_v20, 16 }
  0xac   : > { %v1372_v42 = vsel %vm1364_vm8, %v1333_v44, %v864_v40  ;;  %v9694_v44 = vshll.u32 %v9683_v28, 16  ;;  %v9697_v40 = vshrl.u32 %v9683_v28, 16 }
  0xad   : > { %v1218_v27 = vpop.permute.xlu0 %1217  ;;  %830 = vrot.lane.b32.xlu1 %v795_v8, %s8990_s12  ;;  %v1184_v3 = vrot.slane %v9661_v11, 3 }
  0xae   : > { %v1516_v38 = vsel %vm1364_vm8, %v1478_v41, %v1218_v27  ;;  %v1282_v27 = vrot.slane %v9683_v28, 3 }
  0xaf   : > { %1107 = vrot.lane.b32.xlu0 %v1021_v4, %s8990_s12  ;;  %1816 = vmatprep.mubr.bf16.mxu0 %v1516_v38  ;;  %v736_v51 = vpop.permute.xlu1 %735  ;;  %v1185_v25 = vor.u32 %v1184_v3, %v1183_v2 }
  0xb0   : > { %1817 = vmatmul.mubr.bf16.gmra.mrb[8].mxu0 %v1372_v42  ;;  %v1298_v49 = vsel %vm1290_vm6, %v8964_v61, %v736_v51  ;;  %v8965_v42 = vld [vmem:[%s9077_s26 + $0x20] sm:$0xff]   ;;  %v1283_v55 = vsel %vm1252_vm5, %v1280_v24, %v1282_v27  ;;  %v800_v24 = vrot.slane %v9622_v20, 1 }
  0xb1   : > { %v1037_v60 = vpop.permute.xlu0 %1036  ;;  %883 = vrot.lane.b32.xlu1 %v797_v48, %s8992_s16  ;;  %v1186_v52 = vsel %vm1122_vm3, %v1181_v43, %v1185_v25  ;;  %8672 = vmatprep.mubr.msk.bf16.mxu1 %vm1290_vm6, %v1283_v55 }
  0xb2   : > { %v1430_v23 = vsel %vm1290_vm6, %v9368_v53, %v1037_v60  ;;  %v1023_v53 = vsel %vm992_vm0, %v1020_v35, %v1022_v17  ;;  %v703_v35 = vrot.slane %v9616_v7, 1  ;;  %v1188_v60 = vrot.slane %v9694_v44, 3 }
  0xb3   : > { %1237 = vrot.lane.b32.xlu0 %v1182_v34, %s8992_s16  ;;  %v813_v8 = vpop.permute.xlu1 %812  ;;  %v1187_v34 = vrot.slane %v9697_v40, 2 }
  0xb4   : > { %v1335_v22 = vsel %vm1327_vm7, %v1298_v49, %v813_v8  ;;  %v704_v43 = vsel %vm580_vm2, %v699_v9, %v703_v35  ;;  %v8966_v9 = vld [vmem:[%s9077_s26 + $0x28] sm:$0xff]  }
  0xb5   : > { %v1090_v5 = vpop.permute.xlu0 %1089  ;;  %755 = vrot.lane.b32.xlu1 %v696_v62, %s8991_s13  ;;  %v1189_v2 = vor.u32 %v1188_v60, %v1187_v34  ;;  %v9762_v34 = vld [vmem:[%s9077_s26 + $0x98] sm:$0xff]  }
  0xb6   : > { %v1480_v21 = vsel %vm1327_vm7, %v1430_v23, %v1090_v5 }
  0xb7   : > { %1056 = vrot.lane.b32.xlu0 %v1021_v4, %s8991_s13  ;;  %v866_v59 = vpop.permute.xlu1 %865  ;;  %v9700_v4 = vld [vmem:[%s9077_s26 + $0x90] sm:$0xff]  }
  0xb8   : > { %v1375_v32 = vsel %vm1364_vm8, %v1335_v22, %v866_v59  ;;  %v1284_v36 = vrot.slane %v9700_v4, 3  ;;  %v707_v59 = vor.u32 %v9619_v12, %v703_v35 }
  0xb9   : > { %v1220_v29 = vpop.permute.xlu0 %1219  ;;  %832 = vrot.lane.b32.xlu1 %v797_v48, %s8990_s12  ;;  %v1024_v48 = vrot.slane %v9683_v28, 2 }
  0xba   : > { %v1519_v31 = vsel %vm1364_vm8, %v1480_v21, %v1220_v29  ;;  %v1285_v61 = vsel %vm1252_vm5, %v1282_v27, %v1284_v36  ;;  %v801_v21 = vsel %vm768_vm1, %v798_v18, %v800_v24  ;;  %v1190_v29 = vsel %vm1122_vm3, %v1185_v25, %v1189_v2 }
  0xbb   : > { %1109 = vrot.lane.b32.xlu0 %v1023_v53, %s8990_s12  ;;  %1824 = vmatprep.mubr.bf16.mxu0 %v1519_v31  ;;  %v738_v26 = vpop.permute.xlu1 %737  ;;  %v1025_v8 = vsel %vm992_vm0, %v1022_v17, %v1024_v48  ;;  %v975_v31 = vshll.u32 %v9700_v4, 16  ;;  %v9746_v25 = vrot.slane %v9700_v4, 2 }
  0xbc   : > { %1825 = vmatmul.mubr.bf16.gmra.mrb[12].mxu0 %v1375_v32  ;;  %v1300_v38 = vsel %vm1290_vm6, %v8965_v42, %v738_v26  ;;  %8673 = vmatmul.mubr.msk.bf16.gmra.mrb[28].mxu1 %vm1290_vm6, %v1285_v61  ;;  %v972_v32 = vshrl.u32 %v9700_v4, 16 }
  0xbd   : > { %v1039_v41 = vpop.permute.xlu0 %1038  ;;  %885 = vrot.lane.b32.xlu1 %v799_v57, %s8992_s16  ;;  %v1192_v27 = vrot.slane %v975_v31, 3 }
  0xbe   : > { %v1433_v30 = vsel %vm1290_vm6, %v9380_v63, %v1039_v41  ;;  %v1191_v41 = vrot.slane %v972_v32, 2 }
  0xbf   : > { %1239 = vrot.lane.b32.xlu0 %v1186_v52, %s8992_s16  ;;  %v815_v51 = vpop.permute.xlu1 %814 }
  0xc0   : > { %v1337_v62 = vsel %vm1327_vm7, %v1300_v38, %v815_v51  ;;  %v1193_v51 = vor.u32 %v1192_v27, %v1191_v41 }
  0xc1   : > { %v1092_v49 = vpop.permute.xlu0 %1091  ;;  %757 = vrot.lane.b32.xlu1 %v704_v43, %s8991_s13 }
  0xc2   : > { %v1482_v63 = vsel %vm1327_vm7, %v1433_v30, %v1092_v49  ;;  %v1027_v30 = vsel %vm992_vm0, %v1024_v48, %v9746_v25 }
  0xc3   : > { %1058 = vrot.lane.b32.xlu0 %v1023_v53, %s8991_s13  ;;  %v868_v23 = vpop.permute.xlu1 %867  ;;  %v711_v53 = vrot.slane %v9661_v11, 1 }
  0xc4   : > { %v1378_v5 = vsel %vm1364_vm8, %v1337_v62, %v868_v23 }
  0xc5   : > { %v1222_v3 = vpop.permute.xlu0 %1221  ;;  %834 = vrot.lane.b32.xlu1 %v799_v57, %s8990_s12  ;;  %v712_v18 = vsel %vm580_vm2, %v707_v59, %v711_v53  ;;  %v715_v48 = vor.u32 %v9664_v58, %v711_v53  ;;  %v1286_v59 = vrot.slane %v9762_v34, 3 }
  0xc6   : > { %v1522_v22 = vsel %vm1364_vm8, %v1482_v63, %v1222_v3  ;;  %v719_v63 = vrot.slane %v9694_v44, 1  ;;  %v1196_v3 = vshrl.u32 %v9762_v34, 16 }
  0xc7   : > { %1111 = vrot.lane.b32.xlu0 %v1025_v8, %s8990_s12  ;;  %1832 = vmatprep.mubr.bf16.mxu0 %v1522_v22  ;;  %v740_v17 = vpop.permute.xlu1 %739  ;;  %v8868_v22 = vld [vmem:[%s9077_s26 + $0xa0] ss:$0 sps:$4 sm:$0x77]  }
  0xc8   : > { %1833 = vmatmul.mubr.bf16.gmra.mrb[16].mxu0 %v1378_v5  ;;  %v1302_v26 = vsel %vm1290_vm6, %v8966_v9, %v740_v17  ;;  %v1199_v5 = vshll.u32 %v9762_v34, 16  ;;  %v8967_v17 = vld [vmem:[%s9077_s26 + $0x30] sm:$0xff]   ;;  %v1287_v9 = vsel %vm1252_vm5, %v1284_v36, %v1286_v59 }
  0xc9   : > { %v1041_v57 = vpop.permute.xlu0 %1040  ;;  %887 = vrot.lane.b32.xlu1 %v801_v21, %s8992_s16  ;;  %8676 = vmatprep.mubr.msk.bf16.mxu1 %vm1290_vm6, %v1287_v9 }
  0xca   : > { %v1436_v35 = vsel %vm1290_vm6, %v9399_v15, %v1041_v57  ;;  %v9757_v15 = vrot.slane %v9683_v28, 1  ;;  %v8864_v57 = vld [vmem:[%s9077_s26 + $0x90] ss:$0 sps:$4 sm:$0x11]  }
  0xcb   : > { %1241 = vrot.lane.b32.xlu0 %v1190_v29, %s8992_s16  ;;  %v817_v52 = vpop.permute.xlu1 %816  ;;  %v720_v29 = vsel %vm580_vm2, %v715_v48, %v719_v63  ;;  %v725_v36 = vshll.u32 %v8864_v57, 16 }
  0xcc   : > { %v1339_v38 = vsel %vm1327_vm7, %v1302_v26, %v817_v52  ;;  %v803_v62 = vsel %vm768_vm1, %v800_v24, %v9757_v15  ;;  %v1288_v24 = vrot.slane %v8868_v22, 3  ;;  %v1201_v52 = vrot.slane %v1199_v5, 3 }
  0xcd   : > { %v1094_v42 = vpop.permute.xlu0 %1093  ;;  %759 = vrot.lane.b32.xlu1 %v712_v18, %s8991_s13 }
  0xce   : > { %v1484_v43 = vsel %vm1327_vm7, %v1436_v35, %v1094_v42  ;;  %v1198_v35 = vrot.slane %v1196_v3, 2  ;;  %v1289_v41 = vsel %vm1252_vm5, %v1286_v59, %v1288_v24  ;;  %v1205_v59 = vshrl.u32 %v8868_v22, 16 }
  0xcf   : > { %1060 = vrot.lane.b32.xlu0 %v1025_v8, %s8991_s13  ;;  %v870_v55 = vpop.permute.xlu1 %869  ;;  %v1194_v8 = vsel %vm1122_vm3, %v1189_v2, %v1193_v51  ;;  %v1079_v2 = vrot.slane %v9762_v34, 2  ;;  %8677 = vmatmul.mubr.msk.bf16.gmra.mrb[32].mxu1 %vm1290_vm6, %v1289_v41  ;;  %v1208_v24 = vshll.u32 %v8868_v22, 16 }
  0xd0   : > { %v1381_v61 = vsel %vm1364_vm8, %v1339_v38, %v870_v55 }
  0xd1   : > { %v1224_v60 = vpop.permute.xlu0 %1223  ;;  %836 = vrot.lane.b32.xlu1 %v801_v21, %s8990_s12  ;;  %v1080_v34 = vsel %vm992_vm0, %v9746_v25, %v1079_v2  ;;  %v1210_v41 = vrot.slane %v1208_v24, 3  ;;  %v404_v24 = vld [vmem:[%s14102_s1 + $0x18] sm:$0xff] }
  0xd2   : > { %v1525_v49 = vsel %vm1364_vm8, %v1484_v43, %v1224_v60  ;;  %v9798_v43 = vld [vmem:[%s9077_s26 + $0x98] ss:$0 sps:$4 sm:$0x33]   ;;  %v1202_v60 = vor.u32 %v1201_v52, %v1198_v35  ;;  %v1207_v52 = vrot.slane %v1205_v59, 2 }
  0xd3   : > { %1113 = vrot.lane.b32.xlu0 %v1027_v30, %s8990_s12  ;;  %1840 = vmatprep.mubr.bf16.mxu0 %v1525_v49  ;;  %v742_v23 = vpop.permute.xlu1 %741  ;;  %v1028_v3 = vrot.slane %v9798_v43, 2 }
  0xd4   : > { %1841 = vmatmul.mubr.bf16.gmra.mrb[20].mxu0 %v1381_v61  ;;  %v1304_v53 = vsel %vm1290_vm6, %v8967_v17, %v742_v23  ;;  %v723_v23 = vor.u32 %v9697_v40, %v719_v63 }
  0xd5   : > { %v1043_v21 = vpop.permute.xlu0 %1042  ;;  %889 = vrot.lane.b32.xlu1 %v803_v62, %s8992_s16  ;;  %v1029_v9 = vsel %vm992_vm0, %v9746_v25, %v1028_v3  ;;  %v403_v3 = vld [vmem:[%s14102_s1 + $0x10] sm:$0xff] }
  0xd6   : > { %v1439_v26 = vsel %vm1290_vm6, %v9422_v6, %v1043_v21  ;;  %v855_v6 = vrot.slane %v9700_v4, 1  ;;  %v1203_v21 = vsel %vm1122_vm3, %v1193_v51, %v1202_v60 }
  0xd7   : > { %1243 = vrot.lane.b32.xlu0 %v1194_v8, %s8992_s16  ;;  %v819_v18 = vpop.permute.xlu1 %818  ;;  %v727_v8 = vrot.slane %v725_v36, 1 }
  0xd8   : > { %v1341_v42 = vsel %vm1327_vm7, %v1304_v53, %v819_v18  ;;  %v8968_v53 = vld [vmem:[%s9077_s26 + $0x38] sm:$0xff]  }
  0xd9   : > { %v1096_v27 = vpop.permute.xlu0 %1095  ;;  %761 = vrot.lane.b32.xlu1 %v720_v29, %s8991_s13  ;;  %v728_v63 = vsel %vm580_vm2, %v723_v23, %v727_v8  ;;  %v8867_v18 = vld [vmem:[%s9077_s26 + $0x98] ss:$0 sps:$4 sm:$0x11]  }
  0xda   : > { %v1486_v38 = vsel %vm1327_vm7, %v1439_v26, %v1096_v27  ;;  %v804_v26 = vrot.slane %v8864_v57, 1  ;;  %v857_v57 = vrot.slane %v8867_v18, 1  ;;  %v402_v18 = vld [vmem:[%s14102_s1 + $0x8] sm:$0xff] }
  0xdb   : > { %1062 = vrot.lane.b32.xlu0 %v1027_v30, %s8991_s13  ;;  %v872_v55 = vpop.permute.xlu1 %871  ;;  %v856_v30 = vsel %vm768_vm1, %v9757_v15, %v855_v6 }
  0xdc   : > { %v1384_v49 = vsel %vm1364_vm8, %v1341_v42, %v872_v55  ;;  %v805_v25 = vsel %vm768_vm1, %v9757_v15, %v804_v26  ;;  %v1211_v55 = vor.u32 %v1210_v41, %v1207_v52  ;;  %v408_v41 = vld [vmem:[%s14102_s1 + $0x38] sm:$0xff] }
  0xdd   : > { %v1226_v61 = vpop.permute.xlu0 %1225  ;;  %838 = vrot.lane.b32.xlu1 %v803_v62, %s8990_s12  ;;  %v8866_v62 = vld [vmem:[%s9077_s26 + $0xa0] ss:$0 sps:$4 sm:$0x33]  }
  0xde   : > { %v1528_v48 = vsel %vm1364_vm8, %v1486_v38, %v1226_v61  ;;  %v1081_v22 = vrot.slane %v8866_v62, 2 }
  0xdf   : > { %1115 = vrot.lane.b32.xlu0 %v1080_v34, %s8990_s12  ;;  %1848 = vmatprep.mubr.bf16.mxu0 %v1528_v48  ;;  %v744_v5 = vpop.permute.xlu1 %743  ;;  %v858_v48 = vsel %vm768_vm1, %v855_v6, %v857_v57 }
  0xe0   : > { %1849 = vmatmul.mubr.bf16.gmra.mrb[24].mxu0 %v1384_v49  ;;  %v1306_v29 = vsel %vm1290_vm6, %v8968_v53, %v744_v5 }
  0xe1   : > { %v1045_v17 = vpop.permute.xlu0 %1044  ;;  %891 = vrot.lane.b32.xlu1 %v856_v30, %s8992_s16  ;;  %v1212_v30 = vsel %vm1122_vm3, %v1202_v60, %v1211_v55  ;;  %v401_v60 = vld [vmem:[%s14102_s1] sm:$0xff] }
  0xe2   : > { %v1442_v51 = vsel %vm1290_vm6, %v9441_v47, %v1045_v17  ;;  %v1082_v47 = vsel %vm992_vm0, %v1079_v2, %v1081_v22  ;;  %v8969_v2 = vld [vmem:[%s9077_s26 + $0x40] sm:$0xff]   ;;  %v407_v22 = vld [vmem:[%s14102_s1 + $0x30] sm:$0xff] }
  0xe3   : > { %1245 = vrot.lane.b32.xlu0 %v1203_v21, %s8992_s16  ;;  %v821_v35 = vpop.permute.xlu1 %820 }
  0xe4   : > { %v1343_v42 = vsel %vm1327_vm7, %v1306_v29, %v821_v35 }
  0xe5   : > { %v1098_v27 = vpop.permute.xlu0 %1097  ;;  %763 = vrot.lane.b32.xlu1 %v728_v63, %s8991_s13 }
  0xe6   : > { %v1488_v38 = vsel %vm1327_vm7, %v1442_v51, %v1098_v27 }
  0xe7   : > { %1064 = vrot.lane.b32.xlu0 %v1029_v9, %s8991_s13  ;;  %v874_v36 = vpop.permute.xlu1 %873  ;;  %v406_v9 = vld [vmem:[%s14102_s1 + $0x28] sm:$0xff] }
  0xe8   : > { %v1387_v61 = vsel %vm1364_vm8, %v1343_v42, %v874_v36  ;;  %v947_v42 = vrot.slane %v9522_v39, 1 }
  0xe9   : > { %v1228_v34 = vpop.permute.xlu0 %1227  ;;  %840 = vrot.lane.b32.xlu1 %v805_v25, %s8990_s12 }
  0xea   : > { %v1531_v49 = vsel %vm1364_vm8, %v1488_v38, %v1228_v34  ;;  %v948_v38 = vrot.slane %v9519_v56, 2 }
  0xeb   : > { %1117 = vrot.lane.b32.xlu0 %v1082_v47, %s8990_s12  ;;  %1856 = vmatprep.mubr.bf16.mxu0 %v1531_v49  ;;  %v746_v15 = vpop.permute.xlu1 %745  ;;  %v410_v47 = vld [vmem:[%s14102_s1 + $0x48] sm:$0xff]  ;;  %v412_v49 = vld [vmem:[%s14102_s1 + $0x58] sm:$0xff] }
  0xec   : > { %1857 = vmatmul.mubr.bf16.gmra.mrb[28].mxu0 %v1387_v61  ;;  %v1308_v8 = vsel %vm1290_vm6, %v8969_v2, %v746_v15  ;;  %v949_v56 = vor.u32 %v948_v38, %v947_v42  ;;  %v411_v61 = vld [vmem:[%s14102_s1 + $0x50] sm:$0xff]  ;;  %v955_v42 = vrot.slane %v9580_v19, 1  ;;  %v956_v38 = vrot.slane %v9577_v16, 2 }
  0xed   : > { %v1047_v23 = vpop.permute.xlu0 %1046  ;;  %893 = vrot.lane.b32.xlu1 %v858_v48, %s8992_s16 }
  0xee   : > { %v1445_v5 = vsel %vm1290_vm6, %v9471_v0, %v1047_v23  ;;  %v405_v0 = vld [vmem:[%s14102_s1 + $0x20] sm:$0xff]  ;;  %v950_v15 = vsel %vm898_vm4, %v9505_v46, %v949_v56  ;;  %v8970_v23 = vld [vmem:[%s9077_s26 + $0x50] sm:$0xff]   ;;  %v951_v46 = vrot.slane %v9547_v54, 1 }
  0xef   : > { %1247 = vrot.lane.b32.xlu0 %v1212_v30, %s8992_s16  ;;  %v823_v6 = vpop.permute.xlu1 %822 }
  0xf0   : > { %v1345_v62 = vsel %vm1327_vm7, %v1308_v8, %v823_v6  ;;  %v413_v8 = vld [vmem:[%s14102_s1 + $0x60] sm:$0xff]  ;;  %v414_v6 = vld [vmem:[%s14102_s1 + $0x68] sm:$0xff] }
  0xf1   : > { %v1100_v21 = vpop.permute.xlu0 %1099  ;;  %2170 = vperm.xlu1 %8820, %v403_v3  }
  0xf2   : > { %v1490_v59 = vsel %vm1327_vm7, %v1445_v5, %v1100_v21  ;;  %v952_v21 = vrot.slane %v9544_v14, 2 }
  0xf3   : > { %2160 = vperm.xlu0 %8819, %v401_v60   ;;  %v876_v17 = vpop.permute.xlu1 %875 }
  0xf4   : > { %v1390_v29 = vsel %vm1364_vm8, %v1345_v62, %v876_v17 }
  0xf5   : > { %v1230_v53 = vpop.permute.xlu0 %1229  ;;  %2175 = vperm.xlu1 %8820, %v404_v24   ;;  %v415_v24 = vld [vmem:[%s14102_s1 + $0x70] sm:$0xff] }
  0xf6   : > { %v1534_v63 = vsel %vm1364_vm8, %v1490_v59, %v1230_v53 }
  0xf7   : > { %2180 = vperm.xlu0 %8819, %v405_v0   ;;  %1864 = vmatprep.mubr.bf16.mxu0 %v1534_v63  ;;  %v748_v26 = vpop.permute.xlu1 %747  ;;  %v416_v0 = vld [vmem:[%s14102_s1 + $0x78] sm:$0xff]  ;;  %v417_v63 = vld [vmem:[%s14102_s1 + $0x80] sm:$0xff] }
  0xf8   : > { %1865 = vmatmul.mubr.bf16.gmra.mrb[32].mxu0 %v1390_v29  ;;  %v1310_v35 = vsel %vm1290_vm6, %v9396_v13, %v748_v26  ;;  %v953_v29 = vor.u32 %v952_v21, %v951_v46  ;;  %v418_v26 = vld [vmem:[%s14102_s1 + $0x88] sm:$0xff]  ;;  %v959_v46 = vrot.slane %v9619_v12, 1 }
  0xf9   : > { %v1049_v51 = vpop.permute.xlu0 %1048  ;;  %2185 = vperm.xlu1 %8820, %v406_v9  }
  0xfa   : > { %v1448_v13 = vsel %vm1290_vm6, %v9510_v33, %v1049_v51  ;;  %v409_v33 = vld [vmem:[%s14102_s1 + $0x40] sm:$0xff] }
  0xfb   : > { %2165 = vperm.xlu0 %8819, %v402_v18   ;;  %v825_v52 = vpop.permute.xlu1 %824  ;;  %v954_v18 = vsel %vm898_vm4, %v949_v56, %v953_v29 }
  0xfc   : > { %v1347_v25 = vsel %vm1327_vm7, %v1310_v35, %v825_v52 }
  0xfd   : > { %v1102_v27 = vpop.permute.xlu0 %1101  ;;  %2190 = vperm.xlu1 %8820, %v407_v22   ;;  %v419_v22 = vld [vmem:[%s14102_s1 + $0x90] sm:$0xff] }
  0xfe   : > { %v1492_v57 = vsel %vm1327_vm7, %v1448_v13, %v1102_v27 }
  0xff   : > { %2195 = vperm.xlu0 %8819, %v408_v41   ;;  %v878_v36 = vpop.permute.xlu1 %877  ;;  %v420_v41 = vld [vmem:[%s14102_s1 + $0x98] sm:$0xff] }
 0x100   : > { %v1393_v39 = vsel %vm1364_vm8, %v1347_v25, %v878_v36  ;;  %v422_v36 = vld [vmem:[%s14102_s1 + $0xa8] sm:$0xff] }
 0x101   : > { %v1232_v55 = vpop.permute.xlu0 %1231  ;;  %2200 = vperm.xlu1 %8820, %v409_v33  }
 0x102   : > { %v1537_v34 = vsel %vm1364_vm8, %v1492_v57, %v1232_v55  ;;  %v421_v57 = vld [vmem:[%s14102_s1 + $0xa0] sm:$0xff]  ;;  %v957_v55 = vor.u32 %v956_v38, %v955_v42  ;;  %v432_v42 = vld [vmem:[%s14102_s1 + $0xf8] sm:$0xff] }
 0x103   : > { %2205 = vperm.xlu0 %8819, %v410_v47   ;;  %1872 = vmatprep.mubr.bf16.mxu0 %v1537_v34  ;;  %v750_v48 = vpop.permute.xlu1 %749  ;;  %v424_v34 = vld [vmem:[%s14102_s1 + $0xb8] sm:$0xff] }
 0x104   : > { %1873 = vmatmul.mubr.bf16.gmra.mrb[36].mxu0 %v1393_v39  ;;  %v1312_v2 = vsel %vm1290_vm6, %v8970_v23, %v750_v48  ;;  %v423_v39 = vld [vmem:[%s14102_s1 + $0xb0] sm:$0xff]  ;;  %v425_v23 = vld [vmem:[%s14102_s1 + $0xc0] sm:$0xff] }
 0x105   : > { %v1051_v30 = vpop.permute.xlu0 %1050  ;;  %2210 = vperm.xlu1 %8820, %v411_v61   ;;  %v958_v61 = vsel %vm898_vm4, %v953_v29, %v957_v55 }
 0x106   : > { %v1451_v3 = vsel %vm1290_vm6, %v950_v15, %v1051_v30 }
 0x107   : > { %2215 = vperm.xlu0 %8819, %v412_v49   ;;  %v827_v5 = vpop.permute.xlu1 %826 }
 0x108   : > { %v1349_v62 = vsel %vm1327_vm7, %v1312_v2, %v827_v5  ;;  %v426_v5 = vld [vmem:[%s14102_s1 + $0xc8] sm:$0xff] }
 0x109   : > { %v1104_v60 = vpop.permute.xlu0 %1103  ;;  %2220 = vperm.xlu1 %8820, %v413_v8  }
 0x10a   : > { %v1494_v59 = vsel %vm1327_vm7, %v1451_v3, %v1104_v60 }
 0x10b   : > { %2225 = vperm.xlu0 %8819, %v414_v6   ;;  %v880_v17 = vpop.permute.xlu1 %879 }
 0x10c   : > { %v1396_v54 = vsel %vm1364_vm8, %v1349_v62, %v880_v17  ;;  %v428_v17 = vld [vmem:[%s14102_s1 + $0xd8] sm:$0xff] }
 0x10d   : > { %v1234_v53 = vpop.permute.xlu0 %1233  ;;  %2230 = vperm.xlu1 %8820, %v415_v24  }
 0x10e   : > { %v1540_v14 = vsel %vm1364_vm8, %v1494_v59, %v1234_v53  ;;  %v427_v59 = vld [vmem:[%s14102_s1 + $0xd0] sm:$0xff] }
 0x10f   : > { %2235 = vperm.xlu0 %8819, %v416_v0   ;;  %1880 = vmatprep.mubr.bf16.mxu0 %v1540_v14  ;;  %v752_v9 = vpop.permute.xlu1 %751  ;;  %v429_v14 = vld [vmem:[%s14102_s1 + $0xe0] sm:$0xff] }
 0x110   : > { %1881 = vmatmul.mubr.bf16.gmra.mrb[40].mxu0 %v1396_v54  ;;  %v1314_v35 = vsel %vm1290_vm6, %v9468_v45, %v752_v9  ;;  %v8872_v9 = vld [vmem:[%s14105_s4 + $0x80] sm:$0xff]  }
 0x111   : > { %v1053_v51 = vpop.permute.xlu0 %1052  ;;  %2240 = vperm.xlu1 %8820, %v417_v63   ;;  %8680 = vmatprep.subr.bf16.mxu0 %v8872_v9 }
 0x112   : > { %v1454_v13 = vsel %vm1290_vm6, %v954_v18, %v1053_v51  ;;  %v430_v18 = vld [vmem:[%s14102_s1 + $0xe8] sm:$0xff]  ;;  %8681 = vmatpush3.bf16.msra.mxu0 %v8872_v9 }
 0x113   : > { %2245 = vperm.xlu0 %8819, %v418_v26   ;;  %v829_v52 = vpop.permute.xlu1 %828 }
 0x114   : > { %v1351_v25 = vsel %vm1327_vm7, %v1314_v35, %v829_v52  ;;  %v9973_v48 = vpop.f32.mrb[0].mxu1  ;;  %v431_v52 = vld [vmem:[%s14102_s1 + $0xf0] sm:$0xff] }
 0x115   : > { %v1106_v27 = vpop.permute.xlu0 %1105  ;;  %2250 = vperm.xlu1 %8820, %v419_v22   ;;  %v9975_v15 = vpop.f32.mrb[1].mxu1 }
 0x116   : > { %v1496_v45 = vsel %vm1327_vm7, %v1454_v13, %v1106_v27  ;;  %v9982_v2 = vpop.f32.mrb[2].mxu1 }
 0x117   : > { %2255 = vperm.xlu0 %8819, %v420_v41   ;;  %v882_v33 = vpop.permute.xlu1 %881  ;;  %v9988_v6 = vpop.f32.mrb[3].mxu1 }
 0x118   : > { %v1399_v19 = vsel %vm1364_vm8, %v1351_v25, %v882_v33  ;;  %v963_v25 = vrot.slane %v9664_v58, 1  ;;  %v433_v58 = vld [vmem:[%s14102_s1 + $0x100] sm:$0xff] }
 0x119   : > { %v1236_v47 = vpop.permute.xlu0 %1235  ;;  %2260 = vperm.xlu1 %8820, %v421_v57  }
 0x11a   : > { %v1543_v16 = vsel %vm1364_vm8, %v1496_v45, %v1236_v47  ;;  %v964_v45 = vrot.slane %v9661_v11, 2 }
 0x11b   : > { %2265 = vperm.xlu0 %8819, %v422_v36   ;;  %1888 = vmatprep.mubr.bf16.mxu0 %v1543_v16  ;;  %v754_v56 = vpop.permute.xlu1 %753 }
 0x11c   : > { %1889 = vmatmul.mubr.bf16.gmra.mrb[44].mxu0 %v1399_v19  ;;  %v1316_v30 = vsel %vm1290_vm6, %v9486_v10, %v754_v56  ;;  %v960_v10 = vrot.slane %v9616_v7, 2  ;;  %v10001_v7 = vpop.f32.mrb[4].mxu1 }
 0x11d   : > { %v1055_v49 = vpop.permute.xlu0 %1054  ;;  %2270 = vperm.xlu1 %8820, %v423_v39   ;;  %v10004_v29 = vpop.f32.mrb[5].mxu1 }
 0x11e   : > { %v1457_v8 = vsel %vm1290_vm6, %v958_v61, %v1055_v49  ;;  %v961_v53 = vor.u32 %v960_v10, %v959_v46  ;;  %v10009_v63 = vpop.f32.mrb[6].mxu1  ;;  %v435_v49 = vld [vmem:[%s14102_s1 + $0x110] sm:$0xff] }
 0x11f   : > { %2275 = vperm.xlu0 %8819, %v424_v34   ;;  %v831_v3 = vpop.permute.xlu1 %830  ;;  %v10017_v51 = vpop.f32.mrb[7].mxu1  ;;  %v965_v34 = vor.u32 %v964_v45, %v963_v25  ;;  %v8971_v46 = vld [vmem:[%s9077_s26 + $0x70] sm:$0xff]  }
 0x120   : > { %v1353_v21 = vsel %vm1327_vm7, %v1316_v30, %v831_v3  ;;  %v962_v35 = vsel %vm898_vm4, %v957_v55, %v961_v53  ;;  %v434_v55 = vld [vmem:[%s14102_s1 + $0x108] sm:$0xff] }
 0x121   : > { %v1108_v60 = vpop.permute.xlu0 %1107  ;;  %2280 = vperm.xlu1 %8820, %v425_v23   ;;  %v436_v23 = vld [vmem:[%s14102_s1 + $0x118] sm:$0xff] }
 0x122   : > { %v1498_v62 = vsel %vm1327_vm7, %v1457_v8, %v1108_v60  ;;  %v966_v8 = vsel %vm898_vm4, %v961_v53, %v965_v34 }
 0x123   : > { %2285 = vperm.xlu0 %8819, %v426_v5   ;;  %v884_v24 = vpop.permute.xlu1 %883 }
 0x124   : > { %v1402_v12 = vsel %vm1364_vm8, %v1353_v21, %v884_v24  ;;  %v10031_v57 = vpop.f32.mrb[8].mxu1  ;;  %v967_v24 = vrot.slane %v9697_v40, 1 }
 0x125   : > { %v1238_v0 = vpop.permute.xlu0 %1237  ;;  %2290 = vperm.xlu1 %8820, %v427_v59   ;;  %v10037_v36 = vpop.f32.mrb[9].mxu1 }
 0x126   : > { %v1546_v54 = vsel %vm1364_vm8, %v1498_v62, %v1238_v0  ;;  %v10043_v19 = vpop.f32.mrb[10].mxu1 }
 0x127   : > { %2295 = vperm.xlu0 %8819, %v428_v17   ;;  %1896 = vmatprep.mubr.bf16.mxu0 %v1546_v54  ;;  %v756_v26 = vpop.permute.xlu1 %755  ;;  %v10048_v16 = vpop.f32.mrb[11].mxu1  ;;  %v968_v17 = vrot.slane %v9694_v44, 2 }
 0x128   : > { %1897 = vmatmul.mubr.bf16.gmra.mrb[48].mxu0 %v1402_v12  ;;  %v1318_v13 = vsel %vm1290_vm6, %v9535_v37, %v756_v26  ;;  %v8875_v37 = vld [vmem:[%s14105_s4 + $0x88] sm:$0xff]  }
 0x129   : > { %v1057_v22 = vpop.permute.xlu0 %1056  ;;  %2300 = vperm.xlu1 %8820, %v429_v14   ;;  %8682 = vmatprep.subr.bf16.mxu0 %v8875_v37 }
 0x12a   : > { %v1460_v41 = vsel %vm1290_vm6, %v962_v35, %v1057_v22  ;;  %8683 = vmatpush3.bf16.msra.mxu0 %v8875_v37 }
 0x12b   : > { %2305 = vperm.xlu0 %8819, %v430_v18   ;;  %v833_v27 = vpop.permute.xlu1 %832  ;;  %v969_v18 = vor.u32 %v968_v17, %v967_v24 }
 0x12c   : > { %v1355_v33 = vsel %vm1327_vm7, %v1318_v13, %v833_v27  ;;  %v10059_v5 = vpop.f32.mrb[12].mxu1 }
 0x12d   : > { %v1110_v38 = vpop.permute.xlu0 %1109  ;;  %2310 = vperm.xlu1 %8820, %v431_v52   ;;  %v10061_v60 = vpop.f32.mrb[13].mxu1  ;;  %v970_v44 = vsel %vm898_vm4, %v965_v34, %v969_v18 }
 0x12e   : > { %v1500_v47 = vsel %vm1327_vm7, %v1460_v41, %v1110_v38  ;;  %v10068_v0 = vpop.f32.mrb[14].mxu1  ;;  %v977_v38 = vrot.slane %v975_v31, 2  ;;  %v981_v31 = vshrl.u32 %v9798_v43, 16 }
 0x12f   : > { %2315 = vperm.xlu0 %8819, %v432_v42   ;;  %v886_v11 = vpop.permute.xlu1 %885  ;;  %v10071_v53 = vpop.f32.mrb[15].mxu1  ;;  %v974_v42 = vrot.slane %v972_v32, 1 }
 0x130   : > { %v1405_v56 = vsel %vm1364_vm8, %v1355_v33, %v886_v11 }
 0x131   : > { %v1240_v39 = vpop.permute.xlu0 %1239  ;;  %2320 = vperm.xlu1 %8820, %v433_v58   ;;  %v978_v58 = vor.u32 %v977_v38, %v974_v42  ;;  %v8880_v38 = vld [vmem:[%s14105_s4] sm:$0xff]  }
 0x132   : > { %v1549_v61 = vsel %vm1364_vm8, %v1500_v47, %v1240_v39  ;;  %v984_v39 = vshll.u32 %v9798_v43, 16  ;;  %4544 = vmatpush1.bf16.msra.mxu1 %v8880_v38 }
 0x133   : > { %2325 = vperm.xlu0 %8819, %v434_v55   ;;  %1904 = vmatprep.mubr.bf16.mxu0 %v1549_v61  ;;  %v758_v30 = vpop.permute.xlu1 %757  ;;  %v979_v32 = vsel %vm898_vm4, %v969_v18, %v978_v58 }
 0x134   : > { %1905 = vmatmul.mubr.bf16.gmra.mrb[52].mxu0 %v1405_v56  ;;  %v1320_v10 = vsel %vm1290_vm6, %v8971_v46, %v758_v30  ;;  %4545 = vmatprep.subr.bf16.mxu1 %v14114_v1 }
 0x135   : > { %v1059_v3 = vpop.permute.xlu0 %1058  ;;  %2330 = vperm.xlu1 %8820, %v435_v49  }
 0x136   : > { %v1463_v21 = vsel %vm1290_vm6, %v966_v8, %v1059_v3  ;;  %v986_v8 = vrot.slane %v984_v39, 2 }
 0x137   : > { %2335 = vperm.xlu0 %8819, %v436_v23   ;;  %v835_v62 = vpop.permute.xlu1 %834  ;;  %v983_v23 = vrot.slane %v981_v31, 1 }
 0x138   : > { %v1357_v12 = vsel %vm1327_vm7, %v1320_v10, %v835_v62 }
 0x139   : > { %v1112_v59 = vpop.permute.xlu0 %1111  ;;  %v987_v24 = vor.u32 %v986_v8, %v983_v23 }
 0x13a   : > { %v1502_v54 = vsel %vm1327_vm7, %v1463_v21, %v1112_v59  ;;  %v10088_v55 = vpop.f32.mrb[16].mxu1 }
 0x13b   : > { %v888_v14 = vpop.permute.xlu1 %887  ;;  %v10093_v56 = vpop.f32.mrb[17].mxu1 }
 0x13c   : > { %v1408_v26 = vsel %vm1364_vm8, %v1357_v12, %v888_v14  ;;  %v10098_v3 = vpop.f32.mrb[18].mxu1  ;;  %v988_v12 = vsel %vm898_vm4, %v978_v58, %v987_v24 }
 0x13d   : > { %v1242_v9 = vpop.permute.xlu0 %1241  ;;  %v10101_v10 = vpop.f32.mrb[19].mxu1 }
 0x13e   : > { %v1552_v35 = vsel %vm1364_vm8, %v1502_v54, %v1242_v9 }
 0x13f   : > { %1912 = vmatprep.mubr.bf16.mxu0 %v1552_v35  ;;  %v760_v40 = vpop.permute.xlu1 %759 }
 0x140   : > { %1913 = vmatmul.mubr.bf16.gmra.mrb[56].mxu0 %v1408_v26  ;;  %v1322_v13 = vsel %vm1290_vm6, %v9603_v50, %v760_v40 }
 0x141   : > { %v1061_v22 = vpop.permute.xlu0 %1060 }
 0x142   : > { %v1466_v52 = vsel %vm1290_vm6, %v970_v44, %v1061_v22 }
 0x143   : > { %v837_v41 = vpop.permute.xlu1 %836 }
 0x144   : > { %v1359_v25 = vsel %vm1327_vm7, %v1322_v13, %v837_v41  ;;  %v10114_v41 = vpop.f32.mrb[20].mxu1 }
 0x145   : > { %v1114_v27 = vpop.permute.xlu0 %1113 }
 0x146   : > { %v1504_v45 = vsel %vm1327_vm7, %v1466_v52, %v1114_v27  ;;  %v10116_v27 = vpop.f32.mrb[21].mxu1 }
 0x147   : > { %v890_v37 = vpop.permute.xlu1 %889 }
 0x148   : > { %v1411_v47 = vsel %vm1364_vm8, %v1359_v25, %v890_v37  ;;  %v8882_v25 = vld [vmem:[%s14105_s4 + $0x8] sm:$0xff]  }
 0x149   : > { %v1244_v33 = vpop.permute.xlu0 %1243  ;;  %4546 = vmatpush1.bf16.msra.mxu1 %v8882_v25 }
 0x14a   : > { %v1555_v50 = vsel %vm1364_vm8, %v1504_v45, %v1244_v33  ;;  %v10132_v45 = vld [vmem:[%s14104_s3] ss:$0 sm:$0xff]  ;;  %4547 = vmatprep.subr.bf16.mxu1 %v14114_v1 }
 0x14b   : > { %1920 = vmatprep.mubr.bf16.mxu0 %v1555_v50  ;;  %v762_v11 = vpop.permute.xlu1 %761 }
 0x14c   : > { %1921 = vmatmul.mubr.bf16.gmra.mrb[60].mxu0 %v1411_v47  ;;  %v1324_v34 = vsel %vm1290_vm6, %v9622_v20, %v762_v11  ;;  %v8883_v47 = vld [vmem:[%s14105_s4 + $0x10] sm:$0xff]  }
 0x14d   : > { %v1063_v4 = vpop.permute.xlu0 %1062  ;;  %4548 = vmatpush1.bf16.msra.mxu1 %v8883_v47  ;;  %v2564_v47 = vld [vmem:[#allocation2 + $0xc] sm:$0xf] }
 0x14e   : > { %v1469_v61 = vsel %vm1290_vm6, %v979_v32, %v1063_v4  ;;  %4549 = vmatprep.subr.bf16.mxu1 %v14114_v1 }
 0x14f   : > { %v839_v49 = vpop.permute.xlu1 %838 }
 0x150   : > { %v1361_v46 = vsel %vm1327_vm7, %v1324_v34, %v839_v49  ;;  %v8885_v49 = vld [vmem:[%s14105_s4 + $0x18] sm:$0xff]  }
 0x151   : > { %v1116_v30 = vpop.permute.xlu0 %1115  ;;  %4550 = vmatpush1.bf16.msra.mxu1 %v8885_v49 }
 0x152   : > { %v1506_v21 = vsel %vm1327_vm7, %v1469_v61, %v1116_v30  ;;  %4551 = vmatprep.subr.bf16.mxu1 %v14114_v1 }
 0x153   : > { %v892_v43 = vpop.permute.xlu1 %891 }
 0x154   : > { %v1414_v59 = vsel %vm1364_vm8, %v1361_v46, %v892_v43 }
 0x155   : > { %v1246_v62 = vpop.permute.xlu0 %1245 }
 0x156   : > { %v1558_v20 = vsel %vm1364_vm8, %v1506_v21, %v1246_v62 }
 0x157   : > { %1928 = vmatprep.mubr.bf16.mxu0 %v1558_v20  ;;  %v764_v17 = vpop.permute.xlu1 %763 }
 0x158   : > { %1929 = vmatmul.mubr.bf16.gmra.mrb[64].mxu0 %v1414_v59  ;;  %v1326_v14 = vsel %vm1290_vm6, %v9683_v28, %v764_v17  ;;  %v10118_v28 = vpop.f32.mrb[22].mxu1 }
 0x159   : > { %v1065_v54 = vpop.permute.xlu0 %1064  ;;  %v10120_v42 = vpop.f32.mrb[23].mxu1 }
 0x15a   : > { %v1472_v9 = vsel %vm1290_vm6, %v988_v12, %v1065_v54 }
 0x15b   : > { %v841_v26 = vpop.permute.xlu1 %840 }
 0x15c   : > { %v1363_v35 = vsel %vm1327_vm7, %v1326_v14, %v841_v26  ;;  %v2599_v26 = vld [vmem:[#allocation2 + $0x4] sm:$0x8] }
 0x15d   : > { %v1118_v18 = vpop.permute.xlu0 %1117 }
 0x15e   : > { %v1508_v40 = vsel %vm1327_vm7, %v1472_v9, %v1118_v18  ;;  %v2563_v9 = vld [vmem:[#allocation2 + $0x8] sm:$0xf] }
 0x15f   : > { %v894_v44 = vpop.permute.xlu1 %893  ;;  %v8887_v18 = vld [vmem:[%s14105_s4 + $0x28] sm:$0xff]  }
 0x160   : > { %v1417_v13 = vsel %vm1364_vm8, %v1363_v35, %v894_v44 }
 0x161   : > { %v1248_v22 = vpop.permute.xlu0 %1247 }
 0x162   : > { %v1561_v52 = vsel %vm1364_vm8, %v1508_v40, %v1248_v22 }
 0x163   : > { %1936 = vmatprep.mubr.bf16.mxu0 %v1561_v52 }
 0x164   : > { %1937 = vmatmul.mubr.bf16.gmra.mrb[68].mxu0 %v1417_v13 }
 0x170   : > { %v10161_v24 = vpop.permute.xlu1 %2170 }
 0x171   : > { %14250 = vst [vmem:[#allocation7_spill] sm:$0xff] %v10161_v24 }
 0x172   : > { %v10134_v37 = vpop.permute.xlu0 %2160 }
 0x173   : > { %14247 = vst [vmem:[#allocation4_spill] sm:$0xff] %v10134_v37  ;;  %v1802_v33 = vpop.f32.mrb[0].mxu0 }
 0x174   : > { %v1803_v58 = vadd.f32 %v10132_v45, %v1802_v33  ;;  %v1804_v50 = vpop.f32.mrb[1].mxu0  ;;  %v10179_v25 = vpop.permute.xlu1 %2175 }
 0x175   : > { %v1805_v11 = vpop.f32.mrb[2].mxu0  ;;  %14251 = vst [vmem:[#allocation8_spill] sm:$0xff] %v10179_v25 }
 0x176   : > { %v1806_v32 = vadd.f32 %v10132_v45, %v1805_v11  ;;  %v1980_v4 = vadd.f32 %v9975_v15, %v1803_v58  ;;  %v1807_v31 = vpop.f32.mrb[3].mxu0  ;;  %v10143_v39 = vpop.permute.xlu0 %2180 }
 0x177   : > { %14248 = vst [vmem:[#allocation5_spill] sm:$0xff] %v10143_v39 }
 0x178   : > { %v2122_v34 = vmax.f32 %v1980_v4, 0.0  ;;  %v1983_v61 = vadd.f32 %v9988_v6, %v1806_v32  ;;  %v8886_v6 = vld [vmem:[%s14105_s4 + $0x20] sm:$0xff]   ;;  %v10159_v59 = vpop.f32.mrb[24].mxu1 }
 0x179   : > { %4552 = vmatpush1.bf16.msra.mxu1 %v8886_v6  ;;  %v10169_v35 = vpop.f32.mrb[25].mxu1 }
 0x17a   : > { %v2338_v30 = vmul.f32 %v10134_v37, %v2122_v34  ;;  %v2123_v23 = vmax.f32 %v1983_v61, 0.0  ;;  %v10151_v8 = vpop.permute.xlu0 %2165  ;;  %4553 = vmatprep.subr.bf16.mxu1 %v14114_v1  ;;  %v10174_v22 = vpop.f32.mrb[26].mxu1  ;;  %v8889_v61 = vld [vmem:[%s14105_s4 + $0x30] sm:$0xff]  }
 0x17b   : > { %14249 = vst [vmem:[#allocation6_spill] sm:$0xff] %v10151_v8  ;;  %v1810_v46 = vpop.f32.mrb[4].mxu0  ;;  %v10177_v38 = vpop.f32.mrb[27].mxu1 }
 0x17c   : > { %v8403_v15 = vpack.c.bf16 %v2338_v30, %v2338_v30  ;;  %v2339_v21 = vmul.f32 %v10151_v8, %v2123_v23  ;;  %v1811_v43 = vadd.f32 %v10132_v45, %v1810_v46  ;;  %v1812_v62 = vpop.f32.mrb[5].mxu0 }
 0x17d   : > { %v1813_v20 = vpop.f32.mrb[6].mxu0  ;;  %4554 = vmatpush1.bf16.msra.mxu1 %v8887_v18 }
 0x17e   : > { %2523 = vst.msk [vmem:[#allocation2 + $0x10] sm:$0xf] %vm2392_vm9, %v8403_v15  ;;  %v8404_v17 = vpack.c.bf16 %v2339_v21, %v2339_v21  ;;  %v1988_v12 = vadd.f32 %v9973_v48, %v1811_v43  ;;  %v1814_v54 = vadd.f32 %v10132_v45, %v1813_v20  ;;  %v1815_v14 = vpop.f32.mrb[7].mxu0  ;;  %v8195_v48 = vcombine.low %v2599_v26, %v2563_v9  ;;  %v8890_v20 = vld [vmem:[%s14105_s4 + $0x38] sm:$0xff]   ;;  %v10208_v26 = vpop.permute.xlu1 %2185 }
 0x17f   : > { %4555 = vmatprep.subr.bf16.mxu1 %v14114_v1  ;;  %14252 = vst [vmem:[#allocation9_spill] sm:$0xff] %v10208_v26 }
 0x180   : > { %2524 = vst.msk [vmem:[#allocation2 + $0x14] sm:$0xf] %vm2392_vm9, %v8404_v17  ;;  %v2124_v40 = vmax.f32 %v1988_v12, 0.0  ;;  %v1991_v44 = vadd.f32 %v9982_v2, %v1814_v54  ;;  %v2898_v31 = vrot.slane %v8195_v48, 1  ;;  %v2709_v34 = vshll.u32 %v8195_v48, 16 }
 0x181   : > { %4556 = vmatpush1.bf16.msra.mxu1 %v8889_v61  ;;  %v2707_v17 = vshrl.u32 %v8195_v48, 16 }
 0x182   : > { %v2340_v13 = vmul.f32 %v10161_v24, %v2124_v40  ;;  %v2125_v52 = vmax.f32 %v1991_v44, 0.0  ;;  %4557 = vmatprep.subr.bf16.mxu1 %v14114_v1  ;;  %v2711_v12 = vrot.slane %v2709_v34, 1  ;;  %v2601_v44 = vld [vmem:[#allocation2 + $0xc] sm:$0x8] }
 0x183   : > { %v1818_v33 = vpop.f32.mrb[8].mxu0 }
 0x184   : > { %v8405_v58 = vpack.c.bf16 %v2340_v13, %v2340_v13  ;;  %v2341_v50 = vmul.f32 %v10179_v25, %v2125_v52  ;;  %v1819_v2 = vadd.f32 %v10132_v45, %v1818_v33  ;;  %v1820_v11 = vpop.f32.mrb[9].mxu0 }
 0x185   : > { %v1821_v32 = vpop.f32.mrb[10].mxu0  ;;  %v10184_v4 = vld [vmem:[#allocation2 + $0x10] sm:$0xf]  ;;  %4558 = vmatpush1.bf16.msra.mxu1 %v8890_v20 }
 0x186   : > { %2525 = vst.msk [vmem:[#allocation2 + $0x18] sm:$0xf] %vm2392_vm9, %v8405_v58  ;;  %v8406_v49 = vpack.c.bf16 %v2341_v50, %v2341_v50  ;;  %v1822_v30 = vadd.f32 %v10132_v45, %v1821_v32  ;;  %v1996_v23 = vadd.f32 %v10004_v29, %v1819_v2  ;;  %v1823_v46 = vpop.f32.mrb[11].mxu0  ;;  %v10193_v15 = vcombine.low %v2564_v47, %v10184_v4  ;;  %v8891_v50 = vld [vmem:[%s14105_s4 + $0x40] sm:$0xff]  }
 0x187   : > { %v2566_v21 = vld [vmem:[#allocation2 + $0x14] sm:$0xf]  ;;  %4559 = vmatprep.subr.bf16.mxu1 %v14114_v1  ;;  %v2712_v47 = vor.u32 %v2711_v12, %v2707_v17  ;;  %v8197_v11 = vcombine.low %v2601_v44, %v10184_v4  ;;  %v10246_v44 = vpop.permute.xlu1 %2190 }
 0x188   : > { %2526 = vst.msk [vmem:[#allocation2 + $0x1c] sm:$0xf] %vm2392_vm9, %v8406_v49  ;;  %v2126_v43 = vmax.f32 %v1996_v23, 0.0  ;;  %v1999_v62 = vadd.f32 %v10017_v51, %v1822_v30  ;;  %v2899_v6 = vrot.slane %v10193_v15, 1  ;;  %v10203_v29 = vcombine.low %v10184_v4, %v2566_v21  ;;  %14253 = vst [vmem:[#allocation10_spill] sm:$0xff] %v10246_v44 }
 0x189   : > { %v2714_v51 = vshll.u32 %v10193_v15, 16  ;;  %4560 = vmatpush1.bf16.msra.mxu1 %v8891_v50  ;;  %v2982_v12 = vrot.slane %v8197_v11, 1 }
 0x18a   : > { %v2342_v54 = vmul.f32 %v10143_v39, %v2126_v43  ;;  %v2127_v14 = vmax.f32 %v1999_v62, 0.0  ;;  %v2900_v9 = vsel %vm768_vm1, %v2898_v31, %v2899_v6  ;;  %v3210_v13 = vrot.slane %v10203_v29, 6  ;;  %4561 = vmatprep.subr.bf16.mxu1 %v14114_v1 }
 0x18b   : > { %2935 = vrot.lane.b32.xlu1 %v2900_v9, %s8990_s12  ;;  %v2716_v58 = vrot.slane %v2714_v51, 1  ;;  %v3046_v50 = vshrl.u32 %v10203_v29, 16 }
 0x18c   : > { %v8407_v18 = vpack.c.bf16 %v2342_v54, %v2342_v54  ;;  %v2343_v40 = vmul.f32 %v10208_v26, %v2127_v14  ;;  %v8897_v26 = vld [vmem:[%s14105_s4 + $0x60] sm:$0xff]  }
 0x18d   : > { %v2567_v48 = vld [vmem:[#allocation2 + $0x18] sm:$0xf]  ;;  %v2717_v20 = vsel %vm580_vm2, %v2712_v47, %v2716_v58 }
 0x18e   : > { %2527 = vst.msk [vmem:[#allocation2 + $0x20] sm:$0xf] %vm2392_vm9, %v8407_v18  ;;  %v8408_v52 = vpack.c.bf16 %v2343_v40, %v2343_v40  ;;  %v10215_v33 = vcombine.low %v2566_v21, %v2567_v48  ;;  %v2608_v30 = vld [vmem:[#allocation2 + $0x18] sm:$0xe]  ;;  %v2718_v18 = vshrl.u32 %v10193_v15, 16 }
 0x18f   : > { %v1826_v2 = vpop.f32.mrb[12].mxu0  ;;  %3247 = vrot.lane.b32.xlu1 %v3210_v13, %s8991_s13  ;;  %v2568_v32 = vld [vmem:[#allocation2 + $0x1c] sm:$0xf] }
 0x190   : > { %2528 = vst.msk [vmem:[#allocation2 + $0x24] sm:$0xf] %vm2392_vm9, %v8408_v52  ;;  %v1827_v31 = vadd.f32 %v10132_v45, %v1826_v2  ;;  %v1828_v34 = vpop.f32.mrb[13].mxu0  ;;  %v10225_v61 = vrot.slane %v10215_v33, 1  ;;  %v10227_v49 = vcombine.low %v2567_v48, %v2568_v32  ;;  %v2722_v46 = vshll.u32 %v10215_v33, 16 }
 0x191   : > { %v1829_v23 = vpop.f32.mrb[14].mxu0  ;;  %v8221_v21 = vcombine.low %v2608_v30, %v2568_v32  ;;  %v3049_v2 = vshll.u32 %v10203_v29, 16  ;;  %v10259_v30 = vpop.permute.xlu0 %2195 }
 0x192   : > { %v2004_v4 = vadd.f32 %v10001_v7, %v1827_v31  ;;  %v1830_v43 = vadd.f32 %v10132_v45, %v1829_v23  ;;  %v1831_v62 = vpop.f32.mrb[15].mxu0  ;;  %v2902_v17 = vsel %vm768_vm1, %v2899_v6, %v10225_v61  ;;  %v10239_v54 = vrot.slane %v10227_v49, 6  ;;  %v8893_v6 = vld [vmem:[%s14105_s4 + $0x48] sm:$0xff]   ;;  %14255 = vst [vmem:[#allocation12_spill] sm:$0xff] %v10259_v30 }
 0x193   : > { %2857 = vrot.lane.b32.xlu1 %v2717_v20, %s8991_s13  ;;  %2937 = vrot.lane.b32.xlu0 %v2902_v17, %s8990_s12  ;;  %v3340_v14 = vshrl.u32 %v8221_v21, 16  ;;  %v3343_v9 = vshll.u32 %v8221_v21, 16  ;;  %v3471_v40 = vrot.slane %v8221_v21, 7  ;;  %v2983_v48 = vsel %vm768_vm1, %v2982_v12, %v10225_v61  ;;  %v8894_v20 = vld [vmem:[%s14105_s4 + $0x50] sm:$0xff]   ;;  %v10274_v17 = vpop.f32.mrb[28].mxu1 }
 0x194   : > { %v2128_v51 = vmax.f32 %v2004_v4, 0.0  ;;  %v2007_v7 = vadd.f32 %v10009_v63, %v1830_v43  ;;  %v10250_v52 = vrot.slane %v2722_v46, 1  ;;  %v3212_v31 = vsel %vm3209_vm10, %v3210_v13, %v10239_v54  ;;  %4562 = vmatpush1.bf16.msra.mxu1 %v8893_v6 }
 0x195   : > { %v2569_v47 = vld [vmem:[#allocation2 + $0x20] sm:$0xf]  ;;  %v3342_v23 = vrot.slane %v3340_v14, 6  ;;  %v3345_v46 = vrot.slane %v3343_v9, 7  ;;  %v3904_v29 = vshrl.u32 %v3471_v40, 16  ;;  %v3054_v4 = vshrl.u32 %v10227_v49, 16  ;;  %4563 = vmatprep.subr.bf16.mxu1 %v14114_v1  ;;  %v10329_v39 = vpop.permute.xlu0 %2205 }
 0x196   : > { %v2344_v63 = vmul.f32 %v10246_v44, %v2128_v51  ;;  %v2129_v11 = vmax.f32 %v2007_v7, 0.0  ;;  %v10257_v34 = vcombine.low %v2568_v32, %v2569_v47  ;;  %v2720_v13 = vor.u32 %v2718_v18, %v2716_v58  ;;  %v10276_v51 = vpop.f32.mrb[29].mxu1  ;;  %14257 = vst [vmem:[#allocation14_spill] sm:$0xff] %v10329_v39 }
 0x197   : > { %2988 = vrot.lane.b32.xlu1 %v2983_v48, %s8992_s16  ;;  %3249 = vrot.lane.b32.xlu0 %v3212_v31, %s8991_s13  ;;  %v10263_v21 = vld [vmem:[#allocation2 + $0x24] sm:$0xf]  ;;  %v3907_v12 = vshll.u32 %v3471_v40, 16  ;;  %v3048_v14 = vrot.slane %v3046_v50, 5  ;;  %v3051_v9 = vrot.slane %v3049_v2, 6  ;;  %v3906_v50 = vrot.slane %v3904_v29, 2 }
 0x198   : > { %14254 = vst [vmem:[#allocation11_spill] sm:$0xff] %v10257_v34  ;;  %v8409_v43 = vpack.c.bf16 %v2344_v63, %v2344_v63  ;;  %v2345_v62 = vmul.f32 %v10259_v30, %v2129_v11  ;;  %v10268_v32 = vcombine.low %v2569_v47, %v10263_v21  ;;  %v2725_v7 = vsel %vm580_vm2, %v2720_v13, %v10250_v52 }
 0x199   : > { %v14116_v18 = vrot.slane %v10257_v34, 1  ;;  %4564 = vmatpush1.bf16.msra.mxu1 %v8894_v20  ;;  %v10286_v47 = vor.u32 %v3345_v46, %v3342_v23  ;;  %v3056_v63 = vrot.slane %v3054_v4, 5  ;;  %v3057_v13 = vshll.u32 %v10227_v49, 16 }
 0x19a   : > { %2529 = vst.msk [vmem:[#allocation2 + $0x28] sm:$0xf] %vm2392_vm9, %v8409_v43  ;;  %v8410_v58 = vpack.c.bf16 %v2345_v62, %v2345_v62  ;;  %v14113_v6 = vrot.slane %v10268_v32, 7  ;;  %v3063_v2 = vshrl.u32 %v10268_v32, 16  ;;  %v3066_v62 = vshll.u32 %v10268_v32, 16  ;;  %4565 = vmatprep.subr.bf16.mxu1 %v14114_v1 }
 0x19b   : > { %v1834_v48 = vpop.f32.mrb[16].mxu0  ;;  %3297 = vrot.lane.b32.xlu1 %v10239_v54, %s8990_s12  ;;  %2859 = vrot.lane.b32.xlu0 %v2725_v7, %s8991_s13  ;;  %v3909_v46 = vrot.slane %v3907_v12, 3  ;;  %v2730_v4 = vshll.u32 %v10257_v34, 16  ;;  %v3213_v49 = vrot.slane %v10268_v32, 6 }
 0x19c   : > { %2530 = vst.msk [vmem:[#allocation2 + $0x2c] sm:$0xf] %vm2392_vm9, %v8410_v58  ;;  %v1835_v11 = vadd.f32 %v10132_v45, %v1834_v48  ;;  %v1836_v31 = vpop.f32.mrb[17].mxu0  ;;  %v3473_v43 = vsel %vm3470_vm11, %v3471_v40, %v14113_v6  ;;  %v2904_v40 = vsel %vm768_vm1, %v10225_v61, %v14116_v18  ;;  %v3065_v6 = vrot.slane %v3063_v2, 5  ;;  %v8896_v61 = vld [vmem:[%s14105_s4 + $0x58] sm:$0xff]   ;;  %v10316_v18 = vpop.permute.xlu1 %2200 }
 0x19d   : > { %v1837_v23 = vpop.f32.mrb[18].mxu0  ;;  %v3912_v29 = vshrl.u32 %v3473_v43, 16  ;;  %v3915_v20 = vshll.u32 %v3473_v43, 16  ;;  %v3059_v43 = vrot.slane %v3057_v13, 6  ;;  %14256 = vst [vmem:[#allocation13_spill] sm:$0xff] %v10316_v18  ;;  %v3910_v30 = vor.u32 %v3909_v46, %v3906_v50  ;;  %4566 = vmatpush1.bf16.msra.mxu1 %v8896_v61 }
 0x19e   : > { %v1838_v58 = vadd.f32 %v10132_v45, %v1837_v23  ;;  %v2012_v7 = vadd.f32 %v10037_v36, %v1835_v11  ;;  %v1839_v48 = vpop.f32.mrb[19].mxu0  ;;  %v10308_v23 = vpop.f32.mrb[30].mxu1  ;;  %v10320_v13 = vor.u32 %v3051_v9, %v3048_v14 }
 0x19f   : > { %3429 = vrot.lane.b32.xlu1 %v10286_v47, %s8992_s16  ;;  %2990 = vrot.lane.b32.xlu0 %v2904_v40, %s8992_s16  ;;  %v3914_v12 = vrot.slane %v3912_v29, 2  ;;  %v3917_v31 = vrot.slane %v3915_v20, 3  ;;  %v3068_v48 = vrot.slane %v3066_v62, 6  ;;  %v10311_v1 = vpop.f32.mrb[31].mxu1  ;;  %v3060_v20 = vor.u32 %v3059_v43, %v3056_v63 }
 0x1a0   : > { %v2130_v36 = vmax.f32 %v2012_v7, 0.0  ;;  %v2015_v11 = vadd.f32 %v10048_v16, %v1838_v58  ;;  %v3214_v16 = vsel %vm3209_vm10, %v10239_v54, %v3213_v49  ;;  %v2726_v58 = vshrl.u32 %v10215_v33, 16 }
 0x1a1   : > { %v10318_v29 = vor.u32 %v3917_v31, %v3914_v12  ;;  %v2571_v9 = vld [vmem:[#allocation2 + $0x28] sm:$0xf]  ;;  %v10337_v54 = vrot.slane %v2730_v4, 1  ;;  %v10341_v63 = vsel %vm3044_vm12, %v10320_v13, %v3060_v20  ;;  %v10343_v46 = vor.u32 %v3068_v48, %v3065_v6 }
 0x1a2   : > { %v2346_v7 = vmul.f32 %v10316_v18, %v2130_v36  ;;  %v2131_v44 = vmax.f32 %v2015_v11, 0.0  ;;  %v2728_v43 = vor.u32 %v2726_v58, %v10250_v52  ;;  %v3347_v4 = vrot.slane %v3063_v2, 6 }
 0x1a3   : > { %3251 = vrot.lane.b32.xlu1 %v3214_v16, %s8991_s13  ;;  %2939 = vrot.lane.b32.xlu0 %v2904_v40, %s8990_s12  ;;  %v3919_v14 = vsel %vm1122_vm3, %v3910_v30, %v10318_v29  ;;  %v10335_v50 = vld [vmem:[#allocation2 + $0x2c] sm:$0xf]  ;;  %v14258_v30 = vmov 0   ;;  %v3348_v36 = vrot.slane %v3066_v62, 7  ;;  %v10354_v11 = vsel %vm3044_vm12, %v3060_v20, %v10343_v46 }
 0x1a4   : > { %v8411_v12 = vpack.c.bf16 %v2346_v7, %v2346_v7  ;;  %v2347_v31 = vmul.f32 %v10329_v39, %v2131_v44  ;;  %8684 = vmatprep.mubr.msk.bf16.mxu0 %vm1290_vm6, %v3919_v14  ;;  %v10348_v40 = vcombine.low %v2571_v9, %v10335_v50  ;;  %4567 = vmatprep.subr.bf16.mxu1 %v14258_v30 }
 0x1a5   : > { %4568 = vmatpush1.bf16.msra.mxu1 %v8897_v26  ;;  %v2733_v52 = vsel %vm580_vm2, %v2728_v43, %v10337_v54 }
 0x1a6   : > { %2531 = vst.msk [vmem:[#allocation2 + $0x30] sm:$0xf] %vm2392_vm9, %v8411_v12  ;;  %v8412_v6 = vpack.c.bf16 %v2347_v31, %v2347_v31  ;;  %v14121_v44 = vrot.slane %v10348_v40, 6  ;;  %v14122_v48 = vrot.slane %v10348_v40, 7  ;;  %v3072_v61 = vshrl.u32 %v10348_v40, 16  ;;  %4569 = vmatprep.subr.bf16.mxu1 %v14258_v30 }
 0x1a7   : > { %v1842_v7 = vpop.f32.mrb[20].mxu0  ;;  %3299 = vrot.lane.b32.xlu0 %v3214_v16, %s8990_s12  ;;  %v3075_v2 = vshll.u32 %v10348_v40, 16  ;;  %v14259_v16 = vrot.slane %v10268_v32, 7 }
 0x1a8   : > { %2532 = vst.msk [vmem:[#allocation2 + $0x34] sm:$0xf] %vm2392_vm9, %v8412_v6  ;;  %v1843_v62 = vadd.f32 %v10132_v45, %v1842_v7  ;;  %v1844_v20 = vpop.f32.mrb[21].mxu0  ;;  %v3216_v26 = vsel %vm3209_vm10, %v3213_v49, %v14121_v44  ;;  %v3351_v14 = vrot.slane %v3072_v61, 6  ;;  %v10377_v7 = vcombine.low %v10263_v21, %v2571_v9  ;;  %v8898_v49 = vld [vmem:[%s14105_s4 + $0x68] sm:$0xff]  }
 0x1a9   : > { %v3475_v58 = vsel %vm3470_vm11, %v14259_v16, %v14122_v48  ;;  %v1845_v12 = vpop.f32.mrb[22].mxu0  ;;  %3301 = vrot.lane.b32.xlu1 %v3216_v26, %s8990_s12  ;;  %v3352_v6 = vrot.slane %v3075_v2, 7  ;;  %v3349_v16 = vor.u32 %v3348_v36, %v3347_v4  ;;  %v3074_v48 = vrot.slane %v3072_v61, 5  ;;  %4570 = vmatpush1.bf16.msra.mxu1 %v8898_v49 }
 0x1aa   : > { %v3937_v31 = vshrl.u32 %v3475_v58, 16  ;;  %v3940_v43 = vshll.u32 %v3475_v58, 16  ;;  %14260 = vst [vmem:[#allocation15_spill] sm:$0xff] %v10377_v7  ;;  %v2020_v20 = vadd.f32 %v10031_v57, %v1843_v62  ;;  %v1846_v32 = vadd.f32 %v10132_v45, %v1845_v12  ;;  %v1847_v44 = vpop.f32.mrb[23].mxu0  ;;  %4571 = vmatprep.subr.bf16.mxu1 %v14258_v30  ;;  %v8900_v57 = vld [vmem:[%s14105_s4 + $0x70] sm:$0xff]   ;;  %v10407_v12 = vpop.permute.xlu0 %2215 }
 0x1ab   : > { %2861 = vrot.lane.b32.xlu0 %v2733_v52, %s8991_s13  ;;  %v10385_v58 = vor.u32 %v3352_v6, %v3351_v14  ;;  %v3077_v25 = vrot.slane %v3075_v2, 6  ;;  %v10392_v44 = vpop.permute.xlu1 %2210  ;;  %v14126_v36 = vrot.slane %v10377_v7, 1  ;;  %v10400_v52 = vpop.f32.mrb[32].mxu1  ;;  %v3350_v62 = vsel %vm3338_vm13, %v10286_v47, %v3349_v16  ;;  %14263 = vst [vmem:[#allocation18_spill] sm:$0xff] %v10407_v12 }
 0x1ac   : > { %v3939_v39 = vrot.slane %v3937_v31, 2  ;;  %v3942_v18 = vrot.slane %v3940_v43, 3  ;;  %v2132_v21 = vmax.f32 %v2020_v20, 0.0  ;;  %v2023_v9 = vadd.f32 %v10043_v19, %v1846_v32  ;;  %14261 = vst [vmem:[#allocation16_spill] sm:$0xff] %v10392_v44  ;;  %14262 = vst [vmem:[#allocation17_spill] sm:$0xff] %v10400_v52  ;;  %v10405_v14 = vpop.f32.mrb[33].mxu1 }
 0x1ad   : > { %3253 = vrot.lane.b32.xlu1 %v3216_v26, %s8991_s13  ;;  %v10398_v61 = vor.u32 %v3077_v25, %v3074_v48  ;;  %v3354_v25 = vsel %vm3338_vm13, %v3349_v16, %v10385_v58  ;;  %4572 = vmatpush1.bf16.msra.mxu1 %v8900_v57  ;;  %v8901_v26 = vld [vmem:[%s14105_s4 + $0x78] sm:$0xff]   ;;  %v2738_v49 = vshll.u32 %v10377_v7, 16  ;;  %v2734_v57 = vshrl.u32 %v10257_v34, 16 }
 0x1ae   : > { %v10395_v4 = vor.u32 %v3942_v18, %v3939_v39  ;;  %v2348_v19 = vmul.f32 %v10392_v44, %v2132_v21  ;;  %v2133_v2 = vmax.f32 %v2023_v9, 0.0  ;;  %v2573_v18 = vld [vmem:[#allocation2 + $0x30] sm:$0xf]  ;;  %4573 = vmatprep.subr.bf16.mxu1 %v14258_v30 }
 0x1af   : > { %3431 = vrot.lane.b32.xlu0 %v3350_v62, %s8992_s16  ;;  %v10415_v48 = vld [vmem:[#allocation2 + $0x34] sm:$0xf]  ;;  %v10420_v47 = vsel %vm3044_vm12, %v10343_v46, %v10398_v61  ;;  %v14264_v46 = vrot.slane %v10257_v34, 1 }
 0x1b0   : > { %v3944_v39 = vsel %vm1122_vm3, %v10318_v29, %v10395_v4  ;;  %v8413_v31 = vpack.c.bf16 %v2348_v19, %v2348_v19  ;;  %v2349_v43 = vmul.f32 %v10407_v12, %v2133_v2  ;;  %v10428_v29 = vcombine.low %v2573_v18, %v10415_v48 }
 0x1b1   : > { %8685 = vmatmul.mubr.msk.bf16.vlgmr.msra.gmra.mrb[72].mxu0 %vm1290_vm6, %v3944_v39  ;;  %3433 = vrot.lane.b32.xlu1 %v3354_v25, %s8992_s16  ;;  %v2906_v6 = vsel %vm768_vm1, %v14264_v46, %v14126_v36  ;;  %v14265_v39 = vrot.slane %v10348_v40, 6  ;;  %v10460_v36 = vcombine.low %v10335_v50, %v2573_v18  ;;  %v2736_v18 = vor.u32 %v2734_v57, %v10337_v54 }
 0x1b2   : > { %2533 = vst.msk [vmem:[#allocation2 + $0x38] sm:$0xf] %vm2392_vm9, %v8413_v31  ;;  %v8414_v20 = vpack.c.bf16 %v2349_v43, %v2349_v43  ;;  %v14127_v32 = vrot.slane %v10428_v29, 6  ;;  %v14129_v16 = vrot.slane %v10428_v29, 7  ;;  %v3081_v21 = vshrl.u32 %v10428_v29, 16  ;;  %4574 = vmatpush1.bf16.msra.mxu1 %v8901_v26 }
 0x1b3   : > { %v1850_v9 = vpop.f32.mrb[24].mxu0  ;;  %2992 = vrot.lane.b32.xlu0 %v2906_v6, %s8992_s16  ;;  %v3084_v19 = vshll.u32 %v10428_v29, 16  ;;  %v14266_v31 = vrot.slane %v10348_v40, 7  ;;  %7278 = vmatprep.subr.bf16.mxu1 %v14258_v30  ;;  %14267 = vst [vmem:[#allocation19_spill] sm:$0xff] %v10460_v36  ;;  %v10464_v40 = vrot.slane %v2738_v49, 1 }
 0x1b4   : > { %2534 = vst.msk [vmem:[#allocation2 + $0x3c] sm:$0xf] %vm2392_vm9, %v8414_v20  ;;  %v1851_v2 = vadd.f32 %v10132_v45, %v1850_v9  ;;  %v1852_v62 = vpop.f32.mrb[25].mxu0  ;;  %v3218_v25 = vsel %vm3209_vm10, %v14265_v39, %v14127_v32  ;;  %v3355_v46 = vrot.slane %v3081_v21, 6 }
 0x1b5   : > { %v3477_v43 = vsel %vm3470_vm11, %v14266_v31, %v14129_v16  ;;  %v1853_v26 = vpop.f32.mrb[26].mxu0  ;;  %3303 = vrot.lane.b32.xlu1 %v3218_v25, %s8990_s12  ;;  %v3356_v62 = vrot.slane %v3084_v19, 7  ;;  %v3083_v31 = vrot.slane %v3081_v21, 5  ;;  %v10466_v16 = vpop.permute.xlu1 %2220  ;;  %v3086_v8 = vrot.slane %v3084_v19, 6 }
 0x1b6   : > { %v3962_v20 = vshrl.u32 %v3477_v43, 16  ;;  %v3965_v9 = vshll.u32 %v3477_v43, 16  ;;  %v1854_v39 = vadd.f32 %v10132_v45, %v1853_v26  ;;  %v2028_v32 = vadd.f32 %v10061_v60, %v1851_v2  ;;  %v1855_v12 = vpop.f32.mrb[27].mxu0  ;;  %14268 = vst [vmem:[#allocation20_spill] sm:$0xff] %v10466_v16  ;;  %v10469_v43 = vpop.f32.mrb[34].mxu1 }
 0x1b7   : > { %2941 = vrot.lane.b32.xlu0 %v2906_v6, %s8990_s12  ;;  %14269 = vst [vmem:[#allocation21_spill] sm:$0xff] %v10469_v43  ;;  %v10473_v26 = vor.u32 %v3356_v62, %v3355_v46  ;;  %v10475_v60 = vpop.f32.mrb[35].mxu1  ;;  %v14134_v6 = vrot.slane %v10460_v36, 1  ;;  %v10481_v49 = vor.u32 %v3086_v8, %v3083_v31 }
 0x1b8   : > { %v3964_v44 = vrot.slane %v3962_v20, 2  ;;  %v3967_v24 = vrot.slane %v3965_v9, 3  ;;  %v2134_v37 = vmax.f32 %v2028_v32, 0.0  ;;  %v2031_v50 = vadd.f32 %v10071_v53, %v1854_v39  ;;  %14270 = vst [vmem:[#allocation22_spill] sm:$0xff] %v10475_v60  ;;  %v10486_v32 = vpop.permute.xlu0 %2225 }
 0x1b9   : > { %3255 = vrot.lane.b32.xlu1 %v3218_v25, %s8991_s13  ;;  %v2741_v53 = vsel %vm580_vm2, %v2736_v18, %v10464_v40  ;;  %14271 = vst [vmem:[#allocation23_spill] sm:$0xff] %v10486_v32  ;;  %v10497_v8 = vsel %vm3044_vm12, %v10398_v61, %v10481_v49  ;;  %v3358_v2 = vsel %vm3338_vm13, %v10385_v58, %v10473_v26  ;;  %v14274_v61 = vrot.slane %v10377_v7, 1 }
 0x1ba   : > { %v10478_v12 = vor.u32 %v3967_v24, %v3964_v44  ;;  %v2350_v21 = vmul.f32 %v10466_v16, %v2134_v37  ;;  %v2135_v19 = vmax.f32 %v2031_v50, 0.0  ;;  %v2575_v24 = vld [vmem:[#allocation2 + $0x38] sm:$0xf]  ;;  %14272 = vst [vmem:[#allocation24_spill] sm:$0xff] %v10497_v8  ;;  %v2746_v20 = vshll.u32 %v10460_v36, 16 }
 0x1bb   : > { %2863 = vrot.lane.b32.xlu0 %v2741_v53, %s8991_s13  ;;  %v10492_v44 = vld [vmem:[#allocation2 + $0x3c] sm:$0xf]  ;;  %v2908_v46 = vsel %vm768_vm1, %v14274_v61, %v14134_v6  ;;  %v2742_v50 = vshrl.u32 %v10377_v7, 16  ;;  %v14275_v53 = vrot.slane %v10428_v29, 6 }
 0x1bc   : > { %v3969_v54 = vsel %vm1122_vm3, %v10395_v4, %v10478_v12  ;;  %v8415_v37 = vpack.c.bf16 %v2350_v21, %v2350_v21  ;;  %v2351_v57 = vmul.f32 %v10486_v32, %v2135_v19  ;;  %v10505_v25 = vcombine.low %v2575_v24, %v10492_v44  ;;  %v10507_v4 = vpop.permute.xlu1 %2230 }
 0x1bd   : > { %8688 = vmatprep.mubr.msk.bf16.mxu0 %vm1290_vm6, %v3969_v54  ;;  %14273 = vst [vmem:[#allocation25_spill] sm:$0xff] %v10507_v4  ;;  %3435 = vrot.lane.b32.xlu1 %v3358_v2, %s8992_s16  ;;  %v10541_v16 = vrot.slane %v2746_v20, 1 }
 0x1be   : > { %2535 = vst.msk [vmem:[#allocation2 + $0x40] sm:$0xf] %vm2392_vm9, %v8415_v37  ;;  %v8416_v9 = vpack.c.bf16 %v2351_v57, %v2351_v57  ;;  %v14136_v58 = vrot.slane %v10505_v25, 6  ;;  %v14139_v62 = vrot.slane %v10505_v25, 7  ;;  %v3090_v39 = vshrl.u32 %v10505_v25, 16 }
 0x1bf   : > { %v1858_v31 = vpop.f32.mrb[28].mxu0  ;;  %2994 = vrot.lane.b32.xlu0 %v2908_v46, %s8992_s16  ;;  %v3093_v18 = vshll.u32 %v10505_v25, 16  ;;  %v14276_v37 = vrot.slane %v10428_v29, 7 }
 0x1c0   : > { %2536 = vst.msk [vmem:[#allocation2 + $0x44] sm:$0xf] %vm2392_vm9, %v8416_v9  ;;  %v1859_v21 = vadd.f32 %v10132_v45, %v1858_v31  ;;  %v1860_v19 = vpop.f32.mrb[29].mxu0  ;;  %v3220_v54 = vsel %vm3209_vm10, %v14275_v53, %v14136_v58  ;;  %v3359_v2 = vrot.slane %v3090_v39, 6  ;;  %v3092_v29 = vrot.slane %v3090_v39, 5  ;;  %v10543_v30 = vpop.permute.xlu1 %2240 }
 0x1c1   : > { %v3479_v57 = vsel %vm3470_vm11, %v14276_v37, %v14139_v62  ;;  %v1861_v61 = vpop.f32.mrb[30].mxu0  ;;  %3305 = vrot.lane.b32.xlu1 %v3220_v54, %s8990_s12  ;;  %v3360_v31 = vrot.slane %v3093_v18, 7  ;;  %v10537_v19 = vcombine.low %v10415_v48, %v2575_v24  ;;  %14278 = vst [vmem:[#allocation27_spill] sm:$0xff] %v10543_v30  ;;  %v3095_v43 = vrot.slane %v3093_v18, 6 }
 0x1c2   : > { %v3987_v9 = vshrl.u32 %v3479_v57, 16  ;;  %v3990_v6 = vshll.u32 %v3479_v57, 16  ;;  %v2036_v32 = vadd.f32 %v10059_v5, %v1859_v21  ;;  %v1862_v53 = vadd.f32 %v10132_v45, %v1861_v61  ;;  %v1863_v58 = vpop.f32.mrb[31].mxu0  ;;  %v10550_v5 = vpop.permute.xlu0 %2235 }
 0x1c3   : > { %14277 = vst [vmem:[#allocation26_spill] sm:$0xff] %v10537_v19  ;;  %2943 = vrot.lane.b32.xlu0 %v2908_v46, %s8990_s12  ;;  %v2744_v48 = vor.u32 %v2742_v50, %v10464_v40  ;;  %v10548_v24 = vor.u32 %v3360_v31, %v3359_v2  ;;  %14279 = vst [vmem:[#allocation28_spill] sm:$0xff] %v10550_v5  ;;  %v14141_v58 = vrot.slane %v10537_v19, 1  ;;  %v2754_v2 = vshll.u32 %v10537_v19, 16 }
 0x1c4   : > { %v3989_v37 = vrot.slane %v3987_v9, 2  ;;  %v3992_v62 = vrot.slane %v3990_v6, 3  ;;  %v2136_v57 = vmax.f32 %v2036_v32, 0.0  ;;  %v2039_v7 = vadd.f32 %v10068_v0, %v1862_v53 }
 0x1c5   : > { %3257 = vrot.lane.b32.xlu1 %v3220_v54, %s8991_s13  ;;  %v10556_v39 = vor.u32 %v3095_v43, %v3092_v29  ;;  %v2749_v0 = vsel %vm580_vm2, %v2744_v48, %v10541_v16  ;;  %v2577_v32 = vld [vmem:[#allocation2 + $0x40] sm:$0xf]  ;;  %v3362_v18 = vsel %vm3338_vm13, %v10473_v26, %v10548_v24 }
 0x1c6   : > { %v10553_v20 = vor.u32 %v3992_v62, %v3989_v37  ;;  %v2352_v6 = vmul.f32 %v10507_v4, %v2136_v57  ;;  %v2137_v46 = vmax.f32 %v2039_v7, 0.0  ;;  %v10593_v53 = vpop.permute.xlu0 %2245  ;;  %v2750_v37 = vshrl.u32 %v10460_v36, 16 }
 0x1c7   : > { %2865 = vrot.lane.b32.xlu0 %v2749_v0, %s8991_s13  ;;  %v10565_v50 = vld [vmem:[#allocation2 + $0x44] sm:$0xf]  ;;  %v10570_v43 = vsel %vm3044_vm12, %v10481_v49, %v10556_v39  ;;  %v14282_v49 = vrot.slane %v10460_v36, 1  ;;  %14283 = vst [vmem:[#allocation31_spill] sm:$0xff] %v10593_v53 }
 0x1c8   : > { %v3994_v40 = vsel %vm1122_vm3, %v10478_v12, %v10553_v20  ;;  %14280 = vst [vmem:[#allocation29_spill] sm:$0xff] %v10570_v43  ;;  %v8417_v62 = vpack.c.bf16 %v2352_v6, %v2352_v6  ;;  %v2353_v7 = vmul.f32 %v10550_v5, %v2137_v46  ;;  %v10578_v21 = vcombine.low %v2577_v32, %v10565_v50  ;;  %v10580_v12 = vpop.permute.xlu1 %2250 }
 0x1c9   : > { %8689 = vmatmul.mubr.msk.bf16.gmra.mrb[76].mxu0 %vm1290_vm6, %v3994_v40  ;;  %14281 = vst [vmem:[#allocation30_spill] sm:$0xff] %v10580_v12  ;;  %3437 = vrot.lane.b32.xlu1 %v3362_v18, %s8992_s16  ;;  %v2910_v54 = vsel %vm768_vm1, %v14282_v49, %v14141_v58  ;;  %v14284_v46 = vrot.slane %v10505_v25, 6  ;;  %v14285_v40 = vrot.slane %v10505_v25, 7  ;;  %v10616_v5 = vrot.slane %v2754_v2, 1 }
 0x1ca   : > { %2537 = vst.msk [vmem:[#allocation2 + $0x48] sm:$0xf] %vm2392_vm9, %v8417_v62  ;;  %v8418_v61 = vpack.c.bf16 %v2353_v7, %v2353_v7  ;;  %v14142_v26 = vrot.slane %v10578_v21, 6  ;;  %v14145_v9 = vrot.slane %v10578_v21, 7  ;;  %v3099_v31 = vshrl.u32 %v10578_v21, 16 }
 0x1cb   : > { %v1866_v29 = vpop.f32.mrb[32].mxu0  ;;  %2996 = vrot.lane.b32.xlu0 %v2910_v54, %s8992_s16  ;;  %v3102_v57 = vshll.u32 %v10578_v21, 16 }
 0x1cc   : > { %2538 = vst.msk [vmem:[#allocation2 + $0x4c] sm:$0xf] %vm2392_vm9, %v8418_v61  ;;  %v1867_v48 = vadd.f32 %v10132_v45, %v1866_v29  ;;  %v1868_v6 = vpop.f32.mrb[33].mxu0  ;;  %v3222_v0 = vsel %vm3209_vm10, %v14284_v46, %v14142_v26  ;;  %v3481_v62 = vsel %vm3470_vm11, %v14285_v40, %v14145_v9  ;;  %v3363_v7 = vrot.slane %v3099_v31, 6  ;;  %v10618_v4 = vpop.permute.xlu1 %2260 }
 0x1cd   : > { %v1869_v18 = vpop.f32.mrb[34].mxu0  ;;  %3307 = vrot.lane.b32.xlu1 %v3222_v0, %s8990_s12  ;;  %v4012_v49 = vshrl.u32 %v3481_v62, 16  ;;  %v4015_v61 = vshll.u32 %v3481_v62, 16  ;;  %v3364_v29 = vrot.slane %v3102_v57, 7  ;;  %v10612_v6 = vcombine.low %v10492_v44, %v2577_v32  ;;  %14287 = vst [vmem:[#allocation33_spill] sm:$0xff] %v10618_v4 }
 0x1ce   : > { %v1870_v58 = vadd.f32 %v10132_v45, %v1869_v18  ;;  %v2044_v46 = vadd.f32 %v10093_v56, %v1867_v48  ;;  %v1871_v26 = vpop.f32.mrb[35].mxu0  ;;  %v3101_v25 = vrot.slane %v3099_v31, 5  ;;  %v3104_v36 = vrot.slane %v3102_v57, 6  ;;  %v10625_v18 = vpop.permute.xlu0 %2255 }
 0x1cf   : > { %14286 = vst [vmem:[#allocation32_spill] sm:$0xff] %v10612_v6  ;;  %2945 = vrot.lane.b32.xlu0 %v2910_v54, %s8990_s12  ;;  %v4014_v40 = vrot.slane %v4012_v49, 2  ;;  %v4017_v9 = vrot.slane %v4015_v61, 3  ;;  %v2752_v44 = vor.u32 %v2750_v37, %v10541_v16  ;;  %v10623_v32 = vor.u32 %v3364_v29, %v3363_v7  ;;  %14288 = vst [vmem:[#allocation34_spill] sm:$0xff] %v10625_v18 }
 0x1d0   : > { %v2138_v62 = vmax.f32 %v2044_v46, 0.0  ;;  %v2047_v43 = vadd.f32 %v10101_v10, %v1870_v58  ;;  %v14147_v2 = vrot.slane %v10612_v6, 1  ;;  %v10631_v26 = vor.u32 %v3104_v36, %v3101_v25 }
 0x1d1   : > { %3259 = vrot.lane.b32.xlu1 %v3222_v0, %s8991_s13  ;;  %v10628_v56 = vor.u32 %v4017_v9, %v4014_v40  ;;  %v2757_v10 = vsel %vm580_vm2, %v2752_v44, %v10616_v5  ;;  %v2579_v58 = vld [vmem:[#allocation2 + $0x48] sm:$0xf]  ;;  %v3366_v57 = vsel %vm3338_vm13, %v10548_v24, %v10623_v32  ;;  %v2762_v7 = vshll.u32 %v10612_v6, 16 }
 0x1d2   : > { %v2354_v54 = vmul.f32 %v10543_v30, %v2138_v62  ;;  %v2139_v31 = vmax.f32 %v2047_v43, 0.0  ;;  %v10645_v36 = vsel %vm3044_vm12, %v10556_v39, %v10631_v26  ;;  %v14291_v39 = vrot.slane %v10537_v19, 1  ;;  %v10668_v46 = vpop.permute.xlu0 %2265 }
 0x1d3   : > { %2867 = vrot.lane.b32.xlu0 %v2757_v10, %s8991_s13  ;;  %v4019_v16 = vsel %vm1122_vm3, %v10553_v20, %v10628_v56  ;;  %v10640_v37 = vld [vmem:[#allocation2 + $0x4c] sm:$0xf]  ;;  %14289 = vst [vmem:[#allocation35_spill] sm:$0xff] %v10645_v36  ;;  %v10655_v20 = vpop.permute.xlu1 %2270  ;;  %14292 = vst [vmem:[#allocation37_spill] sm:$0xff] %v10668_v46  ;;  %v2758_v40 = vshrl.u32 %v10537_v19, 16 }
 0x1d4   : > { %v8419_v9 = vpack.c.bf16 %v2354_v54, %v2354_v54  ;;  %v2355_v43 = vmul.f32 %v10593_v53, %v2139_v31  ;;  %8692 = vmatprep.mubr.msk.bf16.mxu0 %vm1290_vm6, %v4019_v16  ;;  %v10653_v48 = vcombine.low %v2579_v58, %v10640_v37  ;;  %14290 = vst [vmem:[#allocation36_spill] sm:$0xff] %v10655_v20  ;;  %v14293_v31 = vrot.slane %v10578_v21, 6 }
 0x1d5   : > { %3439 = vrot.lane.b32.xlu1 %v3366_v57, %s8992_s16  ;;  %v2912_v0 = vsel %vm768_vm1, %v14291_v39, %v14147_v2  ;;  %v14294_v16 = vrot.slane %v10578_v21, 7  ;;  %v10691_v53 = vrot.slane %v2762_v7, 1 }
 0x1d6   : > { %2539 = vst.msk [vmem:[#allocation2 + $0x50] sm:$0xf] %vm2392_vm9, %v8419_v9  ;;  %v8420_v49 = vpack.c.bf16 %v2355_v43, %v2355_v43  ;;  %v14148_v24 = vrot.slane %v10653_v48, 6  ;;  %v14151_v61 = vrot.slane %v10653_v48, 7  ;;  %v3108_v29 = vshrl.u32 %v10653_v48, 16 }
 0x1d7   : > { %v1874_v25 = vpop.f32.mrb[36].mxu0  ;;  %2998 = vrot.lane.b32.xlu0 %v2912_v0, %s8992_s16  ;;  %v3111_v62 = vshll.u32 %v10653_v48, 16  ;;  %v10693_v30 = vpop.permute.xlu1 %2280 }
 0x1d8   : > { %2540 = vst.msk [vmem:[#allocation2 + $0x54] sm:$0xf] %vm2392_vm9, %v8420_v49  ;;  %v1875_v44 = vadd.f32 %v10132_v45, %v1874_v25  ;;  %v1876_v54 = vpop.f32.mrb[37].mxu0  ;;  %v3224_v10 = vsel %vm3209_vm10, %v14293_v31, %v14148_v24  ;;  %v3483_v9 = vsel %vm3470_vm11, %v14294_v16, %v14151_v61  ;;  %v3367_v43 = vrot.slane %v3108_v29, 6  ;;  %14296 = vst [vmem:[#allocation39_spill] sm:$0xff] %v10693_v30 }
 0x1d9   : > { %v1877_v57 = vpop.f32.mrb[38].mxu0  ;;  %3309 = vrot.lane.b32.xlu1 %v3224_v10, %s8990_s12  ;;  %v4037_v39 = vshrl.u32 %v3483_v9, 16  ;;  %v4040_v49 = vshll.u32 %v3483_v9, 16  ;;  %v3368_v25 = vrot.slane %v3111_v62, 7  ;;  %v10687_v54 = vcombine.low %v10565_v50, %v2579_v58 }
 0x1da   : > { %v2052_v2 = vadd.f32 %v10088_v55, %v1875_v44  ;;  %v1878_v31 = vadd.f32 %v10132_v45, %v1877_v57  ;;  %v1879_v24 = vpop.f32.mrb[39].mxu0  ;;  %v3110_v21 = vrot.slane %v3108_v29, 5  ;;  %v3113_v19 = vrot.slane %v3111_v62, 6  ;;  %v10700_v55 = vpop.permute.xlu0 %2275 }
 0x1db   : > { %14295 = vst [vmem:[#allocation38_spill] sm:$0xff] %v10687_v54  ;;  %2947 = vrot.lane.b32.xlu0 %v2912_v0, %s8990_s12  ;;  %v4039_v16 = vrot.slane %v4037_v39, 2  ;;  %v4042_v61 = vrot.slane %v4040_v49, 3  ;;  %v2760_v50 = vor.u32 %v2758_v40, %v10616_v5  ;;  %v10698_v58 = vor.u32 %v3368_v25, %v3367_v43  ;;  %14297 = vst [vmem:[#allocation40_spill] sm:$0xff] %v10700_v55 }
 0x1dc   : > { %v2140_v9 = vmax.f32 %v2052_v2, 0.0  ;;  %v2055_v36 = vadd.f32 %v10098_v3, %v1878_v31  ;;  %v14153_v7 = vrot.slane %v10687_v54, 1  ;;  %v10706_v24 = vor.u32 %v3113_v19, %v3110_v21 }
 0x1dd   : > { %3261 = vrot.lane.b32.xlu1 %v3224_v10, %s8991_s13  ;;  %v10703_v45 = vor.u32 %v4042_v61, %v4039_v16  ;;  %v2765_v3 = vsel %vm580_vm2, %v2760_v50, %v10691_v53  ;;  %v2581_v2 = vld [vmem:[#allocation2 + $0x50] sm:$0xf]  ;;  %v3370_v62 = vsel %vm3338_vm13, %v10623_v32, %v10698_v58  ;;  %v2770_v43 = vshll.u32 %v10687_v54, 16 }
 0x1de   : > { %v2356_v0 = vmul.f32 %v10580_v12, %v2140_v9  ;;  %v2141_v29 = vmax.f32 %v2055_v36, 0.0  ;;  %v10720_v19 = vsel %vm3044_vm12, %v10631_v26, %v10706_v24  ;;  %v14300_v26 = vrot.slane %v10612_v6, 1  ;;  %v10743_v25 = vpop.permute.xlu0 %2285  ;;  %v10752_v9 = vld [vmem:[%s14104_s3] ss:$0 sm:$0xff] }
 0x1df   : > { %2869 = vrot.lane.b32.xlu0 %v2765_v3, %s8991_s13  ;;  %v4044_v5 = vsel %vm1122_vm3, %v10628_v56, %v10703_v45  ;;  %v10715_v40 = vld [vmem:[#allocation2 + $0x54] sm:$0xf]  ;;  %14298 = vst [vmem:[#allocation41_spill] sm:$0xff] %v10720_v19  ;;  %v10730_v56 = vpop.permute.xlu1 %2290  ;;  %14301 = vst [vmem:[#allocation43_spill] sm:$0xff] %v10743_v25  ;;  %v2766_v21 = vshrl.u32 %v10612_v6, 16 }
 0x1e0   : > { %v8421_v61 = vpack.c.bf16 %v2356_v0, %v2356_v0  ;;  %v2357_v36 = vmul.f32 %v10625_v18, %v2141_v29  ;;  %8693 = vmatmul.mubr.msk.bf16.gmra.mrb[80].mxu0 %vm1290_vm6, %v4044_v5  ;;  %v10728_v44 = vcombine.low %v2581_v2, %v10715_v40  ;;  %14299 = vst [vmem:[#allocation42_spill] sm:$0xff] %v10730_v56  ;;  %v14302_v29 = vrot.slane %v10653_v48, 6 }
 0x1e1   : > { %3441 = vrot.lane.b32.xlu1 %v3370_v62, %s8992_s16  ;;  %v2914_v10 = vsel %vm768_vm1, %v14300_v26, %v14153_v7  ;;  %v14303_v5 = vrot.slane %v10653_v48, 7  ;;  %v10771_v18 = vrot.slane %v2770_v43, 1 }
 0x1e2   : > { %2541 = vst.msk [vmem:[#allocation2 + $0x58] sm:$0xf] %vm2392_vm9, %v8421_v61  ;;  %v8422_v57 = vpack.c.bf16 %v2357_v36, %v2357_v36  ;;  %v14154_v32 = vrot.slane %v10728_v44, 6  ;;  %v14157_v39 = vrot.slane %v10728_v44, 7  ;;  %v3117_v49 = vshrl.u32 %v10728_v44, 16 }
 0x1e3   : > { %v1882_v31 = vpop.f32.mrb[40].mxu0  ;;  %3000 = vrot.lane.b32.xlu0 %v2914_v10, %s8992_s16  ;;  %v3120_v16 = vshll.u32 %v10728_v44, 16  ;;  %v10773_v12 = vpop.permute.xlu1 %2300 }
 0x1e4   : > { %2542 = vst.msk [vmem:[#allocation2 + $0x5c] sm:$0xf] %vm2392_vm9, %v8422_v57  ;;  %v1883_v50 = vadd.f32 %v10752_v9, %v1882_v31  ;;  %v1884_v0 = vpop.f32.mrb[41].mxu0  ;;  %v3226_v3 = vsel %vm3209_vm10, %v14302_v29, %v14154_v32  ;;  %v3485_v61 = vsel %vm3470_vm11, %v14303_v5, %v14157_v39  ;;  %v3371_v36 = vrot.slane %v3117_v49, 6  ;;  %14305 = vst [vmem:[#allocation45_spill] sm:$0xff] %v10773_v12 }
 0x1e5   : > { %v1885_v62 = vpop.f32.mrb[42].mxu0  ;;  %3311 = vrot.lane.b32.xlu1 %v3226_v3, %s8990_s12  ;;  %v4062_v26 = vshrl.u32 %v3485_v61, 16  ;;  %v4065_v57 = vshll.u32 %v3485_v61, 16  ;;  %v3372_v31 = vrot.slane %v3120_v16, 7  ;;  %v10767_v0 = vcombine.low %v10640_v37, %v2581_v2 }
 0x1e6   : > { %v1886_v7 = vadd.f32 %v10752_v9, %v1885_v62  ;;  %v2060_v29 = vadd.f32 %v10116_v27, %v1883_v50  ;;  %v1887_v32 = vpop.f32.mrb[43].mxu0  ;;  %v3119_v48 = vrot.slane %v3117_v49, 5  ;;  %v3122_v6 = vrot.slane %v3120_v16, 6  ;;  %v10780_v62 = vpop.permute.xlu0 %2295  ;;  %v10797_v16 = vld [vmem:[#allocation2 + $0xa0] sm:$0xff]  }
 0x1e7   : > { %14304 = vst [vmem:[#allocation44_spill] sm:$0xff] %v10767_v0  ;;  %2949 = vrot.lane.b32.xlu0 %v2914_v10, %s8990_s12  ;;  %v4064_v5 = vrot.slane %v4062_v26, 2  ;;  %v4067_v39 = vrot.slane %v4065_v57, 3  ;;  %v2768_v37 = vor.u32 %v2766_v21, %v10691_v53  ;;  %v10778_v2 = vor.u32 %v3372_v31, %v3371_v36  ;;  %14306 = vst [vmem:[#allocation46_spill] sm:$0xff] %v10780_v62  ;;  %v10812_v36 = vpop.permute.xlu1 %2310 }
 0x1e8   : > { %v2142_v61 = vmax.f32 %v2060_v29, 0.0  ;;  %v2063_v19 = vadd.f32 %v10120_v42, %v1886_v7  ;;  %v14159_v43 = vrot.slane %v10767_v0, 1  ;;  %v10786_v32 = vor.u32 %v3122_v6, %v3119_v48  ;;  %v8910_v7 = vld [vmem:[#allocation2 + $0xa8] ss:$0 sps:$4 sm:$0x33]   ;;  %14308 = vst [vmem:[#allocation48_spill] sm:$0xff] %v10812_v36 }
 0x1e9   : > { %3263 = vrot.lane.b32.xlu1 %v3226_v3, %s8991_s13  ;;  %v10783_v27 = vor.u32 %v4067_v39, %v4064_v5  ;;  %v2773_v42 = vsel %vm580_vm2, %v2768_v37, %v10771_v18  ;;  %v2583_v21 = vld [vmem:[#allocation2 + $0x58] sm:$0xf]  ;;  %v3374_v3 = vsel %vm3338_vm13, %v10698_v58, %v10778_v2  ;;  %v2778_v57 = vshll.u32 %v10767_v0, 16  ;;  %v10825_v5 = vld [vmem:[#allocation2 + $0x4] sm:$0xc] }
 0x1ea   : > { %v2358_v10 = vmul.f32 %v10618_v4, %v2142_v61  ;;  %v2143_v49 = vmax.f32 %v2063_v19, 0.0  ;;  %v10802_v6 = vsel %vm3044_vm12, %v10706_v24, %v10786_v32  ;;  %v14309_v24 = vrot.slane %v10687_v54, 1  ;;  %v10827_v61 = vpop.permute.xlu0 %2305 }
 0x1eb   : > { %2871 = vrot.lane.b32.xlu0 %v2773_v42, %s8991_s13  ;;  %v4069_v53 = vsel %vm1122_vm3, %v10703_v45, %v10783_v27  ;;  %v10795_v39 = vld [vmem:[#allocation2 + $0x5c] sm:$0xf]  ;;  %14307 = vst [vmem:[#allocation47_spill] sm:$0xff] %v10802_v6  ;;  %14310 = vst [vmem:[#allocation49_spill] sm:$0xff] %v10827_v61  ;;  %v10851_v6 = vrot.slane %v2778_v57, 1 }
 0x1ec   : > { %v8423_v19 = vpack.c.bf16 %v2358_v10, %v2358_v10  ;;  %v2359_v50 = vmul.f32 %v10668_v46, %v2143_v49  ;;  %8696 = vmatprep.mubr.msk.bf16.mxu0 %vm1290_vm6, %v4069_v53  ;;  %v10810_v45 = vcombine.low %v2583_v21, %v10795_v39  ;;  %v2916_v26 = vsel %vm768_vm1, %v14309_v24, %v14159_v43 }
 0x1ed   : > { %3443 = vrot.lane.b32.xlu1 %v3374_v3, %s8992_s16  ;;  %v2774_v10 = vshrl.u32 %v10687_v54, 16  ;;  %v3506_v53 = vrot.slane %v8910_v7, 7  ;;  %v14311_v3 = vrot.slane %v10728_v44, 6  ;;  %v14312_v43 = vrot.slane %v10728_v44, 7  ;;  %v10853_v44 = vld [vmem:[#allocation2 + $0x8] sm:$0xf] }
 0x1ee   : > { %2543 = vst.msk [vmem:[#allocation2 + $0x60] sm:$0xf] %vm2392_vm9, %v8423_v19  ;;  %v8424_v31 = vpack.c.bf16 %v2359_v50, %v2359_v50  ;;  %v14163_v58 = vrot.slane %v10810_v45, 6  ;;  %v14164_v29 = vrot.slane %v10810_v45, 7  ;;  %v3126_v48 = vshrl.u32 %v10810_v45, 16  ;;  %v10867_v8 = vpop.permute.xlu0 %2315 }
 0x1ef   : > { %v1890_v37 = vpop.f32.mrb[44].mxu0  ;;  %3002 = vrot.lane.b32.xlu0 %v2916_v26, %s8992_s16  ;;  %v3129_v49 = vshll.u32 %v10810_v45, 16  ;;  %14315 = vst [vmem:[#allocation51_spill] sm:$0xff] %v10867_v8 }
 0x1f0   : > { %2544 = vst.msk [vmem:[#allocation2 + $0x64] sm:$0xf] %vm2392_vm9, %v8424_v31  ;;  %v1891_v19 = vadd.f32 %v10752_v9, %v1890_v37  ;;  %v1892_v50 = vpop.f32.mrb[45].mxu0  ;;  %v3228_v24 = vsel %vm3209_vm10, %v14311_v3, %v14163_v58  ;;  %v3487_v46 = vsel %vm3470_vm11, %v14312_v43, %v14164_v29  ;;  %v3375_v4 = vrot.slane %v3126_v48, 6  ;;  %v10857_v29 = vpop.permute.xlu1 %2320 }
 0x1f1   : > { %v1893_v42 = vpop.f32.mrb[46].mxu0  ;;  %3313 = vrot.lane.b32.xlu1 %v3228_v24, %s8990_s12  ;;  %v4087_v7 = vshrl.u32 %v3487_v46, 16  ;;  %v4090_v31 = vshll.u32 %v3487_v46, 16  ;;  %v3376_v37 = vrot.slane %v3129_v49, 7  ;;  %v10847_v50 = vcombine.low %v10715_v40, %v2583_v21  ;;  %14313 = vst [vmem:[#allocation50_spill] sm:$0xff] %v10857_v29 }
 0x1f2   : > { %v2068_v54 = vadd.f32 %v10114_v41, %v1891_v19  ;;  %v1894_v3 = vadd.f32 %v10752_v9, %v1893_v42  ;;  %v1895_v58 = vpop.f32.mrb[47].mxu0  ;;  %v2776_v46 = vor.u32 %v2774_v10, %v10771_v18  ;;  %v14314_v41 = vrot.slane %v10797_v16, 7 }
 0x1f3   : > { %2951 = vrot.lane.b32.xlu0 %v2916_v26, %s8990_s12  ;;  %v4089_v40 = vrot.slane %v4087_v7, 2  ;;  %v4092_v21 = vrot.slane %v4090_v31, 3  ;;  %v10865_v19 = vor.u32 %v3376_v37, %v3375_v4  ;;  %v3128_v52 = vrot.slane %v3126_v48, 5 }
 0x1f4   : > { %v3507_v42 = vsel %vm3470_vm11, %v14314_v41, %v3506_v53  ;;  %v2144_v58 = vmax.f32 %v2068_v54, 0.0  ;;  %v2071_v57 = vadd.f32 %v10118_v28, %v1894_v3  ;;  %v14165_v18 = vrot.slane %v10847_v50, 1 }
 0x1f5   : > { %3265 = vrot.lane.b32.xlu1 %v3228_v24, %s8991_s13  ;;  %v10870_v43 = vor.u32 %v4092_v21, %v4089_v40  ;;  %v3131_v10 = vrot.slane %v3129_v49, 6  ;;  %v2781_v28 = vsel %vm580_vm2, %v2776_v46, %v10851_v6  ;;  %v2585_v4 = vld [vmem:[#allocation2 + $0x60] sm:$0xf]  ;;  %v4337_v54 = vshrl.u32 %v3507_v42, 16 }
 0x1f6   : > { %v2360_v7 = vmul.f32 %v10655_v20, %v2144_v58  ;;  %v2145_v53 = vmax.f32 %v2071_v57, 0.0  ;;  %v2786_v31 = vshll.u32 %v10847_v50, 16  ;;  %v4340_v37 = vshll.u32 %v3507_v42, 16 }
 0x1f7   : > { %2873 = vrot.lane.b32.xlu0 %v2781_v28, %s8991_s13  ;;  %v4094_v48 = vsel %vm1122_vm3, %v10783_v27, %v10870_v43  ;;  %v10881_v24 = vld [vmem:[#allocation2 + $0x64] sm:$0xf]  ;;  %v10884_v49 = vor.u32 %v3131_v10, %v3128_v52  ;;  %v3378_v46 = vsel %vm3338_vm13, %v10778_v2, %v10865_v19  ;;  %v10894_v27 = vpop.permute.xlu1 %2330  ;;  %v14317_v52 = vrot.slane %v10767_v0, 1  ;;  %v10915_v28 = vpop.permute.xlu0 %2325 }
 0x1f8   : > { %v8425_v3 = vpack.c.bf16 %v2360_v7, %v2360_v7  ;;  %v2361_v40 = vmul.f32 %v10700_v55, %v2145_v53  ;;  %8697 = vmatmul.mubr.msk.bf16.gmra.mrb[84].mxu0 %vm1290_vm6, %v4094_v48  ;;  %v10892_v21 = vcombine.low %v2585_v4, %v10881_v24  ;;  %14316 = vst [vmem:[#allocation52_spill] sm:$0xff] %v10894_v27  ;;  %v2782_v42 = vshrl.u32 %v10767_v0, 16 }
 0x1f9   : > { %3445 = vrot.lane.b32.xlu1 %v3378_v46, %s8992_s16  ;;  %v2918_v41 = vsel %vm768_vm1, %v14317_v52, %v14165_v18  ;;  %v10904_v58 = vcombine.low %v10795_v39, %v2585_v4  ;;  %v10909_v2 = vsel %vm3044_vm12, %v10786_v32, %v10884_v49  ;;  %14319 = vst [vmem:[#allocation54_spill] sm:$0xff] %v10915_v28  ;;  %v2788_v39 = vrot.slane %v2786_v31, 1 }
 0x1fa   : > { %14318 = vst [vmem:[#allocation53_spill] sm:$0xff] %v10909_v2  ;;  %2545 = vst.msk [vmem:[#allocation2 + $0x68] sm:$0xf] %vm2392_vm9, %v8425_v3  ;;  %v8426_v57 = vpack.c.bf16 %v2361_v40, %v2361_v40  ;;  %v14169_v10 = vrot.slane %v10892_v21, 6  ;;  %v14170_v7 = vrot.slane %v10892_v21, 7  ;;  %v3135_v53 = vshrl.u32 %v10892_v21, 16 }
 0x1fb   : > { %v1898_v48 = vpop.f32.mrb[48].mxu0  ;;  %3004 = vrot.lane.b32.xlu0 %v2918_v41, %s8992_s16  ;;  %v3138_v4 = vshll.u32 %v10892_v21, 16  ;;  %v10919_v46 = vrot.slane %v4337_v54, 2  ;;  %v10921_v32 = vrot.slane %v4340_v37, 3  ;;  %v14320_v52 = vrot.slane %v10810_v45, 6  ;;  %v10946_v34 = vpop.permute.xlu0 %2335 }
 0x1fc   : > { %2546 = vst.msk [vmem:[#allocation2 + $0x6c] sm:$0xf] %vm2392_vm9, %v8426_v57  ;;  %v1899_v3 = vadd.f32 %v10752_v9, %v1898_v48  ;;  %v1900_v40 = vpop.f32.mrb[49].mxu0  ;;  %v14321_v31 = vrot.slane %v10810_v45, 7  ;;  %v3379_v18 = vrot.slane %v3135_v53, 6  ;;  %v2794_v20 = vshll.u32 %v10904_v58, 16 }
 0x1fd   : > { %v3230_v26 = vsel %vm3209_vm10, %v14320_v52, %v14169_v10  ;;  %v1901_v37 = vpop.f32.mrb[50].mxu0  ;;  %v2936_v55 = vpop.permute.xlu1 %2935  ;;  %v3380_v40 = vrot.slane %v3138_v4, 7  ;;  %v2784_v2 = vor.u32 %v2782_v42, %v10851_v6  ;;  %v2790_v45 = vshrl.u32 %v10847_v50, 16  ;;  %14322 = vst [vmem:[#allocation55_spill] sm:$0xff] %v10946_v34 }
 0x1fe   : > { %v3489_v54 = vsel %vm3470_vm11, %v14321_v31, %v14170_v7  ;;  %3315 = vrot.lane.b32.xlu1 %v3230_v26, %s8990_s12  ;;  %v1902_v0 = vadd.f32 %v10752_v9, %v1901_v37  ;;  %v2076_v52 = vadd.f32 %v10169_v35, %v1899_v3  ;;  %v1903_v10 = vpop.f32.mrb[51].mxu0  ;;  %v14179_v27 = vrot.slane %v10904_v58, 1 }
 0x1ff   : > { %v4112_v57 = vshrl.u32 %v3489_v54, 16  ;;  %v4115_v48 = vshll.u32 %v3489_v54, 16  ;;  %2953 = vrot.lane.b32.xlu0 %v2918_v41, %s8990_s12  ;;  %v3137_v28 = vrot.slane %v3135_v53, 5  ;;  %v10944_v60 = vor.u32 %v3380_v40, %v3379_v18 }
 0x200   : > { %v2146_v54 = vmax.f32 %v2076_v52, 0.0  ;;  %v2079_v29 = vadd.f32 %v10177_v38, %v1902_v0  ;;  %v3140_v37 = vrot.slane %v3138_v4, 6  ;;  %v2789_v6 = vsel %vm580_vm2, %v2784_v2, %v2788_v39 }
 0x201   : > { %v4114_v31 = vrot.slane %v4112_v57, 2  ;;  %v4117_v7 = vrot.slane %v4115_v48, 3  ;;  %v3248_v35 = vpop.permute.xlu1 %3247  ;;  %v2587_v41 = vld [vmem:[#allocation2 + $0x68] sm:$0xf]  ;;  %v2796_v10 = vrot.slane %v2794_v20, 1  ;;  %v2792_v0 = vor.u32 %v2790_v45, %v2788_v39 }
 0x202   : > { %3267 = vrot.lane.b32.xlu1 %v3230_v26, %s8991_s13  ;;  %v2362_v3 = vmul.f32 %v10693_v30, %v2146_v54  ;;  %v2147_v38 = vmax.f32 %v2079_v29, 0.0  ;;  %v10956_v18 = vcombine.low %v10881_v24, %v2587_v41  ;;  %v14323_v20 = vrot.slane %v10847_v50, 1 }
 0x203   : > { %v10950_v42 = vor.u32 %v4117_v7, %v4114_v31  ;;  %2875 = vrot.lane.b32.xlu0 %v2789_v6, %s8991_s13  ;;  %v10967_v7 = vld [vmem:[#allocation2 + $0x6c] sm:$0xf]  ;;  %v2798_v29 = vshrl.u32 %v10904_v58, 16  ;;  %v10970_v39 = vor.u32 %v3140_v37, %v3137_v28  ;;  %v2797_v28 = vsel %vm580_vm2, %v2792_v0, %v2796_v10 }
 0x204   : > { %v2920_v2 = vsel %vm768_vm1, %v14323_v20, %v14179_v27  ;;  %v8427_v24 = vpack.c.bf16 %v2362_v3, %v2362_v3  ;;  %v2363_v4 = vmul.f32 %v10743_v25, %v2147_v38  ;;  %v10978_v57 = vcombine.low %v2587_v41, %v10967_v7 }
 0x205   : > { %v4119_v26 = vsel %vm1122_vm3, %v10870_v43, %v10950_v42  ;;  %v3382_v43 = vsel %vm3338_vm13, %v10865_v19, %v10944_v60  ;;  %v2858_v48 = vpop.permute.xlu1 %2857  ;;  %v10981_v40 = vpop.permute.xlu0 %2937  ;;  %v2800_v52 = vor.u32 %v2798_v29, %v2796_v10  ;;  %v2802_v45 = vshll.u32 %v10956_v18, 16 }
 0x206   : > { %8700 = vmatprep.mubr.msk.bf16.mxu0 %vm1290_vm6, %v4119_v26  ;;  %3447 = vrot.lane.b32.xlu1 %v3382_v43, %s8992_s16  ;;  %v10988_v31 = vsel %vm3044_vm12, %v10884_v49, %v10970_v39  ;;  %2547 = vst.msk [vmem:[#allocation2 + $0x70] sm:$0xf] %vm2392_vm9, %v8427_v24  ;;  %v8428_v19 = vpack.c.bf16 %v2363_v4, %v2363_v4  ;;  %v14177_v6 = vrot.slane %v10978_v57, 6  ;;  %v14175_v41 = vrot.slane %v10978_v57, 7 }
 0x207   : > { %v14324_v54 = vcombine.low %v10825_v5, %v10853_v44  ;;  %v1906_v10 = vpop.f32.mrb[52].mxu0  ;;  %3006 = vrot.lane.b32.xlu0 %v2920_v2, %s8992_s16  ;;  %v14176_v49 = vshrl.u32 %v10978_v57, 16  ;;  %v14178_v38 = vshll.u32 %v10978_v57, 16  ;;  %v2921_v0 = vrot.slane %v10956_v18, 1 }
 0x208   : > { %2548 = vst.msk [vmem:[#allocation2 + $0x74] sm:$0xf] %vm2392_vm9, %v8428_v19  ;;  %v1907_v5 = vadd.f32 %v10752_v9, %v1906_v10  ;;  %v1908_v44 = vpop.f32.mrb[53].mxu0  ;;  %v14325_v26 = vrot.slane %v10892_v21, 6  ;;  %v2804_v24 = vrot.slane %v2802_v45, 1  ;;  %v3625_v10 = vsel %vm1290_vm6, %v10320_v13, %v3248_v35 }
 0x209   : > { %v3510_v37 = vsel %vm1290_vm6, %v14324_v54, %v2858_v48  ;;  %v1909_v4 = vpop.f32.mrb[54].mxu0  ;;  %v2989_v43 = vpop.permute.xlu1 %2988  ;;  %v3383_v54 = vrot.slane %v14176_v49, 6  ;;  %v2806_v49 = vshrl.u32 %v10956_v18, 16 }
 0x20a   : > { %v3548_v3 = vsel %vm1327_vm7, %v3510_v37, %v2936_v55  ;;  %v3232_v20 = vsel %vm3209_vm10, %v14325_v26, %v14177_v6  ;;  %v14326_v55 = vrot.slane %v10892_v21, 7  ;;  %v3384_v37 = vrot.slane %v14178_v38, 7  ;;  %v3250_v26 = vpop.permute.xlu0 %3249 }
 0x20b   : > { %3317 = vrot.lane.b32.xlu1 %v3232_v20, %s8990_s12  ;;  %v2084_v21 = vadd.f32 %v10159_v59, %v1907_v5  ;;  %v1910_v44 = vadd.f32 %v10752_v9, %v1909_v4  ;;  %v3586_v45 = vsel %vm1364_vm8, %v3548_v3, %v2989_v43  ;;  %2955 = vrot.lane.b32.xlu0 %v2920_v2, %s8990_s12  ;;  %v11029_v59 = vld [vmem:[#allocation2 + $0xa0] ss:$0 sps:$4 sm:$0x11]   ;;  %v14327_v2 = vrot.slane %v10904_v58, 1 }
 0x20c   : > { %v3491_v29 = vsel %vm3470_vm11, %v14326_v55, %v14175_v41  ;;  %v1911_v55 = vpop.f32.mrb[55].mxu0  ;;  %v3873_v53 = vshrl.u32 %v3586_v45, 16  ;;  %v3876_v41 = vshll.u32 %v3586_v45, 16  ;;  %v11027_v13 = vor.u32 %v3384_v37, %v3383_v54 }
 0x20d   : > { %v4137_v48 = vshrl.u32 %v3491_v29, 16  ;;  %v4140_v19 = vshll.u32 %v3491_v29, 16  ;;  %v2148_v6 = vmax.f32 %v2084_v21, 0.0  ;;  %v2087_v38 = vadd.f32 %v10174_v22, %v1910_v44  ;;  %v3298_v5 = vpop.permute.xlu1 %3297  ;;  %v2589_v43 = vld [vmem:[#allocation2 + $0x70] sm:$0xf] }
 0x20e   : > { %v11031_v35 = vrot.slane %v3873_v53, 2  ;;  %v11033_v3 = vrot.slane %v3876_v41, 3  ;;  %v2922_v4 = vsel %vm768_vm1, %v14327_v2, %v2921_v0  ;;  %v11042_v22 = vsel %vm580_vm2, %v2800_v52, %v2804_v24  ;;  %v2860_v41 = vpop.permute.xlu0 %2859 }
 0x20f   : > { %v4139_v29 = vrot.slane %v4137_v48, 2  ;;  %v4142_v27 = vrot.slane %v4140_v19, 3  ;;  %3269 = vrot.lane.b32.xlu1 %v3232_v20, %s8991_s13  ;;  %v2364_v48 = vmul.f32 %v10730_v56, %v2148_v6  ;;  %v2149_v19 = vmax.f32 %v2087_v38, 0.0  ;;  %2877 = vrot.lane.b32.xlu0 %v2797_v28, %s8991_s13  ;;  %v11055_v21 = vld [vmem:[#allocation2 + $0x74] sm:$0xf] }
 0x210   : > { %v11047_v53 = vsel %vm1290_vm6, %v10341_v63, %v3250_v26  ;;  %v3681_v20 = vsel %vm1327_vm7, %v3625_v10, %v3298_v5  ;;  %v3512_v37 = vsel %vm1290_vm6, %v10193_v15, %v2860_v41  ;;  %v11058_v52 = vcombine.low %v10967_v7, %v2589_v43 }
 0x211   : > { %v11049_v54 = vor.u32 %v4142_v27, %v4139_v29  ;;  %v11060_v6 = vor.u32 %v2806_v49, %v2804_v24  ;;  %v8429_v38 = vpack.c.bf16 %v2364_v48, %v2364_v48  ;;  %v2365_v63 = vmul.f32 %v10780_v62, %v2149_v19  ;;  %v3430_v7 = vpop.permute.xlu1 %3429 }
 0x212   : > { %v3386_v15 = vsel %vm3338_vm13, %v10944_v60, %v11027_v13  ;;  %v3550_v49 = vsel %vm1327_vm7, %v3512_v37, %v10981_v40  ;;  %v11076_v24 = vcombine.low %v2589_v43, %v11055_v21  ;;  %v3719_v60 = vsel %vm1364_vm8, %v3681_v20, %v3430_v7  ;;  %v2991_v44 = vpop.permute.xlu0 %2990 }
 0x213   : > { %v4144_v27 = vsel %vm1122_vm3, %v10950_v42, %v11049_v54  ;;  %3449 = vrot.lane.b32.xlu1 %v3386_v15, %s8992_s16  ;;  %2549 = vst.msk [vmem:[#allocation2 + $0x78] sm:$0xf] %vm2392_vm9, %v8429_v38  ;;  %v8430_v10 = vpack.c.bf16 %v2365_v63, %v2365_v63  ;;  %v2923_v45 = vrot.slane %v11058_v52, 1  ;;  %v2810_v26 = vshll.u32 %v11058_v52, 16  ;;  %v1914_v40 = vpop.f32.mrb[56].mxu0  ;;  %3008 = vrot.lane.b32.xlu0 %v2922_v4, %s8992_s16 }
 0x214   : > { %8701 = vmatmul.mubr.msk.bf16.gmra.mrb[88].mxu0 %vm1290_vm6, %v4144_v27  ;;  %v3888_v55 = vshrl.u32 %v3719_v60, 16  ;;  %v3891_v29 = vshll.u32 %v3719_v60, 16  ;;  %v3588_v5 = vsel %vm1364_vm8, %v3550_v49, %v2991_v44  ;;  %v3233_v2 = vrot.slane %v11076_v24, 6  ;;  %v1916_v41 = vpop.f32.mrb[57].mxu0 }
 0x215   : > { %2550 = vst.msk [vmem:[#allocation2 + $0x7c] sm:$0xf] %vm2392_vm9, %v8430_v10  ;;  %v3880_v43 = vshrl.u32 %v3588_v5, 16  ;;  %v3883_v48 = vshll.u32 %v3588_v5, 16  ;;  %v1915_v19 = vadd.f32 %v10752_v9, %v1914_v40  ;;  %v14180_v20 = vrot.slane %v11076_v24, 7  ;;  %v1917_v63 = vpop.f32.mrb[58].mxu0  ;;  %v3252_v27 = vpop.permute.xlu1 %3251 }
 0x216   : > { %v11089_v37 = vrot.slane %v3888_v55, 2  ;;  %v11091_v38 = vrot.slane %v3891_v29, 3  ;;  %v14328_v15 = vrot.slane %v10978_v57, 6  ;;  %v14184_v49 = vshrl.u32 %v11076_v24, 16  ;;  %v2940_v55 = vpop.permute.xlu0 %2939  ;;  %v1919_v29 = vpop.f32.mrb[59].mxu0 }
 0x217   : > { %v3882_v10 = vrot.slane %v3880_v43, 2  ;;  %v3885_v60 = vrot.slane %v3883_v48, 3  ;;  %v1918_v44 = vadd.f32 %v10752_v9, %v1917_v63  ;;  %v2092_v5 = vadd.f32 %v10276_v51, %v1915_v19  ;;  %2957 = vrot.lane.b32.xlu0 %v2922_v4, %s8990_s12 }
 0x218   : > { %v3234_v7 = vsel %vm3209_vm10, %v14328_v15, %v3233_v2  ;;  %v14329_v41 = vrot.slane %v10978_v57, 7  ;;  %v14181_v48 = vshll.u32 %v11076_v24, 16  ;;  %v3631_v19 = vsel %vm1290_vm6, %v10354_v11, %v3252_v27 }
 0x219   : > { %3319 = vrot.lane.b32.xlu1 %v3234_v7, %s8990_s12  ;;  %v2150_v51 = vmax.f32 %v2092_v5, 0.0  ;;  %v2095_v15 = vadd.f32 %v10311_v1, %v1918_v44  ;;  %v11115_v42 = vor.u32 %v3885_v60, %v3882_v10  ;;  %v3387_v40 = vrot.slane %v14184_v49, 6 }
 0x21a   : > { %v3493_v43 = vsel %vm3470_vm11, %v14329_v41, %v14180_v20  ;;  %v3388_v41 = vrot.slane %v14181_v48, 7  ;;  %v2591_v28 = vld [vmem:[#allocation2 + $0x78] sm:$0xf]  ;;  %v3300_v5 = vpop.permute.xlu0 %3299  ;;  %v2924_v1 = vsel %vm768_vm1, %v2921_v0, %v2923_v45 }
 0x21b   : > { %v4162_v29 = vshrl.u32 %v3493_v43, 16  ;;  %v4165_v4 = vshll.u32 %v3493_v43, 16  ;;  %v2366_v20 = vmul.f32 %v10773_v12, %v2150_v51  ;;  %v2151_v63 = vmax.f32 %v2095_v15, 0.0  ;;  %v3302_v27 = vpop.permute.xlu1 %3301  ;;  %2879 = vrot.lane.b32.xlu0 %v11042_v22, %s8991_s13 }
 0x21c   : > { %v11130_v60 = vor.u32 %v3388_v41, %v3387_v40  ;;  %v11132_v44 = vld [vmem:[#allocation2 + $0x7c] sm:$0xf]  ;;  %v2812_v43 = vrot.slane %v2810_v26, 1  ;;  %v3685_v22 = vsel %vm1327_vm7, %v3631_v19, %v3302_v27 }
 0x21d   : > { %3271 = vrot.lane.b32.xlu1 %v3234_v7, %s8991_s13  ;;  %v4164_v11 = vrot.slane %v4162_v29, 2  ;;  %v4167_v10 = vrot.slane %v4165_v4, 3  ;;  %v11135_v7 = vcombine.low %v11055_v21, %v2591_v28  ;;  %v8431_v51 = vpack.c.bf16 %v2366_v20, %v2366_v20 }
 0x21e   : > { %v2367_v15 = vmul.f32 %v10827_v61, %v2151_v63  ;;  %v3683_v29 = vsel %vm1327_vm7, %v11047_v53, %v3300_v5  ;;  %v11141_v0 = vcombine.low %v2591_v28, %v11132_v44  ;;  %v3390_v26 = vsel %vm3338_vm13, %v11027_v13, %v11130_v60  ;;  %v2862_v40 = vpop.permute.xlu0 %2861 }
 0x21f   : > { %v11144_v4 = vor.u32 %v4167_v10, %v4164_v11  ;;  %v14185_v21 = vrot.slane %v11135_v7, 1  ;;  %2551 = vst.msk [vmem:[#allocation2 + $0x80] sm:$0xf] %vm2392_vm9, %v8431_v51  ;;  %v3514_v13 = vsel %vm1290_vm6, %v10215_v33, %v2862_v40  ;;  %v1922_v41 = vpop.f32.mrb[60].mxu0  ;;  %v3254_v5 = vpop.permute.xlu1 %3253  ;;  %3010 = vrot.lane.b32.xlu0 %v2924_v1, %s8992_s16  ;;  %v2813_v11 = vsel %vm580_vm2, %v11060_v6, %v2812_v43 }
 0x220   : > { %v8432_v20 = vpack.c.bf16 %v2367_v15, %v2367_v15  ;;  %v3235_v53 = vrot.slane %v11141_v0, 6  ;;  %v3494_v28 = vrot.slane %v11141_v0, 7  ;;  %v14183_v63 = vshrl.u32 %v11141_v0, 16  ;;  %v1924_v33 = vpop.f32.mrb[61].mxu0 }
 0x221   : > { %3451 = vrot.lane.b32.xlu1 %v3390_v26, %s8992_s16  ;;  %v4169_v19 = vsel %vm1122_vm3, %v11049_v54, %v11144_v4  ;;  %v14182_v27 = vshll.u32 %v11141_v0, 16  ;;  %v1923_v10 = vadd.f32 %v10752_v9, %v1922_v41  ;;  %v11169_v54 = vsel %vm1290_vm6, %v10420_v47, %v3254_v5  ;;  %v1925_v15 = vpop.f32.mrb[62].mxu0 }
 0x222   : > { %2552 = vst.msk [vmem:[#allocation2 + $0x84] sm:$0xf] %vm2392_vm9, %v8432_v20  ;;  %8704 = vmatprep.mubr.msk.bf16.mxu0 %vm1290_vm6, %v4169_v19  ;;  %v3236_v51 = vsel %vm3209_vm10, %v3233_v2, %v3235_v53  ;;  %v11181_v6 = vsel %vm768_vm1, %v2923_v45, %v14185_v21  ;;  %v3552_v26 = vsel %vm1327_vm7, %v3514_v13, %v2940_v55  ;;  %v14330_v47 = vrot.slane %v11076_v24, 7  ;;  %v3432_v41 = vpop.permute.xlu0 %3431  ;;  %v1927_v55 = vpop.f32.mrb[63].mxu0 }
 0x223   : > { %v3391_v40 = vrot.slane %v14183_v63, 6  ;;  %v3392_v2 = vrot.slane %v14182_v27, 7  ;;  %v2100_v19 = vadd.f32 %v10274_v17, %v1923_v10  ;;  %v1926_v45 = vadd.f32 %v10752_v9, %v1925_v15  ;;  %v3434_v48 = vpop.permute.xlu1 %3433  ;;  %2959 = vrot.lane.b32.xlu0 %v2924_v1, %s8990_s12 }
 0x224   : > { %v3495_v20 = vsel %vm3470_vm11, %v14330_v47, %v3494_v28  ;;  %v3721_v33 = vsel %vm1364_vm8, %v3683_v29, %v3432_v41  ;;  %v14331_v27 = vor.u32 %v11033_v3, %v11031_v35  ;;  %v14332_v10 = vshrl.u32 %v11058_v52, 16 }
 0x225   : > { %3321 = vrot.lane.b32.xlu1 %v3236_v51, %s8990_s12  ;;  %v4187_v13 = vshrl.u32 %v3495_v20, 16  ;;  %v4190_v5 = vshll.u32 %v3495_v20, 16  ;;  %v11198_v47 = vor.u32 %v3392_v2, %v3391_v40  ;;  %v2152_v63 = vmax.f32 %v2100_v19, 0.0 }
 0x226   : > { %v3887_v17 = vsel %vm1122_vm3, %v14331_v27, %v11115_v42  ;;  %v2816_v15 = vor.u32 %v14332_v10, %v2812_v43  ;;  %v2103_v55 = vadd.f32 %v10308_v23, %v1926_v45  ;;  %v3895_v20 = vshrl.u32 %v3721_v33, 16  ;;  %v2993_v27 = vpop.permute.xlu0 %2992 }
 0x227   : > { %v3898_v49 = vshll.u32 %v3721_v33, 16  ;;  %v3723_v29 = vsel %vm1364_vm8, %v3685_v22, %v3434_v48  ;;  %v4189_v41 = vrot.slane %v4187_v13, 2  ;;  %v4192_v1 = vrot.slane %v4190_v5, 3  ;;  %v3304_v45 = vpop.permute.xlu1 %3303  ;;  %2881 = vrot.lane.b32.xlu0 %v2813_v11, %s8991_s13 }
 0x228   : > { %v2818_v40 = vshll.u32 %v11135_v7, 16  ;;  %v2368_v2 = vmul.f32 %v10812_v36, %v2152_v63  ;;  %v2153_v21 = vmax.f32 %v2103_v55, 0.0  ;;  %v3897_v35 = vrot.slane %v3895_v20, 2 }
 0x229   : > { %v3900_v3 = vrot.slane %v3898_v49, 3  ;;  %3273 = vrot.lane.b32.xlu1 %v3236_v51, %s8991_s13  ;;  %v3928_v43 = vshrl.u32 %v3723_v29, 16  ;;  %v3931_v19 = vshll.u32 %v3723_v29, 16  ;;  %v3590_v23 = vsel %vm1364_vm8, %v3552_v26, %v2993_v27  ;;  %v11217_v33 = vld [vmem:[#allocation2 + $0x84] sm:$0xf] }
 0x22a   : > { %v11214_v48 = vor.u32 %v4192_v1, %v4189_v41  ;;  %v8433_v22 = vpack.c.bf16 %v2368_v2, %v2368_v2  ;;  %v2369_v13 = vmul.f32 %v10867_v8, %v2153_v21  ;;  %v3920_v63 = vshrl.u32 %v3590_v23, 16  ;;  %v2593_v26 = vld [vmem:[#allocation2 + $0x80] sm:$0xf]  ;;  %v2942_v29 = vpop.permute.xlu0 %2941 }
 0x22b   : > { %v3901_v5 = vor.u32 %v3900_v3, %v3897_v35  ;;  %v3930_v49 = vrot.slane %v3928_v43, 2  ;;  %v3933_v10 = vrot.slane %v3931_v19, 3  ;;  %v3923_v51 = vshll.u32 %v3590_v23, 16  ;;  %v1930_v35 = vpop.f32.mrb[64].mxu0  ;;  %v3256_v3 = vpop.permute.xlu1 %3255  ;;  %3012 = vrot.lane.b32.xlu0 %v11181_v6, %s8992_s16 }
 0x22c   : > { %v3394_v55 = vsel %vm3338_vm13, %v11130_v60, %v11198_v47  ;;  %2553 = vst.msk [vmem:[#allocation2 + $0x88] sm:$0xf] %vm2392_vm9, %v8433_v22  ;;  %v8434_v11 = vpack.c.bf16 %v2369_v13, %v2369_v13  ;;  %v3922_v20 = vrot.slane %v3920_v63, 2  ;;  %v4194_v21 = vsel %vm1122_vm3, %v11144_v4, %v11214_v48  ;;  %v1932_v43 = vpop.f32.mrb[65].mxu0 }
 0x22d   : > { %3453 = vrot.lane.b32.xlu1 %v3394_v55, %s8992_s16  ;;  %v14333_v41 = vor.u32 %v11091_v38, %v11089_v37  ;;  %v11231_v2 = vor.u32 %v3933_v10, %v3930_v49  ;;  %v3925_v60 = vrot.slane %v3923_v51, 3  ;;  %8705 = vmatmul.mubr.msk.bf16.gmra.mrb[92].mxu0 %vm1290_vm6, %v4194_v21  ;;  %v11235_v27 = vcombine.low %v2593_v26, %v11217_v33  ;;  %v1933_v13 = vpop.f32.mrb[66].mxu0  ;;  %v14334_v55 = vld [vmem:[#allocation11_spill] sm:$0xff]  ;;  %v14335_v21 = vld [vmem:[#allocation22_spill] sm:$0xff] }
 0x22e   : > { %v11237_v4 = vrot.slane %v2818_v40, 1  ;;  %2554 = vst.msk [vmem:[#allocation2 + $0x8c] sm:$0xf] %vm2392_vm9, %v8434_v11  ;;  %v3687_v37 = vsel %vm1327_vm7, %v11169_v54, %v3304_v45  ;;  %v1931_v38 = vadd.f32 %v10752_v9, %v1930_v35  ;;  %v11246_v19 = vcombine.low %v11132_v44, %v2593_v26  ;;  %v2864_v44 = vpop.permute.xlu0 %2863  ;;  %v1935_v49 = vpop.f32.mrb[67].mxu0  ;;  %v14336_v43 = vld [vmem:[#allocation50_spill] sm:$0xff] }
 0x22f   : > { %v3902_v1 = vsel %vm1122_vm3, %v14333_v41, %v3901_v5  ;;  %v11249_v22 = vor.u32 %v3925_v60, %v3922_v20  ;;  %v3935_v40 = vsel %vm1122_vm3, %v3901_v5, %v11231_v2  ;;  %v3237_v54 = vrot.slane %v11235_v27, 6  ;;  %v3436_v26 = vpop.permute.xlu1 %3435  ;;  %2961 = vrot.lane.b32.xlu0 %v11181_v6, %s8990_s12 }
 0x230   : > { %4575 = vmatprep.mubr.bf16.mxu1 %v3902_v1  ;;  %v2821_v45 = vsel %vm580_vm2, %v2816_v15, %v11237_v4  ;;  %v2108_v63 = vadd.f32 %v10405_v14, %v1931_v38  ;;  %v3496_v10 = vrot.slane %v11235_v27, 7  ;;  %v14187_v51 = vshrl.u32 %v11235_v27, 16 }
 0x231   : > { %4576 = vmatmul.mubr.bf16.vlgmr.msra.gmra.mrb[36].mxu1 %v3887_v17  ;;  %v1934_v17 = vadd.f32 %v10752_v9, %v1933_v13  ;;  %v3238_v5 = vsel %vm3209_vm10, %v3235_v53, %v3237_v54  ;;  %v3516_v15 = vsel %vm1290_vm6, %v14334_v55, %v2864_v44  ;;  %v3927_v14 = vsel %vm1122_vm3, %v11115_v42, %v11249_v22 }
 0x232   : > { %4583 = vmatprep.mubr.bf16.mxu1 %v3935_v40  ;;  %v14186_v11 = vshll.u32 %v11235_v27, 16  ;;  %v2154_v20 = vmax.f32 %v2108_v63, 0.0  ;;  %3323 = vrot.lane.b32.xlu1 %v3238_v5, %s8990_s12  ;;  %v3725_v1 = vsel %vm1364_vm8, %v3687_v37, %v3436_v26  ;;  %v3554_v53 = vsel %vm1327_vm7, %v3516_v15, %v2942_v29  ;;  %v2995_v37 = vpop.permute.xlu0 %2994  ;;  %v14337_v26 = vld [vmem:[#allocation54_spill] sm:$0xff] }
 0x233   : > { %v2111_v41 = vadd.f32 %v14335_v21, %v1934_v17  ;;  %v3953_v60 = vshrl.u32 %v3725_v1, 16  ;;  %v3956_v35 = vshll.u32 %v3725_v1, 16  ;;  %v3497_v42 = vsel %vm3470_vm11, %v3494_v28, %v3496_v10  ;;  %v3306_v49 = vpop.permute.xlu1 %3305  ;;  %2883 = vrot.lane.b32.xlu0 %v2821_v45, %s8991_s13 }
 0x234   : > { %v3395_v38 = vrot.slane %v14187_v51, 6  ;;  %v2370_v40 = vmul.f32 %v14336_v43, %v2154_v20  ;;  %v4212_v17 = vshrl.u32 %v3497_v42, 16  ;;  %v4215_v63 = vshll.u32 %v3497_v42, 16 }
 0x235   : > { %v2155_v13 = vmax.f32 %v2111_v41, 0.0  ;;  %v3955_v6 = vrot.slane %v3953_v60, 2  ;;  %v3958_v44 = vrot.slane %v3956_v35, 3  ;;  %v3592_v29 = vsel %vm1364_vm8, %v3554_v53, %v2995_v37  ;;  %v11291_v20 = vld [vmem:[#allocation2 + $0x8c] sm:$0xf]  ;;  %v14338_v41 = vld [vmem:[#allocation24_spill] sm:$0xff] }
 0x236   : > { %v3396_v55 = vrot.slane %v14186_v11, 7  ;;  %v8435_v15 = vpack.c.bf16 %v2370_v40, %v2370_v40  ;;  %3275 = vrot.lane.b32.xlu1 %v3238_v5, %s8991_s13  ;;  %v3945_v21 = vshrl.u32 %v3592_v29, 16  ;;  %v3948_v1 = vshll.u32 %v3592_v29, 16  ;;  %v2944_v29 = vpop.permute.xlu0 %2943  ;;  %v11300_v11 = vld [vmem:[#allocation2 + $0x88] sm:$0xf] }
 0x237   : > { %v2371_v28 = vmul.f32 %v14337_v26, %v2155_v13  ;;  %v3637_v60 = vsel %vm1290_vm6, %v14338_v41, %v3256_v3  ;;  %v11295_v35 = vor.u32 %v3958_v44, %v3955_v6  ;;  %v4214_v53 = vrot.slane %v4212_v17, 2  ;;  %v1938_v51 = vpop.f32.mrb[68].mxu0  ;;  %v11304_v23 = vpop.permute.xlu1 %3257 }
 0x238   : > { %v4217_v42 = vrot.slane %v4215_v63, 3  ;;  %2555 = vst.msk [vmem:[#allocation2 + $0x90] sm:$0xf] %vm2392_vm9, %v8435_v15  ;;  %v3947_v13 = vrot.slane %v3945_v21, 2  ;;  %v3950_v37 = vrot.slane %v3948_v1, 3  ;;  %v11298_v5 = vor.u32 %v3396_v55, %v3395_v38  ;;  %v1940_v44 = vpop.f32.mrb[69].mxu0 }
 0x239   : > { %4584 = vmatmul.mubr.bf16.gmra.mrb[40].mxu1 %v3927_v14  ;;  %v8436_v40 = vpack.c.bf16 %v2371_v28, %v2371_v28  ;;  %v2927_v3 = vrot.slane %v11246_v19, 1  ;;  %v3960_v14 = vsel %vm1122_vm3, %v11231_v2, %v11295_v35  ;;  %v11312_v17 = vcombine.low %v11300_v11, %v11291_v20  ;;  %v1941_v21 = vpop.f32.mrb[70].mxu0  ;;  %v14340_v1 = vld [vmem:[#allocation17_spill] sm:$0xff] }
 0x23a   : > { %v11302_v45 = vor.u32 %v4217_v42, %v4214_v53  ;;  %v11315_v38 = vor.u32 %v3950_v37, %v3947_v13  ;;  %v3398_v63 = vsel %vm3338_vm13, %v11198_v47, %v11298_v5  ;;  %v1939_v6 = vadd.f32 %v10752_v9, %v1938_v51  ;;  %4591 = vmatprep.mubr.bf16.mxu1 %v3960_v14  ;;  %v14341_v13 = vld [vmem:[#allocation15_spill] sm:$0xff]  ;;  %v14342_v44 = vld [vmem:[#allocation21_spill] sm:$0xff] }
 0x23b   : > { %2556 = vst.msk [vmem:[#allocation2 + $0x94] sm:$0xf] %vm2392_vm9, %v8436_v40  ;;  %v2822_v55 = vshrl.u32 %v11135_v7, 16  ;;  %v3689_v2 = vsel %vm1327_vm7, %v3637_v60, %v3306_v49  ;;  %3455 = vrot.lane.b32.xlu1 %v3398_v63, %s8992_s16  ;;  %v14339_v28 = vrot.slane %v11135_v7, 1  ;;  %v3239_v51 = vrot.slane %v11312_v17, 6  ;;  %v1943_v60 = vpop.f32.mrb[71].mxu0  ;;  %v3438_v14 = vpop.permute.xlu1 %3437 }
 0x23c   : > { %v4219_v15 = vsel %vm1122_vm3, %v11214_v48, %v11302_v45  ;;  %v2116_v41 = vadd.f32 %v14340_v1, %v1939_v6  ;;  %v1942_v49 = vadd.f32 %v10752_v9, %v1941_v21  ;;  %v2866_v48 = vpop.permute.xlu0 %2865  ;;  %v3952_v53 = vsel %vm1122_vm3, %v11249_v22, %v11315_v38 }
 0x23d   : > { %v2928_v47 = vsel %vm768_vm1, %v14339_v28, %v2927_v3  ;;  %8708 = vmatprep.mubr.msk.bf16.mxu0 %vm1290_vm6, %v4219_v15  ;;  %v2826_v42 = vshll.u32 %v11246_v19, 16  ;;  %v3240_v40 = vsel %vm3209_vm10, %v3237_v54, %v3239_v51  ;;  %v3518_v37 = vsel %vm1290_vm6, %v14341_v13, %v2866_v48 }
 0x23e   : > { %3014 = vrot.lane.b32.xlu0 %v2928_v47, %s8992_s16  ;;  %v2824_v9 = vor.u32 %v2822_v55, %v11237_v4  ;;  %v14188_v63 = vrot.slane %v11312_v17, 7  ;;  %v2156_v6 = vmax.f32 %v2116_v41, 0.0  ;;  %v2119_v15 = vadd.f32 %v14342_v44, %v1942_v49  ;;  %v14343_v55 = vld [vmem:[#allocation52_spill] sm:$0xff] }
 0x23f   : > { %v3727_v22 = vsel %vm1364_vm8, %v3689_v2, %v3438_v14  ;;  %v3556_v28 = vsel %vm1327_vm7, %v3518_v37, %v2944_v29  ;;  %3325 = vrot.lane.b32.xlu1 %v3240_v40, %s8990_s12  ;;  %v11354_v54 = vrot.slane %v2826_v42, 1  ;;  %v3308_v42 = vpop.permute.xlu1 %3307  ;;  %v14190_v37 = vshrl.u32 %v11312_v17, 16 }
 0x240   : > { %v3978_v21 = vshrl.u32 %v3727_v22, 16  ;;  %v3981_v1 = vshll.u32 %v3727_v22, 16  ;;  %v3499_v4 = vsel %vm3470_vm11, %v3496_v10, %v14188_v63  ;;  %v2372_v41 = vmul.f32 %v14343_v55, %v2156_v6  ;;  %v2997_v2 = vpop.permute.xlu0 %2996 }
 0x241   : > { %4592 = vmatmul.mubr.bf16.gmra.mrb[44].mxu1 %v3952_v53  ;;  %v2157_v49 = vmax.f32 %v2119_v15, 0.0  ;;  %v4237_v29 = vshrl.u32 %v3499_v4, 16  ;;  %v4240_v48 = vshll.u32 %v3499_v4, 16  ;;  %v3594_v53 = vsel %vm1364_vm8, %v3556_v28, %v2997_v2 }
 0x242   : > { %2963 = vrot.lane.b32.xlu0 %v2928_v47, %s8990_s12  ;;  %v3980_v60 = vrot.slane %v3978_v21, 2  ;;  %v3983_v13 = vrot.slane %v3981_v1, 3  ;;  %v8437_v14 = vpack.c.bf16 %v2372_v41, %v2372_v41  ;;  %v3970_v22 = vshrl.u32 %v3594_v53, 16  ;;  %v11371_v21 = vld [vmem:[#allocation2 + $0x94] sm:$0xf] }
 0x243   : > { %v2373_v44 = vmul.f32 %v10946_v34, %v2157_v49  ;;  %v3973_v10 = vshll.u32 %v3594_v53, 16  ;;  %3277 = vrot.lane.b32.xlu1 %v3240_v40, %s8991_s13  ;;  %v2829_v47 = vsel %vm580_vm2, %v2824_v9, %v11354_v54  ;;  %v4239_v6 = vrot.slane %v4237_v29, 2  ;;  %v11380_v9 = vpop.permute.xlu1 %3259 }
 0x244   : > { %v11366_v63 = vor.u32 %v3983_v13, %v3980_v60  ;;  %v4242_v15 = vrot.slane %v4240_v48, 3  ;;  %2557 = vst.msk [vmem:[#allocation2 + $0x98] sm:$0xf] %vm2392_vm9, %v8437_v14  ;;  %v3972_v1 = vrot.slane %v3970_v22, 2  ;;  %v14189_v41 = vshll.u32 %v11312_v17, 16  ;;  %v2946_v49 = vpop.permute.xlu0 %2945 }
 0x245   : > { %v8438_v28 = vpack.c.bf16 %v2373_v44, %v2373_v44  ;;  %v3975_v4 = vrot.slane %v3973_v10, 3  ;;  %v3399_v40 = vrot.slane %v14190_v37, 6  ;;  %v11384_v29 = vcombine.low %v11217_v33, %v11300_v11  ;;  %v2597_v60 = vld [vmem:[#allocation2 + $0x90] sm:$0xf]  ;;  %v11397_v44 = vld [vmem:[#allocation2 + $0xa0] sm:$0xff]  }
 0x246   : > { %2885 = vrot.lane.b32.xlu0 %v2829_v47, %s8991_s13  ;;  %v11376_v2 = vor.u32 %v4242_v15, %v4239_v6  ;;  %v3985_v48 = vsel %vm1122_vm3, %v11295_v35, %v11366_v63  ;;  %v3400_v53 = vrot.slane %v14189_v41, 7  ;;  %v11395_v14 = vcombine.low %v2597_v60, %v11371_v21  ;;  %v14344_v11 = vld [vmem:[#allocation29_spill] sm:$0xff] }
 0x247   : > { %2558 = vst.msk [vmem:[#allocation2 + $0x9c] sm:$0xf] %vm2392_vm9, %v8438_v28  ;;  %v11390_v13 = vor.u32 %v3975_v4, %v3972_v1  ;;  %4599 = vmatprep.mubr.bf16.mxu1 %v3985_v48  ;;  %v3640_v35 = vsel %vm1290_vm6, %v14344_v11, %v11304_v23  ;;  %v14191_v10 = vrot.slane %v11384_v29, 1  ;;  %v2834_v47 = vshll.u32 %v11384_v29, 16  ;;  %v14345_v48 = vld [vmem:[#allocation19_spill] sm:$0xff] }
 0x248   : > { %v4244_v22 = vsel %vm1122_vm3, %v11302_v45, %v11376_v2  ;;  %v11409_v6 = vor.u32 %v3400_v53, %v3399_v40  ;;  %v14193_v15 = vrot.slane %v11395_v14, 6  ;;  %v2868_v28 = vpop.permute.xlu0 %2867  ;;  %v14192_v23 = vrot.slane %v11395_v14, 7  ;;  %v3440_v53 = vpop.permute.xlu1 %3439 }
 0x249   : > { %8709 = vmatmul.mubr.msk.bf16.gmra.mrb[96].mxu0 %vm1290_vm6, %v4244_v22  ;;  %v3977_v1 = vsel %vm1122_vm3, %v11315_v38, %v11390_v13  ;;  %v3691_v4 = vsel %vm1327_vm7, %v3640_v35, %v3308_v42  ;;  %v2930_v45 = vsel %vm768_vm1, %v2927_v3, %v14191_v10  ;;  %v3520_v40 = vsel %vm1290_vm6, %v14345_v48, %v2868_v28 }
 0x24a   : > { %4600 = vmatmul.mubr.bf16.gmra.mrb[48].mxu1 %v3977_v1  ;;  %v2830_v11 = vshrl.u32 %v11246_v19, 16  ;;  %v3402_v38 = vsel %vm3338_vm13, %v11298_v5, %v11409_v6  ;;  %3016 = vrot.lane.b32.xlu0 %v2930_v45, %s8992_s16  ;;  %v3242_v42 = vsel %vm3209_vm10, %v3239_v51, %v14193_v15  ;;  %v3729_v3 = vsel %vm1364_vm8, %v3691_v4, %v3440_v53 }
 0x24b   : > { %v11435_v35 = vrot.slane %v2834_v47, 1  ;;  %3457 = vrot.lane.b32.xlu1 %v3402_v38, %s8992_s16  ;;  %v4003_v22 = vshrl.u32 %v3729_v3, 16  ;;  %v4006_v28 = vshll.u32 %v3729_v3, 16  ;;  %v3558_v1 = vsel %vm1327_vm7, %v3520_v40, %v2946_v49 }
 0x24c   : > { %v14346_v5 = vrot.slane %v11312_v17, 7  ;;  %v2999_v41 = vpop.permute.xlu0 %2998  ;;  %v14195_v51 = vshrl.u32 %v11395_v14, 16  ;;  %v14194_v47 = vshll.u32 %v11395_v14, 16  ;;  %v3310_v3 = vpop.permute.xlu1 %3309  ;;  %v11448_v49 = vcombine.low %v11291_v20, %v2597_v60  ;;  %v11461_v60 = vld [vmem:[#allocation2 + $0x98] sm:$0xf] }
 0x24d   : > { %v4005_v4 = vrot.slane %v4003_v22, 2  ;;  %v4008_v53 = vrot.slane %v4006_v28, 3  ;;  %v3596_v38 = vsel %vm1364_vm8, %v3558_v1, %v2999_v41  ;;  %v14354_v34 = vrot.slane %v11395_v14, 7 }
 0x24e   : > { %v3501_v48 = vsel %vm3470_vm11, %v14346_v5, %v14192_v23  ;;  %v11450_v40 = vld [vmem:[#allocation2 + $0x9c] sm:$0xf]  ;;  %2965 = vrot.lane.b32.xlu0 %v2930_v45, %s8990_s12  ;;  %v3995_v5 = vshrl.u32 %v3596_v38, 16  ;;  %v3998_v23 = vshll.u32 %v3596_v38, 16  ;;  %v3403_v41 = vrot.slane %v14195_v51, 6 }
 0x24f   : > { %v4262_v37 = vshrl.u32 %v3501_v48, 16  ;;  %v4265_v10 = vshll.u32 %v3501_v48, 16  ;;  %v2832_v48 = vor.u32 %v2830_v11, %v11354_v54  ;;  %3327 = vrot.lane.b32.xlu1 %v3242_v42, %s8990_s12  ;;  %v11455_v33 = vor.u32 %v4008_v53, %v4005_v4 }
 0x250   : > { %v3404_v20 = vrot.slane %v14194_v47, 7  ;;  %v3997_v28 = vrot.slane %v3995_v5, 2  ;;  %v4000_v45 = vrot.slane %v3998_v23, 3  ;;  %v2948_v54 = vpop.permute.xlu0 %2947  ;;  %v11473_v4 = vpop.permute.xlu1 %3261  ;;  %v11476_v53 = vrot.slane %v11448_v49, 1 }
 0x251   : > { %v4264_v15 = vrot.slane %v4262_v37, 2  ;;  %v4267_v22 = vrot.slane %v4265_v10, 3  ;;  %v2837_v1 = vsel %vm580_vm2, %v2832_v48, %v11435_v35  ;;  %v11467_v37 = vcombine.low %v11461_v60, %v11450_v40 }
 0x252   : > { %v11471_v10 = vor.u32 %v3404_v20, %v3403_v41  ;;  %v4010_v23 = vsel %vm1122_vm3, %v11366_v63, %v11455_v33  ;;  %v11481_v38 = vor.u32 %v4000_v45, %v3997_v28  ;;  %2887 = vrot.lane.b32.xlu0 %v2837_v1, %s8991_s13  ;;  %v14349_v20 = vld [vmem:[#allocation35_spill] sm:$0xff]  ;;  %v2842_v45 = vshll.u32 %v11448_v49, 16 }
 0x253   : > { %v11469_v11 = vor.u32 %v4267_v22, %v4264_v15  ;;  %4607 = vmatprep.mubr.bf16.mxu1 %v4010_v23  ;;  %v11485_v5 = vrot.slane %v11467_v37, 6  ;;  %v14347_v15 = vshrl.u32 %v10797_v16, 16  ;;  %v14348_v22 = vshll.u32 %v11397_v44, 16  ;;  %3279 = vrot.lane.b32.xlu1 %v3242_v42, %s8991_s13 }
 0x254   : > { %v3643_v63 = vsel %vm1290_vm6, %v14349_v20, %v11380_v9  ;;  %v14350_v1 = vshrl.u32 %v10978_v57, 16  ;;  %v4002_v9 = vsel %vm1122_vm3, %v11390_v13, %v11481_v38  ;;  %v2838_v42 = vshrl.u32 %v11384_v29, 16  ;;  %v3442_v47 = vpop.permute.xlu1 %3441 }
 0x255   : > { %v11489_v48 = vrot.slane %v14347_v15, 6  ;;  %v11493_v41 = vrot.slane %v14348_v22, 7  ;;  %v4269_v28 = vsel %vm1122_vm3, %v11376_v2, %v11469_v11  ;;  %v3693_v44 = vsel %vm1327_vm7, %v3643_v63, %v3310_v3  ;;  %v2870_v15 = vpop.permute.xlu0 %2869  ;;  %4608 = vmatmul.mubr.bf16.gmra.mrb[52].mxu1 %v4002_v9 }
 0x256   : > { %v11505_v23 = vrot.slane %v14350_v1, 5  ;;  %8712 = vmatprep.mubr.msk.bf16.mxu0 %vm1290_vm6, %v4269_v28  ;;  %v3502_v22 = vrot.slane %v11467_v37, 7  ;;  %v3406_v2 = vsel %vm3338_vm13, %v11409_v6, %v11471_v10  ;;  %v14351_v20 = vrot.slane %v11384_v29, 1  ;;  %v14353_v1 = vld [vmem:[#allocation26_spill] sm:$0xff] }
 0x257   : > { %v14352_v63 = vrot.slane %v11395_v14, 6  ;;  %v3522_v13 = vsel %vm1290_vm6, %v14353_v1, %v2870_v15  ;;  %v3731_v51 = vsel %vm1364_vm8, %v3693_v44, %v3442_v47  ;;  %v2844_v6 = vrot.slane %v2842_v45, 1  ;;  %3459 = vrot.lane.b32.xlu1 %v3406_v2, %s8992_s16 }
 0x258   : > { %v2932_v3 = vsel %vm768_vm1, %v14351_v20, %v11476_v53  ;;  %v3503_v55 = vsel %vm3470_vm11, %v14354_v34, %v3502_v22  ;;  %v14355_v20 = vrot.slane %v10797_v16, 7  ;;  %v4031_v43 = vshll.u32 %v3731_v51, 16  ;;  %v3312_v12 = vpop.permute.xlu1 %3311 }
 0x259   : > { %v3244_v28 = vsel %vm3209_vm10, %v14352_v63, %v11485_v5  ;;  %3018 = vrot.lane.b32.xlu0 %v2932_v3, %s8992_s16  ;;  %v4028_v63 = vshrl.u32 %v3731_v51, 16  ;;  %v4287_v15 = vshrl.u32 %v3503_v55, 16  ;;  %v8196_v9 = vcombine.low %v11371_v21, %v11371_v21  ;;  %v3001_v47 = vpop.permute.xlu0 %3000 }
 0x25a   : > { %v3505_v26 = vsel %vm3470_vm11, %v3502_v22, %v14355_v20  ;;  %v3560_v1 = vsel %vm1327_vm7, %v3522_v13, %v2948_v54  ;;  %v4290_v45 = vshll.u32 %v3503_v55, 16  ;;  %v4033_v34 = vrot.slane %v4031_v43, 3  ;;  %v11546_v43 = vld [vmem:[#allocation2 + $0x94] ss:$0 sps:$4 sm:$0x77]  }
 0x25b   : > { %v4312_v44 = vshrl.u32 %v3505_v26, 16  ;;  %v4315_v8 = vshll.u32 %v3505_v26, 16  ;;  %v4030_v36 = vrot.slane %v4028_v63, 2  ;;  %v3598_v61 = vsel %vm1364_vm8, %v3560_v1, %v3001_v47  ;;  %3329 = vrot.lane.b32.xlu1 %v3244_v28, %s8990_s12 }
 0x25c   : > { %v4289_v22 = vrot.slane %v4287_v15, 2  ;;  %v4020_v2 = vshrl.u32 %v3598_v61, 16  ;;  %v4023_v51 = vshll.u32 %v3598_v61, 16  ;;  %v4292_v20 = vrot.slane %v4290_v45, 3  ;;  %v11550_v62 = vpop.permute.xlu1 %3263 }
 0x25d   : > { %2967 = vrot.lane.b32.xlu0 %v2932_v3, %s8990_s12  ;;  %v11543_v54 = vor.u32 %v4033_v34, %v4030_v36  ;;  %v2840_v55 = vor.u32 %v2838_v42, %v11435_v35  ;;  %v4314_v26 = vrot.slane %v4312_v44, 2  ;;  %v4317_v13 = vrot.slane %v4315_v8, 3  ;;  %v2950_v47 = vpop.permute.xlu0 %2949 }
 0x25e   : > { %v4022_v63 = vrot.slane %v4020_v2, 2  ;;  %v4025_v1 = vrot.slane %v4023_v51, 3  ;;  %v4293_v15 = vor.u32 %v4292_v20, %v4289_v22  ;;  %v3201_v3 = vshll.u32 %v11467_v37, 16  ;;  %v14357_v22 = vld [vmem:[#allocation41_spill] sm:$0xff] }
 0x25f   : > { %v2845_v61 = vsel %vm580_vm2, %v2840_v55, %v2844_v6  ;;  %v4318_v45 = vor.u32 %v4317_v13, %v4314_v26  ;;  %v11552_v56 = vrot.slane %v8196_v9, 1  ;;  %v4035_v36 = vsel %vm1122_vm3, %v11455_v33, %v11543_v54  ;;  %v11566_v9 = vld [vmem:[#allocation2 + $0xa8] ss:$0 sps:$4 sm:$0x11]   ;;  %3281 = vrot.lane.b32.xlu1 %v3244_v28, %s8991_s13 }
 0x260   : > { %v11557_v8 = vor.u32 %v4025_v1, %v4022_v63  ;;  %v4294_v35 = vsel %vm1122_vm3, %v11469_v11, %v4293_v15  ;;  %4615 = vmatprep.mubr.bf16.mxu1 %v4035_v36  ;;  %v14356_v42 = vshrl.u32 %v11467_v37, 16  ;;  %v3408_v34 = vrot.slane %v3201_v3, 7  ;;  %v14359_v1 = vld [vmem:[#allocation32_spill] sm:$0xff] }
 0x261   : > { %2889 = vrot.lane.b32.xlu0 %v2845_v61, %s8991_s13  ;;  %v3646_v33 = vsel %vm1290_vm6, %v14357_v22, %v11473_v4  ;;  %8713 = vmatmul.mubr.msk.bf16.gmra.mrb[100].mxu0 %vm1290_vm6, %v4294_v35  ;;  %v4319_v2 = vsel %vm1122_vm3, %v4293_v15, %v4318_v45  ;;  %v2846_v11 = vshrl.u32 %v11448_v49, 16  ;;  %v2850_v51 = vshll.u32 %v11546_v43, 16  ;;  %v2872_v55 = vpop.permute.xlu0 %2871  ;;  %v3444_v15 = vpop.permute.xlu1 %3443 }
 0x262   : > { %v3407_v44 = vrot.slane %v14356_v42, 6  ;;  %v3695_v20 = vsel %vm1327_vm7, %v3646_v33, %v3312_v12  ;;  %8716 = vmatprep.mubr.msk.bf16.mxu0 %vm1290_vm6, %v4319_v2  ;;  %v4027_v26 = vsel %vm1122_vm3, %v11481_v38, %v11557_v8  ;;  %v8198_v4 = vcombine.low %v11371_v21, %v11461_v60 }
 0x263   : > { %v14358_v28 = vshll.u32 %v10978_v57, 16  ;;  %v2934_v63 = vsel %vm768_vm1, %v11476_v53, %v11552_v56  ;;  %v3524_v12 = vsel %vm1290_vm6, %v14359_v1, %v2872_v55  ;;  %4616 = vmatmul.mubr.bf16.gmra.mrb[56].mxu1 %v4027_v26  ;;  %v2848_v61 = vor.u32 %v2846_v11, %v2844_v6 }
 0x264   : > { %v11590_v36 = vrot.slane %v2850_v51, 1  ;;  %v14360_v38 = vrot.slane %v10797_v16, 6  ;;  %v3409_v57 = vor.u32 %v3408_v34, %v3407_v44  ;;  %v3733_v60 = vsel %vm1364_vm8, %v3695_v20, %v3444_v15 }
 0x265   : > { %v3149_v13 = vrot.slane %v14358_v28, 6  ;;  %2969 = vrot.lane.b32.xlu0 %v2934_v63, %s8990_s12  ;;  %v3295_v35 = vrot.slane %v11566_v9, 6  ;;  %v4053_v42 = vshrl.u32 %v3733_v60, 16  ;;  %v4056_v22 = vshll.u32 %v3733_v60, 16  ;;  %v3003_v11 = vpop.permute.xlu0 %3002  ;;  %v3314_v63 = vpop.permute.xlu1 %3313 }
 0x266   : > { %v3294_v21 = vsel %vm3209_vm10, %v11485_v5, %v14360_v38  ;;  %v3421_v6 = vshrl.u32 %v11566_v9, 16  ;;  %v3424_v33 = vshll.u32 %v11566_v9, 16  ;;  %v3562_v2 = vsel %vm1327_vm7, %v3524_v12, %v2950_v47 }
 0x267   : > { %3331 = vrot.lane.b32.xlu1 %v3294_v21, %s8990_s12  ;;  %v2984_v51 = vrot.slane %v8198_v4, 1  ;;  %v8199_v55 = vcombine.low %v11450_v40, %v11450_v40  ;;  %v11606_v44 = vor.u32 %v3149_v13, %v11505_v23  ;;  %v4055_v34 = vrot.slane %v4053_v42, 2 }
 0x268   : > { %v4058_v20 = vrot.slane %v4056_v22, 3  ;;  %v2853_v26 = vsel %vm580_vm2, %v2848_v61, %v11590_v36  ;;  %v3600_v28 = vsel %vm1364_vm8, %v3562_v2, %v3003_v11  ;;  %v3410_v1 = vsel %vm3338_vm13, %v11471_v10, %v3409_v57 }
 0x269   : > { %2891 = vrot.lane.b32.xlu0 %v2853_v26, %s8991_s13  ;;  %v14361_v47 = vor.u32 %v10921_v32, %v10919_v46  ;;  %v4045_v23 = vshrl.u32 %v3600_v28, 16  ;;  %v4048_v4 = vshll.u32 %v3600_v28, 16  ;;  %v3418_v12 = vor.u32 %v11493_v41, %v11489_v48  ;;  %v2952_v61 = vpop.permute.xlu0 %2951  ;;  %v11633_v60 = vpop.permute.xlu1 %3265 }
 0x26a   : > { %v11619_v13 = vor.u32 %v4058_v20, %v4055_v34  ;;  %v3423_v15 = vrot.slane %v3421_v6, 6  ;;  %v11627_v10 = vsel %vm3044_vm12, %v10970_v39, %v11606_v44  ;;  %v14362_v38 = vshrl.u32 %v11235_v27, 16 }
 0x26b   : > { %v4344_v40 = vsel %vm1122_vm3, %v4318_v45, %v14361_v47  ;;  %3461 = vrot.lane.b32.xlu1 %v3410_v1, %s8992_s16  ;;  %v4047_v46 = vrot.slane %v4045_v23, 2  ;;  %v4050_v32 = vrot.slane %v4048_v4, 3  ;;  %v2985_v45 = vsel %vm768_vm1, %v11476_v53, %v2984_v51 }
 0x26c   : > { %8717 = vmatmul.mubr.msk.bf16.gmra.mrb[104].mxu0 %vm1290_vm6, %v4344_v40  ;;  %v3173_v21 = vrot.slane %v14362_v38, 5  ;;  %v11635_v42 = vrot.slane %v8199_v55, 1  ;;  %v4060_v48 = vsel %vm1122_vm3, %v11543_v54, %v11619_v13  ;;  %v14363_v39 = vshll.u32 %v11235_v27, 16  ;;  %v14367_v54 = vld [vmem:[#allocation47_spill] sm:$0xff] }
 0x26d   : > { %v14364_v22 = vshrl.u32 %v11312_v17, 16  ;;  %v14365_v53 = vrot.slane %v11029_v59, 6  ;;  %v4051_v11 = vor.u32 %v4050_v32, %v4047_v46  ;;  %3020 = vrot.lane.b32.xlu0 %v2985_v45, %s8992_s16  ;;  %4623 = vmatprep.mubr.bf16.mxu1 %v4060_v48  ;;  %v3426_v55 = vrot.slane %v3424_v33, 7  ;;  %v2874_v33 = vpop.permute.xlu0 %2873  ;;  %v14371_v46 = vld [vmem:[#allocation38_spill] sm:$0xff]  ;;  %v3446_v45 = vpop.permute.xlu1 %3445 }
 0x26e   : > { %v3176_v41 = vrot.slane %v14363_v39, 6  ;;  %v14366_v34 = vshll.u32 %v11312_v17, 16  ;;  %v3649_v27 = vsel %vm1290_vm6, %v14367_v54, %v11550_v62  ;;  %v14368_v59 = vshrl.u32 %v11395_v14, 16 }
 0x26f   : > { %v3182_v6 = vrot.slane %v14364_v22, 5  ;;  %v3246_v2 = vsel %vm3209_vm10, %v11485_v5, %v14365_v53  ;;  %v14369_v5 = vshll.u32 %v11395_v14, 16  ;;  %v3697_v47 = vsel %vm1327_vm7, %v3649_v27, %v3314_v63 }
 0x270   : > { %v3185_v20 = vrot.slane %v14366_v34, 6  ;;  %3283 = vrot.lane.b32.xlu1 %v3246_v2, %s8991_s13  ;;  %v11655_v26 = vor.u32 %v3176_v41, %v3173_v21  ;;  %v3191_v28 = vrot.slane %v14368_v59, 5  ;;  %v4052_v17 = vsel %vm1122_vm3, %v11557_v8, %v4051_v11 }
 0x271   : > { %v3194_v1 = vrot.slane %v14369_v5, 6  ;;  %v14370_v23 = vshrl.u32 %v11467_v37, 16  ;;  %v2987_v4 = vsel %vm768_vm1, %v2984_v51, %v11635_v42  ;;  %v3526_v32 = vsel %vm1290_vm6, %v14371_v46, %v2874_v33  ;;  %4624 = vmatmul.mubr.bf16.gmra.mrb[60].mxu1 %v4052_v17  ;;  %v3005_v2 = vpop.permute.xlu0 %3004  ;;  %v3316_v27 = vpop.permute.xlu1 %3315 }
 0x272   : > { %v3186_v40 = vor.u32 %v3185_v20, %v3182_v6  ;;  %v3203_v63 = vrot.slane %v3201_v3, 6  ;;  %v3419_v38 = vsel %vm3338_vm13, %v3409_v57, %v3418_v12  ;;  %3022 = vrot.lane.b32.xlu0 %v2987_v4, %s8992_s16  ;;  %v3735_v8 = vsel %vm1364_vm8, %v3697_v47, %v3446_v45  ;;  %v14373_v47 = vld [vmem:[#allocation53_spill] sm:$0xff] }
 0x273   : > { %v3200_v62 = vrot.slane %v14370_v23, 5  ;;  %v3195_v14 = vor.u32 %v3194_v1, %v3191_v28  ;;  %v2854_v21 = vshrl.u32 %v11546_v43, 16  ;;  %v4078_v48 = vshrl.u32 %v3735_v8, 16  ;;  %v14374_v23 = vld [vmem:[#allocation44_spill] sm:$0xff] }
 0x274   : > { %v11678_v51 = vsel %vm3044_vm12, %v11655_v26, %v3186_v40  ;;  %3463 = vrot.lane.b32.xlu1 %v3419_v38, %s8992_s16  ;;  %v4081_v39 = vshll.u32 %v3735_v8, 16  ;;  %v14372_v3 = vrot.slane %v10797_v16, 6  ;;  %v3427_v6 = vor.u32 %v3426_v55, %v3423_v15 }
 0x275   : > { %v11682_v41 = vsel %vm3044_vm12, %v3186_v40, %v3195_v14  ;;  %v11684_v37 = vor.u32 %v3203_v63, %v3200_v62  ;;  %v2856_v22 = vor.u32 %v2854_v21, %v11590_v36  ;;  %v3564_v53 = vsel %vm1327_vm7, %v3526_v32, %v2952_v61  ;;  %v2954_v55 = vpop.permute.xlu0 %2953  ;;  %v3268_v28 = vpop.permute.xlu1 %3267 }
 0x276   : > { %v3296_v57 = vsel %vm3209_vm10, %v14372_v3, %v3295_v35  ;;  %v4080_v34 = vrot.slane %v4078_v48, 2  ;;  %v4083_v20 = vrot.slane %v4081_v39, 3  ;;  %v3602_v54 = vsel %vm1364_vm8, %v3564_v53, %v3005_v2 }
 0x277   : > { %v11696_v59 = vsel %vm3044_vm12, %v3195_v14, %v11684_v37  ;;  %2893 = vrot.lane.b32.xlu0 %v2856_v22, %s8991_s13  ;;  %v4070_v16 = vshrl.u32 %v3602_v54, 16  ;;  %v4073_v9 = vshll.u32 %v3602_v54, 16  ;;  %v3428_v35 = vsel %vm3338_vm13, %v3418_v12, %v3427_v6 }
 0x278   : > { %3333 = vrot.lane.b32.xlu1 %v3296_v57, %s8990_s12  ;;  %v4084_v36 = vor.u32 %v4083_v20, %v4080_v34  ;;  %v3652_v33 = vsel %vm1290_vm6, %v14373_v47, %v11633_v60  ;;  %v3655_v6 = vsel %vm1290_vm6, %v10988_v31, %v3268_v28 }
 0x279   : > { %v4072_v15 = vrot.slane %v4070_v16, 2  ;;  %v4075_v61 = vrot.slane %v4073_v9, 3  ;;  %v2876_v17 = vpop.permute.xlu0 %2875  ;;  %v3699_v40 = vsel %vm1327_vm7, %v3652_v33, %v3316_v27 }
 0x27a   : > { %v4085_v5 = vsel %vm1122_vm3, %v11619_v13, %v4084_v36  ;;  %v3528_v62 = vsel %vm1290_vm6, %v14374_v23, %v2876_v17  ;;  %v3448_v13 = vpop.permute.xlu1 %3447 }
 0x27b   : > { %v4076_v1 = vor.u32 %v4075_v61, %v4072_v15  ;;  %2971 = vrot.lane.b32.xlu0 %v11552_v56, %s8990_s12  ;;  %4631 = vmatprep.mubr.bf16.mxu1 %v4085_v5  ;;  %v3737_v56 = vsel %vm1364_vm8, %v3699_v40, %v3448_v13  ;;  %v3566_v32 = vsel %vm1327_vm7, %v3528_v62, %v2954_v55 }
 0x27c   : > { %3465 = vrot.lane.b32.xlu1 %v3428_v35, %s8992_s16  ;;  %v4103_v4 = vshrl.u32 %v3737_v56, 16  ;;  %v4106_v46 = vshll.u32 %v3737_v56, 16 }
 0x27d   : > { %v4077_v12 = vsel %vm1122_vm3, %v4051_v11, %v4076_v1  ;;  %v3007_v60 = vpop.permute.xlu0 %3006 }
 0x27e   : > { %4632 = vmatmul.mubr.bf16.gmra.mrb[64].mxu1 %v4077_v12  ;;  %v4105_v45 = vrot.slane %v4103_v4, 2  ;;  %v4108_v14 = vrot.slane %v4106_v46, 3  ;;  %v3604_v11 = vsel %vm1364_vm8, %v3566_v32, %v3007_v60  ;;  %v3318_v63 = vpop.permute.xlu1 %3317 }
 0x27f   : > { %3024 = vrot.lane.b32.xlu0 %v11635_v42, %s8992_s16  ;;  %v4095_v38 = vshrl.u32 %v3604_v11, 16  ;;  %v4098_v8 = vshll.u32 %v3604_v11, 16  ;;  %v3701_v34 = vsel %vm1327_vm7, %v3655_v6, %v3318_v63  ;;  %v14375_v11 = vshrl.u32 %v11076_v24, 16 }
 0x280   : > { %v4109_v21 = vor.u32 %v4108_v14, %v4105_v45 }
 0x281   : > { %v4097_v48 = vrot.slane %v4095_v38, 2  ;;  %v4100_v39 = vrot.slane %v4098_v8, 3  ;;  %v2956_v3 = vpop.permute.xlu0 %2955  ;;  %v3155_v63 = vrot.slane %v14375_v11, 5  ;;  %v14376_v8 = vshll.u32 %v11076_v24, 16 }
 0x282   : > { %v3270_v57 = vpop.permute.xlu1 %3269  ;;  %v4110_v42 = vsel %vm1122_vm3, %v4084_v36, %v4109_v21  ;;  %v14378_v11 = vshll.u32 %v11141_v0, 16 }
 0x283   : > { %v4101_v22 = vor.u32 %v4100_v39, %v4097_v48  ;;  %4639 = vmatprep.mubr.bf16.mxu1 %v4110_v42  ;;  %v3658_v32 = vsel %vm1290_vm6, %v11627_v10, %v3270_v57 }
 0x284   : > { %v11725_v54 = vpop.f32.mrb[72].mxu0 }
 0x285   : > { %v2878_v53 = vpop.permute.xlu0 %2877  ;;  %v4102_v2 = vsel %vm1122_vm3, %v4076_v1, %v4101_v22  ;;  %v11728_v9 = vpop.f32.mrb[73].mxu0 }
 0x286   : > { %v3530_v20 = vsel %vm1290_vm6, %v10847_v50, %v2878_v53  ;;  %4640 = vmatmul.mubr.bf16.gmra.mrb[68].mxu1 %v4102_v2  ;;  %v3450_v27 = vpop.permute.xlu1 %3449  ;;  %v11730_v15 = vpop.f32.mrb[74].mxu0 }
 0x287   : > { %v3739_v16 = vsel %vm1364_vm8, %v3701_v34, %v3450_v27  ;;  %v3568_v31 = vsel %vm1327_vm7, %v3530_v20, %v2956_v3  ;;  %v11733_v55 = vpop.f32.mrb[75].mxu0 }
 0x288   : > { %v4128_v36 = vshrl.u32 %v3739_v16, 16  ;;  %v4131_v35 = vshll.u32 %v3739_v16, 16 }
 0x289   : > { %v3009_v61 = vpop.permute.xlu0 %3008 }
 0x28a   : > { %v4130_v28 = vrot.slane %v4128_v36, 2  ;;  %v4133_v5 = vrot.slane %v4131_v35, 3  ;;  %v3606_v50 = vsel %vm1364_vm8, %v3568_v31, %v3009_v61 }
 0x28b   : > { %v4120_v1 = vshrl.u32 %v3606_v50, 16  ;;  %v4123_v47 = vshll.u32 %v3606_v50, 16  ;;  %v3320_v33 = vpop.permute.xlu1 %3319 }
 0x28c   : > { %v4134_v17 = vor.u32 %v4133_v5, %v4130_v28  ;;  %v3703_v45 = vsel %vm1327_vm7, %v3658_v32, %v3320_v33 }
 0x28d   : > { %v4122_v12 = vrot.slane %v4120_v1, 2  ;;  %v4125_v40 = vrot.slane %v4123_v47, 3  ;;  %v2958_v23 = vpop.permute.xlu0 %2957 }
 0x28e   : > { %v4135_v62 = vsel %vm1122_vm3, %v4109_v21, %v4134_v17  ;;  %v3158_v21 = vrot.slane %v14376_v8, 6 }
 0x28f   : > { %v4126_v13 = vor.u32 %v4125_v40, %v4122_v12  ;;  %v3272_v56 = vpop.permute.xlu1 %3271  ;;  %4647 = vmatprep.mubr.bf16.mxu1 %v4135_v62 }
 0x290   : > { %v3159_v2 = vor.u32 %v3158_v21, %v3155_v63  ;;  %v3167_v63 = vrot.slane %v14378_v11, 6 }
 0x291   : > { %v2880_v4 = vpop.permute.xlu0 %2879  ;;  %v4127_v46 = vsel %vm1122_vm3, %v4101_v22, %v4126_v13 }
 0x292   : > { %v3532_v60 = vsel %vm1290_vm6, %v10904_v58, %v2880_v4  ;;  %4648 = vmatmul.mubr.bf16.gmra.mrb[72].mxu1 %v4127_v46  ;;  %v3160_v31 = vsel %vm3044_vm12, %v11606_v44, %v3159_v2 }
 0x293   : > { %v3452_v14 = vpop.permute.xlu1 %3451  ;;  %v3570_v3 = vsel %vm1327_vm7, %v3532_v60, %v2958_v23  ;;  %v3661_v5 = vsel %vm1290_vm6, %v3160_v31, %v3272_v56 }
 0x294   : > { %v3741_v38 = vsel %vm1364_vm8, %v3703_v45, %v3452_v14  ;;  %v14377_v45 = vshrl.u32 %v11141_v0, 16 }
 0x295   : > { %v4153_v48 = vshrl.u32 %v3741_v38, 16  ;;  %v4156_v39 = vshll.u32 %v3741_v38, 16  ;;  %v3011_v10 = vpop.permute.xlu0 %3010 }
 0x296   : > { %v3608_v57 = vsel %vm1364_vm8, %v3570_v3, %v3011_v10  ;;  %v3164_v14 = vrot.slane %v14377_v45, 5 }
 0x297   : > { %v4155_v58 = vrot.slane %v4153_v48, 2  ;;  %v4158_v42 = vrot.slane %v4156_v39, 3  ;;  %v4145_v22 = vshrl.u32 %v3608_v57, 16  ;;  %v4148_v6 = vshll.u32 %v3608_v57, 16  ;;  %v3322_v53 = vpop.permute.xlu1 %3321 }
 0x298   : > { %v3705_v47 = vsel %vm1327_vm7, %v3661_v5, %v3322_v53  ;;  %v3168_v57 = vor.u32 %v3167_v63, %v3164_v14 }
 0x299   : > { %v4159_v34 = vor.u32 %v4158_v42, %v4155_v58  ;;  %v4147_v20 = vrot.slane %v4145_v22, 2  ;;  %v4150_v27 = vrot.slane %v4148_v6, 3  ;;  %v2960_v16 = vpop.permute.xlu0 %2959 }
 0x29a   : > { %v3169_v6 = vsel %vm3044_vm12, %v3159_v2, %v3168_v57  ;;  %v3178_v14 = vsel %vm3044_vm12, %v3168_v57, %v11655_v26 }
 0x29b   : > { %v4151_v36 = vor.u32 %v4150_v27, %v4147_v20  ;;  %v3274_v24 = vpop.permute.xlu1 %3273  ;;  %v4160_v35 = vsel %vm1122_vm3, %v4134_v17, %v4159_v34 }
 0x29c   : > { %4655 = vmatprep.mubr.bf16.mxu1 %v4160_v35  ;;  %v11757_v1 = vpop.f32.mrb[76].mxu0  ;;  %v3664_v53 = vsel %vm1290_vm6, %v3169_v6, %v3274_v24 }
 0x29d   : > { %v2882_v61 = vpop.permute.xlu0 %2881  ;;  %v4152_v28 = vsel %vm1122_vm3, %v4126_v13, %v4151_v36  ;;  %v11760_v12 = vpop.f32.mrb[77].mxu0 }
 0x29e   : > { %v3534_v50 = vsel %vm1290_vm6, %v10956_v18, %v2882_v61  ;;  %4656 = vmatmul.mubr.bf16.gmra.mrb[76].mxu1 %v4152_v28  ;;  %v11763_v40 = vpop.f32.mrb[78].mxu0 }
 0x29f   : > { %v3454_v33 = vpop.permute.xlu1 %3453  ;;  %v3572_v62 = vsel %vm1327_vm7, %v3534_v50, %v2960_v16  ;;  %v11766_v56 = vpop.f32.mrb[79].mxu0 }
 0x2a0   : > { %v3743_v17 = vsel %vm1364_vm8, %v3705_v47, %v3454_v33 }
 0x2a1   : > { %v4178_v44 = vshrl.u32 %v3743_v17, 16  ;;  %v4181_v23 = vshll.u32 %v3743_v17, 16  ;;  %v3013_v13 = vpop.permute.xlu0 %3012 }
 0x2a2   : > { %v3610_v18 = vsel %vm1364_vm8, %v3572_v62, %v3013_v13 }
 0x2a3   : > { %v4180_v4 = vrot.slane %v4178_v44, 2  ;;  %v4183_v46 = vrot.slane %v4181_v23, 3  ;;  %v4170_v32 = vshrl.u32 %v3610_v18, 16  ;;  %v4173_v60 = vshll.u32 %v3610_v18, 16 }
 0x2a4   : > { %v3324_v48 = vpop.permute.xlu1 %3323 }
 0x2a5   : > { %v4184_v38 = vor.u32 %v4183_v46, %v4180_v4  ;;  %v4172_v8 = vrot.slane %v4170_v32, 2  ;;  %v4175_v21 = vrot.slane %v4173_v60, 3  ;;  %v2962_v39 = vpop.permute.xlu0 %2961  ;;  %v3707_v20 = vsel %vm1327_vm7, %v3664_v53, %v3324_v48 }
 0x2a7   : > { %v4176_v3 = vor.u32 %v4175_v21, %v4172_v8  ;;  %v4185_v10 = vsel %vm1122_vm3, %v4159_v34, %v4184_v38 }
 0x2a8   : > { %4663 = vmatprep.mubr.bf16.mxu1 %v4185_v10  ;;  %v3276_v58 = vpop.permute.xlu1 %3275 }
 0x2a9   : > { %v2884_v42 = vpop.permute.xlu0 %2883  ;;  %v4177_v22 = vsel %vm1122_vm3, %v4151_v36, %v4176_v3  ;;  %v3667_v11 = vsel %vm1290_vm6, %v3178_v14, %v3276_v58 }
 0x2aa   : > { %4664 = vmatmul.mubr.bf16.gmra.mrb[80].mxu1 %v4177_v22  ;;  %v3536_v0 = vsel %vm1290_vm6, %v11058_v52, %v2884_v42 }
 0x2ab   : > { %v3574_v34 = vsel %vm1327_vm7, %v3536_v0, %v2962_v39 }
 0x2ad   : > { %v3456_v27 = vpop.permute.xlu1 %3455 }
 0x2ae   : > { %v3745_v16 = vsel %vm1364_vm8, %v3707_v20, %v3456_v27  ;;  %v8920_v27 = vld [vmem:[%s14107_s6 + $0x80] sm:$0xff]  }
 0x2af   : > { %v4203_v31 = vshrl.u32 %v3745_v16, 16  ;;  %v4206_v61 = vshll.u32 %v3745_v16, 16  ;;  %v8922_v16 = vld [vmem:[%s14107_s6 + $0x88] sm:$0xff]   ;;  %8720 = vmatprep.subr.bf16.mxu0 %v8920_v27 }
 0x2b0   : > { %v3015_v35 = vpop.permute.xlu0 %3014  ;;  %8721 = vmatpush3.bf16.msra.mxu0 %v8920_v27 }
 0x2b1   : > { %v3612_v36 = vsel %vm1364_vm8, %v3574_v34, %v3015_v35  ;;  %v4205_v2 = vrot.slane %v4203_v31, 2  ;;  %v4208_v50 = vrot.slane %v4206_v61, 3  ;;  %v3326_v47 = vpop.permute.xlu1 %3325  ;;  %8722 = vmatprep.subr.bf16.mxu0 %v8922_v16 }
 0x2b2   : > { %v4195_v28 = vshrl.u32 %v3612_v36, 16  ;;  %v4198_v5 = vshll.u32 %v3612_v36, 16  ;;  %v3709_v8 = vsel %vm1327_vm7, %v3667_v11, %v3326_v47 }
 0x2b3   : > { %v4209_v17 = vor.u32 %v4208_v50, %v4205_v2  ;;  %v11784_v62 = vpop.f32.mrb[80].mxu0 }
 0x2b4   : > { %v4197_v52 = vrot.slane %v4195_v28, 2  ;;  %v4200_v33 = vrot.slane %v4198_v5, 3  ;;  %v2964_v24 = vpop.permute.xlu0 %2963  ;;  %v11787_v4 = vpop.f32.mrb[81].mxu0  ;;  %8723 = vmatpush3.bf16.msra.mxu0 %v8922_v16 }
 0x2b5   : > { %v4210_v23 = vsel %vm1122_vm3, %v4184_v38, %v4209_v17  ;;  %v3278_v46 = vpop.permute.xlu1 %3277  ;;  %v11789_v32 = vpop.f32.mrb[82].mxu0 }
 0x2b6   : > { %v4201_v44 = vor.u32 %v4200_v33, %v4197_v52  ;;  %4671 = vmatprep.mubr.bf16.mxu1 %v4210_v23  ;;  %v11791_v60 = vpop.f32.mrb[83].mxu0  ;;  %v3670_v28 = vsel %vm1290_vm6, %v11678_v51, %v3278_v46 }
 0x2b8   : > { %v2886_v13 = vpop.permute.xlu0 %2885  ;;  %v4202_v18 = vsel %vm1122_vm3, %v4176_v3, %v4201_v44 }
 0x2b9   : > { %4672 = vmatmul.mubr.bf16.gmra.mrb[84].mxu1 %v4202_v18  ;;  %v3538_v45 = vsel %vm1290_vm6, %v11135_v7, %v2886_v13 }
 0x2ba   : > { %v3576_v63 = vsel %vm1327_vm7, %v3538_v45, %v2964_v24 }
 0x2bc   : > { %v3017_v38 = vpop.permute.xlu0 %3016 }
 0x2bd   : > { %v3458_v21 = vpop.permute.xlu1 %3457  ;;  %v3614_v48 = vsel %vm1364_vm8, %v3576_v63, %v3017_v38 }
 0x2be   : > { %v3747_v39 = vsel %vm1364_vm8, %v3709_v8, %v3458_v21  ;;  %v4220_v3 = vshrl.u32 %v3614_v48, 16  ;;  %v4223_v10 = vshll.u32 %v3614_v48, 16 }
 0x2bf   : > { %v4228_v42 = vshrl.u32 %v3747_v39, 16  ;;  %v4231_v22 = vshll.u32 %v3747_v39, 16 }
 0x2c0   : > { %v4222_v7 = vrot.slane %v4220_v3, 2  ;;  %v4225_v6 = vrot.slane %v4223_v10, 3  ;;  %v2966_v0 = vpop.permute.xlu0 %2965 }
 0x2c1   : > { %v4230_v26 = vrot.slane %v4228_v42, 2  ;;  %v4233_v57 = vrot.slane %v4231_v22, 3  ;;  %v3328_v58 = vpop.permute.xlu1 %3327 }
 0x2c2   : > { %v4226_v53 = vor.u32 %v4225_v6, %v4222_v7  ;;  %v3711_v50 = vsel %vm1327_vm7, %v3670_v28, %v3328_v58 }
 0x2c3   : > { %v4234_v20 = vor.u32 %v4233_v57, %v4230_v26 }
 0x2c4   : > { %v2888_v34 = vpop.permute.xlu0 %2887  ;;  %v4227_v35 = vsel %vm1122_vm3, %v4201_v44, %v4226_v53 }
 0x2c5   : > { %v3280_v31 = vpop.permute.xlu1 %3279  ;;  %v4235_v61 = vsel %vm1122_vm3, %v4209_v17, %v4234_v20  ;;  %v3540_v36 = vsel %vm1290_vm6, %v11246_v19, %v2888_v34 }
 0x2c6   : > { %4679 = vmatprep.mubr.bf16.mxu1 %v4235_v61  ;;  %v3578_v5 = vsel %vm1327_vm7, %v3540_v36, %v2966_v0  ;;  %v3673_v7 = vsel %vm1290_vm6, %v11682_v41, %v3280_v31 }
 0x2c7   : > { %4680 = vmatmul.mubr.bf16.gmra.mrb[88].mxu1 %v4227_v35 }
 0x2c9   : > { %v3460_v47 = vpop.permute.xlu1 %3459 }
 0x2ca   : > { %v3749_v33 = vsel %vm1364_vm8, %v3711_v50, %v3460_v47 }
 0x2cb   : > { %v3019_v2 = vpop.permute.xlu0 %3018  ;;  %v4253_v17 = vshrl.u32 %v3749_v33, 16  ;;  %v4256_v44 = vshll.u32 %v3749_v33, 16  ;;  %v11818_v14 = vpop.f32.mrb[84].mxu0 }
 0x2cc   : > { %v3616_v52 = vsel %vm1364_vm8, %v3578_v5, %v3019_v2  ;;  %v11820_v63 = vpop.f32.mrb[85].mxu0 }
 0x2cd   : > { %v4245_v24 = vshrl.u32 %v3616_v52, 16  ;;  %v4248_v19 = vshll.u32 %v3616_v52, 16  ;;  %v4255_v45 = vrot.slane %v4253_v17, 2  ;;  %v4258_v51 = vrot.slane %v4256_v44, 3  ;;  %v3330_v46 = vpop.permute.xlu1 %3329  ;;  %v11822_v8 = vpop.f32.mrb[86].mxu0 }
 0x2ce   : > { %v11825_v39 = vpop.f32.mrb[87].mxu0  ;;  %v3713_v0 = vsel %vm1327_vm7, %v3673_v7, %v3330_v46 }
 0x2cf   : > { %v4247_v23 = vrot.slane %v4245_v24, 2  ;;  %v4250_v13 = vrot.slane %v4248_v19, 3  ;;  %v2968_v18 = vpop.permute.xlu0 %2967  ;;  %v4259_v38 = vor.u32 %v4258_v51, %v4255_v45 }
 0x2d1   : > { %v4251_v11 = vor.u32 %v4250_v13, %v4247_v23  ;;  %v3282_v3 = vpop.permute.xlu1 %3281  ;;  %v4260_v10 = vsel %vm1122_vm3, %v4234_v20, %v4259_v38 }
 0x2d2   : > { %4687 = vmatprep.mubr.bf16.mxu1 %v4260_v10 }
 0x2d3   : > { %v2890_v21 = vpop.permute.xlu0 %2889  ;;  %v4252_v48 = vsel %vm1122_vm3, %v4226_v53, %v4251_v11 }
 0x2d4   : > { %4688 = vmatmul.mubr.bf16.gmra.mrb[92].mxu1 %v4252_v48  ;;  %v3542_v26 = vsel %vm1290_vm6, %v11384_v29, %v2890_v21  ;;  %v3676_v29 = vsel %vm1290_vm6, %v11696_v59, %v3282_v3 }
 0x2d5   : > { %v3580_v20 = vsel %vm1327_vm7, %v3542_v26, %v2968_v18 }
 0x2d7   : > { %v2970_v42 = vpop.permute.xlu0 %2969 }
 0x2d9   : > { %v3332_v22 = vpop.permute.xlu1 %3331 }
 0x2da   : > { %v3715_v33 = vsel %vm1327_vm7, %v3676_v29, %v3332_v22 }
 0x2db   : > { %v2892_v6 = vpop.permute.xlu0 %2891 }
 0x2dc   : > { %v3544_v61 = vsel %vm1290_vm6, %v11448_v49, %v2892_v6 }
 0x2dd   : > { %v3462_v57 = vpop.permute.xlu1 %3461  ;;  %v3582_v47 = vsel %vm1327_vm7, %v3544_v61, %v2970_v42 }
 0x2de   : > { %v3751_v58 = vsel %vm1364_vm8, %v3713_v0, %v3462_v57 }
 0x2df   : > { %v4278_v53 = vshrl.u32 %v3751_v58, 16  ;;  %v4281_v27 = vshll.u32 %v3751_v58, 16  ;;  %v3021_v16 = vpop.permute.xlu0 %3020 }
 0x2e0   : > { %v3618_v31 = vsel %vm1364_vm8, %v3580_v20, %v3021_v16 }
 0x2e1   : > { %v4280_v34 = vrot.slane %v4278_v53, 2  ;;  %v4283_v35 = vrot.slane %v4281_v27, 3  ;;  %v4270_v36 = vshrl.u32 %v3618_v31, 16  ;;  %v4273_v28 = vshll.u32 %v3618_v31, 16 }
 0x2e2   : > { %v3284_v41 = vpop.permute.xlu1 %3283 }
 0x2e3   : > { %v4284_v5 = vor.u32 %v4283_v35, %v4280_v34  ;;  %v4272_v2 = vrot.slane %v4270_v36, 2  ;;  %v4275_v50 = vrot.slane %v4273_v28, 3  ;;  %v3679_v7 = vsel %vm1290_vm6, %v11684_v37, %v3284_v41 }
 0x2e4   : > { %v3023_v52 = vpop.permute.xlu0 %3022 }
 0x2e5   : > { %v4285_v19 = vsel %vm1122_vm3, %v4259_v38, %v4284_v5  ;;  %v3620_v49 = vsel %vm1364_vm8, %v3582_v47, %v3023_v52  ;;  %v4276_v17 = vor.u32 %v4275_v50, %v4272_v2  ;;  %v8926_v52 = vld [vmem:[%s14107_s6] sm:$0xff]  }
 0x2e6   : > { %v3464_v24 = vpop.permute.xlu1 %3463  ;;  %4695 = vmatprep.mubr.bf16.mxu1 %v4285_v19  ;;  %v4295_v23 = vshrl.u32 %v3620_v49, 16  ;;  %v4298_v13 = vshll.u32 %v3620_v49, 16  ;;  %7279 = vmatpush1.bf16.msra.mxu1 %v8926_v52  ;;  %v3792_v19 = vld [vmem:[%s9077_s26 + $0x8] sm:$0xe]  ;;  %v3793_v49 = vld [vmem:[%s9077_s26 + $0xc] sm:$0xf] }
 0x2e7   : > { %v3753_v44 = vsel %vm1364_vm8, %v3715_v33, %v3464_v24  ;;  %v4277_v21 = vsel %vm1122_vm3, %v4251_v11, %v4276_v17  ;;  %v11846_v38 = vpop.f32.mrb[88].mxu0  ;;  %v14379_v24 = vmov 0  }
 0x2e8   : > { %v4303_v18 = vshrl.u32 %v3753_v44, 16  ;;  %v4306_v59 = vshll.u32 %v3753_v44, 16  ;;  %v4297_v45 = vrot.slane %v4295_v23, 2  ;;  %v4300_v51 = vrot.slane %v4298_v13, 3  ;;  %4696 = vmatmul.mubr.bf16.gmra.mrb[96].mxu1 %v4277_v21  ;;  %v11848_v22 = vpop.f32.mrb[89].mxu0  ;;  %7280 = vmatprep.subr.bf16.mxu1 %v14379_v24  ;;  %v8930_v21 = vld [vmem:[%s14107_s6 + $0x10] sm:$0xff]  }
 0x2e9   : > { %v2894_v46 = vpop.permute.xlu0 %2893  ;;  %v11852_v26 = vpop.f32.mrb[90].mxu0  ;;  %v3829_v44 = vunpack.c.l.bf16 %v3792_v19  ;;  %v3830_v23 = vunpack.c.l.bf16 %v3793_v49  ;;  %v8547_v19 = vld [vmem:[%s9077_s26 + $0x30] sm:$0xff]  }
 0x2ea   : > { %v4305_v48 = vrot.slane %v4303_v18, 2  ;;  %v4308_v3 = vrot.slane %v4306_v59, 3  ;;  %v3334_v10 = vpop.permute.xlu1 %3333  ;;  %v4301_v6 = vor.u32 %v4300_v51, %v4297_v45  ;;  %v11856_v53 = vpop.f32.mrb[91].mxu0  ;;  %v3546_v20 = vsel %vm1290_vm6, %v11546_v43, %v2894_v46  ;;  %v8544_v18 = vld [vmem:[%s9077_s26 + $0x18] sm:$0xff]   ;;  %v8928_v59 = vld [vmem:[%s14107_s6 + $0x8] sm:$0xff]  }
 0x2eb   : > { %v3717_v57 = vsel %vm1327_vm7, %v3679_v7, %v3334_v10  ;;  %v11880_v45 = vld [vmem:[%s14106_s5] ss:$0 sm:$0xff]  ;;  %v4935_v51 = vrot.slane %v3829_v44, 3  ;;  %v4936_v46 = vrot.slane %v3830_v23, 3  ;;  %7281 = vmatpush1.bf16.msra.mxu1 %v8928_v59  ;;  %v8481_v10 = vunpack.c.l.bf16 %v8544_v18 }
 0x2ec   : > { %v4309_v42 = vor.u32 %v4308_v3, %v4305_v48  ;;  %v4302_v61 = vsel %vm1122_vm3, %v4276_v17, %v4301_v6  ;;  %v8543_v17 = vld [vmem:[%s9077_s26 + $0x10] sm:$0xff]   ;;  %7282 = vmatprep.subr.bf16.mxu1 %v14379_v24 }
 0x2ed   : > { %v2972_v0 = vpop.permute.xlu0 %2971  ;;  %v8477_v13 = vunpack.c.l.bf16 %v8543_v17  ;;  %v8478_v3 = vunpack.c.h.bf16 %v8543_v17 }
 0x2ee   : > { %v3466_v58 = vpop.permute.xlu1 %3465  ;;  %v4310_v11 = vsel %vm1122_vm3, %v4284_v5, %v4309_v42  ;;  %v3584_v37 = vsel %vm1327_vm7, %v3546_v20, %v2972_v0  ;;  %v8482_v0 = vunpack.c.h.bf16 %v8544_v18  ;;  %v11894_v20 = vld [vmem:[#allocation3 + $0x8] sm:$0xf] }
 0x2ef   : > { %v3755_v27 = vsel %vm1364_vm8, %v3717_v57, %v3466_v58  ;;  %4703 = vmatprep.mubr.bf16.mxu1 %v4310_v11  ;;  %v8545_v57 = vld [vmem:[%s9077_s26 + $0x20] sm:$0xff]   ;;  %7283 = vmatpush1.bf16.msra.mxu1 %v8930_v21 }
 0x2f0   : > { %v4328_v16 = vshrl.u32 %v3755_v27, 16  ;;  %v4331_v34 = vshll.u32 %v3755_v27, 16  ;;  %4704 = vmatmul.mubr.bf16.gmra.mrb[100].mxu1 %v4302_v61  ;;  %7284 = vmatprep.subr.bf16.mxu1 %v14379_v24  ;;  %v8486_v52 = vunpack.c.h.bf16 %v8545_v57 }
 0x2f1   : > { %v3025_v35 = vpop.permute.xlu0 %3024 }
 0x2f2   : > { %v4330_v41 = vrot.slane %v4328_v16, 2  ;;  %v4333_v31 = vrot.slane %v4331_v34, 3  ;;  %v3622_v36 = vsel %vm1364_vm8, %v3584_v37, %v3025_v35  ;;  %v5412_v16 = vld [vmem:[#allocation3 + $0x4] sm:$0x8]  ;;  %v4937_v34 = vsel %vm1252_vm5, %v4935_v51, %v4936_v46 }
 0x2f3   : > { %v4320_v28 = vshrl.u32 %v3622_v36, 16  ;;  %v4323_v5 = vshll.u32 %v3622_v36, 16  ;;  %v4940_v36 = vrot.slane %v8478_v3, 3 }
 0x2f4   : > { %v4334_v29 = vor.u32 %v4333_v31, %v4330_v41 }
 0x2f5   : > { %v4322_v2 = vrot.slane %v4320_v28, 2  ;;  %v4325_v43 = vrot.slane %v4323_v5, 3  ;;  %v4942_v28 = vrot.slane %v8481_v10, 3  ;;  %v8546_v5 = vld [vmem:[%s9077_s26 + $0x28] sm:$0xff]  }
 0x2f6   : > { %v4335_v50 = vsel %vm1122_vm3, %v4309_v42, %v4334_v29  ;;  %v8490_v51 = vunpack.c.h.bf16 %v8546_v5 }
 0x2f7   : > { %v4326_v47 = vor.u32 %v4325_v43, %v4322_v2  ;;  %4711 = vmatprep.mubr.bf16.mxu1 %v4335_v50  ;;  %v4944_v2 = vrot.slane %v8482_v0, 3  ;;  %v8485_v43 = vunpack.c.l.bf16 %v8545_v57  ;;  %v11905_v50 = vcombine.low %v5412_v16, %v11894_v20 }
 0x2f8   : > { %v4943_v23 = vsel %vm1252_vm5, %v4940_v36, %v4942_v28  ;;  %v8494_v0 = vunpack.c.h.bf16 %v8547_v19 }
 0x2f9   : > { %v4327_v33 = vsel %vm1122_vm3, %v4301_v6, %v4326_v47  ;;  %v4938_v6 = vrot.slane %v8477_v13, 3  ;;  %v11913_v13 = vsel %vm1252_vm5, %v4942_v28, %v4944_v2  ;;  %v4946_v18 = vrot.slane %v8485_v43, 3 }
 0x2fa   : > { %4712 = vmatmul.mubr.bf16.gmra.mrb[104].mxu1 %v4327_v33  ;;  %v8489_v33 = vunpack.c.l.bf16 %v8546_v5  ;;  %v5522_v59 = vshll.u32 %v11905_v50, 16  ;;  %v5520_v16 = vshrl.u32 %v11905_v50, 16 }
 0x2fb   : > { %v4939_v29 = vsel %vm1252_vm5, %v4936_v46, %v4938_v6  ;;  %v4941_v44 = vsel %vm1252_vm5, %v4938_v6, %v4940_v36  ;;  %v8548_v46 = vld [vmem:[%s9077_s26 + $0x38] sm:$0xff]  }
 0x2fc   : > { %v8497_v28 = vunpack.c.l.bf16 %v8548_v46  ;;  %v8498_v5 = vunpack.c.h.bf16 %v8548_v46 }
 0x300   : > { %v11885_v48 = vpop.f32.mrb[92].mxu0 }
 0x301   : > { %14380 = vst [vmem:[#allocation11_spill] sm:$0xff] %v11885_v48  ;;  %v11888_v42 = vpop.f32.mrb[93].mxu0 }
 0x302   : > { %v11891_v58 = vpop.f32.mrb[94].mxu0 }
 0x303   : > { %14381 = vst [vmem:[#allocation22_spill] sm:$0xff] %v11891_v58  ;;  %v11897_v37 = vpop.f32.mrb[95].mxu0  ;;  %v14397_v58 = vld [vmem:[#allocation12_spill] sm:$0xff] }
 0x304   : > { %v4577_v7 = vpop.f32.mrb[36].mxu1 }
 0x305   : > { %v4578_v11 = vadd.f32 %v11880_v45, %v4577_v7  ;;  %v4579_v27 = vpop.f32.mrb[37].mxu1  ;;  %v8493_v7 = vunpack.c.l.bf16 %v8547_v19 }
 0x306   : > { %v4580_v35 = vpop.f32.mrb[38].mxu1  ;;  %v4950_v27 = vrot.slane %v8489_v33, 3 }
 0x307   : > { %v4755_v61 = vadd.f32 %v11728_v9, %v4578_v11  ;;  %v4581_v41 = vadd.f32 %v11880_v45, %v4580_v35  ;;  %v4582_v31 = vpop.f32.mrb[39].mxu1  ;;  %v4948_v11 = vrot.slane %v8486_v52, 3  ;;  %v8932_v35 = vld [vmem:[%s14107_s6 + $0x18] sm:$0xff]   ;;  %v4952_v52 = vrot.slane %v8490_v51, 3 }
 0x308   : > { %7285 = vmatpush1.bf16.msra.mxu1 %v8932_v35  ;;  %v4954_v19 = vrot.slane %v8493_v7, 3  ;;  %v8550_v7 = vld [vmem:[%s9077_s26 + $0x48] sm:$0xff]  }
 0x309   : > { %v5044_v47 = vadd.f32 %v4937_v34, %v4755_v61  ;;  %v4758_v9 = vadd.f32 %v11733_v55, %v4581_v41  ;;  %v14382_v55 = vld [vmem:[#allocation4_spill] sm:$0xff]  ;;  %v8549_v34 = vld [vmem:[%s9077_s26 + $0x40] sm:$0xff]   ;;  %v14383_v41 = vld [vmem:[#allocation6_spill] sm:$0xff]  ;;  %7286 = vmatprep.subr.bf16.mxu1 %v14379_v24  ;;  %v11943_v51 = vsel %vm1252_vm5, %v4946_v18, %v4948_v11 }
 0x30a   : > { %v8502_v35 = vunpack.c.h.bf16 %v8549_v34 }
 0x30b   : > { %v5080_v49 = vmax.f32 %v5044_v47, 0.0  ;;  %v5045_v17 = vadd.f32 %v4939_v29, %v4758_v9  ;;  %v5524_v9 = vrot.slane %v5522_v59, 1  ;;  %v5711_v59 = vrot.slane %v11905_v50, 1  ;;  %v8551_v50 = vld [vmem:[%s9077_s26 + $0x50] sm:$0xff]  }
 0x30c   : > { %v4585_v10 = vpop.f32.mrb[40].mxu1 }
 0x30d   : > { %v5116_v21 = vmul.f32 %v5080_v49, %v14382_v55  ;;  %v5081_v3 = vmax.f32 %v5045_v17, 0.0  ;;  %v4586_v6 = vadd.f32 %v11880_v45, %v4585_v10  ;;  %v4587_v57 = vpop.f32.mrb[41].mxu1  ;;  %v4956_v49 = vrot.slane %v8494_v0, 3 }
 0x30e   : > { %v4588_v36 = vpop.f32.mrb[42].mxu1  ;;  %v8501_v17 = vunpack.c.l.bf16 %v8549_v34  ;;  %v4947_v55 = vsel %vm1252_vm5, %v4944_v2, %v4946_v18  ;;  %v4960_v10 = vrot.slane %v8498_v5, 3  ;;  %v11952_v2 = vsel %vm1252_vm5, %v4950_v27, %v4952_v52 }
 0x30f   : > { %v8439_v61 = vpack.c.bf16 %v5116_v21, %v5116_v21  ;;  %v5117_v31 = vmul.f32 %v5081_v3, %v14383_v41  ;;  %v4763_v29 = vadd.f32 %v11725_v54, %v4586_v6  ;;  %v4589_v43 = vadd.f32 %v11880_v45, %v4588_v36  ;;  %v4590_v47 = vpop.f32.mrb[43].mxu1  ;;  %v5377_v36 = vld [vmem:[#allocation3 + $0xc] sm:$0xf] }
 0x310   : > { %v11946_v21 = vsel %vm1252_vm5, %v4948_v11, %v4950_v27  ;;  %v4958_v3 = vrot.slane %v8497_v28, 3  ;;  %v11956_v57 = vsel %vm1252_vm5, %v4952_v52, %v4954_v19  ;;  %v11959_v18 = vsel %vm1252_vm5, %v4954_v19, %v4956_v49 }
 0x311   : > { %5296 = vst.msk [vmem:[%s11921_s30] sm:$0xf] %vm2392_vm9, %v8439_v61  ;;  %5336 = vst.msk [vmem:[#allocation3 + $0x10] sm:$0xf] %vm2392_vm9, %v8439_v61  ;;  %v8440_v33 = vpack.c.bf16 %v5117_v31, %v5117_v31  ;;  %v5046_v54 = vadd.f32 %v4941_v44, %v4763_v29  ;;  %v4766_v46 = vadd.f32 %v11730_v15, %v4589_v43  ;;  %v4962_v11 = vrot.slane %v8501_v17, 3  ;;  %v14384_v61 = vld [vmem:[#allocation7_spill] sm:$0xff] }
 0x312   : > { %v11949_v15 = vor.u32 %v5524_v9, %v5520_v16  ;;  %v8505_v27 = vunpack.c.l.bf16 %v8550_v7  ;;  %v11964_v5 = vsel %vm1252_vm5, %v4956_v49, %v4958_v3  ;;  %v11967_v29 = vsel %vm1252_vm5, %v4958_v3, %v4960_v10  ;;  %v14385_v9 = vld [vmem:[#allocation8_spill] sm:$0xff] }
 0x313   : > { %5297 = vst.msk [vmem:[%s11921_s30 + $0x4] sm:$0xf] %vm2392_vm9, %v8440_v33  ;;  %5337 = vst.msk [vmem:[#allocation3 + $0x14] sm:$0xf] %vm2392_vm9, %v8440_v33  ;;  %v5082_v44 = vmax.f32 %v5046_v54, 0.0  ;;  %v5047_v0 = vadd.f32 %v4943_v23, %v4766_v46  ;;  %v8506_v43 = vunpack.c.h.bf16 %v8550_v7  ;;  %v8509_v47 = vunpack.c.l.bf16 %v8551_v50  ;;  %v8552_v46 = vld [vmem:[%s9077_s26 + $0x58] sm:$0xff]  }
 0x314   : > { %v4593_v6 = vpop.f32.mrb[44].mxu1  ;;  %v11979_v3 = vsel %vm1252_vm5, %v4960_v10, %v4962_v11  ;;  %v4964_v7 = vrot.slane %v8502_v35, 3  ;;  %v8514_v10 = vunpack.c.h.bf16 %v8552_v46 }
 0x315   : > { %v5118_v41 = vmul.f32 %v5082_v44, %v14384_v61  ;;  %v5083_v31 = vmax.f32 %v5047_v0, 0.0  ;;  %v4594_v23 = vadd.f32 %v11880_v45, %v4593_v6  ;;  %v4595_v16 = vpop.f32.mrb[45].mxu1  ;;  %v8510_v44 = vunpack.c.h.bf16 %v8551_v50 }
 0x316   : > { %v4596_v28 = vpop.f32.mrb[46].mxu1  ;;  %v4968_v16 = vrot.slane %v8506_v43, 3 }
 0x317   : > { %v8441_v34 = vpack.c.bf16 %v5118_v41, %v5118_v41  ;;  %v5119_v52 = vmul.f32 %v5083_v31, %v14385_v9  ;;  %v4771_v33 = vadd.f32 %v11760_v12, %v4594_v23  ;;  %v4597_v19 = vadd.f32 %v11880_v45, %v4596_v28  ;;  %v4598_v17 = vpop.f32.mrb[47].mxu1  ;;  %v8553_v31 = vld [vmem:[%s9077_s26 + $0x60] sm:$0xff]  }
 0x318   : > { %v11972_v54 = vld [vmem:[#allocation3 + $0x10] sm:$0xf]  ;;  %v4966_v41 = vrot.slane %v8505_v27, 3  ;;  %v8517_v9 = vunpack.c.l.bf16 %v8553_v31 }
 0x319   : > { %v11976_v49 = vcombine.low %v5377_v36, %v11972_v54  ;;  %5298 = vst.msk [vmem:[%s11921_s30 + $0x8] sm:$0xf] %vm2392_vm9, %v8441_v34  ;;  %5338 = vst.msk [vmem:[#allocation3 + $0x18] sm:$0xf] %vm2392_vm9, %v8441_v34  ;;  %v8442_v12 = vpack.c.bf16 %v5119_v52, %v5119_v52  ;;  %v5048_v0 = vadd.f32 %v11913_v13, %v4771_v33  ;;  %v8513_v36 = vunpack.c.l.bf16 %v8552_v46  ;;  %v14387_v52 = vld [vmem:[#allocation5_spill] sm:$0xff] }
 0x31a   : > { %v4774_v6 = vadd.f32 %v11766_v56, %v4597_v19  ;;  %v5379_v61 = vld [vmem:[#allocation3 + $0x14] sm:$0xf]  ;;  %v4970_v13 = vrot.slane %v8509_v47, 3  ;;  %v4972_v34 = vrot.slane %v8510_v44, 3  ;;  %v12006_v47 = vsel %vm1252_vm5, %v4962_v11, %v4964_v7  ;;  %v8935_v11 = vld [vmem:[%s14107_s6 + $0x28] sm:$0xff]  }
 0x31b   : > { %14386 = vst [vmem:[#allocation24_spill] sm:$0xff] %v11976_v49  ;;  %v14203_v23 = vrot.slane %v11976_v49, 1  ;;  %5299 = vst.msk [vmem:[%s11921_s30 + $0xc] sm:$0xf] %vm2392_vm9, %v8442_v12  ;;  %v5084_v50 = vmax.f32 %v5048_v0, 0.0  ;;  %v11992_v28 = vcombine.low %v11972_v54, %v5379_v61  ;;  %v8933_v56 = vld [vmem:[%s14107_s6 + $0x20] sm:$0xff]   ;;  %v12009_v17 = vsel %vm1252_vm5, %v4964_v7, %v4966_v41 }
 0x31c   : > { %5339 = vst.msk [vmem:[#allocation3 + $0x1c] sm:$0xf] %vm2392_vm9, %v8442_v12  ;;  %v5049_v35 = vadd.f32 %v4947_v55, %v4774_v6  ;;  %v5527_v43 = vshll.u32 %v11976_v49, 16  ;;  %v12002_v55 = vpop.f32.mrb[96].mxu0  ;;  %7287 = vmatpush1.bf16.msra.mxu1 %v8933_v56  ;;  %v12014_v44 = vsel %vm1252_vm5, %v4966_v41, %v4968_v16  ;;  %v4974_v12 = vrot.slane %v8513_v36, 3  ;;  %v14390_v7 = vld [vmem:[#allocation9_spill] sm:$0xff] }
 0x31d   : > { %v5713_v27 = vsel %vm768_vm1, %v5711_v59, %v14203_v23  ;;  %v5120_v33 = vmul.f32 %v5084_v50, %v14387_v52  ;;  %14388 = vst [vmem:[#allocation17_spill] sm:$0xff] %v12002_v55  ;;  %v12011_v46 = vpop.f32.mrb[97].mxu0  ;;  %v4601_v59 = vpop.f32.mrb[48].mxu1  ;;  %v4976_v0 = vrot.slane %v8514_v10, 3  ;;  %v8518_v6 = vunpack.c.h.bf16 %v8553_v31  ;;  %7288 = vmatprep.subr.bf16.mxu1 %v14379_v24  ;;  %v5414_v36 = vld [vmem:[#allocation3 + $0xc] sm:$0x8] }
 0x31e   : > { %v5085_v19 = vmax.f32 %v5049_v35, 0.0  ;;  %5748 = vrot.lane.b32.xlu1 %v5713_v27, %s8990_s12  ;;  %14389 = vst [vmem:[#allocation15_spill] sm:$0xff] %v12011_v46  ;;  %v12021_v56 = vpop.f32.mrb[98].mxu0  ;;  %v4602_v27 = vadd.f32 %v11880_v45, %v4601_v59  ;;  %v4603_v52 = vpop.f32.mrb[49].mxu1  ;;  %v14205_v41 = vrot.slane %v11992_v28, 6  ;;  %v5529_v55 = vrot.slane %v5527_v43, 1 }
 0x31f   : > { %v8443_v50 = vpack.c.bf16 %v5120_v33, %v5120_v33  ;;  %14391 = vst [vmem:[#allocation21_spill] sm:$0xff] %v12021_v56  ;;  %v12025_v10 = vpop.f32.mrb[99].mxu0  ;;  %v4604_v31 = vpop.f32.mrb[50].mxu1  ;;  %v12028_v25 = vsel %vm1252_vm5, %v4968_v16, %v4970_v13  ;;  %v12031_v33 = vsel %vm1252_vm5, %v4970_v13, %v4972_v34  ;;  %v8317_v43 = vcombine.low %v5414_v36, %v11972_v54 }
 0x320   : > { %v5121_v35 = vmul.f32 %v5085_v19, %v14390_v7  ;;  %14392 = vst [vmem:[#allocation29_spill] sm:$0xff] %v12025_v10  ;;  %v5380_v23 = vld [vmem:[#allocation3 + $0x18] sm:$0xf]  ;;  %v12033_v19 = vrot.slane %v8517_v9, 3  ;;  %v4779_v7 = vadd.f32 %v11757_v1, %v4602_v27  ;;  %v4605_v52 = vadd.f32 %v11880_v45, %v4604_v31  ;;  %v4606_v13 = vpop.f32.mrb[51].mxu1  ;;  %v12055_v1 = vld [vmem:[%s9077_s26 + $0x68] sm:$0xff]   ;;  %7289 = vmatpush1.bf16.msra.mxu1 %v8935_v11 }
 0x321   : > { %5300 = vst.msk [vmem:[%s11921_s30 + $0x10] sm:$0xf] %vm2392_vm9, %v8443_v50  ;;  %5340 = vst.msk [vmem:[#allocation3 + $0x20] sm:$0xf] %vm2392_vm9, %v8443_v50  ;;  %v12043_v16 = vcombine.low %v5379_v61, %v5380_v23  ;;  %v12047_v56 = vsel %vm1252_vm5, %v4972_v34, %v4974_v12  ;;  %v12050_v50 = vsel %vm1252_vm5, %v4974_v12, %v4976_v0  ;;  %v8936_v61 = vld [vmem:[%s14107_s6 + $0x30] sm:$0xff]   ;;  %7290 = vmatprep.subr.bf16.mxu1 %v14379_v24 }
 0x322   : > { %v8444_v59 = vpack.c.bf16 %v5121_v35, %v5121_v35  ;;  %6058 = vrot.lane.b32.xlu1 %v14205_v41, %s8991_s13  ;;  %v12052_v35 = vrot.slane %v8518_v6, 3  ;;  %v5050_v54 = vadd.f32 %v11943_v51, %v4779_v7  ;;  %v4782_v34 = vadd.f32 %v11763_v40, %v4605_v52  ;;  %v5421_v27 = vld [vmem:[#allocation3 + $0x18] sm:$0xe] }
 0x323   : > { %14393 = vst [vmem:[#allocation19_spill] sm:$0xff] %v12043_v16  ;;  %v5381_v9 = vld [vmem:[#allocation3 + $0x1c] sm:$0xf]  ;;  %v12066_v12 = vrot.slane %v12043_v16, 1  ;;  %v5530_v11 = vsel %vm580_vm2, %v11949_v15, %v5529_v55  ;;  %v5535_v36 = vshll.u32 %v12043_v16, 16  ;;  %v8521_v52 = vunpack.c.l.bf16 %v12055_v1  ;;  %v12086_v15 = vld [vmem:[%s9077_s26 + $0x70] sm:$0xff]  }
 0x324   : > { %5301 = vst.msk [vmem:[%s11921_s30 + $0x14] sm:$0xf] %vm2392_vm9, %v8444_v59  ;;  %5341 = vst.msk [vmem:[#allocation3 + $0x24] sm:$0xf] %vm2392_vm9, %v8444_v59  ;;  %v12068_v6 = vcombine.low %v5380_v23, %v5381_v9  ;;  %v8341_v31 = vcombine.low %v5421_v27, %v5381_v9  ;;  %v12076_v59 = vsel %vm1252_vm5, %v4976_v0, %v12033_v19  ;;  %v5086_v51 = vmax.f32 %v5050_v54, 0.0 }
 0x325   : > { %14394 = vst [vmem:[#allocation35_spill] sm:$0xff] %v12076_v59  ;;  %v5051_v40 = vadd.f32 %v11946_v21, %v4782_v34  ;;  %v14395_v23 = vrot.slane %v11976_v49, 1  ;;  %v5795_v13 = vrot.slane %v8317_v43, 1  ;;  %7291 = vmatpush1.bf16.msra.mxu1 %v8936_v61  ;;  %v14396_v21 = vld [vmem:[#allocation10_spill] sm:$0xff]  ;;  %v8522_v30 = vunpack.c.h.bf16 %v12055_v1 }
 0x326   : > { %5670 = vrot.lane.b32.xlu1 %v5530_v11, %s8991_s13  ;;  %v12090_v0 = vrot.slane %v12068_v6, 6  ;;  %v6150_v54 = vshrl.u32 %v8341_v31, 16  ;;  %v6153_v27 = vshll.u32 %v8341_v31, 16  ;;  %v5122_v34 = vmul.f32 %v5086_v51, %v14396_v21  ;;  %7292 = vmatprep.subr.bf16.mxu1 %v14379_v24 }
 0x327   : > { %v5715_v7 = vsel %vm768_vm1, %v14395_v23, %v12066_v12  ;;  %v5087_v11 = vmax.f32 %v5051_v40, 0.0  ;;  %v6280_v41 = vrot.slane %v8341_v31, 7  ;;  %v5796_v23 = vsel %vm768_vm1, %v5795_v13, %v12066_v12 }
 0x328   : > { %5750 = vrot.lane.b32.xlu0 %v5715_v7, %s8990_s12  ;;  %v5531_v7 = vshrl.u32 %v11976_v49, 16  ;;  %v12098_v43 = vrot.slane %v5535_v36, 1  ;;  %v5382_v10 = vld [vmem:[#allocation3 + $0x20] sm:$0xf]  ;;  %v8525_v46 = vunpack.c.l.bf16 %v12086_v15  ;;  %v8445_v61 = vpack.c.bf16 %v5122_v34, %v5122_v34  ;;  %v4609_v13 = vpop.f32.mrb[52].mxu1 }
 0x329   : > { %v5123_v51 = vmul.f32 %v5087_v11, %v14397_v58  ;;  %v14398_v1 = vrot.slane %v11992_v28, 6  ;;  %v12107_v40 = vcombine.low %v5381_v9, %v5382_v10  ;;  %v6152_v21 = vrot.slane %v6150_v54, 6  ;;  %v4611_v9 = vpop.f32.mrb[53].mxu1 }
 0x32a   : > { %5801 = vrot.lane.b32.xlu1 %v5796_v23, %s8992_s16  ;;  %v5533_v36 = vor.u32 %v5531_v7, %v5529_v55  ;;  %v6155_v49 = vrot.slane %v6153_v27, 7  ;;  %v5858_v58 = vshrl.u32 %v11992_v28, 16  ;;  %5302 = vst.msk [vmem:[%s11921_s30 + $0x18] sm:$0xf] %vm2392_vm9, %v8445_v61  ;;  %5342 = vst.msk [vmem:[#allocation3 + $0x28] sm:$0xf] %vm2392_vm9, %v8445_v61  ;;  %v4610_v11 = vadd.f32 %v11880_v45, %v4609_v13 }
 0x32b   : > { %v6023_v31 = vsel %vm3209_vm10, %v14398_v1, %v12090_v0  ;;  %v12110_v48 = vld [vmem:[#allocation3 + $0x24] sm:$0xf]  ;;  %v8446_v34 = vpack.c.bf16 %v5123_v51, %v5123_v51  ;;  %v6639_v1 = vshrl.u32 %v6280_v41, 16  ;;  %v8937_v55 = vld [vmem:[%s14107_s6 + $0x38] sm:$0xff]   ;;  %v4612_v54 = vpop.f32.mrb[54].mxu1  ;;  %v6642_v7 = vshll.u32 %v6280_v41, 16 }
 0x32c   : > { %6060 = vrot.lane.b32.xlu0 %v6023_v31, %s8991_s13  ;;  %v12118_v23 = vcombine.low %v5382_v10, %v12110_v48  ;;  %v12127_v61 = vsel %vm1252_vm5, %v12033_v19, %v12052_v35  ;;  %v12129_v51 = vrot.slane %v8521_v52, 3  ;;  %v4787_v10 = vadd.f32 %v11787_v4, %v4610_v11  ;;  %v4614_v9 = vpop.f32.mrb[55].mxu1  ;;  %7293 = vmatpush1.bf16.msra.mxu1 %v8937_v55  ;;  %v8939_v19 = vld [vmem:[%s14107_s6 + $0x40] sm:$0xff]  }
 0x32d   : > { %14399 = vst [vmem:[#allocation26_spill] sm:$0xff] %v12127_v61  ;;  %5303 = vst.msk [vmem:[%s11921_s30 + $0x1c] sm:$0xf] %vm2392_vm9, %v8446_v34  ;;  %v4613_v31 = vadd.f32 %v11880_v45, %v4612_v54  ;;  %v5538_v13 = vsel %vm580_vm2, %v5533_v36, %v12098_v43  ;;  %v12140_v27 = vrot.slane %v8522_v30, 3  ;;  %v12147_v52 = vrot.slane %v8525_v46, 3  ;;  %7294 = vmatprep.subr.bf16.mxu1 %v14379_v24 }
 0x32e   : > { %5343 = vst.msk [vmem:[#allocation3 + $0x2c] sm:$0xf] %vm2392_vm9, %v8446_v34  ;;  %6108 = vrot.lane.b32.xlu1 %v12090_v0, %s8990_s12  ;;  %v14208_v4 = vrot.slane %v12118_v23, 7  ;;  %v12149_v34 = vrot.slane %v5858_v58, 5  ;;  %v5861_v11 = vshll.u32 %v11992_v28, 16  ;;  %v5052_v30 = vadd.f32 %v11952_v2, %v4787_v10 }
 0x32f   : > { %v4790_v36 = vadd.f32 %v11791_v60, %v4613_v31  ;;  %v12155_v55 = vor.u32 %v6155_v49, %v6152_v21  ;;  %v6641_v54 = vrot.slane %v6639_v1, 2  ;;  %v14400_v9 = vrot.slane %v12107_v40, 1 }
 0x330   : > { %5672 = vrot.lane.b32.xlu0 %v5538_v13, %s8991_s13  ;;  %v14209_v46 = vrot.slane %v12118_v23, 6  ;;  %v6282_v28 = vsel %vm3470_vm11, %v6280_v41, %v14208_v4  ;;  %v6644_v58 = vrot.slane %v6642_v7, 3  ;;  %v5088_v61 = vmax.f32 %v5052_v30, 0.0  ;;  %7295 = vmatpush1.bf16.msra.mxu1 %v8939_v19  ;;  %v14401_v41 = vld [vmem:[#allocation13_spill] sm:$0xff] }
 0x331   : > { %v5717_v13 = vsel %vm768_vm1, %v12066_v12, %v14400_v9  ;;  %v5053_v2 = vadd.f32 %v11956_v57, %v4790_v36  ;;  %v6647_v60 = vshrl.u32 %v6282_v28, 16  ;;  %v6650_v49 = vshll.u32 %v6282_v28, 16  ;;  %7296 = vmatprep.subr.bf16.mxu1 %v14379_v24  ;;  %v8940_v57 = vld [vmem:[%s14107_s6 + $0x48] sm:$0xff]   ;;  %v5384_v28 = vld [vmem:[#allocation3 + $0x28] sm:$0xf] }
 0x332   : > { %6239 = vrot.lane.b32.xlu1 %v12155_v55, %s8992_s16  ;;  %v5543_v12 = vshll.u32 %v12107_v40, 16  ;;  %v12172_v10 = vrot.slane %v5861_v11, 6  ;;  %v5124_v7 = vmul.f32 %v5088_v61, %v14401_v41  ;;  %v6025_v9 = vsel %vm3209_vm10, %v12090_v0, %v14209_v46 }
 0x333   : > { %v5089_v31 = vmax.f32 %v5053_v2, 0.0  ;;  %v6649_v19 = vrot.slane %v6647_v60, 2  ;;  %v6652_v30 = vrot.slane %v6650_v49, 3  ;;  %v6645_v11 = vor.u32 %v6644_v58, %v6641_v54  ;;  %v14403_v2 = vld [vmem:[#allocation14_spill] sm:$0xff] }
 0x334   : > { %5803 = vrot.lane.b32.xlu0 %v5717_v13, %s8992_s16  ;;  %v12179_v36 = vpop.f32.mrb[100].mxu0  ;;  %v5539_v1 = vshrl.u32 %v12043_v16, 16  ;;  %v8447_v61 = vpack.c.bf16 %v5124_v7, %v5124_v7  ;;  %v12201_v46 = vrot.slane %v5543_v12, 1  ;;  %v14406_v7 = vshrl.u32 %v12118_v23, 16  ;;  %7297 = vmatpush1.bf16.msra.mxu1 %v8940_v57  ;;  %v8941_v57 = vld [vmem:[%s14107_s6 + $0x50] sm:$0xff]  }
 0x335   : > { %14402 = vst [vmem:[#allocation41_spill] sm:$0xff] %v12179_v36  ;;  %v12185_v4 = vld [vmem:[#allocation3 + $0x2c] sm:$0xf]  ;;  %v5125_v60 = vmul.f32 %v5089_v31, %v14403_v2  ;;  %v12190_v49 = vpop.f32.mrb[101].mxu0  ;;  %v12193_v41 = vor.u32 %v6652_v30, %v6649_v19  ;;  %v14407_v31 = vshll.u32 %v12118_v23, 16  ;;  %v5866_v36 = vshrl.u32 %v12068_v6, 16  ;;  %7298 = vmatprep.subr.bf16.mxu1 %v14379_v24 }
 0x336   : > { %14404 = vst [vmem:[#allocation32_spill] sm:$0xff] %v12190_v49  ;;  %6062 = vrot.lane.b32.xlu1 %v6025_v9, %s8991_s13  ;;  %v12196_v0 = vcombine.low %v5384_v28, %v12185_v4  ;;  %v12198_v54 = vpop.f32.mrb[102].mxu0  ;;  %v4617_v58 = vpop.f32.mrb[56].mxu1  ;;  %v6157_v21 = vrot.slane %v14406_v7, 6  ;;  %5304 = vst.msk [vmem:[%s11921_s30 + $0x20] sm:$0xf] %vm2392_vm9, %v8447_v61 }
 0x337   : > { %14405 = vst [vmem:[#allocation47_spill] sm:$0xff] %v12198_v54  ;;  %v6158_v2 = vrot.slane %v14407_v31, 7  ;;  %5344 = vst.msk [vmem:[#allocation3 + $0x30] sm:$0xf] %vm2392_vm9, %v8447_v61  ;;  %v8448_v19 = vpack.c.bf16 %v5125_v60, %v5125_v60  ;;  %v12211_v30 = vpop.f32.mrb[103].mxu0  ;;  %v6654_v12 = vsel %vm1122_vm3, %v6645_v11, %v12193_v41  ;;  %v4619_v7 = vpop.f32.mrb[57].mxu1  ;;  %v5541_v31 = vor.u32 %v5539_v1, %v12098_v43 }
 0x338   : > { %5752 = vrot.lane.b32.xlu0 %v5717_v13, %s8990_s12  ;;  %14408 = vst [vmem:[#allocation38_spill] sm:$0xff] %v12211_v30  ;;  %v4618_v13 = vadd.f32 %v11880_v45, %v4617_v58  ;;  %8724 = vmatprep.mubr.msk.bf16.mxu0 %vm1290_vm6, %v6654_v12  ;;  %v4620_v61 = vpop.f32.mrb[58].mxu1  ;;  %v14212_v58 = vshll.u32 %v12196_v0, 16  ;;  %v5869_v11 = vshll.u32 %v12068_v6, 16  ;;  %v14409_v12 = vrot.slane %v12196_v0, 6 }
 0x339   : > { %5305 = vst.msk [vmem:[%s11921_s30 + $0x24] sm:$0xf] %vm2392_vm9, %v8448_v19  ;;  %5345 = vst.msk [vmem:[#allocation3 + $0x34] sm:$0xf] %vm2392_vm9, %v8448_v19  ;;  %v4621_v54 = vadd.f32 %v11880_v45, %v4620_v61  ;;  %v4622_v16 = vpop.f32.mrb[59].mxu1  ;;  %v14410_v30 = vrot.slane %v12118_v23, 6  ;;  %7299 = vmatpush1.bf16.msra.mxu1 %v8941_v57 }
 0x33a   : > { %v4795_v7 = vadd.f32 %v11784_v62, %v4618_v13  ;;  %v14411_v6 = vrot.slane %v12196_v0, 7  ;;  %v14412_v19 = vrot.slane %v12118_v23, 7  ;;  %v14413_v16 = vshrl.u32 %v12196_v0, 16  ;;  %7300 = vmatprep.subr.bf16.mxu1 %v14379_v24 }
 0x33b   : > { %v6027_v60 = vsel %vm3209_vm10, %v14410_v30, %v14409_v12  ;;  %v6162_v61 = vrot.slane %v14212_v58, 7  ;;  %v5868_v49 = vrot.slane %v5866_v36, 5  ;;  %v4798_v43 = vadd.f32 %v11789_v32, %v4621_v54  ;;  %v8943_v12 = vld [vmem:[%s14107_s6 + $0x58] sm:$0xff]  }
 0x33c   : > { %6110 = vrot.lane.b32.xlu0 %v6025_v9, %s8990_s12  ;;  %6112 = vrot.lane.b32.xlu1 %v6027_v60, %s8990_s12  ;;  %v6284_v62 = vsel %vm3470_vm11, %v14412_v19, %v14411_v6  ;;  %v6161_v13 = vrot.slane %v14413_v16, 6  ;;  %v5054_v30 = vadd.f32 %v11959_v18, %v4795_v7  ;;  %v5546_v6 = vsel %vm580_vm2, %v5541_v31, %v12201_v46  ;;  %v14417_v31 = vld [vmem:[#allocation16_spill] sm:$0xff] }
 0x33d   : > { %v6672_v1 = vshrl.u32 %v6284_v62, 16  ;;  %v6675_v9 = vshll.u32 %v6284_v62, 16  ;;  %v6159_v19 = vor.u32 %v6158_v2, %v6157_v21  ;;  %v12258_v16 = vcombine.low %v12110_v48, %v5384_v28  ;;  %7301 = vmatpush1.bf16.msra.mxu1 %v8943_v12 }
 0x33e   : > { %v5871_v36 = vrot.slane %v5869_v11, 6  ;;  %v5090_v32 = vmax.f32 %v5054_v30, 0.0  ;;  %v5055_v18 = vadd.f32 %v11964_v5, %v4798_v43  ;;  %v12268_v21 = vor.u32 %v6162_v61, %v6161_v13  ;;  %7302 = vmatprep.subr.bf16.mxu1 %v14379_v24 }
 0x33f   : > { %v12253_v59 = vpop.f32.mrb[104].mxu0  ;;  %v6674_v57 = vrot.slane %v6672_v1, 2  ;;  %v6677_v7 = vrot.slane %v6675_v9, 3  ;;  %v12272_v48 = vor.u32 %v12172_v10, %v12149_v34  ;;  %v14416_v28 = vunpack.c.h.bf16 %v12086_v15  ;;  %v8944_v15 = vld [vmem:[%s14107_s6 + $0x60] sm:$0xff]  }
 0x340   : > { %14414 = vst [vmem:[#allocation53_spill] sm:$0xff] %v12253_v59  ;;  %v12262_v54 = vpop.f32.mrb[105].mxu0  ;;  %5674 = vrot.lane.b32.xlu0 %v5546_v6, %s8991_s13  ;;  %6064 = vrot.lane.b32.xlu1 %v6027_v60, %s8991_s13  ;;  %v12278_v5 = vor.u32 %v5871_v36, %v5868_v49  ;;  %v5126_v11 = vmul.f32 %v5090_v32, %v14417_v31  ;;  %v5091_v30 = vmax.f32 %v5055_v18, 0.0  ;;  %v14211_v10 = vrot.slane %v12258_v16, 1  ;;  %v5386_v49 = vld [vmem:[#allocation3 + $0x30] sm:$0xf] }
 0x341   : > { %v12264_v62 = vpop.f32.mrb[106].mxu0  ;;  %v12276_v2 = vrot.slane %v14416_v28, 3  ;;  %v12283_v1 = vor.u32 %v6677_v7, %v6674_v57  ;;  %v12288_v60 = vsel %vm1252_vm5, %v12052_v35, %v12129_v51  ;;  %v6160_v34 = vsel %vm3338_vm13, %v12155_v55, %v6159_v19  ;;  %v12296_v13 = vld [vmem:[#allocation3 + $0x34] sm:$0xf]  ;;  %v14418_v55 = vld [vmem:[#allocation18_spill] sm:$0xff]  ;;  %7303 = vmatpush1.bf16.msra.mxu1 %v8944_v15 }
 0x342   : > { %14415 = vst [vmem:[#allocation44_spill] sm:$0xff] %v12264_v62  ;;  %v12281_v43 = vpop.f32.mrb[107].mxu0  ;;  %v12301_v61 = vsel %vm1252_vm5, %v12129_v51, %v12140_v27  ;;  %v12306_v35 = vsel %vm3044_vm12, %v12272_v48, %v12278_v5  ;;  %v8449_v9 = vpack.c.bf16 %v5126_v11, %v5126_v11  ;;  %v5127_v12 = vmul.f32 %v5091_v30, %v14418_v55 }
 0x343   : > { %v6679_v6 = vsel %vm1122_vm3, %v12193_v41, %v12283_v1  ;;  %v12314_v36 = vcombine.low %v5386_v49, %v12296_v13  ;;  %v6164_v51 = vsel %vm3338_vm13, %v6159_v19, %v12268_v21  ;;  %v5547_v18 = vshrl.u32 %v12107_v40, 16  ;;  %7304 = vmatprep.subr.bf16.mxu1 %v14379_v24 }
 0x344   : > { %8725 = vmatmul.mubr.msk.bf16.vlgmr.msra.gmra.mrb[108].mxu0 %vm1290_vm6, %v6679_v6  ;;  %6241 = vrot.lane.b32.xlu0 %v6160_v34, %s8992_s16  ;;  %v4625_v32 = vpop.f32.mrb[60].mxu1  ;;  %v12324_v57 = vsel %vm1252_vm5, %v12140_v27, %v12147_v52  ;;  %v12329_v41 = vsel %vm1252_vm5, %v12147_v52, %v12276_v2  ;;  %5306 = vst.msk [vmem:[%s11921_s30 + $0x28] sm:$0xf] %vm2392_vm9, %v8449_v9  ;;  %5346 = vst.msk [vmem:[#allocation3 + $0x38] sm:$0xf] %vm2392_vm9, %v8449_v9  ;;  %v14419_v52 = vrot.slane %v12107_v40, 1 }
 0x345   : > { %v8450_v7 = vpack.c.bf16 %v5127_v12, %v5127_v12  ;;  %6243 = vrot.lane.b32.xlu1 %v6164_v51, %s8992_s16  ;;  %v4626_v19 = vadd.f32 %v11880_v45, %v4625_v32  ;;  %v4627_v28 = vpop.f32.mrb[61].mxu1  ;;  %v14213_v31 = vrot.slane %v12314_v36, 6  ;;  %v14214_v27 = vrot.slane %v12314_v36, 7  ;;  %v8945_v12 = vld [vmem:[%s14107_s6 + $0x68] sm:$0xff]  }
 0x346   : > { %v4628_v11 = vpop.f32.mrb[62].mxu1  ;;  %v5719_v30 = vsel %vm768_vm1, %v14419_v52, %v14211_v10  ;;  %v5551_v34 = vshll.u32 %v12258_v16, 16  ;;  %v14215_v9 = vshrl.u32 %v12314_v36, 16  ;;  %v14216_v55 = vshll.u32 %v12314_v36, 16  ;;  %7305 = vmatpush1.bf16.msra.mxu1 %v8945_v12 }
 0x347   : > { %5307 = vst.msk [vmem:[%s11921_s30 + $0x2c] sm:$0xf] %vm2392_vm9, %v8450_v7  ;;  %5347 = vst.msk [vmem:[#allocation3 + $0x3c] sm:$0xf] %vm2392_vm9, %v8450_v7  ;;  %v4803_v15 = vadd.f32 %v11820_v63, %v4626_v19  ;;  %v4629_v6 = vadd.f32 %v11880_v45, %v4628_v11  ;;  %v4630_v51 = vpop.f32.mrb[63].mxu1  ;;  %v14420_v32 = vrot.slane %v12196_v0, 6  ;;  %7306 = vmatprep.subr.bf16.mxu1 %v14379_v24 }
 0x348   : > { %v14421_v52 = vrot.slane %v12196_v0, 7  ;;  %5805 = vrot.lane.b32.xlu0 %v5719_v30, %s8992_s16  ;;  %v6165_v63 = vrot.slane %v14215_v9, 6  ;;  %v6166_v19 = vrot.slane %v14216_v55, 7  ;;  %v12379_v59 = vrot.slane %v5551_v34, 1  ;;  %v12384_v55 = vld [vmem:[#allocation3 + $0x4] sm:$0xc] }
 0x349   : > { %v6029_v28 = vsel %vm3209_vm10, %v14420_v32, %v14213_v31  ;;  %v5056_v11 = vadd.f32 %v11967_v29, %v4803_v15  ;;  %v4806_v51 = vadd.f32 %v11825_v39, %v4629_v6  ;;  %v5549_v32 = vor.u32 %v5547_v18, %v12201_v46  ;;  %v12375_v31 = vld [vmem:[%s9077_s26 + $0x78] sm:$0xff]   ;;  %v8947_v39 = vld [vmem:[%s14107_s6 + $0x70] sm:$0xff]  }
 0x34a   : > { %v6286_v10 = vsel %vm3470_vm11, %v14421_v52, %v14214_v27  ;;  %6114 = vrot.lane.b32.xlu1 %v6029_v28, %s8990_s12  ;;  %v14422_v52 = vshrl.u32 %v12118_v23, 16  ;;  %v12382_v9 = vcombine.low %v12185_v4, %v5386_v49  ;;  %v14423_v18 = vshll.u32 %v12118_v23, 16  ;;  %7307 = vmatpush1.bf16.msra.mxu1 %v8947_v39 }
 0x34b   : > { %v6697_v7 = vshrl.u32 %v6286_v10, 16  ;;  %v6700_v58 = vshll.u32 %v6286_v10, 16  ;;  %v5092_v29 = vmax.f32 %v5056_v11, 0.0  ;;  %v5057_v46 = vadd.f32 %v11979_v3, %v4806_v51  ;;  %v14426_v3 = vld [vmem:[#allocation20_spill] sm:$0xff]  ;;  %7308 = vmatprep.subr.bf16.mxu1 %v14379_v24 }
 0x34c   : > { %v5877_v27 = vrot.slane %v14422_v52, 5  ;;  %v5880_v15 = vrot.slane %v14423_v18, 6  ;;  %5754 = vrot.lane.b32.xlu0 %v5719_v30, %s8990_s12  ;;  %v12398_v49 = vor.u32 %v6166_v19, %v6165_v63  ;;  %v8529_v12 = vunpack.c.l.bf16 %v12375_v31 }
 0x34d   : > { %v6699_v10 = vrot.slane %v6697_v7, 2  ;;  %v6702_v62 = vrot.slane %v6700_v58, 3  ;;  %v14424_v58 = vshrl.u32 %v12196_v0, 16  ;;  %v14425_v6 = vshll.u32 %v12196_v0, 16  ;;  %v5388_v0 = vld [vmem:[#allocation3 + $0x38] sm:$0xf] }
 0x34e   : > { %v5128_v11 = vmul.f32 %v5092_v29, %v14426_v3  ;;  %v5093_v23 = vmax.f32 %v5057_v46, 0.0  ;;  %6066 = vrot.lane.b32.xlu1 %v6029_v28, %s8991_s13  ;;  %v5881_v52 = vor.u32 %v5880_v15, %v5877_v27  ;;  %v5554_v30 = vsel %vm580_vm2, %v5549_v32, %v12379_v59  ;;  %v12413_v19 = vld [vmem:[#allocation3 + $0x3c] sm:$0xf]  ;;  %v8948_v27 = vld [vmem:[%s14107_s6 + $0x78] sm:$0xff]   ;;  %v14427_v29 = vld [vmem:[#allocation23_spill] sm:$0xff] }
 0x34f   : > { %v5886_v34 = vrot.slane %v14424_v58, 5  ;;  %v12396_v4 = vor.u32 %v6702_v62, %v6699_v10  ;;  %v5889_v7 = vrot.slane %v14425_v6, 6  ;;  %v5720_v63 = vrot.slane %v12382_v9, 1  ;;  %7309 = vmatpush1.bf16.msra.mxu1 %v8948_v27 }
 0x350   : > { %v8451_v28 = vpack.c.bf16 %v5128_v11, %v5128_v11  ;;  %v5129_v46 = vmul.f32 %v5093_v23, %v14427_v29  ;;  %5676 = vrot.lane.b32.xlu0 %v5554_v30, %s8991_s13  ;;  %v6168_v32 = vsel %vm3338_vm13, %v12268_v21, %v12398_v49  ;;  %v12430_v18 = vrot.slane %v8529_v12, 3 }
 0x351   : > { %v6704_v62 = vsel %vm1122_vm3, %v12283_v1, %v12396_v4  ;;  %v12415_v10 = vor.u32 %v5889_v7, %v5886_v34  ;;  %v12423_v1 = vcombine.low %v5388_v0, %v12413_v19  ;;  %v4633_v39 = vpop.f32.mrb[64].mxu1  ;;  %v12434_v15 = vsel %vm3044_vm12, %v12278_v5, %v5881_v52 }
 0x352   : > { %8728 = vmatprep.mubr.msk.bf16.mxu0 %vm1290_vm6, %v6704_v62  ;;  %5308 = vst.msk [vmem:[%s11921_s30 + $0x30] sm:$0xf] %vm2392_vm9, %v8451_v28  ;;  %5348 = vst.msk [vmem:[#allocation3 + $0x40] sm:$0xf] %vm2392_vm9, %v8451_v28  ;;  %v8452_v24 = vpack.c.bf16 %v5129_v46, %v5129_v46  ;;  %6245 = vrot.lane.b32.xlu1 %v6168_v32, %s8992_s16  ;;  %v4634_v21 = vadd.f32 %v11880_v45, %v4633_v39  ;;  %v4635_v34 = vpop.f32.mrb[65].mxu1  ;;  %v14428_v7 = vrot.slane %v12258_v16, 1 }
 0x353   : > { %v12438_v58 = vsel %vm3044_vm12, %v5881_v52, %v12415_v10  ;;  %v6030_v12 = vrot.slane %v12423_v1, 6  ;;  %v14219_v5 = vrot.slane %v12423_v1, 7  ;;  %v4636_v6 = vpop.f32.mrb[66].mxu1  ;;  %v5559_v11 = vshll.u32 %v12382_v9, 16  ;;  %v12471_v39 = vld [vmem:[%s9077_s26 + $0x80] sm:$0xff]  }
 0x354   : > { %v5721_v3 = vsel %vm768_vm1, %v14428_v7, %v5720_v63  ;;  %v14217_v23 = vshrl.u32 %v12423_v1, 16  ;;  %v14218_v52 = vshll.u32 %v12423_v1, 16  ;;  %5309 = vst.msk [vmem:[%s11921_s30 + $0x34] sm:$0xf] %vm2392_vm9, %v8452_v24  ;;  %5349 = vst.msk [vmem:[#allocation3 + $0x44] sm:$0xf] %vm2392_vm9, %v8452_v24  ;;  %v4811_v62 = vadd.f32 %v11818_v14, %v4634_v21 }
 0x355   : > { %v4637_v30 = vadd.f32 %v11880_v45, %v4636_v6  ;;  %v4638_v28 = vpop.f32.mrb[67].mxu1  ;;  %v14429_v29 = vrot.slane %v12314_v36, 6  ;;  %v14430_v32 = vrot.slane %v12314_v36, 7  ;;  %v8975_v14 = vld [vmem:[%s14107_s6 + $0x80] sm:$0xff]   ;;  %5807 = vrot.lane.b32.xlu0 %v5721_v3, %s8992_s16  ;;  %v8533_v51 = vunpack.c.l.bf16 %v12471_v39 }
 0x356   : > { %8800 = vmatprep.subr.bf16.mxu1 %v8975_v14  ;;  %v6169_v21 = vrot.slane %v14217_v23, 6  ;;  %v6170_v34 = vrot.slane %v14218_v52, 7  ;;  %v5058_v6 = vadd.f32 %v12006_v47, %v4811_v62  ;;  %v5555_v28 = vshrl.u32 %v12258_v16, 16 }
 0x357   : > { %v6031_v46 = vsel %vm3209_vm10, %v14429_v29, %v6030_v12  ;;  %v6288_v27 = vsel %vm3470_vm11, %v14430_v32, %v14219_v5  ;;  %v4814_v7 = vadd.f32 %v11822_v8, %v4637_v30  ;;  %v8530_v29 = vunpack.c.h.bf16 %v12375_v31 }
 0x358   : > { %v6722_v45 = vshrl.u32 %v6288_v27, 16  ;;  %v6725_v24 = vshll.u32 %v6288_v27, 16  ;;  %6116 = vrot.lane.b32.xlu1 %v6031_v46, %s8990_s12  ;;  %v12487_v27 = vcombine.low %v12296_v13, %v5388_v0  ;;  %v5094_v23 = vmax.f32 %v5058_v6, 0.0 }
 0x359   : > { %v5059_v52 = vadd.f32 %v12009_v17, %v4814_v7  ;;  %v5561_v5 = vrot.slane %v5559_v11, 1  ;;  %v14432_v47 = vshrl.u32 %v12314_v36, 16  ;;  %5756 = vrot.lane.b32.xlu0 %v5721_v3, %s8990_s12  ;;  %v12496_v30 = vor.u32 %v6170_v34, %v6169_v21 }
 0x35a   : > { %v6724_v32 = vrot.slane %v6722_v45, 2  ;;  %v6727_v14 = vrot.slane %v6725_v24, 3  ;;  %14431 = vst [vmem:[#allocation4_spill] sm:$0xff] %v12487_v27  ;;  %v12501_v13 = vsel %vm1252_vm5, %v12276_v2, %v12430_v18  ;;  %v14433_v31 = vshll.u32 %v12314_v36, 16  ;;  %v14434_v45 = vld [vmem:[#allocation25_spill] sm:$0xff] }
 0x35b   : > { %v5895_v8 = vrot.slane %v14432_v47, 5  ;;  %v5130_v17 = vmul.f32 %v5094_v23, %v14434_v45  ;;  %v5095_v11 = vmax.f32 %v5059_v52, 0.0  ;;  %v5557_v24 = vor.u32 %v5555_v28, %v12379_v59  ;;  %v5390_v2 = vld [vmem:[#allocation3 + $0x40] sm:$0xf]  ;;  %v12514_v6 = vld [vmem:[#allocation3 + $0x44] sm:$0xf] }
 0x35c   : > { %v12494_v62 = vor.u32 %v6727_v14, %v6724_v32  ;;  %v5898_v0 = vrot.slane %v14433_v31, 6  ;;  %6068 = vrot.lane.b32.xlu1 %v6031_v46, %s8991_s13  ;;  %v12508_v3 = vrot.slane %v8530_v29, 3  ;;  %v5722_v34 = vrot.slane %v12487_v27, 1  ;;  %v14435_v46 = vld [vmem:[#allocation28_spill] sm:$0xff] }
 0x35d   : > { %v12516_v36 = vrot.slane %v8533_v51, 3  ;;  %v8453_v52 = vpack.c.bf16 %v5130_v17, %v5130_v17  ;;  %v5131_v7 = vmul.f32 %v5095_v11, %v14435_v46  ;;  %v5562_v59 = vsel %vm580_vm2, %v5557_v24, %v5561_v5  ;;  %v4641_v51 = vpop.f32.mrb[68].mxu1 }
 0x35e   : > { %v6729_v21 = vsel %vm1122_vm3, %v12396_v4, %v12494_v62  ;;  %v12518_v23 = vor.u32 %v5898_v0, %v5895_v8  ;;  %v12524_v28 = vcombine.low %v5390_v2, %v12514_v6  ;;  %5678 = vrot.lane.b32.xlu0 %v5562_v59, %s8991_s13  ;;  %v6172_v4 = vsel %vm3338_vm13, %v12398_v49, %v12496_v30  ;;  %v12544_v49 = vld [vmem:[%s14106_s5] ss:$0 sm:$0xff]  ;;  %v4643_v8 = vpop.f32.mrb[69].mxu1 }
 0x35f   : > { %8729 = vmatmul.mubr.msk.bf16.gmra.mrb[112].mxu0 %vm1290_vm6, %v6729_v21  ;;  %v5563_v29 = vshrl.u32 %v12382_v9, 16  ;;  %v8534_v32 = vunpack.c.h.bf16 %v12471_v39  ;;  %5310 = vst.msk [vmem:[%s11921_s30 + $0x38] sm:$0xf] %vm2392_vm9, %v8453_v52  ;;  %5350 = vst.msk [vmem:[#allocation3 + $0x48] sm:$0xf] %vm2392_vm9, %v8453_v52  ;;  %v8454_v47 = vpack.c.bf16 %v5131_v7, %v5131_v7  ;;  %v4642_v39 = vadd.f32 %v12544_v49, %v4641_v51  ;;  %v4644_v0 = vpop.f32.mrb[70].mxu1 }
 0x360   : > { %v12535_v14 = vsel %vm3044_vm12, %v12415_v10, %v12518_v23  ;;  %6247 = vrot.lane.b32.xlu1 %v6172_v4, %s8992_s16  ;;  %v6032_v31 = vrot.slane %v12524_v28, 6  ;;  %v14221_v10 = vrot.slane %v12524_v28, 7  ;;  %v5723_v45 = vsel %vm768_vm1, %v5720_v63, %v5722_v34  ;;  %v4646_v46 = vpop.f32.mrb[71].mxu1 }
 0x361   : > { %v5567_v17 = vshll.u32 %v12487_v27, 16  ;;  %v14220_v11 = vshrl.u32 %v12524_v28, 16  ;;  %v14222_v24 = vshll.u32 %v12524_v28, 16  ;;  %5311 = vst.msk [vmem:[%s11921_s30 + $0x3c] sm:$0xf] %vm2392_vm9, %v8454_v47  ;;  %v4819_v21 = vadd.f32 %v11848_v22, %v4642_v39  ;;  %v12586_v46 = vld [vmem:[%s9077_s26 + $0x88] sm:$0xff]  }
 0x362   : > { %5351 = vst.msk [vmem:[#allocation3 + $0x4c] sm:$0xf] %vm2392_vm9, %v8454_v47  ;;  %v4645_v52 = vadd.f32 %v12544_v49, %v4644_v0  ;;  %v6033_v63 = vsel %vm3209_vm10, %v6030_v12, %v6032_v31  ;;  %v14436_v7 = vrot.slane %v12423_v1, 7  ;;  %5809 = vrot.lane.b32.xlu0 %v5723_v45, %s8992_s16  ;;  %v5565_v8 = vor.u32 %v5563_v29, %v5561_v5 }
 0x363   : > { %v6173_v22 = vrot.slane %v14220_v11, 6  ;;  %v6174_v47 = vrot.slane %v14222_v24, 7  ;;  %v5060_v39 = vadd.f32 %v12014_v44, %v4819_v21  ;;  %v12583_v0 = vsel %vm1252_vm5, %v12430_v18, %v12508_v3 }
 0x364   : > { %v6290_v59 = vsel %vm3470_vm11, %v14436_v7, %v14221_v10  ;;  %v4822_v12 = vadd.f32 %v11856_v53, %v4645_v52  ;;  %6118 = vrot.lane.b32.xlu1 %v6033_v63, %s8990_s12  ;;  %v5569_v11 = vrot.slane %v5567_v17, 1  ;;  %v12589_v10 = vcombine.low %v12413_v19, %v5390_v2  ;;  %v14440_v2 = vld [vmem:[#allocation27_spill] sm:$0xff] }
 0x365   : > { %v6747_v4 = vshrl.u32 %v6290_v59, 16  ;;  %v6750_v51 = vshll.u32 %v6290_v59, 16  ;;  %v5096_v24 = vmax.f32 %v5060_v39, 0.0  ;;  %v12592_v53 = vrot.slane %v8534_v32, 3 }
 0x366   : > { %14437 = vst [vmem:[#allocation6_spill] sm:$0xff] %v12589_v10  ;;  %v5061_v44 = vadd.f32 %v12028_v25, %v4822_v12  ;;  %v14438_v5 = vshrl.u32 %v12423_v1, 16  ;;  %5758 = vrot.lane.b32.xlu0 %v5723_v45, %s8990_s12  ;;  %v12599_v21 = vor.u32 %v6174_v47, %v6173_v22  ;;  %v8537_v52 = vunpack.c.l.bf16 %v12586_v46  ;;  %v14441_v12 = vld [vmem:[#allocation31_spill] sm:$0xff] }
 0x367   : > { %v6749_v7 = vrot.slane %v6747_v4, 2  ;;  %v6752_v59 = vrot.slane %v6750_v51, 3  ;;  %v14439_v17 = vshll.u32 %v12423_v1, 16  ;;  %v5132_v4 = vmul.f32 %v5096_v24, %v14440_v2  ;;  %v5392_v24 = vld [vmem:[#allocation3 + $0x48] sm:$0xf] }
 0x368   : > { %v5904_v29 = vrot.slane %v14438_v5, 5  ;;  %v5097_v51 = vmax.f32 %v5061_v44, 0.0  ;;  %6070 = vrot.lane.b32.xlu1 %v6033_v63, %s8991_s13  ;;  %v5571_v25 = vshrl.u32 %v12487_v27, 16  ;;  %v12610_v32 = vsel %vm1252_vm5, %v12508_v3, %v12516_v36 }
 0x369   : > { %v12597_v18 = vor.u32 %v6752_v59, %v6749_v7  ;;  %v5907_v19 = vrot.slane %v14439_v17, 6  ;;  %v5570_v22 = vsel %vm580_vm2, %v5565_v8, %v5569_v11  ;;  %v14225_v1 = vrot.slane %v12589_v10, 1  ;;  %v12617_v47 = vld [vmem:[#allocation3 + $0x4c] sm:$0xf]  ;;  %v4649_v8 = vpop.f32.mrb[72].mxu1 }
 0x36a   : > { %v8455_v39 = vpack.c.bf16 %v5132_v4, %v5132_v4  ;;  %v5133_v7 = vmul.f32 %v5097_v51, %v14441_v12  ;;  %v12624_v3 = vcombine.low %v5392_v24, %v12617_v47  ;;  %v12626_v59 = vor.u32 %v5571_v25, %v5569_v11  ;;  %5680 = vrot.lane.b32.xlu0 %v5570_v22, %s8991_s13  ;;  %v4651_v17 = vpop.f32.mrb[73].mxu1 }
 0x36b   : > { %v6754_v45 = vsel %vm1122_vm3, %v12494_v62, %v12597_v18  ;;  %v12619_v63 = vor.u32 %v5907_v19, %v5904_v29  ;;  %v6176_v62 = vsel %vm3338_vm13, %v12496_v30, %v12599_v21  ;;  %v12635_v44 = vsel %vm1252_vm5, %v12516_v36, %v12592_v53  ;;  %v4652_v19 = vpop.f32.mrb[74].mxu1 }
 0x36c   : > { %8732 = vmatprep.mubr.msk.bf16.mxu0 %vm1290_vm6, %v6754_v45  ;;  %v12637_v5 = vrot.slane %v8537_v52, 3  ;;  %5312 = vst.msk [vmem:[%s11921_s30 + $0x40] sm:$0xf] %vm2392_vm9, %v8455_v39  ;;  %5352 = vst.msk [vmem:[#allocation3 + $0x50] sm:$0xf] %vm2392_vm9, %v8455_v39  ;;  %v8456_v29 = vpack.c.bf16 %v5133_v7, %v5133_v7  ;;  %6249 = vrot.lane.b32.xlu1 %v6176_v62, %s8992_s16  ;;  %v4650_v30 = vadd.f32 %v12544_v49, %v4649_v8  ;;  %v4654_v22 = vpop.f32.mrb[75].mxu1 }
 0x36d   : > { %v12642_v11 = vsel %vm3044_vm12, %v12518_v23, %v12619_v63  ;;  %v14224_v36 = vrot.slane %v12624_v3, 6  ;;  %v14223_v52 = vrot.slane %v12624_v3, 7  ;;  %v5725_v23 = vsel %vm768_vm1, %v5722_v34, %v14225_v1 }
 0x36e   : > { %v5575_v2 = vshll.u32 %v12589_v10, 16  ;;  %v5920_v4 = vshrl.u32 %v12624_v3, 16  ;;  %v5923_v51 = vshll.u32 %v12624_v3, 16  ;;  %5313 = vst.msk [vmem:[%s11921_s30 + $0x44] sm:$0xf] %vm2392_vm9, %v8456_v29  ;;  %v4827_v25 = vadd.f32 %v11846_v38, %v4650_v30  ;;  %5811 = vrot.lane.b32.xlu0 %v5725_v23, %s8992_s16 }
 0x36f   : > { %5353 = vst.msk [vmem:[#allocation3 + $0x54] sm:$0xf] %vm2392_vm9, %v8456_v29  ;;  %v4653_v45 = vadd.f32 %v12544_v49, %v4652_v19  ;;  %v6035_v34 = vsel %vm3209_vm10, %v6032_v31, %v14224_v36  ;;  %v14442_v39 = vrot.slane %v12524_v28, 7  ;;  %v8538_v31 = vunpack.c.h.bf16 %v12586_v46 }
 0x370   : > { %v6177_v62 = vrot.slane %v5920_v4, 6  ;;  %v6178_v8 = vrot.slane %v5923_v51, 7  ;;  %v5062_v29 = vadd.f32 %v12031_v33, %v4827_v25  ;;  %6120 = vrot.lane.b32.xlu1 %v6035_v34, %s8990_s12  ;;  %v14443_v17 = vshrl.u32 %v12524_v28, 16  ;;  %v12688_v33 = vld [vmem:[%s9077_s26 + $0x90] sm:$0xff]  }
 0x371   : > { %v6292_v12 = vsel %vm3470_vm11, %v14442_v39, %v14223_v52  ;;  %v4830_v30 = vadd.f32 %v11852_v26, %v4653_v45  ;;  %v12681_v52 = vrot.slane %v5575_v2, 1  ;;  %v12684_v36 = vcombine.low %v12514_v6, %v5392_v24  ;;  %v14446_v2 = vld [vmem:[#allocation30_spill] sm:$0xff] }
 0x372   : > { %v6772_v7 = vshrl.u32 %v6292_v12, 16  ;;  %v6775_v38 = vshll.u32 %v6292_v12, 16  ;;  %v5913_v19 = vrot.slane %v14443_v17, 5  ;;  %v5098_v12 = vmax.f32 %v5062_v29, 0.0  ;;  %5760 = vrot.lane.b32.xlu0 %v5725_v23, %s8990_s12 }
 0x373   : > { %14444 = vst [vmem:[#allocation7_spill] sm:$0xff] %v12684_v36  ;;  %v5063_v1 = vadd.f32 %v12047_v56, %v4830_v30  ;;  %v14445_v26 = vshll.u32 %v12524_v28, 16  ;;  %v5922_v45 = vrot.slane %v5920_v4, 5  ;;  %v12700_v6 = vsel %vm1252_vm5, %v12592_v53, %v12637_v5  ;;  %v14447_v30 = vld [vmem:[#allocation34_spill] sm:$0xff] }
 0x374   : > { %v6774_v22 = vrot.slane %v6772_v7, 2  ;;  %v6777_v39 = vrot.slane %v6775_v38, 3  ;;  %v12695_v7 = vor.u32 %v6178_v8, %v6177_v62  ;;  %v5925_v24 = vrot.slane %v5923_v51, 6  ;;  %6072 = vrot.lane.b32.xlu1 %v6035_v34, %s8991_s13  ;;  %v5394_v8 = vld [vmem:[#allocation3 + $0x50] sm:$0xf] }
 0x375   : > { %v5916_v25 = vrot.slane %v14445_v26, 6  ;;  %v5134_v56 = vmul.f32 %v5098_v12, %v14446_v2  ;;  %v5099_v38 = vmax.f32 %v5063_v1, 0.0  ;;  %v12704_v28 = vrot.slane %v8538_v31, 3 }
 0x376   : > { %v12693_v46 = vor.u32 %v6777_v39, %v6774_v22  ;;  %v14228_v62 = vrot.slane %v12684_v36, 1  ;;  %v12710_v29 = vld [vmem:[#allocation3 + $0x54] sm:$0xf]  ;;  %v8541_v53 = vunpack.c.l.bf16 %v12688_v33  ;;  %v12713_v51 = vor.u32 %v5925_v24, %v5922_v45 }
 0x377   : > { %v5917_v4 = vor.u32 %v5916_v25, %v5913_v19  ;;  %v8457_v1 = vpack.c.bf16 %v5134_v56, %v5134_v56  ;;  %v5135_v34 = vmul.f32 %v5099_v38, %v14447_v30  ;;  %v5578_v31 = vsel %vm580_vm2, %v12626_v59, %v12681_v52  ;;  %v4657_v19 = vpop.f32.mrb[76].mxu1 }
 0x378   : > { %v6779_v23 = vsel %vm1122_vm3, %v12597_v18, %v12693_v46  ;;  %v12721_v18 = vcombine.low %v5394_v8, %v12710_v29  ;;  %5682 = vrot.lane.b32.xlu0 %v5578_v31, %s8991_s13  ;;  %v6180_v17 = vsel %vm3338_vm13, %v12599_v21, %v12695_v7  ;;  %v5579_v22 = vshrl.u32 %v12589_v10, 16  ;;  %v4659_v26 = vpop.f32.mrb[77].mxu1 }
 0x379   : > { %8733 = vmatmul.mubr.msk.bf16.gmra.mrb[116].mxu0 %vm1290_vm6, %v6779_v23  ;;  %v12730_v39 = vsel %vm3044_vm12, %v12619_v63, %v5917_v4  ;;  %v12734_v59 = vsel %vm3044_vm12, %v5917_v4, %v12713_v51  ;;  %5314 = vst.msk [vmem:[%s11921_s30 + $0x48] sm:$0xf] %vm2392_vm9, %v8457_v1  ;;  %5354 = vst.msk [vmem:[#allocation3 + $0x58] sm:$0xf] %vm2392_vm9, %v8457_v1  ;;  %v8458_v12 = vpack.c.bf16 %v5135_v34, %v5135_v34  ;;  %v4660_v63 = vpop.f32.mrb[78].mxu1 }
 0x37a   : > { %14448 = vst [vmem:[#allocation8_spill] sm:$0xff] %v12734_v59  ;;  %6251 = vrot.lane.b32.xlu1 %v6180_v17, %s8992_s16  ;;  %v4658_v21 = vadd.f32 %v12544_v49, %v4657_v19  ;;  %v14226_v25 = vrot.slane %v12721_v18, 6  ;;  %v14227_v45 = vrot.slane %v12721_v18, 7  ;;  %v14449_v24 = vrot.slane %v12589_v10, 1  ;;  %v4662_v30 = vpop.f32.mrb[79].mxu1 }
 0x37b   : > { %v5583_v56 = vshll.u32 %v12684_v36, 16  ;;  %v5929_v38 = vshrl.u32 %v12721_v18, 16  ;;  %v5932_v4 = vshll.u32 %v12721_v18, 16  ;;  %5315 = vst.msk [vmem:[%s11921_s30 + $0x4c] sm:$0xf] %vm2392_vm9, %v8458_v12  ;;  %v4661_v1 = vadd.f32 %v12544_v49, %v4660_v63 }
 0x37c   : > { %v5727_v2 = vsel %vm768_vm1, %v14449_v24, %v14228_v62  ;;  %5355 = vst.msk [vmem:[#allocation3 + $0x5c] sm:$0xf] %vm2392_vm9, %v8458_v12  ;;  %v4835_v23 = vadd.f32 %v11888_v42, %v4658_v21  ;;  %v14450_v34 = vrot.slane %v12624_v3, 6  ;;  %v14451_v17 = vrot.slane %v12624_v3, 7 }
 0x37d   : > { %5813 = vrot.lane.b32.xlu0 %v5727_v2, %s8992_s16  ;;  %v6181_v21 = vrot.slane %v5929_v38, 6  ;;  %v6182_v26 = vrot.slane %v5932_v4, 7  ;;  %v4838_v24 = vadd.f32 %v11897_v37, %v4661_v1  ;;  %v12770_v30 = vrot.slane %v8541_v53, 3 }
 0x37e   : > { %v6037_v31 = vsel %vm3209_vm10, %v14450_v34, %v14226_v25  ;;  %v6294_v19 = vsel %vm3470_vm11, %v14451_v17, %v14227_v45  ;;  %v5064_v63 = vadd.f32 %v12050_v50, %v4835_v23  ;;  %v8542_v34 = vunpack.c.h.bf16 %v12688_v33  ;;  %v3828_v50 = vld [vmem:[%s9077_s26 + $0x98] sm:$0x3]  ;;  %s13986_s26 = scalar_lea.vmem %s14112_s11, %s8806_s15 }
 0x37f   : > { %v6797_v12 = vshrl.u32 %v6294_v19, 16  ;;  %v6800_v42 = vshll.u32 %v6294_v19, 16  ;;  %6122 = vrot.lane.b32.xlu1 %v6037_v31, %s8990_s12  ;;  %v12774_v17 = vcombine.low %v12617_v47, %v5394_v8  ;;  %v5931_v45 = vrot.slane %v5929_v38, 5  ;;  %v14453_v19 = vld [vmem:[#allocation35_spill] sm:$0xff]  ;;  %v14454_v8 = vld [vmem:[#allocation33_spill] sm:$0xff] }
 0x380   : > { %v5100_v62 = vmax.f32 %v5064_v63, 0.0  ;;  %v5065_v10 = vadd.f32 %v14453_v19, %v4838_v24  ;;  %v12777_v27 = vrot.slane %v5583_v56, 1  ;;  %v5934_v23 = vrot.slane %v5932_v4, 6 }
 0x381   : > { %v6799_v3 = vrot.slane %v6797_v12, 2  ;;  %v6802_v25 = vrot.slane %v6800_v42, 3  ;;  %14452 = vst [vmem:[#allocation5_spill] sm:$0xff] %v12774_v17  ;;  %5762 = vrot.lane.b32.xlu0 %v5727_v2, %s8990_s12  ;;  %v5581_v53 = vor.u32 %v5579_v22, %v12681_v52  ;;  %v12784_v33 = vor.u32 %v6182_v26, %v6181_v21  ;;  %v4665_v42 = vpop.f32.mrb[80].mxu1 }
 0x382   : > { %v12789_v47 = vsel %vm1252_vm5, %v12637_v5, %v12704_v28  ;;  %v5136_v38 = vmul.f32 %v5100_v62, %v14454_v8  ;;  %v5101_v1 = vmax.f32 %v5065_v10, 0.0  ;;  %v12796_v2 = vsel %vm1252_vm5, %v12704_v28, %v12770_v30  ;;  %v5396_v5 = vld [vmem:[#allocation3 + $0x58] sm:$0xf] }
 0x383   : > { %v12781_v37 = vor.u32 %v6802_v25, %v6799_v3  ;;  %6074 = vrot.lane.b32.xlu1 %v6037_v31, %s8991_s13  ;;  %v12798_v25 = vor.u32 %v5934_v23, %v5931_v45  ;;  %v14231_v22 = vrot.slane %v12774_v17, 1  ;;  %v12804_v56 = vld [vmem:[#allocation3 + $0x5c] sm:$0xf]  ;;  %v5004_v10 = vrot.slane %v8542_v34, 3  ;;  %v14455_v31 = vld [vmem:[#allocation37_spill] sm:$0xff]  ;;  %v4667_v34 = vpop.f32.mrb[81].mxu1 }
 0x384   : > { %v3865_v62 = vunpack.c.l.bf16 %v3828_v50  ;;  %v8459_v4 = vpack.c.bf16 %v5136_v38, %v5136_v38  ;;  %v5137_v12 = vmul.f32 %v5101_v1, %v14455_v31  ;;  %v5586_v28 = vsel %vm580_vm2, %v5581_v53, %v12777_v27  ;;  %v4668_v50 = vpop.f32.mrb[82].mxu1  ;;  %v14458_v1 = vld [vmem:[#allocation11_spill] sm:$0xff] }
 0x385   : > { %v6804_v52 = vsel %vm1122_vm3, %v12693_v46, %v12781_v37  ;;  %v12811_v45 = vcombine.low %v5396_v5, %v12804_v56  ;;  %5684 = vrot.lane.b32.xlu0 %v5586_v28, %s8991_s13  ;;  %v6184_v46 = vsel %vm3338_vm13, %v12695_v7, %v12784_v33  ;;  %v5587_v21 = vshrl.u32 %v12684_v36, 16  ;;  %v4670_v31 = vpop.f32.mrb[83].mxu1 }
 0x386   : > { %8736 = vmatprep.mubr.msk.bf16.mxu0 %vm1290_vm6, %v6804_v52  ;;  %v5591_v26 = vshll.u32 %v12774_v17, 16  ;;  %v12822_v63 = vsel %vm3044_vm12, %v12713_v51, %v12798_v25  ;;  %5316 = vst.msk [vmem:[%s11921_s30 + $0x50] sm:$0xf] %vm2392_vm9, %v8459_v4  ;;  %5356 = vst.msk [vmem:[#allocation3 + $0x60] sm:$0xf] %vm2392_vm9, %v8459_v4  ;;  %v8460_v24 = vpack.c.bf16 %v5137_v12, %v5137_v12  ;;  %v14457_v51 = vrot.slane %v12684_v36, 1 }
 0x387   : > { %14456 = vst [vmem:[#allocation9_spill] sm:$0xff] %v12822_v63  ;;  %6253 = vrot.lane.b32.xlu1 %v6184_v46, %s8992_s16  ;;  %v4666_v7 = vadd.f32 %v12544_v49, %v4665_v42  ;;  %v14232_v3 = vrot.slane %v12811_v45, 6  ;;  %v14233_v19 = vrot.slane %v12811_v45, 7  ;;  %v5938_v53 = vshrl.u32 %v12811_v45, 16  ;;  %v14471_v63 = vld [vmem:[#allocation29_spill] sm:$0xff] }
 0x388   : > { %v5729_v23 = vsel %vm768_vm1, %v14457_v51, %v14231_v22  ;;  %v5941_v8 = vshll.u32 %v12811_v45, 16  ;;  %v5006_v38 = vrot.slane %v3865_v62, 3  ;;  %5317 = vst.msk [vmem:[%s11921_s30 + $0x54] sm:$0xf] %vm2392_vm9, %v8460_v24  ;;  %5357 = vst.msk [vmem:[#allocation3 + $0x64] sm:$0xf] %vm2392_vm9, %v8460_v24  ;;  %v4669_v4 = vadd.f32 %v12544_v49, %v4668_v50 }
 0x389   : > { %v4843_v52 = vadd.f32 %v14458_v1, %v4666_v7  ;;  %v14459_v12 = vrot.slane %v12721_v18, 6  ;;  %v14460_v46 = vrot.slane %v12721_v18, 7  ;;  %5815 = vrot.lane.b32.xlu0 %v5729_v23, %s8992_s16  ;;  %v6185_v7 = vrot.slane %v5938_v53, 6  ;;  %v14461_v50 = vld [vmem:[#allocation26_spill] sm:$0xff] }
 0x38a   : > { %v6186_v34 = vrot.slane %v5941_v8, 7  ;;  %v14462_v1 = vld [vmem:[#allocation22_spill] sm:$0xff]  ;;  %v5593_v22 = vrot.slane %v5591_v26, 1 }
 0x38b   : > { %v6039_v28 = vsel %vm3209_vm10, %v14459_v12, %v14232_v3  ;;  %v6296_v62 = vsel %vm3470_vm11, %v14460_v46, %v14233_v19  ;;  %v5066_v51 = vadd.f32 %v14461_v50, %v4843_v52  ;;  %v4846_v31 = vadd.f32 %v14462_v1, %v4669_v4 }
 0x38c   : > { %v6822_v42 = vshrl.u32 %v6296_v62, 16  ;;  %v6825_v24 = vshll.u32 %v6296_v62, 16  ;;  %6124 = vrot.lane.b32.xlu1 %v6039_v28, %s8990_s12  ;;  %v12859_v12 = vsel %vm1252_vm5, %v12770_v30, %v5004_v10  ;;  %v12862_v46 = vcombine.low %v12710_v29, %v5396_v5  ;;  %v12875_v29 = vld [vmem:[#allocation3 + $0xa0] sm:$0xff]   ;;  %v14464_v5 = vld [vmem:[#allocation36_spill] sm:$0xff] }
 0x38d   : > { %v5940_v19 = vrot.slane %v5938_v53, 5  ;;  %v5102_v62 = vmax.f32 %v5066_v51, 0.0  ;;  %v5067_v36 = vadd.f32 %v12288_v60, %v4846_v31  ;;  %v5589_v52 = vor.u32 %v5587_v21, %v12777_v27  ;;  %5764 = vrot.lane.b32.xlu0 %v5729_v23, %s8990_s12  ;;  %v5398_v30 = vld [vmem:[#allocation3 + $0x60] sm:$0xf] }
 0x38e   : > { %v6824_v18 = vrot.slane %v6822_v42, 2  ;;  %v6827_v3 = vrot.slane %v6825_v24, 3  ;;  %14463 = vst [vmem:[#allocation10_spill] sm:$0xff] %v12862_v46  ;;  %v5943_v50 = vrot.slane %v5941_v8, 6  ;;  %v12869_v26 = vor.u32 %v6186_v34, %v6185_v7 }
 0x38f   : > { %v5595_v42 = vshrl.u32 %v12774_v17, 16  ;;  %v12873_v24 = vsel %vm1252_vm5, %v5004_v10, %v5006_v38  ;;  %v5138_v53 = vmul.f32 %v5102_v62, %v14464_v5  ;;  %v5103_v60 = vmax.f32 %v5067_v36, 0.0  ;;  %v12886_v10 = vld [vmem:[#allocation3 + $0x64] sm:$0xf]  ;;  %v14465_v36 = vld [vmem:[#allocation40_spill] sm:$0xff]  ;;  %v4673_v62 = vpop.f32.mrb[84].mxu1 }
 0x390   : > { %v12867_v4 = vor.u32 %v6827_v3, %v6824_v18  ;;  %6076 = vrot.lane.b32.xlu1 %v6039_v28, %s8991_s13  ;;  %v5594_v27 = vsel %vm580_vm2, %v5589_v52, %v5593_v22  ;;  %v12880_v21 = vor.u32 %v5943_v50, %v5940_v19  ;;  %v14237_v23 = vrot.slane %v12862_v46, 1 }
 0x391   : > { %v5597_v8 = vor.u32 %v5595_v42, %v5593_v22  ;;  %v5599_v38 = vshll.u32 %v12862_v46, 16  ;;  %v8461_v7 = vpack.c.bf16 %v5138_v53, %v5138_v53  ;;  %v5139_v34 = vmul.f32 %v5103_v60, %v14465_v36  ;;  %5686 = vrot.lane.b32.xlu0 %v5594_v27, %s8991_s13  ;;  %v4675_v53 = vpop.f32.mrb[85].mxu1 }
 0x392   : > { %v6829_v3 = vsel %vm1122_vm3, %v12781_v37, %v12867_v4  ;;  %v12892_v19 = vcombine.low %v5398_v30, %v12886_v10  ;;  %v12895_v28 = vcombine.low %v12804_v56, %v5398_v30  ;;  %v6188_v37 = vsel %vm3338_vm13, %v12784_v33, %v12869_v26  ;;  %v4676_v36 = vpop.f32.mrb[86].mxu1 }
 0x393   : > { %8737 = vmatmul.mubr.msk.bf16.gmra.mrb[120].mxu0 %vm1290_vm6, %v6829_v3  ;;  %v12904_v22 = vsel %vm3044_vm12, %v12798_v25, %v12880_v21  ;;  %v6222_v51 = vshrl.u32 %v12875_v29, 16  ;;  %v6225_v1 = vshll.u32 %v12875_v29, 16  ;;  %5318 = vst.msk [vmem:[%s11921_s30 + $0x58] sm:$0xf] %vm2392_vm9, %v8461_v7  ;;  %5358 = vst.msk [vmem:[#allocation3 + $0x68] sm:$0xf] %vm2392_vm9, %v8461_v7  ;;  %v8462_v56 = vpack.c.bf16 %v5139_v34, %v5139_v34 }
 0x394   : > { %14466 = vst [vmem:[#allocation12_spill] sm:$0xff] %v12904_v22  ;;  %6255 = vrot.lane.b32.xlu1 %v6188_v37, %s8992_s16  ;;  %v14235_v31 = vrot.slane %v12892_v19, 6  ;;  %v14236_v33 = vrot.slane %v12892_v19, 7  ;;  %v5947_v18 = vshrl.u32 %v12892_v19, 16  ;;  %v14467_v25 = vrot.slane %v12774_v17, 1 }
 0x395   : > { %v5601_v50 = vrot.slane %v5599_v38, 1  ;;  %v5950_v30 = vshll.u32 %v12892_v19, 16  ;;  %5319 = vst.msk [vmem:[%s11921_s30 + $0x5c] sm:$0xf] %vm2392_vm9, %v8462_v56  ;;  %5359 = vst.msk [vmem:[#allocation3 + $0x6c] sm:$0xf] %vm2392_vm9, %v8462_v56  ;;  %v4674_v5 = vadd.f32 %v12544_v49, %v4673_v62  ;;  %v4677_v42 = vadd.f32 %v12544_v49, %v4676_v36 }
 0x396   : > { %v5731_v52 = vsel %vm768_vm1, %v14467_v25, %v14237_v23  ;;  %v14468_v60 = vrot.slane %v12811_v45, 6  ;;  %v14469_v3 = vrot.slane %v12811_v45, 7  ;;  %v5607_v7 = vshll.u32 %v12895_v28, 16  ;;  %v14470_v25 = vld [vmem:[#allocation15_spill] sm:$0xff] }
 0x397   : > { %5817 = vrot.lane.b32.xlu0 %v5731_v52, %s8992_s16  ;;  %v6189_v56 = vrot.slane %v5947_v18, 6  ;;  %v6190_v62 = vrot.slane %v5950_v30, 7  ;;  %v4851_v53 = vadd.f32 %v14470_v25, %v4674_v5  ;;  %v6224_v45 = vrot.slane %v6222_v51, 6 }
 0x398   : > { %v6041_v27 = vsel %vm3209_vm10, %v14468_v60, %v14235_v31  ;;  %v6298_v38 = vsel %vm3470_vm11, %v14469_v3, %v14236_v33  ;;  %v4678_v60 = vpop.f32.mrb[87].mxu1  ;;  %v12941_v31 = vpop.permute.xlu1 %5748  ;;  %v6227_v3 = vrot.slane %v6225_v1, 7  ;;  %v14241_v17 = vrot.slane %v12895_v28, 1 }
 0x399   : > { %v6847_v34 = vshrl.u32 %v6298_v38, 16  ;;  %v6850_v37 = vshll.u32 %v6298_v38, 16  ;;  %6126 = vrot.lane.b32.xlu1 %v6041_v27, %s8990_s12  ;;  %v5949_v22 = vrot.slane %v5947_v18, 5  ;;  %v5068_v38 = vadd.f32 %v12301_v61, %v4851_v53 }
 0x39a   : > { %v4854_v59 = vadd.f32 %v14471_v63, %v4677_v42  ;;  %v5603_v5 = vshrl.u32 %v12862_v46, 16  ;;  %v5952_v25 = vrot.slane %v5950_v30, 6  ;;  %v5602_v60 = vsel %vm580_vm2, %v5597_v8, %v5601_v50  ;;  %v5400_v1 = vld [vmem:[#allocation3 + $0x68] sm:$0xf] }
 0x39b   : > { %v6849_v33 = vrot.slane %v6847_v34, 2  ;;  %v6852_v23 = vrot.slane %v6850_v37, 3  ;;  %5766 = vrot.lane.b32.xlu0 %v5731_v52, %s8990_s12  ;;  %v12951_v51 = vor.u32 %v6190_v62, %v6189_v56  ;;  %v5609_v34 = vrot.slane %v5607_v7, 1  ;;  %v12953_v37 = vld [vmem:[#allocation3 + $0xa8] ss:$0 sps:$4 sm:$0x11]  }
 0x39c   : > { %v5104_v18 = vmax.f32 %v5068_v38, 0.0  ;;  %v5069_v61 = vadd.f32 %v12324_v57, %v4854_v59  ;;  %v6059_v63 = vpop.permute.xlu1 %6058  ;;  %v5605_v42 = vor.u32 %v5603_v5, %v5601_v50  ;;  %v12957_v30 = vor.u32 %v5952_v25, %v5949_v22  ;;  %v12967_v52 = vld [vmem:[#allocation3 + $0x6c] sm:$0xf] }
 0x39d   : > { %v12948_v36 = vor.u32 %v6852_v23, %v6849_v33  ;;  %6078 = vrot.lane.b32.xlu1 %v6041_v27, %s8991_s13  ;;  %v14472_v8 = vrot.slane %v12862_v46, 1  ;;  %v5611_v57 = vshrl.u32 %v12895_v28, 16  ;;  %v12970_v59 = vor.u32 %v6227_v3, %v6224_v45  ;;  %v14473_v27 = vld [vmem:[#allocation39_spill] sm:$0xff] }
 0x39e   : > { %v5140_v50 = vmul.f32 %v5104_v18, %v14473_v27  ;;  %v5105_v22 = vmax.f32 %v5069_v61, 0.0  ;;  %v12975_v7 = vcombine.low %v5400_v1, %v12967_v52  ;;  %v6192_v56 = vsel %vm3338_vm13, %v12869_v26, %v12951_v51  ;;  %v13001_v18 = vpop.permute.xlu0 %5750 }
 0x39f   : > { %v6854_v23 = vsel %vm1122_vm3, %v12867_v4, %v12948_v36  ;;  %v5733_v33 = vsel %vm768_vm1, %v14472_v8, %v14241_v17  ;;  %v12978_v4 = vcombine.low %v12886_v10, %v5400_v1  ;;  %5688 = vrot.lane.b32.xlu0 %v5602_v60, %s8991_s13  ;;  %v12985_v62 = vsel %vm580_vm2, %v5605_v42, %v5609_v34  ;;  %v14475_v10 = vld [vmem:[#allocation43_spill] sm:$0xff] }
 0x3a0   : > { %8740 = vmatprep.mubr.msk.bf16.mxu0 %vm1290_vm6, %v6854_v23  ;;  %v6106_v53 = vrot.slane %v12953_v37, 6  ;;  %v12991_v45 = vsel %vm3044_vm12, %v12880_v21, %v12957_v30  ;;  %v8463_v3 = vpack.c.bf16 %v5140_v50, %v5140_v50  ;;  %v5141_v38 = vmul.f32 %v5105_v22, %v14475_v10  ;;  %v5671_v5 = vpop.permute.xlu1 %5670 }
 0x3a1   : > { %14474 = vst [vmem:[#allocation13_spill] sm:$0xff] %v12991_v45  ;;  %6257 = vrot.lane.b32.xlu1 %v6192_v56, %s8992_s16  ;;  %v14240_v25 = vrot.slane %v12975_v7, 6  ;;  %v14239_v26 = vrot.slane %v12975_v7, 7  ;;  %v14476_v60 = vcombine.low %v12384_v55, %v11894_v20  ;;  %v5956_v21 = vshrl.u32 %v12975_v7, 16 }
 0x3a2   : > { %v5959_v61 = vshll.u32 %v12975_v7, 16  ;;  %v5613_v42 = vor.u32 %v5611_v57, %v5609_v34  ;;  %5320 = vst.msk [vmem:[%s11921_s30 + $0x60] sm:$0xf] %vm2392_vm9, %v8463_v3  ;;  %5360 = vst.msk [vmem:[#allocation3 + $0x70] sm:$0xf] %vm2392_vm9, %v8463_v3  ;;  %v8464_v23 = vpack.c.bf16 %v5141_v38, %v5141_v38  ;;  %v14477_v8 = vrot.slane %v12892_v19, 6 }
 0x3a3   : > { %v6319_v1 = vsel %vm1290_vm6, %v14476_v60, %v5671_v5  ;;  %v14478_v55 = vrot.slane %v12892_v19, 7  ;;  %v5615_v50 = vshll.u32 %v12978_v4, 16  ;;  %5819 = vrot.lane.b32.xlu0 %v5733_v33, %s8992_s16  ;;  %v6193_v22 = vrot.slane %v5956_v21, 6 }
 0x3a4   : > { %v6043_v20 = vsel %vm3209_vm10, %v14477_v8, %v14240_v25  ;;  %v6194_v56 = vrot.slane %v5959_v61, 7  ;;  %5321 = vst.msk [vmem:[%s11921_s30 + $0x64] sm:$0xf] %vm2392_vm9, %v8464_v23  ;;  %5361 = vst.msk [vmem:[#allocation3 + $0x74] sm:$0xf] %vm2392_vm9, %v8464_v23  ;;  %v6357_v3 = vsel %vm1327_vm7, %v6319_v1, %v12941_v31  ;;  %v5802_v19 = vpop.permute.xlu1 %5801  ;;  %v14479_v38 = vrot.slane %v12875_v29, 6 }
 0x3a5   : > { %v6300_v27 = vsel %vm3470_vm11, %v14478_v55, %v14239_v26  ;;  %6128 = vrot.lane.b32.xlu1 %v6043_v20, %s8990_s12  ;;  %v5958_v60 = vrot.slane %v5956_v21, 5  ;;  %v4681_v8 = vpop.f32.mrb[88].mxu1  ;;  %v6395_v55 = vsel %vm1364_vm8, %v6357_v3, %v5802_v19  ;;  %v5961_v25 = vrot.slane %v5959_v61, 6 }
 0x3a6   : > { %v6872_v34 = vshrl.u32 %v6300_v27, 16  ;;  %v6875_v57 = vshll.u32 %v6300_v27, 16  ;;  %v13030_v5 = vsel %vm3209_vm10, %v14479_v38, %v6106_v53  ;;  %v6061_v27 = vpop.permute.xlu0 %6060  ;;  %v4682_v17 = vadd.f32 %v12544_v49, %v4681_v8  ;;  %v4683_v46 = vpop.f32.mrb[89].mxu1 }
 0x3a7   : > { %v6608_v31 = vshrl.u32 %v6395_v55, 16  ;;  %v6611_v1 = vshll.u32 %v6395_v55, 16  ;;  %v13034_v45 = vor.u32 %v6194_v56, %v6193_v22  ;;  %v6434_v10 = vsel %vm1290_vm6, %v12272_v48, %v6059_v63  ;;  %v4684_v53 = vpop.f32.mrb[90].mxu1  ;;  %5768 = vrot.lane.b32.xlu0 %v5733_v33, %s8990_s12  ;;  %v14483_v55 = vld [vmem:[#allocation21_spill] sm:$0xff] }
 0x3a8   : > { %v6874_v26 = vrot.slane %v6872_v34, 2  ;;  %v6877_v23 = vrot.slane %v6875_v57, 3  ;;  %v5617_v3 = vrot.slane %v5615_v50, 1  ;;  %v5619_v34 = vshrl.u32 %v12978_v4, 16  ;;  %v14480_v57 = vld [vmem:[#allocation17_spill] sm:$0xff]  ;;  %v4686_v46 = vpop.f32.mrb[91].mxu1  ;;  %v6109_v48 = vpop.permute.xlu1 %6108 }
 0x3a9   : > { %v4859_v61 = vadd.f32 %v14480_v57, %v4682_v17  ;;  %v4685_v19 = vadd.f32 %v12544_v49, %v4684_v53  ;;  %v13046_v22 = vsel %vm1290_vm6, %v12306_v35, %v6061_v27  ;;  %6080 = vrot.lane.b32.xlu1 %v6043_v20, %s8991_s13  ;;  %v14481_v63 = vrot.slane %v12978_v4, 1  ;;  %v5402_v35 = vld [vmem:[#allocation3 + $0x70] sm:$0xf] }
 0x3aa   : > { %v13039_v21 = vor.u32 %v6877_v23, %v6874_v26  ;;  %v14482_v33 = vrot.slane %v12895_v28, 1  ;;  %v13054_v50 = vrot.slane %v6608_v31, 2  ;;  %v13056_v56 = vrot.slane %v6611_v1, 3  ;;  %v5673_v17 = vpop.permute.xlu0 %5672  ;;  %v14484_v23 = vld [vmem:[#allocation24_spill] sm:$0xff] }
 0x3ab   : > { %v13061_v8 = vor.u32 %v5961_v25, %v5958_v60  ;;  %v5070_v20 = vadd.f32 %v12329_v41, %v4859_v61  ;;  %v4862_v27 = vadd.f32 %v14483_v55, %v4685_v19  ;;  %v6321_v53 = vsel %vm1290_vm6, %v14484_v23, %v5673_v17  ;;  %5690 = vrot.lane.b32.xlu0 %v12985_v62, %s8991_s13 }
 0x3ac   : > { %v5735_v26 = vsel %vm768_vm1, %v14482_v33, %v14481_v63  ;;  %v6879_v38 = vsel %vm1122_vm3, %v12948_v36, %v13039_v21  ;;  %v6196_v31 = vsel %vm3338_vm13, %v12951_v51, %v13034_v45  ;;  %v13073_v36 = vld [vmem:[#allocation3 + $0x74] sm:$0xf]  ;;  %v13076_v25 = vsel %vm580_vm2, %v5613_v42, %v5617_v3  ;;  %v6240_v61 = vpop.permute.xlu1 %6239 }
 0x3ad   : > { %8741 = vmatmul.mubr.msk.bf16.gmra.mrb[124].mxu0 %vm1290_vm6, %v6879_v38  ;;  %v13079_v41 = vcombine.low %v12967_v52, %v5402_v35  ;;  %v13081_v60 = vor.u32 %v5619_v34, %v5617_v3  ;;  %v13086_v1 = vsel %vm3044_vm12, %v12957_v30, %v13061_v8  ;;  %v5106_v57 = vmax.f32 %v5070_v20, 0.0  ;;  %6259 = vrot.lane.b32.xlu1 %v6196_v31, %s8992_s16  ;;  %v14486_v20 = vld [vmem:[#allocation46_spill] sm:$0xff]  ;;  %v4689_v31 = vpop.f32.mrb[92].mxu1 }
 0x3ae   : > { %v5071_v51 = vadd.f32 %v12501_v13, %v4862_v27  ;;  %v6490_v62 = vsel %vm1327_vm7, %v6434_v10, %v6109_v48  ;;  %v13092_v42 = vcombine.low %v5402_v35, %v13073_v36  ;;  %v6359_v30 = vsel %vm1327_vm7, %v6321_v53, %v13001_v18  ;;  %v5804_v34 = vpop.permute.xlu0 %5803  ;;  %v14485_v13 = vld [vmem:[#allocation42_spill] sm:$0xff] }
 0x3af   : > { %v6528_v3 = vsel %vm1364_vm8, %v6490_v62, %v6240_v61  ;;  %v5142_v46 = vmul.f32 %v5106_v57, %v14485_v13  ;;  %v6397_v33 = vsel %vm1364_vm8, %v6359_v30, %v5804_v34  ;;  %5821 = vrot.lane.b32.xlu0 %v5735_v26, %s8992_s16  ;;  %v5623_v35 = vshll.u32 %v13079_v41, 16 }
 0x3b0   : > { %v5107_v10 = vmax.f32 %v5071_v51, 0.0  ;;  %v6623_v48 = vshrl.u32 %v6528_v3, 16  ;;  %v6626_v63 = vshll.u32 %v6528_v3, 16  ;;  %v14243_v17 = vrot.slane %v13092_v42, 6  ;;  %v6063_v27 = vpop.permute.xlu1 %6062 }
 0x3b1   : > { %v14244_v38 = vrot.slane %v13092_v42, 7  ;;  %v8465_v18 = vpack.c.bf16 %v5142_v46, %v5142_v46  ;;  %v5965_v23 = vshrl.u32 %v13092_v42, 16  ;;  %v6615_v51 = vshrl.u32 %v6397_v33, 16 }
 0x3b2   : > { %v5143_v55 = vmul.f32 %v5107_v10, %v14486_v20  ;;  %v13109_v57 = vrot.slane %v6623_v48, 2  ;;  %v6618_v62 = vshll.u32 %v6397_v33, 16  ;;  %v14487_v61 = vrot.slane %v12975_v7, 6  ;;  %v13116_v30 = vpop.permute.xlu0 %5752  ;;  %v4691_v10 = vpop.f32.mrb[93].mxu1 }
 0x3b3   : > { %5322 = vst.msk [vmem:[%s11921_s30 + $0x68] sm:$0xf] %vm2392_vm9, %v8465_v18  ;;  %5362 = vst.msk [vmem:[#allocation3 + $0x78] sm:$0xf] %vm2392_vm9, %v8465_v18  ;;  %v4690_v13 = vadd.f32 %v12544_v49, %v4689_v31  ;;  %v13122_v46 = vrot.slane %v6626_v63, 3  ;;  %v14488_v48 = vrot.slane %v12975_v7, 7  ;;  %5770 = vrot.lane.b32.xlu0 %v5735_v26, %s8990_s12  ;;  %v6440_v7 = vsel %vm1290_vm6, %v12434_v15, %v6063_v27 }
 0x3b4   : > { %v6045_v3 = vsel %vm3209_vm10, %v14487_v61, %v14243_v17  ;;  %v8466_v34 = vpack.c.bf16 %v5143_v55, %v5143_v55  ;;  %v6617_v20 = vrot.slane %v6615_v51, 2  ;;  %v6620_v61 = vrot.slane %v6618_v62, 3  ;;  %v4692_v17 = vpop.f32.mrb[94].mxu1  ;;  %v14489_v63 = vld [vmem:[#allocation32_spill] sm:$0xff]  ;;  %v6113_v26 = vpop.permute.xlu1 %6112 }
 0x3b5   : > { %6130 = vrot.lane.b32.xlu1 %v6045_v3, %s8990_s12  ;;  %v6302_v33 = vsel %vm3470_vm11, %v14488_v48, %v14244_v38  ;;  %v4867_v31 = vadd.f32 %v14489_v63, %v4690_v13  ;;  %v4693_v10 = vadd.f32 %v12544_v49, %v4692_v17  ;;  %v4694_v53 = vpop.f32.mrb[95].mxu1  ;;  %v5968_v51 = vshll.u32 %v13092_v42, 16  ;;  %v14490_v13 = vld [vmem:[#allocation38_spill] sm:$0xff] }
 0x3b6   : > { %v6897_v18 = vshrl.u32 %v6302_v33, 16  ;;  %v6900_v55 = vshll.u32 %v6302_v33, 16  ;;  %5323 = vst.msk [vmem:[%s11921_s30 + $0x6c] sm:$0xf] %vm2392_vm9, %v8466_v34  ;;  %5363 = vst.msk [vmem:[#allocation3 + $0x7c] sm:$0xf] %vm2392_vm9, %v8466_v34  ;;  %v13139_v62 = vor.u32 %v6620_v61, %v6617_v20  ;;  %v6111_v48 = vpop.permute.xlu0 %6110  ;;  %v6629_v34 = vor.u32 %v13122_v46, %v13109_v57 }
 0x3b7   : > { %v6197_v52 = vrot.slane %v5965_v23, 6  ;;  %v5072_v19 = vadd.f32 %v12583_v0, %v4867_v31  ;;  %v4870_v49 = vadd.f32 %v14490_v13, %v4693_v10  ;;  %v14491_v15 = vrot.slane %v13079_v41, 1  ;;  %5692 = vrot.lane.b32.xlu0 %v13076_v25, %s8991_s13  ;;  %v14502_v46 = vld [vmem:[#allocation47_spill] sm:$0xff] }
 0x3b8   : > { %v6899_v38 = vrot.slane %v6897_v18, 2  ;;  %v6902_v33 = vrot.slane %v6900_v55, 3  ;;  %v14492_v17 = vrot.slane %v12978_v4, 1  ;;  %v6492_v53 = vsel %vm1327_vm7, %v13046_v22, %v6111_v48 }
 0x3b9   : > { %6082 = vrot.lane.b32.xlu1 %v6045_v3, %s8991_s13  ;;  %v6198_v0 = vrot.slane %v5968_v51, 7  ;;  %v5625_v61 = vrot.slane %v5623_v35, 1  ;;  %v5108_v18 = vmax.f32 %v5072_v19, 0.0  ;;  %v5073_v55 = vadd.f32 %v12610_v32, %v4870_v49  ;;  %v14494_v32 = vld [vmem:[#allocation45_spill] sm:$0xff] }
 0x3ba   : > { %v5737_v27 = vsel %vm768_vm1, %v14492_v17, %v14491_v15  ;;  %v13153_v20 = vor.u32 %v6902_v33, %v6899_v38  ;;  %v5967_v3 = vrot.slane %v5965_v23, 5  ;;  %v5970_v63 = vrot.slane %v5968_v51, 6  ;;  %v5675_v22 = vpop.permute.xlu0 %5674  ;;  %v6065_v38 = vpop.permute.xlu1 %6064  ;;  %v5404_v48 = vld [vmem:[#allocation3 + $0x78] sm:$0xf] }
 0x3bb   : > { %v6494_v31 = vsel %vm1327_vm7, %v6440_v7, %v6113_v26  ;;  %v13162_v13 = vor.u32 %v6198_v0, %v6197_v52  ;;  %v14493_v25 = vor.u32 %v13056_v56, %v13054_v50  ;;  %v5144_v35 = vmul.f32 %v5108_v18, %v14494_v32  ;;  %v14495_v7 = vld [vmem:[#allocation19_spill] sm:$0xff]  ;;  %5823 = vrot.lane.b32.xlu0 %v5737_v27, %s8992_s16 }
 0x3bc   : > { %v6904_v10 = vsel %vm1122_vm3, %v13039_v21, %v13153_v20  ;;  %v5109_v23 = vmax.f32 %v5073_v55, 0.0  ;;  %v6323_v21 = vsel %vm1290_vm6, %v14495_v7, %v5675_v22  ;;  %v5626_v52 = vsel %vm580_vm2, %v13081_v60, %v5625_v61  ;;  %v14497_v60 = vld [vmem:[#allocation49_spill] sm:$0xff] }
 0x3bd   : > { %v13169_v19 = vsel %vm1122_vm3, %v14493_v25, %v13139_v62  ;;  %8744 = vmatprep.mubr.msk.bf16.mxu0 %vm1290_vm6, %v6904_v10  ;;  %v6200_v51 = vsel %vm3338_vm13, %v13034_v45, %v13162_v13  ;;  %v13181_v50 = vld [vmem:[#allocation3 + $0x7c] sm:$0xf]  ;;  %v13184_v56 = vcombine.low %v13073_v36, %v5404_v48  ;;  %v14496_v26 = vshrl.u32 %v13079_v41, 16 }
 0x3be   : > { %v13190_v49 = vor.u32 %v5970_v63, %v5967_v3  ;;  %v8467_v15 = vpack.c.bf16 %v5144_v35, %v5144_v35  ;;  %v5145_v17 = vmul.f32 %v5109_v23, %v14497_v60  ;;  %6261 = vrot.lane.b32.xlu1 %v6200_v51, %s8992_s16  ;;  %v13196_v45 = vsel %vm1290_vm6, %v12438_v58, %v6065_v38  ;;  %v6242_v36 = vpop.permute.xlu0 %6241 }
 0x3bf   : > { %v13188_v33 = vor.u32 %v14496_v26, %v5625_v61  ;;  %v13199_v0 = vcombine.low %v5404_v48, %v13181_v50  ;;  %v6361_v18 = vsel %vm1327_vm7, %v6323_v21, %v13116_v30  ;;  %v5738_v61 = vrot.slane %v13184_v56, 1  ;;  %v6244_v30 = vpop.permute.xlu1 %6243  ;;  %5772 = vrot.lane.b32.xlu0 %v5737_v27, %s8990_s12 }
 0x3c0   : > { %v5631_v55 = vshll.u32 %v13184_v56, 16  ;;  %v13208_v3 = vsel %vm3044_vm12, %v13061_v8, %v13190_v49  ;;  %5324 = vst.msk [vmem:[%s11921_s30 + $0x70] sm:$0xf] %vm2392_vm9, %v8467_v15  ;;  %5364 = vst.msk [vmem:[#allocation3 + $0x80] sm:$0xf] %vm2392_vm9, %v8467_v15  ;;  %v8468_v58 = vpack.c.bf16 %v5145_v17, %v5145_v17  ;;  %v6530_v10 = vsel %vm1364_vm8, %v6492_v53, %v6242_v36 }
 0x3c1   : > { %v6046_v63 = vrot.slane %v13199_v0, 6  ;;  %v14245_v22 = vrot.slane %v13199_v0, 7  ;;  %v6630_v38 = vshrl.u32 %v6530_v10, 16  ;;  %v6633_v48 = vshll.u32 %v6530_v10, 16 }
 0x3c2   : > { %v6532_v25 = vsel %vm1364_vm8, %v6494_v31, %v6244_v30  ;;  %v5974_v8 = vshrl.u32 %v13199_v0, 16  ;;  %5325 = vst.msk [vmem:[%s11921_s30 + $0x74] sm:$0xf] %vm2392_vm9, %v8468_v58  ;;  %5365 = vst.msk [vmem:[#allocation3 + $0x84] sm:$0xf] %vm2392_vm9, %v8468_v58  ;;  %v14498_v32 = vrot.slane %v13092_v42, 6  ;;  %v5806_v51 = vpop.permute.xlu0 %5805 }
 0x3c3   : > { %v6663_v35 = vshrl.u32 %v6532_v25, 16  ;;  %v6666_v23 = vshll.u32 %v6532_v25, 16  ;;  %v14499_v31 = vrot.slane %v13092_v42, 7  ;;  %v6632_v7 = vrot.slane %v6630_v38, 2  ;;  %v6115_v58 = vpop.permute.xlu1 %6114  ;;  %v4697_v25 = vpop.f32.mrb[96].mxu1  ;;  %5694 = vrot.lane.b32.xlu0 %v5626_v52, %s8991_s13 }
 0x3c4   : > { %v6047_v53 = vsel %vm3209_vm10, %v14498_v32, %v6046_v63  ;;  %v6635_v21 = vrot.slane %v6633_v48, 3  ;;  %v6399_v36 = vsel %vm1364_vm8, %v6361_v18, %v5806_v51  ;;  %v5977_v10 = vshll.u32 %v13199_v0, 16  ;;  %v13242_v48 = vld [vmem:[%s14106_s5] ss:$0 sm:$0xff] }
 0x3c5   : > { %v6304_v27 = vsel %vm3470_vm11, %v14499_v31, %v14245_v22  ;;  %6132 = vrot.lane.b32.xlu1 %v6047_v53, %s8990_s12  ;;  %v6665_v60 = vrot.slane %v6663_v35, 2  ;;  %v6668_v17 = vrot.slane %v6666_v23, 3  ;;  %v6655_v32 = vshrl.u32 %v6399_v36, 16  ;;  %v4699_v35 = vpop.f32.mrb[97].mxu1 }
 0x3c6   : > { %v6922_v26 = vshrl.u32 %v6304_v27, 16  ;;  %v6925_v15 = vshll.u32 %v6304_v27, 16  ;;  %v6636_v30 = vor.u32 %v6635_v21, %v6632_v7  ;;  %v6658_v42 = vshll.u32 %v6399_v36, 16  ;;  %v4700_v51 = vpop.f32.mrb[98].mxu1  ;;  %v14500_v36 = vld [vmem:[#allocation41_spill] sm:$0xff] }
 0x3c7   : > { %v13237_v38 = vor.u32 %v6668_v17, %v6665_v60  ;;  %v4698_v18 = vadd.f32 %v13242_v48, %v4697_v25  ;;  %v6657_v7 = vrot.slane %v6655_v32, 2  ;;  %v6201_v52 = vrot.slane %v5974_v8, 6  ;;  %v5755_v17 = vpop.permute.xlu0 %5754 }
 0x3c8   : > { %v6924_v23 = vrot.slane %v6922_v26, 2  ;;  %v6927_v27 = vrot.slane %v6925_v15, 3  ;;  %v6660_v21 = vrot.slane %v6658_v42, 3  ;;  %v6202_v60 = vrot.slane %v5977_v10, 7  ;;  %v4702_v26 = vpop.f32.mrb[99].mxu1  ;;  %v6067_v15 = vpop.permute.xlu1 %6066 }
 0x3c9   : > { %6084 = vrot.lane.b32.xlu1 %v6047_v53, %s8991_s13  ;;  %v4875_v22 = vadd.f32 %v14500_v36, %v4698_v18  ;;  %v4701_v31 = vadd.f32 %v13242_v48, %v4700_v51  ;;  %v6637_v53 = vsel %vm1122_vm3, %v6629_v34, %v6636_v30  ;;  %v6496_v42 = vsel %vm1327_vm7, %v13196_v45, %v6115_v58  ;;  %v5406_v45 = vld [vmem:[#allocation3 + $0x80] sm:$0xf]  ;;  %v14503_v26 = vld [vmem:[#allocation48_spill] sm:$0xff] }
 0x3ca   : > { %v13252_v25 = vor.u32 %v6927_v27, %v6924_v23  ;;  %v13258_v32 = vor.u32 %v6660_v21, %v6657_v7  ;;  %v13262_v35 = vor.u32 %v6202_v60, %v6201_v52  ;;  %7310 = vmatprep.mubr.bf16.mxu1 %v6637_v53  ;;  %v14501_v18 = vrot.slane %v13079_v41, 1  ;;  %v13269_v27 = vld [vmem:[#allocation3 + $0x84] sm:$0xf]  ;;  %v4705_v60 = vpop.f32.mrb[100].mxu1 }
 0x3cb   : > { %v5074_v57 = vadd.f32 %v12635_v44, %v4875_v22  ;;  %v4878_v34 = vadd.f32 %v14502_v46, %v4701_v31  ;;  %7311 = vmatmul.mubr.bf16.vlgmr.msra.gmra.mrb[108].mxu1 %v13169_v19  ;;  %v13280_v58 = vrot.slane %v5631_v55, 1  ;;  %v13288_v22 = vsel %vm1290_vm6, %v12535_v14, %v6067_v15  ;;  %v5677_v31 = vpop.permute.xlu0 %5676 }
 0x3cc   : > { %v5739_v23 = vsel %vm768_vm1, %v14501_v18, %v5738_v61  ;;  %v6929_v7 = vsel %vm1122_vm3, %v13153_v20, %v13252_v25  ;;  %v6204_v44 = vsel %vm3338_vm13, %v13162_v13, %v13262_v35  ;;  %v13291_v20 = vcombine.low %v5406_v45, %v13269_v27  ;;  %v6246_v51 = vpop.permute.xlu1 %6245  ;;  %v4707_v18 = vpop.f32.mrb[101].mxu1 }
 0x3cd   : > { %5825 = vrot.lane.b32.xlu0 %v5739_v23, %s8992_s16  ;;  %8745 = vmatmul.mubr.msk.bf16.gmra.mrb[128].mxu0 %vm1290_vm6, %v6929_v7  ;;  %v6670_v19 = vsel %vm1122_vm3, %v6636_v30, %v13237_v38  ;;  %v5110_v21 = vmax.f32 %v5074_v57, 0.0  ;;  %v5075_v55 = vadd.f32 %v12700_v6, %v4878_v34  ;;  %v6325_v13 = vsel %vm1290_vm6, %v12107_v40, %v5677_v31  ;;  %v8978_v40 = vld [vmem:[%s14107_s6 + $0x80] sm:$0xff]   ;;  %v4708_v34 = vpop.f32.mrb[102].mxu1  ;;  %v14504_v31 = vld [vmem:[#allocation51_spill] sm:$0xff] }
 0x3ce   : > { %6263 = vrot.lane.b32.xlu1 %v6204_v44, %s8992_s16  ;;  %7318 = vmatprep.mubr.bf16.mxu1 %v6670_v19  ;;  %v6662_v14 = vsel %vm1122_vm3, %v13139_v62, %v13258_v32  ;;  %v6048_v52 = vrot.slane %v13291_v20, 6  ;;  %v6534_v30 = vsel %vm1364_vm8, %v6496_v42, %v6246_v51  ;;  %v5634_v6 = vsel %vm580_vm2, %v13188_v33, %v13280_v58  ;;  %v8979_v33 = vld [vmem:[%s14107_s6 + $0x88] sm:$0xff]  }
 0x3cf   : > { %v5983_v36 = vshrl.u32 %v13291_v20, 16  ;;  %8802 = vmatpush3.bf16.msra.mxu1 %v8978_v40  ;;  %v5146_v15 = vmul.f32 %v5110_v21, %v14503_v26  ;;  %v5111_v53 = vmax.f32 %v5075_v55, 0.0  ;;  %v4706_v62 = vadd.f32 %v13242_v48, %v4705_v60  ;;  %v5808_v44 = vpop.permute.xlu0 %5807  ;;  %v4710_v60 = vpop.f32.mrb[103].mxu1 }
 0x3d0   : > { %v6688_v57 = vshrl.u32 %v6534_v30, 16  ;;  %8801 = vmatprep.subr.bf16.mxu1 %v8979_v33  ;;  %v6049_v42 = vsel %vm3209_vm10, %v6046_v63, %v6048_v52  ;;  %v6691_v46 = vshll.u32 %v6534_v30, 16  ;;  %v6363_v7 = vsel %vm1327_vm7, %v6325_v13, %v5755_v17  ;;  %v6117_v40 = vpop.permute.xlu1 %6116 }
 0x3d1   : > { %5774 = vrot.lane.b32.xlu0 %v5739_v23, %s8990_s12  ;;  %v5986_v19 = vshll.u32 %v13291_v20, 16  ;;  %v8469_v23 = vpack.c.bf16 %v5146_v15, %v5146_v15  ;;  %v5147_v21 = vmul.f32 %v5111_v53, %v14504_v31  ;;  %v4883_v55 = vadd.f32 %v12262_v54, %v4706_v62 }
 0x3d2   : > { %6134 = vrot.lane.b32.xlu1 %v6049_v42, %s8990_s12  ;;  %v6690_v51 = vrot.slane %v6688_v57, 2  ;;  %v6693_v26 = vrot.slane %v6691_v46, 3  ;;  %v4709_v63 = vadd.f32 %v13242_v48, %v4708_v34  ;;  %v6401_v30 = vsel %vm1364_vm8, %v6363_v7, %v5808_v44  ;;  %v13352_v7 = vld [vmem:[#allocation3 + $0xa0] ss:$0 sps:$4 sm:$0x11]  }
 0x3d3   : > { %v6205_v17 = vrot.slane %v5983_v36, 6  ;;  %8803 = vmatpush3.bf16.msra.mxu1 %v8979_v33  ;;  %5326 = vst.msk [vmem:[%s11921_s30 + $0x78] sm:$0xf] %vm2392_vm9, %v8469_v23  ;;  %5366 = vst.msk [vmem:[#allocation3 + $0x88] sm:$0xf] %vm2392_vm9, %v8469_v23  ;;  %v8470_v13 = vpack.c.bf16 %v5147_v21, %v5147_v21  ;;  %v5076_v54 = vadd.f32 %v12789_v47, %v4883_v55  ;;  %v6680_v15 = vshrl.u32 %v6401_v30, 16  ;;  %v5757_v33 = vpop.permute.xlu0 %5756 }
 0x3d4   : > { %v6683_v53 = vshll.u32 %v6401_v30, 16  ;;  %7319 = vmatmul.mubr.bf16.gmra.mrb[112].mxu1 %v6662_v14  ;;  %v13336_v62 = vor.u32 %v6693_v26, %v6690_v51  ;;  %v4886_v18 = vadd.f32 %v12281_v43, %v4709_v63  ;;  %v6206_v57 = vrot.slane %v5986_v19, 7  ;;  %v13350_v43 = vpop.permute.xlu1 %6068  ;;  %v14506_v21 = vld [vmem:[#allocation50_spill] sm:$0xff] }
 0x3d5   : > { %5696 = vrot.lane.b32.xlu0 %v5634_v6, %s8991_s13  ;;  %v13342_v46 = vcombine.low %v13181_v50, %v5406_v45  ;;  %5327 = vst.msk [vmem:[%s11921_s30 + $0x7c] sm:$0xf] %vm2392_vm9, %v8470_v13  ;;  %5367 = vst.msk [vmem:[#allocation3 + $0x8c] sm:$0xf] %vm2392_vm9, %v8470_v13  ;;  %v5112_v47 = vmax.f32 %v5076_v54, 0.0  ;;  %v6682_v6 = vrot.slane %v6680_v15, 2  ;;  %v6498_v34 = vsel %vm1327_vm7, %v13288_v22, %v6117_v40 }
 0x3d6   : > { %6086 = vrot.lane.b32.xlu1 %v6049_v42, %s8991_s13  ;;  %v6685_v14 = vrot.slane %v6683_v53, 3  ;;  %v5077_v44 = vadd.f32 %v12796_v2, %v4886_v18  ;;  %v13355_v50 = vor.u32 %v6206_v57, %v6205_v17  ;;  %v4713_v45 = vpop.f32.mrb[104].mxu1  ;;  %v14505_v31 = vshrl.u32 %v13184_v56, 16  ;;  %v14508_v57 = vld [vmem:[#allocation54_spill] sm:$0xff] }
 0x3d7   : > { %v5740_v23 = vrot.slane %v13342_v46, 1  ;;  %v5148_v55 = vmul.f32 %v5112_v47, %v14506_v21  ;;  %v4714_v22 = vadd.f32 %v13242_v48, %v4713_v45  ;;  %v4715_v60 = vpop.f32.mrb[105].mxu1  ;;  %v6695_v2 = vsel %vm1122_vm3, %v13237_v38, %v13336_v62  ;;  %v5679_v30 = vpop.permute.xlu0 %5678  ;;  %v14507_v38 = vld [vmem:[#allocation53_spill] sm:$0xff]  ;;  %v14509_v45 = vld [vmem:[#allocation44_spill] sm:$0xff] }
 0x3d8   : > { %v5637_v42 = vor.u32 %v14505_v31, %v13280_v58  ;;  %v13362_v51 = vor.u32 %v6685_v14, %v6682_v6  ;;  %v5113_v40 = vmax.f32 %v5077_v44, 0.0  ;;  %v6208_v26 = vsel %vm3338_vm13, %v13262_v35, %v13355_v50  ;;  %v4716_v63 = vpop.f32.mrb[106].mxu1  ;;  %7326 = vmatprep.mubr.bf16.mxu1 %v6695_v2  ;;  %v6248_v53 = vpop.permute.xlu1 %6247 }
 0x3d9   : > { %v5741_v58 = vsel %vm768_vm1, %v5738_v61, %v5740_v23  ;;  %v5639_v17 = vshll.u32 %v13342_v46, 16  ;;  %v8471_v13 = vpack.c.bf16 %v5148_v55, %v5148_v55  ;;  %v4891_v54 = vadd.f32 %v14507_v38, %v4714_v22  ;;  %v4718_v35 = vpop.f32.mrb[107].mxu1  ;;  %v14510_v38 = vld [vmem:[#allocation52_spill] sm:$0xff] }
 0x3da   : > { %6265 = vrot.lane.b32.xlu1 %v6208_v26, %s8992_s16  ;;  %v4717_v15 = vadd.f32 %v13242_v48, %v4716_v63  ;;  %5827 = vrot.lane.b32.xlu0 %v5741_v58, %s8992_s16  ;;  %v6056_v18 = vrot.slane %v13352_v7, 6  ;;  %v5149_v61 = vmul.f32 %v5113_v40, %v14508_v57  ;;  %v6327_v47 = vsel %vm1290_vm6, %v12258_v16, %v5679_v30  ;;  %v5408_v44 = vld [vmem:[#allocation3 + $0x88] sm:$0xf] }
 0x3db   : > { %v6536_v6 = vsel %vm1364_vm8, %v6498_v34, %v6248_v53  ;;  %v6687_v14 = vsel %vm1122_vm3, %v13258_v32, %v13362_v51  ;;  %5328 = vst.msk [vmem:[%s11921_s30 + $0x80] sm:$0xf] %vm2392_vm9, %v8471_v13  ;;  %5368 = vst.msk [vmem:[#allocation3 + $0x90] sm:$0xf] %vm2392_vm9, %v8471_v13  ;;  %v5078_v48 = vadd.f32 %v12859_v12, %v4891_v54  ;;  %v5810_v22 = vpop.permute.xlu0 %5809  ;;  %v5641_v60 = vrot.slane %v5639_v17, 1 }
 0x3dc   : > { %v4894_v31 = vadd.f32 %v14509_v45, %v4717_v15  ;;  %v6713_v21 = vshrl.u32 %v6536_v6, 16  ;;  %v6716_v55 = vshll.u32 %v6536_v6, 16  ;;  %7327 = vmatmul.mubr.bf16.gmra.mrb[116].mxu1 %v6687_v14  ;;  %v8472_v16 = vpack.c.bf16 %v5149_v61, %v5149_v61  ;;  %v5409_v2 = vld [vmem:[#allocation3 + $0x8c] sm:$0xf]  ;;  %v6119_v30 = vpop.permute.xlu1 %6118  ;;  %v14511_v6 = vld [vmem:[#allocation55_spill] sm:$0xff] }
 0x3dd   : > { %v6365_v34 = vsel %vm1327_vm7, %v6327_v47, %v5757_v33  ;;  %v13396_v32 = vcombine.low %v13269_v27, %v5408_v44  ;;  %v5114_v40 = vmax.f32 %v5078_v48, 0.0  ;;  %v5642_v17 = vsel %vm580_vm2, %v5637_v42, %v5641_v60 }
 0x3de   : > { %v5079_v26 = vadd.f32 %v12873_v24, %v4894_v31  ;;  %v6715_v63 = vrot.slane %v6713_v21, 2  ;;  %v6718_v12 = vrot.slane %v6716_v55, 3  ;;  %5776 = vrot.lane.b32.xlu0 %v5741_v58, %s8990_s12  ;;  %5329 = vst.msk [vmem:[%s11921_s30 + $0x84] sm:$0xf] %vm2392_vm9, %v8472_v16  ;;  %5369 = vst.msk [vmem:[#allocation3 + $0x94] sm:$0xf] %vm2392_vm9, %v8472_v16  ;;  %v6403_v33 = vsel %vm1364_vm8, %v6365_v34, %v5810_v22 }
 0x3df   : > { %v13405_v13 = vcombine.low %v5408_v44, %v5409_v2  ;;  %v5150_v54 = vmul.f32 %v5114_v40, %v14510_v38  ;;  %v6705_v35 = vshrl.u32 %v6403_v33, 16  ;;  %v6708_v58 = vshll.u32 %v6403_v33, 16  ;;  %v5759_v57 = vpop.permute.xlu0 %5758 }
 0x3e0   : > { %v5115_v24 = vmax.f32 %v5079_v26, 0.0  ;;  %v13409_v15 = vor.u32 %v6718_v12, %v6715_v63  ;;  %v5742_v61 = vrot.slane %v13396_v32, 1  ;;  %v6071_v48 = vpop.permute.xlu1 %6070  ;;  %v6449_v31 = vsel %vm1290_vm6, %v12642_v11, %v13350_v43 }
 0x3e1   : > { %v6050_v53 = vrot.slane %v13405_v13, 6  ;;  %v5992_v47 = vshrl.u32 %v13405_v13, 16  ;;  %v8473_v42 = vpack.c.bf16 %v5150_v54, %v5150_v54  ;;  %v6707_v44 = vrot.slane %v6705_v35, 2 }
 0x3e2   : > { %v5151_v14 = vmul.f32 %v5115_v24, %v14511_v6  ;;  %5698 = vrot.lane.b32.xlu0 %v5642_v17, %s8991_s13  ;;  %v6720_v45 = vsel %vm1122_vm3, %v13336_v62, %v13409_v15  ;;  %v6710_v21 = vrot.slane %v6708_v58, 3  ;;  %v5410_v16 = vld [vmem:[#allocation3 + $0x90] sm:$0xf]  ;;  %v5995_v11 = vshll.u32 %v13405_v13, 16 }
 0x3e3   : > { %v6051_v55 = vsel %vm3209_vm10, %v6048_v52, %v6050_v53  ;;  %7334 = vmatprep.mubr.bf16.mxu1 %v6720_v45  ;;  %5330 = vst.msk [vmem:[%s11921_s30 + $0x88] sm:$0xf] %vm2392_vm9, %v8473_v42  ;;  %5370 = vst.msk [vmem:[#allocation3 + $0x98] sm:$0xf] %vm2392_vm9, %v8473_v42  ;;  %v6209_v43 = vrot.slane %v5992_v47, 6  ;;  %v5643_v22 = vshrl.u32 %v13342_v46, 16  ;;  %v5743_v40 = vsel %vm768_vm1, %v5740_v23, %v5742_v61  ;;  %v5681_v26 = vpop.permute.xlu0 %5680 }
 0x3e4   : > { %v8474_v62 = vpack.c.bf16 %v5151_v14, %v5151_v14  ;;  %6136 = vrot.lane.b32.xlu1 %v6051_v55, %s8990_s12  ;;  %v13436_v52 = vor.u32 %v6710_v21, %v6707_v44  ;;  %v5647_v63 = vshll.u32 %v13396_v32, 16  ;;  %v13444_v12 = vcombine.low %v5409_v2, %v5410_v16  ;;  %v6250_v23 = vpop.permute.xlu1 %6249 }
 0x3e5   : > { %v6500_v33 = vsel %vm1327_vm7, %v6449_v31, %v6119_v30  ;;  %v6452_v17 = vsel %vm1290_vm6, %v12730_v39, %v6071_v48  ;;  %v6329_v38 = vsel %vm1290_vm6, %v12382_v9, %v5681_v26  ;;  %v6210_v54 = vrot.slane %v5995_v11, 7  ;;  %v13457_v2 = vld [vmem:[#allocation3 + $0x94] sm:$0xf] }
 0x3e6   : > { %5331 = vst.msk [vmem:[%s11921_s30 + $0x8c] sm:$0xf] %vm2392_vm9, %v8474_v62  ;;  %5371 = vst.msk [vmem:[#allocation3 + $0x9c] sm:$0xf] %vm2392_vm9, %v8474_v62  ;;  %5829 = vrot.lane.b32.xlu0 %v5743_v40, %s8992_s16  ;;  %v6538_v24 = vsel %vm1364_vm8, %v6500_v33, %v6250_v23  ;;  %v6712_v30 = vsel %vm1122_vm3, %v13362_v51, %v13436_v52  ;;  %v5645_v35 = vor.u32 %v5643_v22, %v5641_v60 }
 0x3e7   : > { %v5649_v58 = vrot.slane %v5647_v63, 1  ;;  %v6738_v39 = vshrl.u32 %v6538_v24, 16  ;;  %v6741_v42 = vshll.u32 %v6538_v24, 16  ;;  %7335 = vmatmul.mubr.bf16.gmra.mrb[120].mxu1 %v6712_v30  ;;  %v6211_v9 = vor.u32 %v6210_v54, %v6209_v43  ;;  %v5812_v44 = vpop.permute.xlu0 %5811  ;;  %v13480_v26 = vld [vmem:[#allocation3 + $0x94] ss:$0 sps:$4 sm:$0x77]  }
 0x3e8   : > { %6088 = vrot.lane.b32.xlu1 %v6051_v55, %s8991_s13  ;;  %v13465_v6 = vcombine.low %v5410_v16, %v13457_v2  ;;  %v6367_v14 = vsel %vm1327_vm7, %v6329_v38, %v5759_v57  ;;  %v5651_v48 = vshrl.u32 %v13396_v32, 16  ;;  %v5655_v45 = vshll.u32 %v13444_v12, 16  ;;  %v6121_v55 = vpop.permute.xlu1 %6120 }
 0x3e9   : > { %v13472_v51 = vrot.slane %v5974_v8, 5  ;;  %v6740_v60 = vrot.slane %v6738_v39, 2  ;;  %v6743_v31 = vrot.slane %v6741_v42, 3  ;;  %v6405_v21 = vsel %vm1364_vm8, %v6367_v14, %v5812_v44 }
 0x3ea   : > { %5778 = vrot.lane.b32.xlu0 %v5743_v40, %s8990_s12  ;;  %v5650_v16 = vsel %vm580_vm2, %v5645_v35, %v5649_v58  ;;  %v6212_v57 = vsel %vm3338_vm13, %v13355_v50, %v6211_v9  ;;  %v6730_v62 = vshrl.u32 %v6405_v21, 16  ;;  %v6733_v43 = vshll.u32 %v6405_v21, 16  ;;  %v5415_v38 = vld [vmem:[#allocation3 + $0x98] sm:$0xf] }
 0x3eb   : > { %v6052_v22 = vrot.slane %v13465_v6, 6  ;;  %v13482_v8 = vor.u32 %v6743_v31, %v6740_v60  ;;  %v13486_v40 = vrot.slane %v13444_v12, 1  ;;  %v6001_v63 = vshrl.u32 %v13465_v6, 16  ;;  %v5761_v54 = vpop.permute.xlu0 %5760 }
 0x3ec   : > { %6267 = vrot.lane.b32.xlu1 %v6212_v57, %s8992_s16  ;;  %v14246_v33 = vshll.u32 %v13465_v6, 16  ;;  %v6732_v23 = vrot.slane %v6730_v62, 2  ;;  %v6735_v50 = vrot.slane %v6733_v43, 3  ;;  %v5653_v24 = vor.u32 %v5651_v48, %v5649_v58  ;;  %v6073_v39 = vpop.permute.xlu1 %6072 }
 0x3ed   : > { %v5657_v30 = vrot.slane %v5655_v45, 1  ;;  %v5416_v35 = vld [vmem:[#allocation3 + $0x9c] sm:$0xf]  ;;  %v6745_v42 = vsel %vm1122_vm3, %v13409_v15, %v13482_v8  ;;  %v6213_v14 = vrot.slane %v6001_v63, 6  ;;  %v6502_v58 = vsel %vm1327_vm7, %v6452_v17, %v6121_v55  ;;  %v14512_v55 = vld [vmem:[#allocation8_spill] sm:$0xff] }
 0x3ee   : > { %5700 = vrot.lane.b32.xlu0 %v5650_v16, %s8991_s13  ;;  %v6214_v44 = vrot.slane %v14246_v33, 7  ;;  %v13498_v60 = vcombine.low %v5415_v38, %v5416_v35  ;;  %v13500_v31 = vor.u32 %v6735_v50, %v6732_v23  ;;  %v6053_v48 = vsel %vm3209_vm10, %v6050_v53, %v6052_v22  ;;  %7342 = vmatprep.mubr.bf16.mxu1 %v6745_v42 }
 0x3ef   : > { %v8316_v15 = vcombine.low %v13457_v2, %v13457_v2  ;;  %v5745_v45 = vsel %vm768_vm1, %v5742_v61, %v13486_v40  ;;  %v5663_v17 = vshll.u32 %v13480_v26, 16  ;;  %v6455_v53 = vsel %vm1290_vm6, %v14512_v55, %v6073_v39  ;;  %v5683_v57 = vpop.permute.xlu0 %5682  ;;  %v14513_v61 = vld [vmem:[#allocation4_spill] sm:$0xff] }
 0x3f0   : > { %6138 = vrot.lane.b32.xlu1 %v6053_v48, %s8990_s12  ;;  %v13513_v21 = vor.u32 %v6214_v44, %v6213_v14  ;;  %v6054_v16 = vrot.slane %v13498_v60, 6  ;;  %v6737_v62 = vsel %vm1122_vm3, %v13436_v52, %v13500_v31  ;;  %v8318_v23 = vcombine.low %v13457_v2, %v5415_v38  ;;  %v6252_v42 = vpop.permute.xlu1 %6251 }
 0x3f1   : > { %v13522_v43 = vrot.slane %v8316_v15, 1  ;;  %v6331_v50 = vsel %vm1290_vm6, %v14513_v61, %v5683_v57  ;;  %7343 = vmatmul.mubr.bf16.gmra.mrb[124].mxu1 %v6737_v62  ;;  %v5658_v14 = vsel %vm580_vm2, %v5653_v24, %v5657_v30  ;;  %v5659_v39 = vshrl.u32 %v13444_v12, 16 }
 0x3f2   : > { %5831 = vrot.lane.b32.xlu0 %v5745_v45, %s8992_s16  ;;  %v6010_v44 = vshrl.u32 %v13498_v60, 16  ;;  %v6540_v55 = vsel %vm1364_vm8, %v6502_v58, %v6252_v42  ;;  %v6216_v52 = vsel %vm3338_vm13, %v6211_v9, %v13513_v21  ;;  %v13535_v2 = vsel %vm3209_vm10, %v6052_v22, %v6054_v16 }
 0x3f3   : > { %v13537_v38 = vrot.slane %v5663_v17, 1  ;;  %v6763_v15 = vshrl.u32 %v6540_v55, 16  ;;  %v6766_v57 = vshll.u32 %v6540_v55, 16  ;;  %v5661_v62 = vor.u32 %v5659_v39, %v5657_v30  ;;  %v5814_v34 = vpop.permute.xlu0 %5813 }
 0x3f4   : > { %6090 = vrot.lane.b32.xlu1 %v6053_v48, %s8991_s13  ;;  %v5797_v24 = vrot.slane %v8318_v23, 1  ;;  %v6369_v61 = vsel %vm1327_vm7, %v6331_v50, %v5761_v54  ;;  %v5747_v58 = vsel %vm768_vm1, %v13486_v40, %v13522_v43  ;;  %v6013_v9 = vshll.u32 %v13498_v60, 16  ;;  %v6123_v17 = vpop.permute.xlu1 %6122 }
 0x3f5   : > { %v8319_v42 = vcombine.low %v5416_v35, %v5416_v35  ;;  %v6765_v22 = vrot.slane %v6763_v15, 2  ;;  %v6768_v27 = vrot.slane %v6766_v57, 3  ;;  %v6407_v48 = vsel %vm1364_vm8, %v6369_v61, %v5814_v34 }
 0x3f6   : > { %5780 = vrot.lane.b32.xlu0 %v5745_v45, %s8990_s12  ;;  %v14514_v30 = vrot.slane %v12875_v29, 6  ;;  %v6755_v54 = vshrl.u32 %v6407_v48, 16  ;;  %v6758_v50 = vshll.u32 %v6407_v48, 16  ;;  %v6217_v39 = vrot.slane %v6010_v44, 6 }
 0x3f7   : > { %v6218_v55 = vrot.slane %v6013_v9, 7  ;;  %v13552_v33 = vor.u32 %v6768_v27, %v6765_v22  ;;  %v5666_v35 = vsel %vm580_vm2, %v5661_v62, %v13537_v38  ;;  %v13559_v34 = vsel %vm768_vm1, %v13486_v40, %v5797_v24  ;;  %v5763_v61 = vpop.permute.xlu0 %5762 }
 0x3f8   : > { %v13550_v23 = vsel %vm3209_vm10, %v6054_v16, %v14514_v30  ;;  %6269 = vrot.lane.b32.xlu1 %v6216_v52, %s8992_s16  ;;  %v13561_v45 = vrot.slane %v8319_v42, 1  ;;  %v6757_v29 = vrot.slane %v6755_v54, 2  ;;  %v6760_v15 = vrot.slane %v6758_v50, 3  ;;  %v6075_v52 = vpop.permute.xlu1 %6074 }
 0x3f9   : > { %v6504_v57 = vsel %vm1327_vm7, %v6455_v53, %v6123_v17  ;;  %v5979_v27 = vrot.slane %v5977_v10, 6  ;;  %v6770_v62 = vsel %vm1122_vm3, %v13482_v8, %v13552_v33  ;;  %v13573_v40 = vsel %vm3209_vm10, %v6054_v16, %v6056_v18  ;;  %v14515_v10 = vld [vmem:[#allocation9_spill] sm:$0xff] }
 0x3fa   : > { %5702 = vrot.lane.b32.xlu0 %v5658_v14, %s8991_s13  ;;  %v5667_v42 = vshrl.u32 %v13480_v26, 16  ;;  %v5985_v53 = vrot.slane %v5983_v36, 5  ;;  %v13578_v22 = vor.u32 %v6760_v15, %v6757_v29  ;;  %v13582_v14 = vsel %vm1290_vm6, %v14515_v10, %v6075_v52  ;;  %7350 = vmatprep.mubr.bf16.mxu1 %v6770_v62 }
 0x3fb   : > { %v13584_v48 = vor.u32 %v6218_v55, %v6217_v39  ;;  %v13588_v7 = vsel %vm768_vm1, %v5797_v24, %v13561_v45  ;;  %v5980_v18 = vor.u32 %v5979_v27, %v13472_v51  ;;  %v5988_v36 = vrot.slane %v5986_v19, 6  ;;  %v5685_v17 = vpop.permute.xlu0 %5684  ;;  %v14517_v19 = vld [vmem:[#allocation6_spill] sm:$0xff] }
 0x3fc   : > { %6140 = vrot.lane.b32.xlu1 %v13535_v2, %s8990_s12  ;;  %v5994_v8 = vrot.slane %v5992_v47, 5  ;;  %v5997_v16 = vrot.slane %v5995_v11, 6  ;;  %v6762_v24 = vsel %vm1122_vm3, %v13500_v31, %v13578_v22  ;;  %v6003_v30 = vrot.slane %v6001_v63, 5  ;;  %v6254_v39 = vpop.permute.xlu1 %6253 }
 0x3fd   : > { %v14516_v54 = vshll.u32 %v13465_v6, 16  ;;  %v6012_v50 = vrot.slane %v6010_v44, 5  ;;  %v6333_v47 = vsel %vm1290_vm6, %v14517_v19, %v5685_v17  ;;  %7351 = vmatmul.mubr.bf16.gmra.mrb[128].mxu1 %v6762_v24  ;;  %v13611_v11 = vsel %vm3044_vm12, %v13190_v49, %v5980_v18 }
 0x3fe   : > { %5782 = vrot.lane.b32.xlu0 %v5747_v58, %s8990_s12  ;;  %v5989_v55 = vor.u32 %v5988_v36, %v5985_v53  ;;  %v6015_v31 = vrot.slane %v6013_v9, 6  ;;  %v6542_v29 = vsel %vm1364_vm8, %v6504_v57, %v6254_v39  ;;  %v6371_v63 = vsel %vm1327_vm7, %v6333_v47, %v5763_v61 }
 0x3ff   : > { %v6006_v51 = vrot.slane %v14516_v54, 6  ;;  %v5998_v15 = vor.u32 %v5997_v16, %v5994_v8  ;;  %v6788_v44 = vshrl.u32 %v6542_v29, 16  ;;  %v6791_v58 = vshll.u32 %v6542_v29, 16  ;;  %v5816_v49 = vpop.permute.xlu0 %5815 }
 0x400   : > { %6092 = vrot.lane.b32.xlu1 %v13535_v2, %s8991_s13  ;;  %v13618_v52 = vsel %vm3044_vm12, %v5980_v18, %v5989_v55  ;;  %v13620_v62 = vor.u32 %v6015_v31, %v6012_v50  ;;  %v6305_v57 = vrot.slane %v13291_v20, 7  ;;  %v6307_v61 = vrot.slane %v13405_v13, 7  ;;  %v6125_v36 = vpop.permute.xlu1 %6124 }
 0x401   : > { %v6007_v27 = vor.u32 %v6006_v51, %v6003_v30  ;;  %v13623_v53 = vsel %vm3044_vm12, %v5989_v55, %v5998_v15  ;;  %v6790_v10 = vrot.slane %v6788_v44, 2  ;;  %v6793_v2 = vrot.slane %v6791_v58, 3 }
 0x402   : > { %5704 = vrot.lane.b32.xlu0 %v5666_v35, %s8991_s13  ;;  %v6409_v18 = vsel %vm1364_vm8, %v6371_v63, %v5816_v49  ;;  %v6220_v24 = vsel %vm3338_vm13, %v13513_v21, %v13584_v48  ;;  %v14518_v20 = vrot.slane %v13199_v0, 7  ;;  %v6308_v51 = vsel %vm3470_vm11, %v6305_v57, %v6307_v61 }
 0x403   : > { %v13626_v9 = vsel %vm3044_vm12, %v5998_v15, %v6007_v27  ;;  %v13634_v8 = vsel %vm3044_vm12, %v6007_v27, %v13620_v62  ;;  %v6780_v16 = vshrl.u32 %v6409_v18, 16  ;;  %v6783_v17 = vshll.u32 %v6409_v18, 16  ;;  %v5765_v47 = vpop.permute.xlu0 %5764 }
 0x404   : > { %v6306_v13 = vsel %vm3470_vm11, %v14518_v20, %v6305_v57  ;;  %v13642_v30 = vor.u32 %v6793_v2, %v6790_v10  ;;  %6142 = vrot.lane.b32.xlu1 %v13550_v23, %s8990_s12  ;;  %v6972_v39 = vshrl.u32 %v6308_v51, 16  ;;  %v6975_v55 = vshll.u32 %v6308_v51, 16  ;;  %v13649_v0 = vpop.permute.xlu1 %6076 }
 0x405   : > { %v6947_v35 = vshrl.u32 %v6306_v13, 16  ;;  %v6950_v54 = vshll.u32 %v6306_v13, 16  ;;  %v6782_v50 = vrot.slane %v6780_v16, 2  ;;  %v6785_v19 = vrot.slane %v6783_v17, 3 }
 0x406   : > { %5833 = vrot.lane.b32.xlu0 %v13559_v34, %s8992_s16  ;;  %v6795_v21 = vsel %vm1122_vm3, %v13552_v33, %v13642_v30  ;;  %v6309_v29 = vrot.slane %v13465_v6, 7  ;;  %v6506_v15 = vsel %vm1327_vm7, %v13582_v14, %v6125_v36  ;;  %v6974_v27 = vrot.slane %v6972_v39, 2  ;;  %v13662_v33 = vld [vmem:[#allocation3 + $0xa0] sm:$0xff]  }
 0x407   : > { %v6949_v31 = vrot.slane %v6947_v35, 2  ;;  %v6952_v23 = vrot.slane %v6950_v54, 3  ;;  %v13655_v63 = vor.u32 %v6785_v19, %v6782_v50  ;;  %7358 = vmatprep.mubr.bf16.mxu1 %v6795_v21  ;;  %v6977_v44 = vrot.slane %v6975_v55, 3  ;;  %v5687_v6 = vpop.permute.xlu0 %5686  ;;  %v14519_v36 = vld [vmem:[#allocation7_spill] sm:$0xff] }
 0x408   : > { %6271 = vrot.lane.b32.xlu1 %v6220_v24, %s8992_s16  ;;  %v6310_v58 = vsel %vm3470_vm11, %v6307_v61, %v6309_v29  ;;  %v6311_v49 = vrot.slane %v13498_v60, 7  ;;  %v6313_v57 = vrot.slane %v13662_v33, 7  ;;  %v6335_v61 = vsel %vm1290_vm6, %v14519_v36, %v5687_v6  ;;  %v6256_v16 = vpop.permute.xlu1 %6255 }
 0x409   : > { %v6953_v34 = vor.u32 %v6952_v23, %v6949_v31  ;;  %v6787_v10 = vsel %vm1122_vm3, %v13578_v22, %v13655_v63  ;;  %v6978_v14 = vor.u32 %v6977_v44, %v6974_v27  ;;  %v6997_v2 = vshrl.u32 %v6310_v58, 16 }
 0x40a   : > { %v7000_v18 = vshll.u32 %v6310_v58, 16  ;;  %5835 = vrot.lane.b32.xlu0 %v13588_v7, %s8992_s16  ;;  %7359 = vmatmul.mubr.bf16.gmra.mrb[132].mxu1 %v6787_v10  ;;  %v14520_v60 = vshrl.u32 %v12953_v37, 16  ;;  %v6312_v22 = vsel %vm3470_vm11, %v6309_v29, %v6311_v49  ;;  %v6544_v20 = vsel %vm1364_vm8, %v6506_v15, %v6256_v16 }
 0x40b   : > { %v13676_v24 = vsel %vm1122_vm3, %v13252_v25, %v6953_v34  ;;  %v5669_v7 = vor.u32 %v5667_v42, %v13537_v38  ;;  %v13684_v13 = vsel %vm1122_vm3, %v6953_v34, %v6978_v14  ;;  %v6999_v35 = vrot.slane %v6997_v2, 2  ;;  %v5818_v39 = vpop.permute.xlu0 %5817 }
 0x40c   : > { %v6233_v17 = vrot.slane %v14520_v60, 6  ;;  %6094 = vrot.lane.b32.xlu1 %v13573_v40, %s8991_s13  ;;  %v6813_v54 = vshrl.u32 %v6544_v20, 16  ;;  %v6816_v51 = vshll.u32 %v6544_v20, 16  ;;  %v7002_v50 = vrot.slane %v7000_v18, 3  ;;  %v6127_v29 = vpop.permute.xlu1 %6126 }
 0x40d   : > { %v7022_v25 = vshrl.u32 %v6312_v22, 16  ;;  %v6373_v19 = vsel %vm1327_vm7, %v6335_v61, %v5765_v47  ;;  %v14521_v55 = vshll.u32 %v12953_v37, 16  ;;  %v7025_v31 = vshll.u32 %v6312_v22, 16 }
 0x40e   : > { %v6314_v38 = vsel %vm3470_vm11, %v6311_v49, %v6313_v57  ;;  %v6815_v42 = vrot.slane %v6813_v54, 2  ;;  %v6818_v23 = vrot.slane %v6816_v51, 3  ;;  %5706 = vrot.lane.b32.xlu0 %v5669_v7, %s8991_s13  ;;  %v6411_v40 = vsel %vm1364_vm8, %v6373_v19, %v5818_v39 }
 0x40f   : > { %v6236_v21 = vrot.slane %v14521_v55, 7  ;;  %v7003_v15 = vor.u32 %v7002_v50, %v6999_v35  ;;  %v6229_v47 = vsel %vm3338_vm13, %v13584_v48, %v12970_v59  ;;  %v6805_v27 = vshrl.u32 %v6411_v40, 16  ;;  %v5767_v18 = vpop.permute.xlu0 %5766 }
 0x410   : > { %v6808_v37 = vshll.u32 %v6411_v40, 16  ;;  %v7024_v44 = vrot.slane %v7022_v25, 2  ;;  %v6819_v34 = vor.u32 %v6818_v23, %v6815_v42  ;;  %6273 = vrot.lane.b32.xlu1 %v6229_v47, %s8992_s16  ;;  %v7027_v49 = vrot.slane %v7025_v31, 3  ;;  %v6079_v48 = vpop.permute.xlu1 %6078 }
 0x411   : > { %v13701_v58 = vsel %vm1122_vm3, %v6978_v14, %v7003_v15  ;;  %v7047_v6 = vshrl.u32 %v6314_v38, 16  ;;  %v6807_v10 = vrot.slane %v6805_v27, 2  ;;  %v6237_v36 = vor.u32 %v6236_v21, %v6233_v17  ;;  %v14522_v17 = vld [vmem:[#allocation12_spill] sm:$0xff] }
 0x412   : > { %v6810_v2 = vrot.slane %v6808_v37, 3  ;;  %v7050_v61 = vshll.u32 %v6314_v38, 16  ;;  %5784 = vrot.lane.b32.xlu0 %v13522_v43, %s8990_s12  ;;  %v6820_v16 = vsel %vm1122_vm3, %v13642_v30, %v6819_v34  ;;  %v7028_v60 = vor.u32 %v7027_v49, %v7024_v44 }
 0x413   : > { %v7049_v22 = vrot.slane %v7047_v6, 2  ;;  %7366 = vmatprep.mubr.bf16.mxu1 %v6820_v16  ;;  %v6461_v35 = vsel %vm1290_vm6, %v14522_v17, %v13649_v0  ;;  %v6238_v43 = vsel %vm3338_vm13, %v12970_v59, %v6237_v36  ;;  %v5689_v54 = vpop.permute.xlu0 %5688  ;;  %v14524_v6 = vld [vmem:[#allocation13_spill] sm:$0xff] }
 0x414   : > { %v6811_v20 = vor.u32 %v6810_v2, %v6807_v10  ;;  %v7052_v14 = vrot.slane %v7050_v61, 3  ;;  %6144 = vrot.lane.b32.xlu1 %v13030_v5, %s8990_s12  ;;  %v13710_v7 = vsel %vm1122_vm3, %v7003_v15, %v7028_v60  ;;  %v6508_v50 = vsel %vm1327_vm7, %v6461_v35, %v6127_v29  ;;  %v14523_v5 = vld [vmem:[#allocation5_spill] sm:$0xff]  ;;  %v6258_v19 = vpop.permute.xlu1 %6257  ;;  %v14525_v61 = vld [vmem:[#allocation10_spill] sm:$0xff] }
 0x415   : > { %v6337_v25 = vsel %vm1290_vm6, %v14523_v5, %v5689_v54  ;;  %v6546_v0 = vsel %vm1364_vm8, %v6508_v50, %v6258_v19  ;;  %v6464_v10 = vsel %vm1290_vm6, %v14524_v6, %v6079_v48 }
 0x416   : > { %v6812_v30 = vsel %vm1122_vm3, %v13655_v63, %v6811_v20  ;;  %v13719_v51 = vor.u32 %v7052_v14, %v7049_v22  ;;  %5837 = vrot.lane.b32.xlu0 %v13561_v45, %s8992_s16  ;;  %v6838_v63 = vshrl.u32 %v6546_v0, 16  ;;  %v6841_v39 = vshll.u32 %v6546_v0, 16 }
 0x417   : > { %7367 = vmatmul.mubr.bf16.gmra.mrb[136].mxu1 %v6812_v30  ;;  %v6375_v55 = vsel %vm1327_vm7, %v6337_v25, %v5767_v18  ;;  %v5820_v21 = vpop.permute.xlu0 %5819 }
 0x418   : > { %v13729_v59 = vsel %vm1122_vm3, %v7028_v60, %v13719_v51  ;;  %6275 = vrot.lane.b32.xlu1 %v6238_v43, %s8992_s16  ;;  %v6840_v31 = vrot.slane %v6838_v63, 2  ;;  %v6843_v45 = vrot.slane %v6841_v39, 3  ;;  %v6413_v38 = vsel %vm1364_vm8, %v6375_v55, %v5820_v21  ;;  %v6129_v42 = vpop.permute.xlu1 %6128  ;;  %v13741_v60 = vpop.f32.mrb[108].mxu0 }
 0x419   : > { %v6830_v23 = vshrl.u32 %v6413_v38, 16  ;;  %v6833_v40 = vshll.u32 %v6413_v38, 16  ;;  %v6510_v36 = vsel %vm1327_vm7, %v6464_v10, %v6129_v42 }
 0x41a   : > { %v6844_v29 = vor.u32 %v6843_v45, %v6840_v31 }
 0x41b   : > { %v6832_v15 = vrot.slane %v6830_v23, 2  ;;  %v6835_v47 = vrot.slane %v6833_v40, 3  ;;  %v5769_v27 = vpop.permute.xlu0 %5768 }
 0x41c   : > { %v6081_v37 = vpop.permute.xlu1 %6080  ;;  %v6845_v44 = vsel %vm1122_vm3, %v6819_v34, %v6844_v29  ;;  %v13744_v34 = vpop.f32.mrb[109].mxu0 }
 0x41d   : > { %v6836_v49 = vor.u32 %v6835_v47, %v6832_v15  ;;  %7374 = vmatprep.mubr.bf16.mxu1 %v6845_v44  ;;  %v13746_v43 = vpop.f32.mrb[110].mxu0  ;;  %v8962_v15 = vld [vmem:[%s14109_s8] sm:$0xff]   ;;  %v8963_v47 = vld [vmem:[%s14109_s8 + $0x8] sm:$0xff]  }
 0x41e   : > { %v13748_v48 = vpop.f32.mrb[111].mxu0  ;;  %8760 = vmatprep.subr.bf16.mxu0 %v8962_v15 }
 0x41f   : > { %v5691_v2 = vpop.permute.xlu0 %5690  ;;  %v6837_v18 = vsel %vm1122_vm3, %v6811_v20, %v6836_v49  ;;  %8761 = vmatpush3.bf16.msra.mxu0 %v8962_v15 }
 0x420   : > { %v6339_v16 = vsel %vm1290_vm6, %v14525_v61, %v5691_v2  ;;  %v6260_v22 = vpop.permute.xlu1 %6259  ;;  %7375 = vmatmul.mubr.bf16.gmra.mrb[140].mxu1 %v6837_v18  ;;  %8762 = vmatprep.subr.bf16.mxu0 %v8963_v47 }
 0x421   : > { %v6548_v14 = vsel %vm1364_vm8, %v6510_v36, %v6260_v22  ;;  %v6377_v20 = vsel %vm1327_vm7, %v6339_v16, %v5769_v27 }
 0x422   : > { %v6863_v17 = vshrl.u32 %v6548_v14, 16  ;;  %v6866_v35 = vshll.u32 %v6548_v14, 16 }
 0x423   : > { %v5822_v54 = vpop.permute.xlu0 %5821  ;;  %8763 = vmatpush3.bf16.msra.mxu0 %v8963_v47 }
 0x424   : > { %v6865_v30 = vrot.slane %v6863_v17, 2  ;;  %v6868_v50 = vrot.slane %v6866_v35, 3  ;;  %v6415_v5 = vsel %vm1364_vm8, %v6377_v20, %v5822_v54 }
 0x425   : > { %v6855_v25 = vshrl.u32 %v6415_v5, 16  ;;  %v6858_v19 = vshll.u32 %v6415_v5, 16 }
 0x426   : > { %v6869_v0 = vor.u32 %v6868_v50, %v6865_v30 }
 0x427   : > { %v6131_v63 = vpop.permute.xlu1 %6130  ;;  %v6857_v39 = vrot.slane %v6855_v25, 2  ;;  %v6860_v55 = vrot.slane %v6858_v19, 3  ;;  %v5771_v21 = vpop.permute.xlu0 %5770 }
 0x428   : > { %v6870_v31 = vsel %vm1122_vm3, %v6844_v29, %v6869_v0  ;;  %v6467_v29 = vsel %vm1290_vm6, %v13086_v1, %v6081_v37 }
 0x429   : > { %v6861_v45 = vor.u32 %v6860_v55, %v6857_v39  ;;  %7382 = vmatprep.mubr.bf16.mxu1 %v6870_v31 }
 0x42b   : > { %v6083_v38 = vpop.permute.xlu1 %6082  ;;  %v5693_v42 = vpop.permute.xlu0 %5692  ;;  %v6862_v23 = vsel %vm1122_vm3, %v6836_v49, %v6861_v45  ;;  %v6512_v49 = vsel %vm1327_vm7, %v6467_v29, %v6131_v63 }
 0x42c   : > { %v6341_v40 = vsel %vm1290_vm6, %v12895_v28, %v5693_v42  ;;  %7383 = vmatmul.mubr.bf16.gmra.mrb[144].mxu1 %v6862_v23 }
 0x42d   : > { %v6379_v27 = vsel %vm1327_vm7, %v6341_v40, %v5771_v21 }
 0x42f   : > { %v5824_v44 = vpop.permute.xlu0 %5823 }
 0x430   : > { %v6262_v6 = vpop.permute.xlu1 %6261  ;;  %v6417_v28 = vsel %vm1364_vm8, %v6379_v27, %v5824_v44 }
 0x431   : > { %v6550_v10 = vsel %vm1364_vm8, %v6512_v49, %v6262_v6  ;;  %v6880_v2 = vshrl.u32 %v6417_v28, 16  ;;  %v6883_v18 = vshll.u32 %v6417_v28, 16 }
 0x432   : > { %v6888_v36 = vshrl.u32 %v6550_v10, 16  ;;  %v6891_v61 = vshll.u32 %v6550_v10, 16  ;;  %v13768_v30 = vpop.f32.mrb[112].mxu0 }
 0x433   : > { %v6882_v16 = vrot.slane %v6880_v2, 2  ;;  %v6885_v22 = vrot.slane %v6883_v18, 3  ;;  %v5773_v1 = vpop.permute.xlu0 %5772  ;;  %v13772_v25 = vpop.f32.mrb[113].mxu0 }
 0x434   : > { %v6890_v37 = vrot.slane %v6888_v36, 2  ;;  %v6893_v14 = vrot.slane %v6891_v61, 3  ;;  %v13776_v39 = vpop.f32.mrb[114].mxu0 }
 0x435   : > { %v6886_v17 = vor.u32 %v6885_v22, %v6882_v16  ;;  %v13778_v55 = vpop.f32.mrb[115].mxu0 }
 0x436   : > { %v6894_v20 = vor.u32 %v6893_v14, %v6890_v37 }
 0x437   : > { %v6133_v35 = vpop.permute.xlu1 %6132  ;;  %v5695_v54 = vpop.permute.xlu0 %5694  ;;  %v6887_v50 = vsel %vm1122_vm3, %v6861_v45, %v6886_v17  ;;  %v6470_v45 = vsel %vm1290_vm6, %v13208_v3, %v6083_v38 }
 0x438   : > { %v6895_v5 = vsel %vm1122_vm3, %v6869_v0, %v6894_v20  ;;  %v6343_v63 = vsel %vm1290_vm6, %v12978_v4, %v5695_v54  ;;  %v6514_v42 = vsel %vm1327_vm7, %v6470_v45, %v6133_v35 }
 0x439   : > { %7390 = vmatprep.mubr.bf16.mxu1 %v6895_v5  ;;  %v6381_v21 = vsel %vm1327_vm7, %v6343_v63, %v5773_v1 }
 0x43a   : > { %7391 = vmatmul.mubr.bf16.gmra.mrb[148].mxu1 %v6887_v50 }
 0x43b   : > { %v6085_v19 = vpop.permute.xlu1 %6084 }
 0x43c   : > { %v6473_v22 = vsel %vm1290_vm6, %v13611_v11, %v6085_v19 }
 0x43f   : > { %v5826_v31 = vpop.permute.xlu0 %5825 }
 0x440   : > { %v6419_v0 = vsel %vm1364_vm8, %v6381_v21, %v5826_v31  ;;  %v6264_v23 = vpop.permute.xlu1 %6263 }
 0x441   : > { %v6905_v40 = vshrl.u32 %v6419_v0, 16  ;;  %v6908_v15 = vshll.u32 %v6419_v0, 16  ;;  %v6552_v4 = vsel %vm1364_vm8, %v6514_v42, %v6264_v23 }
 0x442   : > { %v6913_v47 = vshrl.u32 %v6552_v4, 16  ;;  %v6916_v29 = vshll.u32 %v6552_v4, 16 }
 0x443   : > { %v6907_v27 = vrot.slane %v6905_v40, 2  ;;  %v6910_v44 = vrot.slane %v6908_v15, 3  ;;  %v5775_v49 = vpop.permute.xlu0 %5774 }
 0x444   : > { %v6915_v6 = vrot.slane %v6913_v47, 2  ;;  %v6918_v28 = vrot.slane %v6916_v29, 3  ;;  %v6135_v2 = vpop.permute.xlu1 %6134 }
 0x445   : > { %v6911_v10 = vor.u32 %v6910_v44, %v6907_v27  ;;  %v6516_v1 = vsel %vm1327_vm7, %v6473_v22, %v6135_v2 }
 0x446   : > { %v6919_v18 = vor.u32 %v6918_v28, %v6915_v6 }
 0x447   : > { %v5697_v3 = vpop.permute.xlu0 %5696  ;;  %v6912_v38 = vsel %vm1122_vm3, %v6886_v17, %v6911_v10 }
 0x448   : > { %v6087_v36 = vpop.permute.xlu1 %6086  ;;  %v6920_v61 = vsel %vm1122_vm3, %v6894_v20, %v6919_v18  ;;  %v6345_v16 = vsel %vm1290_vm6, %v13079_v41, %v5697_v3 }
 0x449   : > { %7398 = vmatprep.mubr.bf16.mxu1 %v6920_v61  ;;  %v6383_v14 = vsel %vm1327_vm7, %v6345_v16, %v5775_v49 }
 0x44a   : > { %7399 = vmatmul.mubr.bf16.gmra.mrb[152].mxu1 %v6912_v38 }
 0x44c   : > { %v6266_v37 = vpop.permute.xlu1 %6265  ;;  %v5828_v35 = vpop.permute.xlu0 %5827 }
 0x44d   : > { %v6554_v54 = vsel %vm1364_vm8, %v6516_v1, %v6266_v37  ;;  %v6421_v17 = vsel %vm1364_vm8, %v6383_v14, %v5828_v35  ;;  %v13796_v11 = vpop.f32.mrb[116].mxu0 }
 0x44e   : > { %v6938_v50 = vshrl.u32 %v6554_v54, 16  ;;  %v6941_v20 = vshll.u32 %v6554_v54, 16  ;;  %v6930_v5 = vshrl.u32 %v6421_v17, 16  ;;  %v6933_v63 = vshll.u32 %v6421_v17, 16  ;;  %v13798_v23 = vpop.f32.mrb[117].mxu0 }
 0x44f   : > { %v13800_v40 = vpop.f32.mrb[118].mxu0 }
 0x450   : > { %v6940_v21 = vrot.slane %v6938_v50, 2  ;;  %v6943_v41 = vrot.slane %v6941_v20, 3  ;;  %v6932_v31 = vrot.slane %v6930_v5, 2  ;;  %v6935_v45 = vrot.slane %v6933_v63, 3  ;;  %v5777_v0 = vpop.permute.xlu0 %5776  ;;  %v13804_v29 = vpop.f32.mrb[119].mxu0 }
 0x452   : > { %v6944_v19 = vor.u32 %v6943_v41, %v6940_v21  ;;  %v6936_v42 = vor.u32 %v6935_v45, %v6932_v31 }
 0x454   : > { %v6945_v15 = vsel %vm1122_vm3, %v6919_v18, %v6944_v19  ;;  %v5699_v4 = vpop.permute.xlu0 %5698  ;;  %v6937_v47 = vsel %vm1122_vm3, %v6911_v10, %v6936_v42  ;;  %v6476_v10 = vsel %vm1290_vm6, %v13618_v52, %v6087_v36 }
 0x455   : > { %7406 = vmatprep.mubr.bf16.mxu1 %v6945_v15  ;;  %v6347_v27 = vsel %vm1290_vm6, %v13184_v56, %v5699_v4 }
 0x456   : > { %v6137_v44 = vpop.permute.xlu1 %6136  ;;  %7407 = vmatmul.mubr.bf16.gmra.mrb[156].mxu1 %v6937_v47  ;;  %v6385_v49 = vsel %vm1327_vm7, %v6347_v27, %v5777_v0 }
 0x457   : > { %v6518_v61 = vsel %vm1327_vm7, %v6476_v10, %v6137_v44 }
 0x458   : > { %v5830_v6 = vpop.permute.xlu0 %5829 }
 0x459   : > { %v6423_v28 = vsel %vm1364_vm8, %v6385_v49, %v5830_v6 }
 0x45a   : > { %v6089_v2 = vpop.permute.xlu1 %6088  ;;  %v6955_v3 = vshrl.u32 %v6423_v28, 16  ;;  %v6958_v38 = vshll.u32 %v6423_v28, 16 }
 0x45b   : > { %v6479_v4 = vsel %vm1290_vm6, %v13623_v53, %v6089_v2 }
 0x45c   : > { %v5779_v18 = vpop.permute.xlu0 %5778  ;;  %v6957_v22 = vrot.slane %v6955_v3, 2  ;;  %v6960_v1 = vrot.slane %v6958_v38, 3 }
 0x45e   : > { %v6268_v16 = vpop.permute.xlu1 %6267  ;;  %v6961_v5 = vor.u32 %v6960_v1, %v6957_v22 }
 0x45f   : > { %v6556_v56 = vsel %vm1364_vm8, %v6518_v61, %v6268_v16 }
 0x460   : > { %v6963_v37 = vshrl.u32 %v6556_v56, 16  ;;  %v6966_v14 = vshll.u32 %v6556_v56, 16  ;;  %v5701_v35 = vpop.permute.xlu0 %5700  ;;  %v6962_v15 = vsel %vm1122_vm3, %v6936_v42, %v6961_v5 }
 0x461   : > { %v6349_v54 = vsel %vm1290_vm6, %v13342_v46, %v5701_v35 }
 0x462   : > { %v6965_v17 = vrot.slane %v6963_v37, 2  ;;  %v6968_v50 = vrot.slane %v6966_v14, 3  ;;  %v6139_v20 = vpop.permute.xlu1 %6138  ;;  %v6387_v52 = vsel %vm1327_vm7, %v6349_v54, %v5779_v18 }
 0x463   : > { %v6520_v27 = vsel %vm1327_vm7, %v6479_v4, %v6139_v20 }
 0x464   : > { %v6969_v63 = vor.u32 %v6968_v50, %v6965_v17  ;;  %v5832_v36 = vpop.permute.xlu0 %5831 }
 0x465   : > { %v6425_v21 = vsel %vm1364_vm8, %v6387_v52, %v5832_v36 }
 0x466   : > { %v6091_v41 = vpop.permute.xlu1 %6090  ;;  %v6970_v31 = vsel %vm1122_vm3, %v6944_v19, %v6969_v63  ;;  %v6980_v45 = vshrl.u32 %v6425_v21, 16  ;;  %v6983_v0 = vshll.u32 %v6425_v21, 16  ;;  %v13822_v47 = vpop.f32.mrb[120].mxu0 }
 0x467   : > { %7414 = vmatprep.mubr.bf16.mxu1 %v6970_v31  ;;  %v13825_v49 = vpop.f32.mrb[121].mxu0  ;;  %v6482_v36 = vsel %vm1290_vm6, %v13626_v9, %v6091_v41 }
 0x468   : > { %7415 = vmatmul.mubr.bf16.gmra.mrb[160].mxu1 %v6962_v15  ;;  %v5781_v46 = vpop.permute.xlu0 %5780  ;;  %v6982_v6 = vrot.slane %v6980_v45, 2  ;;  %v6985_v28 = vrot.slane %v6983_v0, 3  ;;  %v13828_v3 = vpop.f32.mrb[122].mxu0 }
 0x469   : > { %v13830_v10 = vpop.f32.mrb[123].mxu0 }
 0x46a   : > { %v6270_v44 = vpop.permute.xlu1 %6269  ;;  %v6986_v16 = vor.u32 %v6985_v28, %v6982_v6 }
 0x46b   : > { %v6558_v19 = vsel %vm1364_vm8, %v6520_v27, %v6270_v44 }
 0x46c   : > { %v6988_v38 = vshrl.u32 %v6558_v19, 16  ;;  %v6991_v42 = vshll.u32 %v6558_v19, 16  ;;  %v5703_v18 = vpop.permute.xlu0 %5702  ;;  %v6987_v14 = vsel %vm1122_vm3, %v6961_v5, %v6986_v16 }
 0x46d   : > { %v6351_v54 = vsel %vm1290_vm6, %v13396_v32, %v5703_v18 }
 0x46e   : > { %v6990_v61 = vrot.slane %v6988_v38, 2  ;;  %v6993_v53 = vrot.slane %v6991_v42, 3  ;;  %v6141_v2 = vpop.permute.xlu1 %6140  ;;  %v6389_v20 = vsel %vm1327_vm7, %v6351_v54, %v5781_v46 }
 0x46f   : > { %v6522_v21 = vsel %vm1327_vm7, %v6482_v36, %v6141_v2 }
 0x470   : > { %v6994_v22 = vor.u32 %v6993_v53, %v6990_v61  ;;  %v5783_v1 = vpop.permute.xlu0 %5782 }
 0x472   : > { %v6093_v56 = vpop.permute.xlu1 %6092  ;;  %v6995_v37 = vsel %vm1122_vm3, %v6969_v63, %v6994_v22 }
 0x473   : > { %7422 = vmatprep.mubr.bf16.mxu1 %v6995_v37  ;;  %v6485_v61 = vsel %vm1290_vm6, %v13634_v8, %v6093_v56 }
 0x474   : > { %7423 = vmatmul.mubr.bf16.gmra.mrb[164].mxu1 %v6987_v14  ;;  %v5705_v35 = vpop.permute.xlu0 %5704 }
 0x475   : > { %v6353_v50 = vsel %vm1290_vm6, %v13444_v12, %v5705_v35 }
 0x476   : > { %v6143_v17 = vpop.permute.xlu1 %6142  ;;  %v6391_v32 = vsel %vm1327_vm7, %v6353_v50, %v5783_v1 }
 0x477   : > { %v6524_v2 = vsel %vm1327_vm7, %v6485_v61, %v6143_v17 }
 0x478   : > { %v5834_v52 = vpop.permute.xlu0 %5833 }
 0x479   : > { %v6427_v63 = vsel %vm1364_vm8, %v6389_v20, %v5834_v52 }
 0x47a   : > { %v7005_v5 = vshrl.u32 %v6427_v63, 16  ;;  %v7008_v31 = vshll.u32 %v6427_v63, 16  ;;  %v6272_v45 = vpop.permute.xlu1 %6271 }
 0x47b   : > { %v6560_v0 = vsel %vm1364_vm8, %v6522_v21, %v6272_v45 }
 0x47c   : > { %v7007_v15 = vrot.slane %v7005_v5, 2  ;;  %v7010_v4 = vrot.slane %v7008_v31, 3  ;;  %v7013_v12 = vshrl.u32 %v6560_v0, 16  ;;  %v7016_v27 = vshll.u32 %v6560_v0, 16  ;;  %v5836_v46 = vpop.permute.xlu0 %5835 }
 0x47d   : > { %v6429_v44 = vsel %vm1364_vm8, %v6391_v32, %v5836_v46 }
 0x47e   : > { %v7015_v6 = vrot.slane %v7013_v12, 2  ;;  %v7018_v9 = vrot.slane %v7016_v27, 3  ;;  %v6095_v41 = vpop.permute.xlu1 %6094  ;;  %v7011_v28 = vor.u32 %v7010_v4, %v7007_v15  ;;  %v7030_v19 = vshrl.u32 %v6429_v44, 16 }
 0x47f   : > { %v7033_v38 = vshll.u32 %v6429_v44, 16 }
 0x480   : > { %v7019_v42 = vor.u32 %v7018_v9, %v7015_v6  ;;  %v5707_v18 = vpop.permute.xlu0 %5706  ;;  %v13848_v53 = vpop.f32.mrb[124].mxu0  ;;  %v7032_v35 = vrot.slane %v7030_v19, 2  ;;  %v7012_v20 = vsel %vm1122_vm3, %v6986_v16, %v7011_v28  ;;  %v6488_v16 = vsel %vm1290_vm6, %v13620_v62, %v6095_v41 }
 0x481   : > { %v13852_v14 = vpop.f32.mrb[125].mxu0  ;;  %v7035_v54 = vrot.slane %v7033_v38, 3  ;;  %v6355_v31 = vsel %vm1290_vm6, %v13480_v26, %v5707_v18 }
 0x482   : > { %v6274_v1 = vpop.permute.xlu1 %6273  ;;  %v7020_v37 = vsel %vm1122_vm3, %v6994_v22, %v7019_v42  ;;  %v13856_v52 = vpop.f32.mrb[126].mxu0 }
 0x483   : > { %v6562_v50 = vsel %vm1364_vm8, %v6524_v2, %v6274_v1  ;;  %7430 = vmatprep.mubr.bf16.mxu1 %v7020_v37  ;;  %v13858_v63 = vpop.f32.mrb[127].mxu0  ;;  %v7036_v5 = vor.u32 %v7035_v54, %v7032_v35  ;;  %v13884_v54 = vld [vmem:[%s14108_s7] ss:$0 sm:$0xff] }
 0x484   : > { %v7038_v36 = vshrl.u32 %v6562_v50, 16  ;;  %v7041_v8 = vshll.u32 %v6562_v50, 16  ;;  %7431 = vmatmul.mubr.bf16.gmra.mrb[168].mxu1 %v7012_v20  ;;  %v5785_v56 = vpop.permute.xlu0 %5784 }
 0x485   : > { %v6393_v0 = vsel %vm1327_vm7, %v6355_v31, %v5785_v56  ;;  %v7037_v26 = vsel %vm1122_vm3, %v7011_v28, %v7036_v5 }
 0x486   : > { %v7040_v17 = vrot.slane %v7038_v36, 2  ;;  %v7043_v21 = vrot.slane %v7041_v8, 3  ;;  %v6145_v22 = vpop.permute.xlu1 %6144 }
 0x487   : > { %v6526_v4 = vsel %vm1327_vm7, %v6488_v16, %v6145_v22 }
 0x488   : > { %v7044_v45 = vor.u32 %v7043_v21, %v7040_v17  ;;  %v5838_v32 = vpop.permute.xlu0 %5837 }
 0x489   : > { %v6431_v15 = vsel %vm1364_vm8, %v6393_v0, %v5838_v32 }
 0x48a   : > { %v7055_v12 = vshrl.u32 %v6431_v15, 16  ;;  %v7058_v27 = vshll.u32 %v6431_v15, 16  ;;  %v6276_v46 = vpop.permute.xlu1 %6275  ;;  %v7045_v44 = vsel %vm1122_vm3, %v7019_v42, %v7044_v45  ;;  %v8961_v42 = vld [vmem:[#allocation3 + $0xa8] ss:$0 sps:$4 sm:$0x33]  }
 0x48b   : > { %v6564_v6 = vsel %vm1364_vm8, %v6526_v4, %v6276_v46  ;;  %7438 = vmatprep.mubr.bf16.mxu1 %v7045_v44  ;;  %v6315_v28 = vrot.slane %v8961_v42, 7 }
 0x48c   : > { %v7057_v9 = vrot.slane %v7055_v12, 2  ;;  %v7060_v19 = vrot.slane %v7058_v27, 3  ;;  %v7063_v38 = vshrl.u32 %v6564_v6, 16  ;;  %v7066_v18 = vshll.u32 %v6564_v6, 16  ;;  %7439 = vmatmul.mubr.bf16.gmra.mrb[172].mxu1 %v7037_v26 }
 0x48d   : > { %v6316_v35 = vsel %vm3470_vm11, %v6313_v57, %v6315_v28 }
 0x48e   : > { %v7065_v62 = vrot.slane %v7063_v38, 2  ;;  %v7068_v41 = vrot.slane %v7066_v18, 3  ;;  %v7061_v61 = vor.u32 %v7060_v19, %v7057_v9  ;;  %v7072_v20 = vshrl.u32 %v6316_v35, 16 }
 0x48f   : > { %v7075_v36 = vshll.u32 %v6316_v35, 16 }
 0x490   : > { %v7069_v2 = vor.u32 %v7068_v41, %v7065_v62  ;;  %v7062_v37 = vsel %vm1122_vm3, %v7036_v5, %v7061_v61  ;;  %v7074_v5 = vrot.slane %v7072_v20, 2 }
 0x491   : > { %v7077_v31 = vrot.slane %v7075_v36, 3 }
 0x492   : > { %v7070_v1 = vsel %vm1122_vm3, %v7044_v45, %v7069_v2 }
 0x493   : > { %7446 = vmatprep.mubr.bf16.mxu1 %v7070_v1  ;;  %v7078_v15 = vor.u32 %v7077_v31, %v7074_v5 }
 0x494   : > { %7447 = vmatmul.mubr.bf16.gmra.mrb[176].mxu1 %v7062_v37 }
 0x495   : > { %8748 = vmatprep.mubr.msk.bf16.mxu1 %vm1290_vm6, %v13676_v24 }
 0x49c   : > { %8749 = vmatmul.mubr.msk.bf16.vlgmr.msra.gmra.mrb[180].mxu1 %vm1290_vm6, %v13684_v13 }
 0x49d   : > { %8752 = vmatprep.mubr.msk.bf16.mxu1 %vm1290_vm6, %v13701_v58 }
 0x49e   : > { %v7312_v50 = vpop.f32.mrb[108].mxu1 }
 0x49f   : > { %v7313_v8 = vadd.f32 %v13884_v54, %v7312_v50  ;;  %v7314_v13 = vpop.f32.mrb[109].mxu1 }
 0x4a0   : > { %v13886_v24 = vpop.f32.mrb[128].mxu0  ;;  %v7315_v33 = vpop.f32.mrb[110].mxu1 }
 0x4a1   : > { %v13889_v56 = vpop.f32.mrb[129].mxu0  ;;  %v7490_v58 = vadd.f32 %v13744_v34, %v7313_v8  ;;  %v7316_v17 = vadd.f32 %v13884_v54, %v7315_v33  ;;  %v7317_v21 = vpop.f32.mrb[111].mxu1 }
 0x4a2   : > { %v13891_v57 = vpop.f32.mrb[130].mxu0 }
 0x4a3   : > { %v13895_v22 = vpop.f32.mrb[131].mxu0  ;;  %v7493_v45 = vadd.f32 %v13748_v48, %v7316_v17  ;;  %v7632_v0 = vmax.f32 %v7490_v58, 0.0 }
 0x4a4   : > { %8753 = vmatmul.mubr.msk.bf16.gmra.mrb[184].mxu1 %vm1290_vm6, %v13710_v7  ;;  %v7079_v7 = vsel %vm1122_vm3, %v13719_v51, %v7078_v15 }
 0x4a5   : > { %8756 = vmatprep.mubr.msk.bf16.mxu1 %vm1290_vm6, %v13729_v59  ;;  %v7633_v32 = vmax.f32 %v7493_v45, 0.0 }
 0x4a7   : > { %v7320_v16 = vpop.f32.mrb[112].mxu1  ;;  %v7668_v34 = vpack.c.bf16 %v7633_v32, %v7632_v0 }
 0x4a8   : > { %v7321_v4 = vadd.f32 %v13884_v54, %v7320_v16  ;;  %v7322_v12 = vpop.f32.mrb[113].mxu1 }
 0x4a9   : > { %v7323_v27 = vpop.f32.mrb[114].mxu1  ;;  %8764 = vmatprep.mubr.msk.bf16.mxu0 %vm1290_vm6, %v7668_v34 }
 0x4aa   : > { %v7498_v46 = vadd.f32 %v13741_v60, %v7321_v4  ;;  %v7324_v44 = vadd.f32 %v13884_v54, %v7323_v27  ;;  %v7325_v48 = vpop.f32.mrb[115].mxu1 }
 0x4ac   : > { %v7501_v59 = vadd.f32 %v13746_v43, %v7324_v44  ;;  %8757 = vmatmul.mubr.msk.bf16.gmra.mrb[188].mxu1 %vm1290_vm6, %v7079_v7  ;;  %v7634_v6 = vmax.f32 %v7498_v46, 0.0 }
 0x4ae   : > { %v7635_v26 = vmax.f32 %v7501_v59, 0.0 }
 0x4af   : > { %v7328_v9 = vpop.f32.mrb[116].mxu1 }
 0x4b0   : > { %v7669_v19 = vpack.c.bf16 %v7635_v26, %v7634_v6  ;;  %v7329_v38 = vadd.f32 %v13884_v54, %v7328_v9  ;;  %v7330_v18 = vpop.f32.mrb[117].mxu1 }
 0x4b1   : > { %v7331_v60 = vpop.f32.mrb[118].mxu1 }
 0x4b2   : > { %v7506_v62 = vadd.f32 %v13772_v25, %v7329_v38  ;;  %v7332_v41 = vadd.f32 %v13884_v54, %v7331_v60  ;;  %v7333_v61 = vpop.f32.mrb[119].mxu1  ;;  %8765 = vmatmul.mubr.msk.bf16.vlgmr.msra.gmra.mrb[132].mxu0 %vm1290_vm6, %v7669_v19 }
 0x4b4   : > { %v7509_v51 = vadd.f32 %v13778_v55, %v7332_v41  ;;  %v7636_v43 = vmax.f32 %v7506_v62, 0.0 }
 0x4b6   : > { %v7637_v2 = vmax.f32 %v7509_v51, 0.0 }
 0x4b8   : > { %v7670_v1 = vpack.c.bf16 %v7637_v2, %v7636_v43 }
 0x4ba   : > { %8768 = vmatprep.mubr.msk.bf16.mxu0 %vm1290_vm6, %v7670_v1  ;;  %v7336_v37 = vpop.f32.mrb[120].mxu1 }
 0x4bb   : > { %v7337_v42 = vadd.f32 %v13884_v54, %v7336_v37  ;;  %v7338_v28 = vpop.f32.mrb[121].mxu1 }
 0x4bc   : > { %v7339_v35 = vpop.f32.mrb[122].mxu1 }
 0x4bd   : > { %v7514_v50 = vadd.f32 %v13768_v30, %v7337_v42  ;;  %v7340_v25 = vadd.f32 %v13884_v54, %v7339_v35  ;;  %v7341_v20 = vpop.f32.mrb[123].mxu1 }
 0x4bf   : > { %v7517_v36 = vadd.f32 %v13776_v39, %v7340_v25  ;;  %v7638_v8 = vmax.f32 %v7514_v50, 0.0 }
 0x4c1   : > { %v7639_v13 = vmax.f32 %v7517_v36, 0.0 }
 0x4c3   : > { %v7671_v55 = vpack.c.bf16 %v7639_v13, %v7638_v8 }
 0x4c4   : > { %v7344_v33 = vpop.f32.mrb[124].mxu1 }
 0x4c5   : > { %8769 = vmatmul.mubr.msk.bf16.gmra.mrb[136].mxu0 %vm1290_vm6, %v7671_v55  ;;  %v7345_v58 = vadd.f32 %v13884_v54, %v7344_v33  ;;  %v7346_v17 = vpop.f32.mrb[125].mxu1 }
 0x4c6   : > { %v7347_v21 = vpop.f32.mrb[126].mxu1 }
 0x4c7   : > { %v7522_v5 = vadd.f32 %v13798_v23, %v7345_v58  ;;  %v7348_v31 = vadd.f32 %v13884_v54, %v7347_v21  ;;  %v7349_v30 = vpop.f32.mrb[127].mxu1 }
 0x4c9   : > { %v7525_v45 = vadd.f32 %v13804_v29, %v7348_v31  ;;  %v7640_v0 = vmax.f32 %v7522_v5, 0.0 }
 0x4cb   : > { %v7641_v32 = vmax.f32 %v7525_v45, 0.0 }
 0x4cd   : > { %v7672_v39 = vpack.c.bf16 %v7641_v32, %v7640_v0 }
 0x4cf   : > { %8772 = vmatprep.mubr.msk.bf16.mxu0 %vm1290_vm6, %v7672_v39 }
 0x4d0   : > { %v7352_v16 = vpop.f32.mrb[128].mxu1 }
 0x4d1   : > { %v7353_v15 = vadd.f32 %v13884_v54, %v7352_v16  ;;  %v7354_v34 = vpop.f32.mrb[129].mxu1 }
 0x4d2   : > { %v7355_v4 = vpop.f32.mrb[130].mxu1 }
 0x4d3   : > { %v7530_v12 = vadd.f32 %v13796_v11, %v7353_v15  ;;  %v7356_v27 = vadd.f32 %v13884_v54, %v7355_v4  ;;  %v7357_v23 = vpop.f32.mrb[131].mxu1 }
 0x4d5   : > { %v7533_v46 = vadd.f32 %v13800_v40, %v7356_v27  ;;  %v7642_v44 = vmax.f32 %v7530_v12, 0.0 }
 0x4d7   : > { %v7643_v48 = vmax.f32 %v7533_v46, 0.0 }
 0x4d9   : > { %v7673_v29 = vpack.c.bf16 %v7643_v48, %v7642_v44 }
 0x4db   : > { %8773 = vmatmul.mubr.msk.bf16.gmra.mrb[140].mxu0 %vm1290_vm6, %v7673_v29 }
 0x4dd   : > { %v7360_v7 = vpop.f32.mrb[132].mxu1 }
 0x4de   : > { %v7361_v59 = vadd.f32 %v13884_v54, %v7360_v7  ;;  %v7362_v6 = vpop.f32.mrb[133].mxu1 }
 0x4df   : > { %v7363_v26 = vpop.f32.mrb[134].mxu1 }
 0x4e0   : > { %v7538_v9 = vadd.f32 %v13825_v49, %v7361_v59  ;;  %v7364_v19 = vadd.f32 %v13884_v54, %v7363_v26  ;;  %v7365_v11 = vpop.f32.mrb[135].mxu1 }
 0x4e2   : > { %v7541_v38 = vadd.f32 %v13830_v10, %v7364_v19  ;;  %v7644_v18 = vmax.f32 %v7538_v9, 0.0 }
 0x4e4   : > { %v7645_v60 = vmax.f32 %v7541_v38, 0.0 }
 0x4e6   : > { %v7674_v40 = vpack.c.bf16 %v7645_v60, %v7644_v18 }
 0x4e8   : > { %8776 = vmatprep.mubr.msk.bf16.mxu0 %vm1290_vm6, %v7674_v40 }
 0x4ea   : > { %v7368_v62 = vpop.f32.mrb[136].mxu1 }
 0x4eb   : > { %v7369_v41 = vadd.f32 %v13884_v54, %v7368_v62  ;;  %v7370_v61 = vpop.f32.mrb[137].mxu1 }
 0x4ec   : > { %v7371_v51 = vpop.f32.mrb[138].mxu1 }
 0x4ed   : > { %v7546_v43 = vadd.f32 %v13822_v47, %v7369_v41  ;;  %v7372_v2 = vadd.f32 %v13884_v54, %v7371_v51  ;;  %v7373_v49 = vpop.f32.mrb[139].mxu1 }
 0x4ef   : > { %v7549_v1 = vadd.f32 %v13828_v3, %v7372_v2  ;;  %v7646_v37 = vmax.f32 %v7546_v43, 0.0 }
 0x4f1   : > { %v7647_v42 = vmax.f32 %v7549_v1, 0.0 }
 0x4f3   : > { %v7675_v10 = vpack.c.bf16 %v7647_v42, %v7646_v37  ;;  %v7376_v28 = vpop.f32.mrb[140].mxu1 }
 0x4f4   : > { %v7377_v35 = vadd.f32 %v13884_v54, %v7376_v28  ;;  %v7378_v50 = vpop.f32.mrb[141].mxu1 }
 0x4f5   : > { %8777 = vmatmul.mubr.msk.bf16.gmra.mrb[144].mxu0 %vm1290_vm6, %v7675_v10  ;;  %v7379_v25 = vpop.f32.mrb[142].mxu1 }
 0x4f6   : > { %v7554_v20 = vadd.f32 %v13852_v14, %v7377_v35  ;;  %v7380_v36 = vadd.f32 %v13884_v54, %v7379_v25  ;;  %v7381_v47 = vpop.f32.mrb[143].mxu1 }
 0x4f8   : > { %v7557_v8 = vadd.f32 %v13858_v63, %v7380_v36  ;;  %v7648_v13 = vmax.f32 %v7554_v20, 0.0 }
 0x4fa   : > { %v7649_v55 = vmax.f32 %v7557_v8, 0.0 }
 0x4fc   : > { %v7676_v3 = vpack.c.bf16 %v7649_v55, %v7648_v13 }
 0x4fe   : > { %8780 = vmatprep.mubr.msk.bf16.mxu0 %vm1290_vm6, %v7676_v3 }
 0x4ff   : > { %v7384_v33 = vpop.f32.mrb[144].mxu1 }
 0x500   : > { %v7385_v58 = vadd.f32 %v13884_v54, %v7384_v33  ;;  %v7386_v17 = vpop.f32.mrb[145].mxu1 }
 0x501   : > { %v7387_v21 = vpop.f32.mrb[146].mxu1 }
 0x502   : > { %v7562_v5 = vadd.f32 %v13848_v53, %v7385_v58  ;;  %v7388_v31 = vadd.f32 %v13884_v54, %v7387_v21  ;;  %v7389_v14 = vpop.f32.mrb[147].mxu1 }
 0x504   : > { %v7565_v30 = vadd.f32 %v13856_v52, %v7388_v31  ;;  %v7650_v45 = vmax.f32 %v7562_v5, 0.0 }
 0x506   : > { %v7651_v0 = vmax.f32 %v7565_v30, 0.0 }
 0x508   : > { %v7677_v63 = vpack.c.bf16 %v7651_v0, %v7650_v45 }
 0x50a   : > { %8781 = vmatmul.mubr.msk.bf16.gmra.mrb[148].mxu0 %vm1290_vm6, %v7677_v63 }
 0x50d   : > { %v7392_v32 = vpop.f32.mrb[148].mxu1 }
 0x50e   : > { %v7393_v39 = vadd.f32 %v13884_v54, %v7392_v32  ;;  %v7394_v16 = vpop.f32.mrb[149].mxu1 }
 0x50f   : > { %v7395_v15 = vpop.f32.mrb[150].mxu1 }
 0x510   : > { %v7570_v34 = vadd.f32 %v13889_v56, %v7393_v39  ;;  %v7396_v4 = vadd.f32 %v13884_v54, %v7395_v15  ;;  %v7397_v53 = vpop.f32.mrb[151].mxu1 }
 0x512   : > { %v7573_v12 = vadd.f32 %v13895_v22, %v7396_v4  ;;  %v7652_v27 = vmax.f32 %v7570_v34, 0.0 }
 0x514   : > { %v7653_v23 = vmax.f32 %v7573_v12, 0.0 }
 0x516   : > { %v7678_v52 = vpack.c.bf16 %v7653_v23, %v7652_v27 }
 0x518   : > { %8784 = vmatprep.mubr.msk.bf16.mxu0 %vm1290_vm6, %v7678_v52 }
 0x51d   : > { %v7400_v46 = vpop.f32.mrb[152].mxu1 }
 0x51e   : > { %v7401_v44 = vadd.f32 %v13884_v54, %v7400_v46  ;;  %v7402_v48 = vpop.f32.mrb[153].mxu1 }
 0x51f   : > { %v7403_v29 = vpop.f32.mrb[154].mxu1 }
 0x520   : > { %v7578_v7 = vadd.f32 %v13886_v24, %v7401_v44  ;;  %v7404_v59 = vadd.f32 %v13884_v54, %v7403_v29  ;;  %v7405_v56 = vpop.f32.mrb[155].mxu1 }
 0x522   : > { %v7581_v6 = vadd.f32 %v13891_v57, %v7404_v59  ;;  %v7654_v26 = vmax.f32 %v7578_v7, 0.0 }
 0x524   : > { %v7655_v9 = vmax.f32 %v7581_v6, 0.0 }
 0x526   : > { %v7679_v22 = vpack.c.bf16 %v7655_v9, %v7654_v26 }
 0x528   : > { %8785 = vmatmul.mubr.msk.bf16.gmra.mrb[152].mxu0 %vm1290_vm6, %v7679_v22 }
 0x529   : > { %v7408_v19 = vpop.f32.mrb[156].mxu1 }
 0x52a   : > { %v7410_v11 = vpop.f32.mrb[157].mxu1  ;;  %v7409_v47 = vadd.f32 %v13884_v54, %v7408_v19 }
 0x52b   : > { %v7411_v38 = vpop.f32.mrb[158].mxu1 }
 0x52c   : > { %v7413_v18 = vpop.f32.mrb[159].mxu1  ;;  %v7412_v33 = vadd.f32 %v13884_v54, %v7411_v38 }
 0x53b   : > { %v7416_v60 = vpop.f32.mrb[160].mxu1 }
 0x53c   : > { %v7418_v40 = vpop.f32.mrb[161].mxu1  ;;  %v7417_v36 = vadd.f32 %v13884_v54, %v7416_v60 }
 0x53d   : > { %v7419_v62 = vpop.f32.mrb[162].mxu1 }
 0x53e   : > { %v7421_v41 = vpop.f32.mrb[163].mxu1  ;;  %v7420_v13 = vadd.f32 %v13884_v54, %v7419_v62 }
 0x547   : > { %v7424_v61 = vpop.f32.mrb[164].mxu1 }
 0x548   : > { %v7426_v24 = vpop.f32.mrb[165].mxu1  ;;  %v7425_v39 = vadd.f32 %v13884_v54, %v7424_v61 }
 0x549   : > { %v7427_v51 = vpop.f32.mrb[166].mxu1  ;;  %v13981_v24 = vld [vmem:[%s14110_s9] ss:$0 sm:$0xff] }
 0x54a   : > { %v7429_v43 = vpop.f32.mrb[167].mxu1  ;;  %v7428_v12 = vadd.f32 %v13884_v54, %v7427_v51 }
 0x557   : > { %v7432_v2 = vpop.f32.mrb[168].mxu1 }
 0x558   : > { %v7434_v49 = vpop.f32.mrb[169].mxu1  ;;  %v7433_v63 = vadd.f32 %v13884_v54, %v7432_v2 }
 0x559   : > { %v7435_v57 = vpop.f32.mrb[170].mxu1 }
 0x55a   : > { %v7437_v1 = vpop.f32.mrb[171].mxu1  ;;  %v7436_v34 = vadd.f32 %v13884_v54, %v7435_v57 }
 0x55f   : > { %v7440_v37 = vpop.f32.mrb[172].mxu1 }
 0x560   : > { %v7442_v42 = vpop.f32.mrb[173].mxu1  ;;  %v7441_v26 = vadd.f32 %v13884_v54, %v7440_v37 }
 0x561   : > { %v7443_v10 = vpop.f32.mrb[174].mxu1 }
 0x562   : > { %v7445_v28 = vpop.f32.mrb[175].mxu1  ;;  %v7444_v18 = vadd.f32 %v13884_v54, %v7443_v10 }
 0x567   : > { %v7448_v35 = vpop.f32.mrb[176].mxu1 }
 0x568   : > { %v7450_v50 = vpop.f32.mrb[177].mxu1  ;;  %v7449_v56 = vadd.f32 %v13884_v54, %v7448_v35 }
 0x569   : > { %v7451_v25 = vpop.f32.mrb[178].mxu1 }
 0x56a   : > { %v7453_v20 = vpop.f32.mrb[179].mxu1  ;;  %v7452_v19 = vadd.f32 %v13884_v54, %v7451_v25 }
 0x56f   : > { %v8750_v8 = vpop.f32.mrb[180].mxu1 }
 0x570   : > { %v7594_v55 = vadd.f32 %v8750_v8, %v7417_v36  ;;  %v7585_v3 = vpop.f32.mrb[181].mxu1 }
 0x571   : > { %v7586_v58 = vadd.f32 %v7585_v3, %v7409_v47  ;;  %v8751_v17 = vpop.f32.mrb[182].mxu1 }
 0x572   : > { %v7597_v21 = vadd.f32 %v8751_v17, %v7420_v13  ;;  %v7588_v5 = vpop.f32.mrb[183].mxu1  ;;  %v7658_v14 = vmax.f32 %v7594_v55, 0.0 }
 0x573   : > { %v7589_v31 = vadd.f32 %v7588_v5, %v7412_v33  ;;  %v7656_v45 = vmax.f32 %v7586_v58, 0.0 }
 0x574   : > { %v7659_v30 = vmax.f32 %v7597_v21, 0.0 }
 0x575   : > { %v7657_v0 = vmax.f32 %v7589_v31, 0.0 }
 0x576   : > { %v7681_v32 = vpack.c.bf16 %v7659_v30, %v7658_v14 }
 0x577   : > { %v7680_v16 = vpack.c.bf16 %v7657_v0, %v7656_v45  ;;  %v8754_v15 = vpop.f32.mrb[184].mxu1 }
 0x578   : > { %v7610_v4 = vadd.f32 %v8754_v15, %v7433_v63  ;;  %v7601_v53 = vpop.f32.mrb[185].mxu1 }
 0x579   : > { %v7602_v27 = vadd.f32 %v7601_v53, %v7425_v39  ;;  %v8755_v23 = vpop.f32.mrb[186].mxu1  ;;  %8788 = vmatprep.mubr.msk.bf16.mxu0 %vm1290_vm6, %v7680_v16 }
 0x57a   : > { %v7613_v52 = vadd.f32 %v8755_v23, %v7436_v34  ;;  %v7604_v46 = vpop.f32.mrb[187].mxu1  ;;  %8789 = vmatmul.mubr.msk.bf16.gmra.mrb[156].mxu0 %vm1290_vm6, %v7681_v32  ;;  %v7662_v48 = vmax.f32 %v7610_v4, 0.0 }
 0x57b   : > { %v7605_v44 = vadd.f32 %v7604_v46, %v7428_v12  ;;  %v7660_v7 = vmax.f32 %v7602_v27, 0.0 }
 0x57c   : > { %v7663_v29 = vmax.f32 %v7613_v52, 0.0 }
 0x57d   : > { %v7661_v59 = vmax.f32 %v7605_v44, 0.0 }
 0x57e   : > { %v7683_v6 = vpack.c.bf16 %v7663_v29, %v7662_v48 }
 0x57f   : > { %v7682_v9 = vpack.c.bf16 %v7661_v59, %v7660_v7  ;;  %v8758_v22 = vpop.f32.mrb[188].mxu1 }
 0x580   : > { %v7626_v11 = vadd.f32 %v8758_v22, %v7449_v56  ;;  %v7617_v38 = vpop.f32.mrb[189].mxu1 }
 0x581   : > { %v7618_v60 = vadd.f32 %v7617_v38, %v7441_v26  ;;  %v8759_v40 = vpop.f32.mrb[190].mxu1  ;;  %8792 = vmatprep.mubr.msk.bf16.mxu0 %vm1290_vm6, %v7682_v9 }
 0x582   : > { %v7629_v62 = vadd.f32 %v8759_v40, %v7452_v19  ;;  %v7620_v41 = vpop.f32.mrb[191].mxu1  ;;  %8793 = vmatmul.mubr.msk.bf16.gmra.mrb[160].mxu0 %vm1290_vm6, %v7683_v6  ;;  %v7666_v51 = vmax.f32 %v7626_v11, 0.0 }
 0x583   : > { %v7621_v61 = vadd.f32 %v7620_v41, %v7444_v18  ;;  %v7664_v2 = vmax.f32 %v7618_v60, 0.0 }
 0x584   : > { %v7667_v43 = vmax.f32 %v7629_v62, 0.0 }
 0x585   : > { %v7665_v49 = vmax.f32 %v7621_v61, 0.0  ;;  %v8766_v54 = vpop.f32.mrb[132].mxu0 }
 0x586   : > { %v7685_v57 = vpack.c.bf16 %v7667_v43, %v7666_v51  ;;  %v7806_v1 = vadd.f32 %v8766_v54, %v13981_v24  ;;  %v7797_v37 = vpop.f32.mrb[133].mxu0 }
 0x587   : > { %v7684_v42 = vpack.c.bf16 %v7665_v49, %v7664_v2  ;;  %v7798_v10 = vadd.f32 %v13981_v24, %v7797_v37  ;;  %v8767_v28 = vpop.f32.mrb[134].mxu0 }
 0x588   : > { %7943 = vst.msk [vmem:[%s13986_s26 + $0x10] sm:$0xff] %vm7940_vm14, %v7806_v1  ;;  %v7809_v35 = vadd.f32 %v8767_v28, %v13981_v24  ;;  %v7800_v50 = vpop.f32.mrb[135].mxu0 }
 0x589   : > { %7941 = vst.msk [vmem:[%s13986_s26] sm:$0xff] %vm7940_vm14, %v7798_v10  ;;  %8796 = vmatprep.mubr.msk.bf16.mxu0 %vm1290_vm6, %v7684_v42  ;;  %v7801_v25 = vadd.f32 %v13981_v24, %v7800_v50 }
 0x58a   : > { %7944 = vst.msk [vmem:[%s13986_s26 + $0x18] sm:$0xff] %vm7940_vm14, %v7809_v35  ;;  %8797 = vmatmul.mubr.msk.bf16.gmra.mrb[164].mxu0 %vm1290_vm6, %v7685_v57 }
 0x58b   : > { %7942 = vst.msk [vmem:[%s13986_s26 + $0x8] sm:$0xff] %vm7940_vm14, %v7801_v25 }
 0x598   : > { %v8770_v20 = vpop.f32.mrb[136].mxu0 }
 0x599   : > { %v7822_v36 = vadd.f32 %v8770_v20, %v13981_v24  ;;  %v7813_v47 = vpop.f32.mrb[137].mxu0 }
 0x59a   : > { %v7814_v8 = vadd.f32 %v13981_v24, %v7813_v47  ;;  %v8771_v13 = vpop.f32.mrb[138].mxu0 }
 0x59b   : > { %7947 = vst.msk [vmem:[%s13986_s26 + $0x30] sm:$0xff] %vm7940_vm14, %v7822_v36  ;;  %v7825_v55 = vadd.f32 %v8771_v13, %v13981_v24  ;;  %v7816_v3 = vpop.f32.mrb[139].mxu0 }
 0x59c   : > { %7945 = vst.msk [vmem:[%s13986_s26 + $0x20] sm:$0xff] %vm7940_vm14, %v7814_v8  ;;  %v7817_v33 = vadd.f32 %v13981_v24, %v7816_v3 }
 0x59d   : > { %7948 = vst.msk [vmem:[%s13986_s26 + $0x38] sm:$0xff] %vm7940_vm14, %v7825_v55 }
 0x59e   : > { %7946 = vst.msk [vmem:[%s13986_s26 + $0x28] sm:$0xff] %vm7940_vm14, %v7817_v33 }
 0x5ae   : > { %v8774_v58 = vpop.f32.mrb[140].mxu0 }
 0x5af   : > { %v7838_v17 = vadd.f32 %v8774_v58, %v13981_v24  ;;  %v7829_v21 = vpop.f32.mrb[141].mxu0 }
 0x5b0   : > { %v7830_v5 = vadd.f32 %v13981_v24, %v7829_v21  ;;  %v8775_v31 = vpop.f32.mrb[142].mxu0 }
 0x5b1   : > { %7951 = vst.msk [vmem:[%s13986_s26 + $0x50] sm:$0xff] %vm7940_vm14, %v7838_v17  ;;  %v7841_v14 = vadd.f32 %v8775_v31, %v13981_v24  ;;  %v7832_v30 = vpop.f32.mrb[143].mxu0 }
 0x5b2   : > { %7949 = vst.msk [vmem:[%s13986_s26 + $0x40] sm:$0xff] %vm7940_vm14, %v7830_v5  ;;  %v7833_v45 = vadd.f32 %v13981_v24, %v7832_v30 }
 0x5b3   : > { %7952 = vst.msk [vmem:[%s13986_s26 + $0x58] sm:$0xff] %vm7940_vm14, %v7841_v14 }
 0x5b4   : > { %7950 = vst.msk [vmem:[%s13986_s26 + $0x48] sm:$0xff] %vm7940_vm14, %v7833_v45 }
 0x5c8   : > { %v8778_v0 = vpop.f32.mrb[144].mxu0 }
 0x5c9   : > { %v7854_v63 = vadd.f32 %v8778_v0, %v13981_v24  ;;  %v7845_v32 = vpop.f32.mrb[145].mxu0 }
 0x5ca   : > { %v7846_v39 = vadd.f32 %v13981_v24, %v7845_v32  ;;  %v8779_v16 = vpop.f32.mrb[146].mxu0 }
 0x5cb   : > { %7955 = vst.msk [vmem:[%s13986_s26 + $0x70] sm:$0xff] %vm7940_vm14, %v7854_v63  ;;  %v7857_v15 = vadd.f32 %v8779_v16, %v13981_v24  ;;  %v7848_v34 = vpop.f32.mrb[147].mxu0 }
 0x5cc   : > { %7953 = vst.msk [vmem:[%s13986_s26 + $0x60] sm:$0xff] %vm7940_vm14, %v7846_v39  ;;  %v7849_v4 = vadd.f32 %v13981_v24, %v7848_v34 }
 0x5cd   : > { %7956 = vst.msk [vmem:[%s13986_s26 + $0x78] sm:$0xff] %vm7940_vm14, %v7857_v15 }
 0x5ce   : > { %7954 = vst.msk [vmem:[%s13986_s26 + $0x68] sm:$0xff] %vm7940_vm14, %v7849_v4 }
 0x5dd   : > { %v8782_v53 = vpop.f32.mrb[148].mxu0 }
 0x5de   : > { %v7870_v12 = vadd.f32 %v8782_v53, %v13981_v24  ;;  %v7861_v27 = vpop.f32.mrb[149].mxu0 }
 0x5df   : > { %v7862_v23 = vadd.f32 %v13981_v24, %v7861_v27  ;;  %v8783_v52 = vpop.f32.mrb[150].mxu0 }
 0x5e0   : > { %7959 = vst.msk [vmem:[%s13986_s26 + $0x90] sm:$0xff] %vm7940_vm14, %v7870_v12  ;;  %v7873_v46 = vadd.f32 %v8783_v52, %v13981_v24  ;;  %v7864_v44 = vpop.f32.mrb[151].mxu0 }
 0x5e1   : > { %7957 = vst.msk [vmem:[%s13986_s26 + $0x80] sm:$0xff] %vm7940_vm14, %v7862_v23  ;;  %v7865_v48 = vadd.f32 %v13981_v24, %v7864_v44 }
 0x5e2   : > { %7960 = vst.msk [vmem:[%s13986_s26 + $0x98] sm:$0xff] %vm7940_vm14, %v7873_v46 }
 0x5e3   : > { %7958 = vst.msk [vmem:[%s13986_s26 + $0x88] sm:$0xff] %vm7940_vm14, %v7865_v48 }
 0x5fb   : > { %v8786_v29 = vpop.f32.mrb[152].mxu0 }
 0x5fc   : > { %v7886_v7 = vadd.f32 %v8786_v29, %v13981_v24  ;;  %v7877_v59 = vpop.f32.mrb[153].mxu0 }
 0x5fd   : > { %v7878_v56 = vadd.f32 %v13981_v24, %v7877_v59  ;;  %v8787_v6 = vpop.f32.mrb[154].mxu0 }
 0x5fe   : > { %7963 = vst.msk [vmem:[%s13986_s26 + $0xb0] sm:$0xff] %vm7940_vm14, %v7886_v7  ;;  %v7889_v26 = vadd.f32 %v8787_v6, %v13981_v24  ;;  %v7880_v9 = vpop.f32.mrb[155].mxu0 }
 0x5ff   : > { %7961 = vst.msk [vmem:[%s13986_s26 + $0xa0] sm:$0xff] %vm7940_vm14, %v7878_v56  ;;  %v7881_v22 = vadd.f32 %v13981_v24, %v7880_v9 }
 0x600   : > { %7964 = vst.msk [vmem:[%s13986_s26 + $0xb8] sm:$0xff] %vm7940_vm14, %v7889_v26 }
 0x601   : > { %7962 = vst.msk [vmem:[%s13986_s26 + $0xa8] sm:$0xff] %vm7940_vm14, %v7881_v22 }
 0x64d   : > { %v8790_v19 = vpop.f32.mrb[156].mxu0 }
 0x64e   : > { %v7902_v11 = vadd.f32 %v8790_v19, %v13981_v24  ;;  %v7893_v38 = vpop.f32.mrb[157].mxu0 }
 0x64f   : > { %v7894_v18 = vadd.f32 %v13981_v24, %v7893_v38  ;;  %v8791_v60 = vpop.f32.mrb[158].mxu0 }
 0x650   : > { %7967 = vst.msk [vmem:[%s13986_s26 + $0xd0] sm:$0xff] %vm7940_vm14, %v7902_v11  ;;  %v7905_v40 = vadd.f32 %v8791_v60, %v13981_v24  ;;  %v7896_v62 = vpop.f32.mrb[159].mxu0 }
 0x651   : > { %7965 = vst.msk [vmem:[%s13986_s26 + $0xc0] sm:$0xff] %vm7940_vm14, %v7894_v18  ;;  %v7897_v41 = vadd.f32 %v13981_v24, %v7896_v62 }
 0x652   : > { %7968 = vst.msk [vmem:[%s13986_s26 + $0xd8] sm:$0xff] %vm7940_vm14, %v7905_v40 }
 0x653   : > { %7966 = vst.msk [vmem:[%s13986_s26 + $0xc8] sm:$0xff] %vm7940_vm14, %v7897_v41 }
 0x655   : > { %v8794_v61 = vpop.f32.mrb[160].mxu0 }
 0x656   : > { %v7918_v51 = vadd.f32 %v8794_v61, %v13981_v24  ;;  %v7909_v43 = vpop.f32.mrb[161].mxu0 }
 0x657   : > { %v7910_v2 = vadd.f32 %v13981_v24, %v7909_v43  ;;  %v8795_v49 = vpop.f32.mrb[162].mxu0 }
 0x658   : > { %7971 = vst.msk [vmem:[%s13986_s26 + $0xf0] sm:$0xff] %vm7940_vm14, %v7918_v51  ;;  %v7921_v54 = vadd.f32 %v8795_v49, %v13981_v24  ;;  %v7912_v57 = vpop.f32.mrb[163].mxu0 }
 0x659   : > { %7969 = vst.msk [vmem:[%s13986_s26 + $0xe0] sm:$0xff] %vm7940_vm14, %v7910_v2  ;;  %v7913_v1 = vadd.f32 %v13981_v24, %v7912_v57 }
 0x65a   : > { %7972 = vst.msk [vmem:[%s13986_s26 + $0xf8] sm:$0xff] %vm7940_vm14, %v7921_v54 }
 0x65b   : > { %7970 = vst.msk [vmem:[%s13986_s26 + $0xe8] sm:$0xff] %vm7940_vm14, %v7913_v1 }
 0x65d   : > { %v8798_v37 = vpop.f32.mrb[164].mxu0 }
 0x65e   : > { %v7934_v42 = vadd.f32 %v8798_v37, %v13981_v24  ;;  %v7925_v10 = vpop.f32.mrb[165].mxu0 }
 0x65f   : > { %v7926_v28 = vadd.f32 %v13981_v24, %v7925_v10  ;;  %v8799_v35 = vpop.f32.mrb[166].mxu0 }
 0x660   : > { %7975 = vst.msk [vmem:[%s13986_s26 + $0x110] sm:$0xff] %vm7940_vm14, %v7934_v42  ;;  %v7937_v50 = vadd.f32 %v8799_v35, %v13981_v24  ;;  %v7928_v25 = vpop.f32.mrb[167].mxu0 }
 0x661   : > { %7973 = vst.msk [vmem:[%s13986_s26 + $0x100] sm:$0xff] %vm7940_vm14, %v7926_v28  ;;  %v7929_v20 = vadd.f32 %v13981_v24, %v7928_v25 }
 0x662   : > { %7976 = vst.msk [vmem:[%s13986_s26 + $0x118] sm:$0xff] %vm7940_vm14, %v7937_v50 }
 0x663   : > { %7974 = vst.msk [vmem:[%s13986_s26 + $0x108] sm:$0xff] %vm7940_vm14, %v7929_v20 }
 0x664 PF: > { %s22_s17 = sadd.s32 1, %s8987_s17  }
 0x665   : > { %p19_p4 = scmp.ge.s32.totalorder %s22_s17, 4  }
 0x667   :  { %21 = sbr.rel (!%p19_p4) target bundleno = 1 (0x1), region = 102 }

</bundles_post_ra>
